<compile_context>
chip_gen: v7x
topology: tpu7x:2x2x1
jax: 0.10.0
libtpu: 0.0.40
codegen_flags: <defaults>
</compile_context>

<pallas_src>
import math

import numpy as np
import jax
import jax.numpy as jnp
from jax.experimental import pallas as pl
from jax.experimental.pallas import tpu as pltpu

_GN_EPS = 1e-5  # PyTorch nn.GroupNorm default


# ---------------------------------------------------------------------------
# in-kernel helpers (operate on (T, C) values and weight refs)
# ---------------------------------------------------------------------------
def _relu(x):
    return jnp.maximum(x, 0.0)


def _group_norm(x, gn_ref):
    # nn.GroupNorm(num_groups=1, C): normalize over all (C, T) elements of the sample,
    # then per-channel affine.  x: (T, C) f32, gn_ref: (2, C) f32 (row0=gamma, row1=beta).
    gn = gn_ref[...]
    denom = float(x.shape[0] * x.shape[1])
    s = jnp.sum(x, axis=1, keepdims=True)                       # (T, 1)  lane reduce
    mu = jnp.sum(s, axis=0, keepdims=True) / denom              # (1, 1)
    d = x - mu
    s2 = jnp.sum(d * d, axis=1, keepdims=True)
    var = jnp.sum(s2, axis=0, keepdims=True) / denom
    xn = d * jax.lax.rsqrt(var + _GN_EPS)
    return xn * gn[0:1, :] + gn[1:2, :]


def _conv3(x, w_ref):
    # nn.Conv1d(kernel=3, padding=1, stride=1, bias=False) on a single sample.
    # x: (T, Cin) f32, w_ref: (3, Cin, Cout) bf16.  Three shifted MXU matmuls, f32 accum.
    xb = x.astype(jnp.bfloat16)
    z = jnp.zeros((1, x.shape[1]), jnp.bfloat16)
    xm = jnp.concatenate([z, xb[:-1, :]], axis=0)               # x[t-1]
    xp = jnp.concatenate([xb[1:, :], z], axis=0)                # x[t+1]
    y = jnp.dot(xm, w_ref[0], preferred_element_type=jnp.float32)
    y = y + jnp.dot(xb, w_ref[1], preferred_element_type=jnp.float32)
    y = y + jnp.dot(xp, w_ref[2], preferred_element_type=jnp.float32)
    return y


def _decimate(x, d_ref):
    # stride-2: y[t] = y_stride1[2t]  (exact selection matrix, applied on the MXU)
    return jnp.dot(d_ref[...], x, preferred_element_type=jnp.float32)


def _res1d(x, bp, d_ref):
    # Res1d: conv1 -> GN -> ReLU -> conv2 -> GN ; (+ optional 1x1-conv/GN downsample) ; add ; ReLU
    out = _conv3(x, bp['w1'])
    if d_ref is not None:                                       # conv1 carries the stride
        out = _decimate(out, d_ref)
    out = _relu(_group_norm(out, bp['gn1']))
    out = _conv3(out, bp['w2'])
    out = _group_norm(out, bp['gn2'])
    if bp['down'] is not None:
        sc = jnp.dot(x.astype(jnp.bfloat16), bp['down']['w'][...],
                     preferred_element_type=jnp.float32)        # 1x1 conv
        if d_ref is not None:
            sc = _decimate(sc, d_ref)
        sc = _group_norm(sc, bp['down']['gn'])
        x = sc
    return _relu(out + x)


def _lateral(x, lp):
    # Conv1d(k=3, pad=1) + GroupNorm, act=False
    return _group_norm(_conv3(x, lp['w']), lp['gn'])


# ---------------------------------------------------------------------------
# fused ActorNet forward: one pallas_call, grid over actors
# ---------------------------------------------------------------------------
def actor_net_forward(params, actors):
    # actors: (N, C_in, T) float32  (PyTorch Conv1d layout); returns (N, hidden)
    x = jnp.transpose(actors, (0, 2, 1)).astype(jnp.float32)    # (N, T, C_in) channel-last
    N, T, C_in = x.shape
    H = params['output']['w1'].shape[-1]

    leaves, treedef = jax.tree_util.tree_flatten(params)

    def kernel(x_ref, *rest):
        w_refs = rest[:-1]
        o_ref = rest[-1]
        p = jax.tree_util.tree_unflatten(treedef, list(w_refs))  # pytree of refs

        cur = x_ref[0].astype(jnp.float32)                       # (T, C_in) for this actor

        # ----- FPN backbone groups (Res1d x2 each; groups 1..3 start with stride 2) -----
        outs = []
        for gi, grp in enumerate(p['groups']):
            d_ref = p['decim'][gi - 1] if gi > 0 else None
            cur = _res1d(cur, grp[0], d_ref)
            cur = _res1d(cur, grp[1], None)
            outs.append(cur)

        # ----- FPN top-down merge: lateral + 2x linear upsample (align_corners=False) -----
        y = _lateral(outs[-1], p['lateral'][-1])
        for step, i in enumerate(range(len(outs) - 2, -1, -1)):
            y = jnp.dot(p['up'][step][...], y, preferred_element_type=jnp.float32)
            y = y + _lateral(outs[i], p['lateral'][i])

        # ----- output Res1d, then take the last timestep -----
        y = _res1d(y, p['output'], None)
        o_ref[...] = jnp.reshape(y[y.shape[0] - 1:, :], (1, 1, y.shape[1]))

    in_specs = [pl.BlockSpec((1, T, C_in), lambda i: (i, 0, 0))]
    for leaf in leaves:
        # full-array weight blocks with a constant index map -> loaded once, resident in VMEM
        in_specs.append(pl.BlockSpec(leaf.shape, lambda i, nd=leaf.ndim: (0,) * nd))

    out = pl.pallas_call(
        kernel,
        grid=(N,),
        in_specs=in_specs,
        out_specs=pl.BlockSpec((1, 1, H), lambda i: (i, 0, 0)),
        out_shape=jax.ShapeDtypeStruct((N, 1, H), jnp.float32),
        compiler_params=pltpu.CompilerParams(
            dimension_semantics=("parallel",),
            vmem_limit_bytes=32 * 1024 * 1024,
        ),
    )(x, *leaves)
    return out.reshape(N, H)


# ---------------------------------------------------------------------------
# structural constant matrices (exact, built on host)
# ---------------------------------------------------------------------------
def _decim_matrix(t_in):
    # selects even positions of a stride-1 conv output == stride-2 conv with padding=1
    m = np.zeros((t_in // 2, t_in), np.float32)
    m[np.arange(t_in // 2), 2 * np.arange(t_in // 2)] = 1.0
    return jnp.asarray(m)


def _interp_matrix(t_in):
    # F.interpolate(scale_factor=2, mode='linear', align_corners=False) as a (2T, T) matrix
    t_out = 2 * t_in
    m = np.zeros((t_out, t_in), np.float32)
    for o in range(t_out):
        src = max(0.0, (o + 0.5) * 0.5 - 0.5)
        i0 = min(int(math.floor(src)), t_in - 1)
        i1 = min(i0 + 1, t_in - 1)
        lam = src - i0
        m[o, i0] += 1.0 - lam
        m[o, i1] += lam
    return jnp.asarray(m)


# ---------------------------------------------------------------------------
# deterministic synthetic parameter init (matches ActorNet architecture)
# ---------------------------------------------------------------------------
def init_params(key, n_in=3, hidden=128, n_fpn_scale=4, t_in=16):
    n_out = [2 ** (5 + s) for s in range(n_fpn_scale)]           # [32, 64, 128, 256]
    keys = iter(jax.random.split(key, 128))

    def conv_w(cin, cout, k=3):
        w = jax.random.normal(next(keys), (k, cin, cout), jnp.float32) / math.sqrt(cin * k)
        return w.astype(jnp.bfloat16)                            # bf16 MXU operand

    def lin_w(cin, cout):
        w = jax.random.normal(next(keys), (cin, cout), jnp.float32) / math.sqrt(cin)
        return w.astype(jnp.bfloat16)

    def gn_p(c):
        # PyTorch GroupNorm default affine init: gamma=1, beta=0 ; packed as one (2, C) row-pair
        return jnp.concatenate([jnp.ones((1, c), jnp.float32),
                                jnp.zeros((1, c), jnp.float32)], axis=0)

    def res_block(cin, cout, downsample):
        p = {'w1': conv_w(cin, cout), 'gn1': gn_p(cout),
             'w2': conv_w(cout, cout), 'gn2': gn_p(cout), 'down': None}
        if downsample:
            p['down'] = {'w': lin_w(cin, cout), 'gn': gn_p(cout)}
        return p

    groups = []
    cin = n_in
    for i, cout in enumerate(n_out):
        # first block: stride 2 for i>0 (always has downsample: channel change / stride)
        blocks = [res_block(cin, cout, downsample=True),
                  res_block(cout, cout, downsample=False)]
        groups.append(blocks)
        cin = cout

    lateral = [{'w': conv_w(c, hidden), 'gn': gn_p(hidden)} for c in n_out]
    output = res_block(hidden, hidden, downsample=False)

    decim, up = [], []
    t = t_in
    for _ in range(n_fpn_scale - 1):
        decim.append(_decim_matrix(t))
        t //= 2
    for _ in range(n_fpn_scale - 1):
        up.append(_interp_matrix(t))
        t *= 2

    return {'groups': groups, 'lateral': lateral, 'output': output,
            'decim': decim, 'up': up}


# ---------------------------------------------------------------------------
if __name__ == "__main__":
    N_ACTORS, C_IN, T, HIDDEN, N_SCALE = 8, 3, 16, 128, 4

    root = jax.random.PRNGKey(0)
    k_par, k_x = jax.random.split(root)
    params = init_params(k_par, n_in=C_IN, hidden=HIDDEN, n_fpn_scale=N_SCALE, t_in=T)

    # actors in PyTorch Conv1d layout: (num_actors, channels=3, timesteps=16)
    actors = jax.random.normal(k_x, (N_ACTORS, C_IN, T), jnp.float32)

    out = actor_net_forward(params, actors)
    out = jax.block_until_ready(out)

    assert out.shape == (N_ACTORS, HIDDEN)
    assert bool(jnp.all(jnp.isfinite(out)))
    print("KERNEL_OK")
</pallas_src>

<mosaic_0001>
module attributes {stable_mosaic.version = 11 : i64} {
  func.func @kernel(%arg0: i32, %arg1: memref<1x16x3xf32, #tpu.memory_space<vmem>>, %arg2: memref<8x16xf32, #tpu.memory_space<vmem>>, %arg3: memref<4x8xf32, #tpu.memory_space<vmem>>, %arg4: memref<2x4xf32, #tpu.memory_space<vmem>>, %arg5: memref<2x32xf32, #tpu.memory_space<vmem>>, %arg6: memref<3x32xbf16, #tpu.memory_space<vmem>>, %arg7: memref<2x32xf32, #tpu.memory_space<vmem>>, %arg8: memref<2x32xf32, #tpu.memory_space<vmem>>, %arg9: memref<3x3x32xbf16, #tpu.memory_space<vmem>>, %arg10: memref<3x32x32xbf16, #tpu.memory_space<vmem>>, %arg11: memref<2x32xf32, #tpu.memory_space<vmem>>, %arg12: memref<2x32xf32, #tpu.memory_space<vmem>>, %arg13: memref<3x32x32xbf16, #tpu.memory_space<vmem>>, %arg14: memref<3x32x32xbf16, #tpu.memory_space<vmem>>, %arg15: memref<2x64xf32, #tpu.memory_space<vmem>>, %arg16: memref<32x64xbf16, #tpu.memory_space<vmem>>, %arg17: memref<2x64xf32, #tpu.memory_space<vmem>>, %arg18: memref<2x64xf32, #tpu.memory_space<vmem>>, %arg19: memref<3x32x64xbf16, #tpu.memory_space<vmem>>, %arg20: memref<3x64x64xbf16, #tpu.memory_space<vmem>>, %arg21: memref<2x64xf32, #tpu.memory_space<vmem>>, %arg22: memref<2x64xf32, #tpu.memory_space<vmem>>, %arg23: memref<3x64x64xbf16, #tpu.memory_space<vmem>>, %arg24: memref<3x64x64xbf16, #tpu.memory_space<vmem>>, %arg25: memref<2x128xf32, #tpu.memory_space<vmem>>, %arg26: memref<64x128xbf16, #tpu.memory_space<vmem>>, %arg27: memref<2x128xf32, #tpu.memory_space<vmem>>, %arg28: memref<2x128xf32, #tpu.memory_space<vmem>>, %arg29: memref<3x64x128xbf16, #tpu.memory_space<vmem>>, %arg30: memref<3x128x128xbf16, #tpu.memory_space<vmem>>, %arg31: memref<2x128xf32, #tpu.memory_space<vmem>>, %arg32: memref<2x128xf32, #tpu.memory_space<vmem>>, %arg33: memref<3x128x128xbf16, #tpu.memory_space<vmem>>, %arg34: memref<3x128x128xbf16, #tpu.memory_space<vmem>>, %arg35: memref<2x256xf32, #tpu.memory_space<vmem>>, %arg36: memref<128x256xbf16, #tpu.memory_space<vmem>>, %arg37: memref<2x256xf32, #tpu.memory_space<vmem>>, %arg38: memref<2x256xf32, #tpu.memory_space<vmem>>, %arg39: memref<3x128x256xbf16, #tpu.memory_space<vmem>>, %arg40: memref<3x256x256xbf16, #tpu.memory_space<vmem>>, %arg41: memref<2x256xf32, #tpu.memory_space<vmem>>, %arg42: memref<2x256xf32, #tpu.memory_space<vmem>>, %arg43: memref<3x256x256xbf16, #tpu.memory_space<vmem>>, %arg44: memref<3x256x256xbf16, #tpu.memory_space<vmem>>, %arg45: memref<2x128xf32, #tpu.memory_space<vmem>>, %arg46: memref<3x32x128xbf16, #tpu.memory_space<vmem>>, %arg47: memref<2x128xf32, #tpu.memory_space<vmem>>, %arg48: memref<3x64x128xbf16, #tpu.memory_space<vmem>>, %arg49: memref<2x128xf32, #tpu.memory_space<vmem>>, %arg50: memref<3x128x128xbf16, #tpu.memory_space<vmem>>, %arg51: memref<2x128xf32, #tpu.memory_space<vmem>>, %arg52: memref<3x256x128xbf16, #tpu.memory_space<vmem>>, %arg53: memref<2x128xf32, #tpu.memory_space<vmem>>, %arg54: memref<2x128xf32, #tpu.memory_space<vmem>>, %arg55: memref<3x128x128xbf16, #tpu.memory_space<vmem>>, %arg56: memref<3x128x128xbf16, #tpu.memory_space<vmem>>, %arg57: memref<4x2xf32, #tpu.memory_space<vmem>>, %arg58: memref<8x4xf32, #tpu.memory_space<vmem>>, %arg59: memref<16x8xf32, #tpu.memory_space<vmem>>, %arg60: memref<1x1x128xf32, #tpu.memory_space<vmem>>) attributes {dimension_semantics = [#tpu.dimension_semantics<parallel>], iteration_bounds = array<i64: 8>, scalar_prefetch = 0 : i64, scratch_operands = 0 : i64, tpu.core_type = #tpu.core_type<tc>, window_params = [{transform_indices = @transform_0, window_bounds = array<i64: 1, 16, 3>}, {pipeline_mode = #tpu.pipeline_mode<synchronous>, transform_indices = @transform_1, window_bounds = array<i64: 8, 16>}, {pipeline_mode = #tpu.pipeline_mode<synchronous>, transform_indices = @transform_2, window_bounds = array<i64: 4, 8>}, {pipeline_mode = #tpu.pipeline_mode<synchronous>, transform_indices = @transform_3, window_bounds = array<i64: 2, 4>}, {pipeline_mode = #tpu.pipeline_mode<synchronous>, transform_indices = @transform_4, window_bounds = array<i64: 2, 32>}, {pipeline_mode = #tpu.pipeline_mode<synchronous>, transform_indices = @transform_5, window_bounds = array<i64: 3, 32>}, {pipeline_mode = #tpu.pipeline_mode<synchronous>, transform_indices = @transform_6, window_bounds = array<i64: 2, 32>}, {pipeline_mode = #tpu.pipeline_mode<synchronous>, transform_indices = @transform_7, window_bounds = array<i64: 2, 32>}, {pipeline_mode = #tpu.pipeline_mode<synchronous>, transform_indices = @transform_8, window_bounds = array<i64: 3, 3, 32>}, {pipeline_mode = #tpu.pipeline_mode<synchronous>, transform_indices = @transform_9, window_bounds = array<i64: 3, 32, 32>}, {pipeline_mode = #tpu.pipeline_mode<synchronous>, transform_indices = @transform_10, window_bounds = array<i64: 2, 32>}, {pipeline_mode = #tpu.pipeline_mode<synchronous>, transform_indices = @transform_11, window_bounds = array<i64: 2, 32>}, {pipeline_mode = #tpu.pipeline_mode<synchronous>, transform_indices = @transform_12, window_bounds = array<i64: 3, 32, 32>}, {pipeline_mode = #tpu.pipeline_mode<synchronous>, transform_indices = @transform_13, window_bounds = array<i64: 3, 32, 32>}, {pipeline_mode = #tpu.pipeline_mode<synchronous>, transform_indices = @transform_14, window_bounds = array<i64: 2, 64>}, {pipeline_mode = #tpu.pipeline_mode<synchronous>, transform_indices = @transform_15, window_bounds = array<i64: 32, 64>}, {pipeline_mode = #tpu.pipeline_mode<synchronous>, transform_indices = @transform_16, window_bounds = array<i64: 2, 64>}, {pipeline_mode = #tpu.pipeline_mode<synchronous>, transform_indices = @transform_17, window_bounds = array<i64: 2, 64>}, {pipeline_mode = #tpu.pipeline_mode<synchronous>, transform_indices = @transform_18, window_bounds = array<i64: 3, 32, 64>}, {pipeline_mode = #tpu.pipeline_mode<synchronous>, transform_indices = @transform_19, window_bounds = array<i64: 3, 64, 64>}, {pipeline_mode = #tpu.pipeline_mode<synchronous>, transform_indices = @transform_20, window_bounds = array<i64: 2, 64>}, {pipeline_mode = #tpu.pipeline_mode<synchronous>, transform_indices = @transform_21, window_bounds = array<i64: 2, 64>}, {pipeline_mode = #tpu.pipeline_mode<synchronous>, transform_indices = @transform_22, window_bounds = array<i64: 3, 64, 64>}, {pipeline_mode = #tpu.pipeline_mode<synchronous>, transform_indices = @transform_23, window_bounds = array<i64: 3, 64, 64>}, {pipeline_mode = #tpu.pipeline_mode<synchronous>, transform_indices = @transform_24, window_bounds = array<i64: 2, 128>}, {pipeline_mode = #tpu.pipeline_mode<synchronous>, transform_indices = @transform_25, window_bounds = array<i64: 64, 128>}, {pipeline_mode = #tpu.pipeline_mode<synchronous>, transform_indices = @transform_26, window_bounds = array<i64: 2, 128>}, {pipeline_mode = #tpu.pipeline_mode<synchronous>, transform_indices = @transform_27, window_bounds = array<i64: 2, 128>}, {pipeline_mode = #tpu.pipeline_mode<synchronous>, transform_indices = @transform_28, window_bounds = array<i64: 3, 64, 128>}, {pipeline_mode = #tpu.pipeline_mode<synchronous>, transform_indices = @transform_29, window_bounds = array<i64: 3, 128, 128>}, {pipeline_mode = #tpu.pipeline_mode<synchronous>, transform_indices = @transform_30, window_bounds = array<i64: 2, 128>}, {pipeline_mode = #tpu.pipeline_mode<synchronous>, transform_indices = @transform_31, window_bounds = array<i64: 2, 128>}, {pipeline_mode = #tpu.pipeline_mode<synchronous>, transform_indices = @transform_32, window_bounds = array<i64: 3, 128, 128>}, {pipeline_mode = #tpu.pipeline_mode<synchronous>, transform_indices = @transform_33, window_bounds = array<i64: 3, 128, 128>}, {pipeline_mode = #tpu.pipeline_mode<synchronous>, transform_indices = @transform_34, window_bounds = array<i64: 2, 256>}, {pipeline_mode = #tpu.pipeline_mode<synchronous>, transform_indices = @transform_35, window_bounds = array<i64: 128, 256>}, {pipeline_mode = #tpu.pipeline_mode<synchronous>, transform_indices = @transform_36, window_bounds = array<i64: 2, 256>}, {pipeline_mode = #tpu.pipeline_mode<synchronous>, transform_indices = @transform_37, window_bounds = array<i64: 2, 256>}, {pipeline_mode = #tpu.pipeline_mode<synchronous>, transform_indices = @transform_38, window_bounds = array<i64: 3, 128, 256>}, {pipeline_mode = #tpu.pipeline_mode<synchronous>, transform_indices = @transform_39, window_bounds = array<i64: 3, 256, 256>}, {pipeline_mode = #tpu.pipeline_mode<synchronous>, transform_indices = @transform_40, window_bounds = array<i64: 2, 256>}, {pipeline_mode = #tpu.pipeline_mode<synchronous>, transform_indices = @transform_41, window_bounds = array<i64: 2, 256>}, {pipeline_mode = #tpu.pipeline_mode<synchronous>, transform_indices = @transform_42, window_bounds = array<i64: 3, 256, 256>}, {pipeline_mode = #tpu.pipeline_mode<synchronous>, transform_indices = @transform_43, window_bounds = array<i64: 3, 256, 256>}, {pipeline_mode = #tpu.pipeline_mode<synchronous>, transform_indices = @transform_44, window_bounds = array<i64: 2, 128>}, {pipeline_mode = #tpu.pipeline_mode<synchronous>, transform_indices = @transform_45, window_bounds = array<i64: 3, 32, 128>}, {pipeline_mode = #tpu.pipeline_mode<synchronous>, transform_indices = @transform_46, window_bounds = array<i64: 2, 128>}, {pipeline_mode = #tpu.pipeline_mode<synchronous>, transform_indices = @transform_47, window_bounds = array<i64: 3, 64, 128>}, {pipeline_mode = #tpu.pipeline_mode<synchronous>, transform_indices = @transform_48, window_bounds = array<i64: 2, 128>}, {pipeline_mode = #tpu.pipeline_mode<synchronous>, transform_indices = @transform_49, window_bounds = array<i64: 3, 128, 128>}, {pipeline_mode = #tpu.pipeline_mode<synchronous>, transform_indices = @transform_50, window_bounds = array<i64: 2, 128>}, {pipeline_mode = #tpu.pipeline_mode<synchronous>, transform_indices = @transform_51, window_bounds = array<i64: 3, 256, 128>}, {pipeline_mode = #tpu.pipeline_mode<synchronous>, transform_indices = @transform_52, window_bounds = array<i64: 2, 128>}, {pipeline_mode = #tpu.pipeline_mode<synchronous>, transform_indices = @transform_53, window_bounds = array<i64: 2, 128>}, {pipeline_mode = #tpu.pipeline_mode<synchronous>, transform_indices = @transform_54, window_bounds = array<i64: 3, 128, 128>}, {pipeline_mode = #tpu.pipeline_mode<synchronous>, transform_indices = @transform_55, window_bounds = array<i64: 3, 128, 128>}, {pipeline_mode = #tpu.pipeline_mode<synchronous>, transform_indices = @transform_56, window_bounds = array<i64: 4, 2>}, {pipeline_mode = #tpu.pipeline_mode<synchronous>, transform_indices = @transform_57, window_bounds = array<i64: 8, 4>}, {pipeline_mode = #tpu.pipeline_mode<synchronous>, transform_indices = @transform_58, window_bounds = array<i64: 16, 8>}, {transform_indices = @transform_59, window_bounds = array<i64: 1, 1, 128>}]} {
    %c0 = arith.constant 0 : index
    %c0_0 = arith.constant 0 : index
    %c0_1 = arith.constant 0 : index
    %0 = vector.load %arg1[%c0, %c0_0, %c0_1] : memref<1x16x3xf32, #tpu.memory_space<vmem>>, vector<1x16x3xf32>
    %1 = vector.shape_cast %0 : vector<1x16x3xf32> to vector<16x3xf32>
    %2 = arith.truncf %1 : vector<16x3xf32> to vector<16x3xbf16>
    %cst = arith.constant 0.000000e+00 : bf16
    %3 = vector.broadcast %cst : bf16 to vector<1x3xbf16>
    %4 = vector.extract_strided_slice %2 {offsets = [0, 0], sizes = [15, 3], strides = [1, 1]} : vector<16x3xbf16> to vector<15x3xbf16>
    %5 = tpu.concatenate %3, %4 in 0 : vector<1x3xbf16>, vector<15x3xbf16> -> vector<16x3xbf16>
    %6 = vector.extract_strided_slice %2 {offsets = [1, 0], sizes = [15, 3], strides = [1, 1]} : vector<16x3xbf16> to vector<15x3xbf16>
    %7 = tpu.concatenate %6, %3 in 0 : vector<15x3xbf16>, vector<1x3xbf16> -> vector<16x3xbf16>
    %c0_2 = arith.constant 0 : index
    %c0_3 = arith.constant 0 : index
    %c0_4 = arith.constant 0 : index
    %8 = vector.load %arg9[%c0_2, %c0_3, %c0_4] : memref<3x3x32xbf16, #tpu.memory_space<vmem>>, vector<1x3x32xbf16>
    %9 = vector.shape_cast %8 : vector<1x3x32xbf16> to vector<3x32xbf16>
    %cst_5 = arith.constant dense<0.000000e+00> : vector<16x32xf32>
    %10 = tpu.matmul %5, %9, %cst_5 {dimension_numbers = #tpu.dot_dimension_numbers<[1], [0], [0], [1], [0, 0, 1, 1], [], []>} : vector<16x3xbf16>, vector<3x32xbf16>, vector<16x32xf32> -> vector<16x32xf32>
    %c1 = arith.constant 1 : index
    %c0_6 = arith.constant 0 : index
    %c0_7 = arith.constant 0 : index
    %11 = vector.load %arg9[%c1, %c0_6, %c0_7] : memref<3x3x32xbf16, #tpu.memory_space<vmem>>, vector<1x3x32xbf16>
    %12 = vector.shape_cast %11 : vector<1x3x32xbf16> to vector<3x32xbf16>
    %cst_8 = arith.constant dense<0.000000e+00> : vector<16x32xf32>
    %13 = tpu.matmul %2, %12, %cst_8 {dimension_numbers = #tpu.dot_dimension_numbers<[1], [0], [0], [1], [0, 0, 1, 1], [], []>} : vector<16x3xbf16>, vector<3x32xbf16>, vector<16x32xf32> -> vector<16x32xf32>
    %14 = arith.addf %10, %13 : vector<16x32xf32>
    %c2 = arith.constant 2 : index
    %c0_9 = arith.constant 0 : index
    %c0_10 = arith.constant 0 : index
    %15 = vector.load %arg9[%c2, %c0_9, %c0_10] : memref<3x3x32xbf16, #tpu.memory_space<vmem>>, vector<1x3x32xbf16>
    %16 = vector.shape_cast %15 : vector<1x3x32xbf16> to vector<3x32xbf16>
    %cst_11 = arith.constant dense<0.000000e+00> : vector<16x32xf32>
    %17 = tpu.matmul %7, %16, %cst_11 {dimension_numbers = #tpu.dot_dimension_numbers<[1], [0], [0], [1], [0, 0, 1, 1], [], []>} : vector<16x3xbf16>, vector<3x32xbf16>, vector<16x32xf32> -> vector<16x32xf32>
    %18 = arith.addf %14, %17 : vector<16x32xf32>
    %c0_12 = arith.constant 0 : index
    %c0_13 = arith.constant 0 : index
    %19 = vector.load %arg7[%c0_12, %c0_13] : memref<2x32xf32, #tpu.memory_space<vmem>>, vector<2x32xf32>
    %cst_14 = arith.constant dense<0.000000e+00> : vector<16xf32>
    %20 = vector.multi_reduction <add>, %18, %cst_14 [1] : vector<16x32xf32> to vector<16xf32>
    %21 = vector.shape_cast %20 : vector<16xf32> to vector<16x1xf32>
    %cst_15 = arith.constant dense<0.000000e+00> : vector<1xf32>
    %22 = vector.multi_reduction <add>, %21, %cst_15 [0] : vector<16x1xf32> to vector<1xf32>
    %23 = vector.shape_cast %22 : vector<1xf32> to vector<1x1xf32>
    %cst_16 = arith.constant 5.120000e+02 : f32
    %24 = vector.broadcast %cst_16 : f32 to vector<1x1xf32>
    %25 = arith.divf %23, %24 : vector<1x1xf32>
    %26 = vector.broadcast %25 : vector<1x1xf32> to vector<16x32xf32>
    %27 = arith.subf %18, %26 : vector<16x32xf32>
    %28 = arith.mulf %27, %27 : vector<16x32xf32>
    %cst_17 = arith.constant dense<0.000000e+00> : vector<16xf32>
    %29 = vector.multi_reduction <add>, %28, %cst_17 [1] : vector<16x32xf32> to vector<16xf32>
    %30 = vector.shape_cast %29 : vector<16xf32> to vector<16x1xf32>
    %cst_18 = arith.constant dense<0.000000e+00> : vector<1xf32>
    %31 = vector.multi_reduction <add>, %30, %cst_18 [0] : vector<16x1xf32> to vector<1xf32>
    %32 = vector.shape_cast %31 : vector<1xf32> to vector<1x1xf32>
    %cst_19 = arith.constant 5.120000e+02 : f32
    %33 = vector.broadcast %cst_19 : f32 to vector<1x1xf32>
    %34 = arith.divf %32, %33 : vector<1x1xf32>
    %cst_20 = arith.constant 9.99999974E-6 : f32
    %35 = vector.broadcast %cst_20 : f32 to vector<1x1xf32>
    %36 = arith.addf %34, %35 : vector<1x1xf32>
    %37 = math.rsqrt %36 : vector<1x1xf32>
    %38 = vector.broadcast %37 : vector<1x1xf32> to vector<16x32xf32>
    %39 = arith.mulf %27, %38 : vector<16x32xf32>
    %40 = vector.extract_strided_slice %19 {offsets = [0, 0], sizes = [1, 32], strides = [1, 1]} : vector<2x32xf32> to vector<1x32xf32>
    %41 = vector.broadcast %40 : vector<1x32xf32> to vector<16x32xf32>
    %42 = arith.mulf %39, %41 : vector<16x32xf32>
    %43 = vector.extract_strided_slice %19 {offsets = [1, 0], sizes = [1, 32], strides = [1, 1]} : vector<2x32xf32> to vector<1x32xf32>
    %44 = vector.broadcast %43 : vector<1x32xf32> to vector<16x32xf32>
    %45 = arith.addf %42, %44 : vector<16x32xf32>
    %cst_21 = arith.constant 0.000000e+00 : f32
    %46 = vector.broadcast %cst_21 : f32 to vector<16x32xf32>
    %47 = arith.maximumf %45, %46 : vector<16x32xf32>
    %48 = arith.truncf %47 : vector<16x32xf32> to vector<16x32xbf16>
    %cst_22 = arith.constant 0.000000e+00 : bf16
    %49 = vector.broadcast %cst_22 : bf16 to vector<1x32xbf16>
    %50 = vector.extract_strided_slice %48 {offsets = [0, 0], sizes = [15, 32], strides = [1, 1]} : vector<16x32xbf16> to vector<15x32xbf16>
    %51 = tpu.concatenate %49, %50 in 0 : vector<1x32xbf16>, vector<15x32xbf16> -> vector<16x32xbf16>
    %52 = vector.extract_strided_slice %48 {offsets = [1, 0], sizes = [15, 32], strides = [1, 1]} : vector<16x32xbf16> to vector<15x32xbf16>
    %53 = tpu.concatenate %52, %49 in 0 : vector<15x32xbf16>, vector<1x32xbf16> -> vector<16x32xbf16>
    %c0_23 = arith.constant 0 : index
    %c0_24 = arith.constant 0 : index
    %c0_25 = arith.constant 0 : index
    %54 = vector.load %arg10[%c0_23, %c0_24, %c0_25] : memref<3x32x32xbf16, #tpu.memory_space<vmem>>, vector<1x32x32xbf16>
    %55 = vector.shape_cast %54 : vector<1x32x32xbf16> to vector<32x32xbf16>
    %cst_26 = arith.constant dense<0.000000e+00> : vector<16x32xf32>
    %56 = tpu.matmul %51, %55, %cst_26 {dimension_numbers = #tpu.dot_dimension_numbers<[1], [0], [0], [1], [0, 0, 1, 1], [], []>} : vector<16x32xbf16>, vector<32x32xbf16>, vector<16x32xf32> -> vector<16x32xf32>
    %c1_27 = arith.constant 1 : index
    %c0_28 = arith.constant 0 : index
    %c0_29 = arith.constant 0 : index
    %57 = vector.load %arg10[%c1_27, %c0_28, %c0_29] : memref<3x32x32xbf16, #tpu.memory_space<vmem>>, vector<1x32x32xbf16>
    %58 = vector.shape_cast %57 : vector<1x32x32xbf16> to vector<32x32xbf16>
    %cst_30 = arith.constant dense<0.000000e+00> : vector<16x32xf32>
    %59 = tpu.matmul %48, %58, %cst_30 {dimension_numbers = #tpu.dot_dimension_numbers<[1], [0], [0], [1], [0, 0, 1, 1], [], []>} : vector<16x32xbf16>, vector<32x32xbf16>, vector<16x32xf32> -> vector<16x32xf32>
    %60 = arith.addf %56, %59 : vector<16x32xf32>
    %c2_31 = arith.constant 2 : index
    %c0_32 = arith.constant 0 : index
    %c0_33 = arith.constant 0 : index
    %61 = vector.load %arg10[%c2_31, %c0_32, %c0_33] : memref<3x32x32xbf16, #tpu.memory_space<vmem>>, vector<1x32x32xbf16>
    %62 = vector.shape_cast %61 : vector<1x32x32xbf16> to vector<32x32xbf16>
    %cst_34 = arith.constant dense<0.000000e+00> : vector<16x32xf32>
    %63 = tpu.matmul %53, %62, %cst_34 {dimension_numbers = #tpu.dot_dimension_numbers<[1], [0], [0], [1], [0, 0, 1, 1], [], []>} : vector<16x32xbf16>, vector<32x32xbf16>, vector<16x32xf32> -> vector<16x32xf32>
    %64 = arith.addf %60, %63 : vector<16x32xf32>
    %c0_35 = arith.constant 0 : index
    %c0_36 = arith.constant 0 : index
    %65 = vector.load %arg8[%c0_35, %c0_36] : memref<2x32xf32, #tpu.memory_space<vmem>>, vector<2x32xf32>
    %cst_37 = arith.constant dense<0.000000e+00> : vector<16xf32>
    %66 = vector.multi_reduction <add>, %64, %cst_37 [1] : vector<16x32xf32> to vector<16xf32>
    %67 = vector.shape_cast %66 : vector<16xf32> to vector<16x1xf32>
    %cst_38 = arith.constant dense<0.000000e+00> : vector<1xf32>
    %68 = vector.multi_reduction <add>, %67, %cst_38 [0] : vector<16x1xf32> to vector<1xf32>
    %69 = vector.shape_cast %68 : vector<1xf32> to vector<1x1xf32>
    %cst_39 = arith.constant 5.120000e+02 : f32
    %70 = vector.broadcast %cst_39 : f32 to vector<1x1xf32>
    %71 = arith.divf %69, %70 : vector<1x1xf32>
    %72 = vector.broadcast %71 : vector<1x1xf32> to vector<16x32xf32>
    %73 = arith.subf %64, %72 : vector<16x32xf32>
    %74 = arith.mulf %73, %73 : vector<16x32xf32>
    %cst_40 = arith.constant dense<0.000000e+00> : vector<16xf32>
    %75 = vector.multi_reduction <add>, %74, %cst_40 [1] : vector<16x32xf32> to vector<16xf32>
    %76 = vector.shape_cast %75 : vector<16xf32> to vector<16x1xf32>
    %cst_41 = arith.constant dense<0.000000e+00> : vector<1xf32>
    %77 = vector.multi_reduction <add>, %76, %cst_41 [0] : vector<16x1xf32> to vector<1xf32>
    %78 = vector.shape_cast %77 : vector<1xf32> to vector<1x1xf32>
    %cst_42 = arith.constant 5.120000e+02 : f32
    %79 = vector.broadcast %cst_42 : f32 to vector<1x1xf32>
    %80 = arith.divf %78, %79 : vector<1x1xf32>
    %cst_43 = arith.constant 9.99999974E-6 : f32
    %81 = vector.broadcast %cst_43 : f32 to vector<1x1xf32>
    %82 = arith.addf %80, %81 : vector<1x1xf32>
    %83 = math.rsqrt %82 : vector<1x1xf32>
    %84 = vector.broadcast %83 : vector<1x1xf32> to vector<16x32xf32>
    %85 = arith.mulf %73, %84 : vector<16x32xf32>
    %86 = vector.extract_strided_slice %65 {offsets = [0, 0], sizes = [1, 32], strides = [1, 1]} : vector<2x32xf32> to vector<1x32xf32>
    %87 = vector.broadcast %86 : vector<1x32xf32> to vector<16x32xf32>
    %88 = arith.mulf %85, %87 : vector<16x32xf32>
    %89 = vector.extract_strided_slice %65 {offsets = [1, 0], sizes = [1, 32], strides = [1, 1]} : vector<2x32xf32> to vector<1x32xf32>
    %90 = vector.broadcast %89 : vector<1x32xf32> to vector<16x32xf32>
    %91 = arith.addf %88, %90 : vector<16x32xf32>
    %92 = arith.truncf %1 : vector<16x3xf32> to vector<16x3xbf16>
    %c0_44 = arith.constant 0 : index
    %c0_45 = arith.constant 0 : index
    %93 = vector.load %arg6[%c0_44, %c0_45] : memref<3x32xbf16, #tpu.memory_space<vmem>>, vector<3x32xbf16>
    %cst_46 = arith.constant dense<0.000000e+00> : vector<16x32xf32>
    %94 = tpu.matmul %92, %93, %cst_46 {dimension_numbers = #tpu.dot_dimension_numbers<[1], [0], [0], [1], [0, 0, 1, 1], [], []>} : vector<16x3xbf16>, vector<3x32xbf16>, vector<16x32xf32> -> vector<16x32xf32>
    %c0_47 = arith.constant 0 : index
    %c0_48 = arith.constant 0 : index
    %95 = vector.load %arg5[%c0_47, %c0_48] : memref<2x32xf32, #tpu.memory_space<vmem>>, vector<2x32xf32>
    %cst_49 = arith.constant dense<0.000000e+00> : vector<16xf32>
    %96 = vector.multi_reduction <add>, %94, %cst_49 [1] : vector<16x32xf32> to vector<16xf32>
    %97 = vector.shape_cast %96 : vector<16xf32> to vector<16x1xf32>
    %cst_50 = arith.constant dense<0.000000e+00> : vector<1xf32>
    %98 = vector.multi_reduction <add>, %97, %cst_50 [0] : vector<16x1xf32> to vector<1xf32>
    %99 = vector.shape_cast %98 : vector<1xf32> to vector<1x1xf32>
    %cst_51 = arith.constant 5.120000e+02 : f32
    %100 = vector.broadcast %cst_51 : f32 to vector<1x1xf32>
    %101 = arith.divf %99, %100 : vector<1x1xf32>
    %102 = vector.broadcast %101 : vector<1x1xf32> to vector<16x32xf32>
    %103 = arith.subf %94, %102 : vector<16x32xf32>
    %104 = arith.mulf %103, %103 : vector<16x32xf32>
    %cst_52 = arith.constant dense<0.000000e+00> : vector<16xf32>
    %105 = vector.multi_reduction <add>, %104, %cst_52 [1] : vector<16x32xf32> to vector<16xf32>
    %106 = vector.shape_cast %105 : vector<16xf32> to vector<16x1xf32>
    %cst_53 = arith.constant dense<0.000000e+00> : vector<1xf32>
    %107 = vector.multi_reduction <add>, %106, %cst_53 [0] : vector<16x1xf32> to vector<1xf32>
    %108 = vector.shape_cast %107 : vector<1xf32> to vector<1x1xf32>
    %cst_54 = arith.constant 5.120000e+02 : f32
    %109 = vector.broadcast %cst_54 : f32 to vector<1x1xf32>
    %110 = arith.divf %108, %109 : vector<1x1xf32>
    %cst_55 = arith.constant 9.99999974E-6 : f32
    %111 = vector.broadcast %cst_55 : f32 to vector<1x1xf32>
    %112 = arith.addf %110, %111 : vector<1x1xf32>
    %113 = math.rsqrt %112 : vector<1x1xf32>
    %114 = vector.broadcast %113 : vector<1x1xf32> to vector<16x32xf32>
    %115 = arith.mulf %103, %114 : vector<16x32xf32>
    %116 = vector.extract_strided_slice %95 {offsets = [0, 0], sizes = [1, 32], strides = [1, 1]} : vector<2x32xf32> to vector<1x32xf32>
    %117 = vector.broadcast %116 : vector<1x32xf32> to vector<16x32xf32>
    %118 = arith.mulf %115, %117 : vector<16x32xf32>
    %119 = vector.extract_strided_slice %95 {offsets = [1, 0], sizes = [1, 32], strides = [1, 1]} : vector<2x32xf32> to vector<1x32xf32>
    %120 = vector.broadcast %119 : vector<1x32xf32> to vector<16x32xf32>
    %121 = arith.addf %118, %120 : vector<16x32xf32>
    %122 = arith.addf %91, %121 : vector<16x32xf32>
    %cst_56 = arith.constant 0.000000e+00 : f32
    %123 = vector.broadcast %cst_56 : f32 to vector<16x32xf32>
    %124 = arith.maximumf %122, %123 : vector<16x32xf32>
    %125 = arith.truncf %124 : vector<16x32xf32> to vector<16x32xbf16>
    %cst_57 = arith.constant 0.000000e+00 : bf16
    %126 = vector.broadcast %cst_57 : bf16 to vector<1x32xbf16>
    %127 = vector.extract_strided_slice %125 {offsets = [0, 0], sizes = [15, 32], strides = [1, 1]} : vector<16x32xbf16> to vector<15x32xbf16>
    %128 = tpu.concatenate %126, %127 in 0 : vector<1x32xbf16>, vector<15x32xbf16> -> vector<16x32xbf16>
    %129 = vector.extract_strided_slice %125 {offsets = [1, 0], sizes = [15, 32], strides = [1, 1]} : vector<16x32xbf16> to vector<15x32xbf16>
    %130 = tpu.concatenate %129, %126 in 0 : vector<15x32xbf16>, vector<1x32xbf16> -> vector<16x32xbf16>
    %c0_58 = arith.constant 0 : index
    %c0_59 = arith.constant 0 : index
    %c0_60 = arith.constant 0 : index
    %131 = vector.load %arg13[%c0_58, %c0_59, %c0_60] : memref<3x32x32xbf16, #tpu.memory_space<vmem>>, vector<1x32x32xbf16>
    %132 = vector.shape_cast %131 : vector<1x32x32xbf16> to vector<32x32xbf16>
    %cst_61 = arith.constant dense<0.000000e+00> : vector<16x32xf32>
    %133 = tpu.matmul %128, %132, %cst_61 {dimension_numbers = #tpu.dot_dimension_numbers<[1], [0], [0], [1], [0, 0, 1, 1], [], []>} : vector<16x32xbf16>, vector<32x32xbf16>, vector<16x32xf32> -> vector<16x32xf32>
    %c1_62 = arith.constant 1 : index
    %c0_63 = arith.constant 0 : index
    %c0_64 = arith.constant 0 : index
    %134 = vector.load %arg13[%c1_62, %c0_63, %c0_64] : memref<3x32x32xbf16, #tpu.memory_space<vmem>>, vector<1x32x32xbf16>
    %135 = vector.shape_cast %134 : vector<1x32x32xbf16> to vector<32x32xbf16>
    %cst_65 = arith.constant dense<0.000000e+00> : vector<16x32xf32>
    %136 = tpu.matmul %125, %135, %cst_65 {dimension_numbers = #tpu.dot_dimension_numbers<[1], [0], [0], [1], [0, 0, 1, 1], [], []>} : vector<16x32xbf16>, vector<32x32xbf16>, vector<16x32xf32> -> vector<16x32xf32>
    %137 = arith.addf %133, %136 : vector<16x32xf32>
    %c2_66 = arith.constant 2 : index
    %c0_67 = arith.constant 0 : index
    %c0_68 = arith.constant 0 : index
    %138 = vector.load %arg13[%c2_66, %c0_67, %c0_68] : memref<3x32x32xbf16, #tpu.memory_space<vmem>>, vector<1x32x32xbf16>
    %139 = vector.shape_cast %138 : vector<1x32x32xbf16> to vector<32x32xbf16>
    %cst_69 = arith.constant dense<0.000000e+00> : vector<16x32xf32>
    %140 = tpu.matmul %130, %139, %cst_69 {dimension_numbers = #tpu.dot_dimension_numbers<[1], [0], [0], [1], [0, 0, 1, 1], [], []>} : vector<16x32xbf16>, vector<32x32xbf16>, vector<16x32xf32> -> vector<16x32xf32>
    %141 = arith.addf %137, %140 : vector<16x32xf32>
    %c0_70 = arith.constant 0 : index
    %c0_71 = arith.constant 0 : index
    %142 = vector.load %arg11[%c0_70, %c0_71] : memref<2x32xf32, #tpu.memory_space<vmem>>, vector<2x32xf32>
    %cst_72 = arith.constant dense<0.000000e+00> : vector<16xf32>
    %143 = vector.multi_reduction <add>, %141, %cst_72 [1] : vector<16x32xf32> to vector<16xf32>
    %144 = vector.shape_cast %143 : vector<16xf32> to vector<16x1xf32>
    %cst_73 = arith.constant dense<0.000000e+00> : vector<1xf32>
    %145 = vector.multi_reduction <add>, %144, %cst_73 [0] : vector<16x1xf32> to vector<1xf32>
    %146 = vector.shape_cast %145 : vector<1xf32> to vector<1x1xf32>
    %cst_74 = arith.constant 5.120000e+02 : f32
    %147 = vector.broadcast %cst_74 : f32 to vector<1x1xf32>
    %148 = arith.divf %146, %147 : vector<1x1xf32>
    %149 = vector.broadcast %148 : vector<1x1xf32> to vector<16x32xf32>
    %150 = arith.subf %141, %149 : vector<16x32xf32>
    %151 = arith.mulf %150, %150 : vector<16x32xf32>
    %cst_75 = arith.constant dense<0.000000e+00> : vector<16xf32>
    %152 = vector.multi_reduction <add>, %151, %cst_75 [1] : vector<16x32xf32> to vector<16xf32>
    %153 = vector.shape_cast %152 : vector<16xf32> to vector<16x1xf32>
    %cst_76 = arith.constant dense<0.000000e+00> : vector<1xf32>
    %154 = vector.multi_reduction <add>, %153, %cst_76 [0] : vector<16x1xf32> to vector<1xf32>
    %155 = vector.shape_cast %154 : vector<1xf32> to vector<1x1xf32>
    %cst_77 = arith.constant 5.120000e+02 : f32
    %156 = vector.broadcast %cst_77 : f32 to vector<1x1xf32>
    %157 = arith.divf %155, %156 : vector<1x1xf32>
    %cst_78 = arith.constant 9.99999974E-6 : f32
    %158 = vector.broadcast %cst_78 : f32 to vector<1x1xf32>
    %159 = arith.addf %157, %158 : vector<1x1xf32>
    %160 = math.rsqrt %159 : vector<1x1xf32>
    %161 = vector.broadcast %160 : vector<1x1xf32> to vector<16x32xf32>
    %162 = arith.mulf %150, %161 : vector<16x32xf32>
    %163 = vector.extract_strided_slice %142 {offsets = [0, 0], sizes = [1, 32], strides = [1, 1]} : vector<2x32xf32> to vector<1x32xf32>
    %164 = vector.broadcast %163 : vector<1x32xf32> to vector<16x32xf32>
    %165 = arith.mulf %162, %164 : vector<16x32xf32>
    %166 = vector.extract_strided_slice %142 {offsets = [1, 0], sizes = [1, 32], strides = [1, 1]} : vector<2x32xf32> to vector<1x32xf32>
    %167 = vector.broadcast %166 : vector<1x32xf32> to vector<16x32xf32>
    %168 = arith.addf %165, %167 : vector<16x32xf32>
    %cst_79 = arith.constant 0.000000e+00 : f32
    %169 = vector.broadcast %cst_79 : f32 to vector<16x32xf32>
    %170 = arith.maximumf %168, %169 : vector<16x32xf32>
    %171 = arith.truncf %170 : vector<16x32xf32> to vector<16x32xbf16>
    %cst_80 = arith.constant 0.000000e+00 : bf16
    %172 = vector.broadcast %cst_80 : bf16 to vector<1x32xbf16>
    %173 = vector.extract_strided_slice %171 {offsets = [0, 0], sizes = [15, 32], strides = [1, 1]} : vector<16x32xbf16> to vector<15x32xbf16>
    %174 = tpu.concatenate %172, %173 in 0 : vector<1x32xbf16>, vector<15x32xbf16> -> vector<16x32xbf16>
    %175 = vector.extract_strided_slice %171 {offsets = [1, 0], sizes = [15, 32], strides = [1, 1]} : vector<16x32xbf16> to vector<15x32xbf16>
    %176 = tpu.concatenate %175, %172 in 0 : vector<15x32xbf16>, vector<1x32xbf16> -> vector<16x32xbf16>
    %c0_81 = arith.constant 0 : index
    %c0_82 = arith.constant 0 : index
    %c0_83 = arith.constant 0 : index
    %177 = vector.load %arg14[%c0_81, %c0_82, %c0_83] : memref<3x32x32xbf16, #tpu.memory_space<vmem>>, vector<1x32x32xbf16>
    %178 = vector.shape_cast %177 : vector<1x32x32xbf16> to vector<32x32xbf16>
    %cst_84 = arith.constant dense<0.000000e+00> : vector<16x32xf32>
    %179 = tpu.matmul %174, %178, %cst_84 {dimension_numbers = #tpu.dot_dimension_numbers<[1], [0], [0], [1], [0, 0, 1, 1], [], []>} : vector<16x32xbf16>, vector<32x32xbf16>, vector<16x32xf32> -> vector<16x32xf32>
    %c1_85 = arith.constant 1 : index
    %c0_86 = arith.constant 0 : index
    %c0_87 = arith.constant 0 : index
    %180 = vector.load %arg14[%c1_85, %c0_86, %c0_87] : memref<3x32x32xbf16, #tpu.memory_space<vmem>>, vector<1x32x32xbf16>
    %181 = vector.shape_cast %180 : vector<1x32x32xbf16> to vector<32x32xbf16>
    %cst_88 = arith.constant dense<0.000000e+00> : vector<16x32xf32>
    %182 = tpu.matmul %171, %181, %cst_88 {dimension_numbers = #tpu.dot_dimension_numbers<[1], [0], [0], [1], [0, 0, 1, 1], [], []>} : vector<16x32xbf16>, vector<32x32xbf16>, vector<16x32xf32> -> vector<16x32xf32>
    %183 = arith.addf %179, %182 : vector<16x32xf32>
    %c2_89 = arith.constant 2 : index
    %c0_90 = arith.constant 0 : index
    %c0_91 = arith.constant 0 : index
    %184 = vector.load %arg14[%c2_89, %c0_90, %c0_91] : memref<3x32x32xbf16, #tpu.memory_space<vmem>>, vector<1x32x32xbf16>
    %185 = vector.shape_cast %184 : vector<1x32x32xbf16> to vector<32x32xbf16>
    %cst_92 = arith.constant dense<0.000000e+00> : vector<16x32xf32>
    %186 = tpu.matmul %176, %185, %cst_92 {dimension_numbers = #tpu.dot_dimension_numbers<[1], [0], [0], [1], [0, 0, 1, 1], [], []>} : vector<16x32xbf16>, vector<32x32xbf16>, vector<16x32xf32> -> vector<16x32xf32>
    %187 = arith.addf %183, %186 : vector<16x32xf32>
    %c0_93 = arith.constant 0 : index
    %c0_94 = arith.constant 0 : index
    %188 = vector.load %arg12[%c0_93, %c0_94] : memref<2x32xf32, #tpu.memory_space<vmem>>, vector<2x32xf32>
    %cst_95 = arith.constant dense<0.000000e+00> : vector<16xf32>
    %189 = vector.multi_reduction <add>, %187, %cst_95 [1] : vector<16x32xf32> to vector<16xf32>
    %190 = vector.shape_cast %189 : vector<16xf32> to vector<16x1xf32>
    %cst_96 = arith.constant dense<0.000000e+00> : vector<1xf32>
    %191 = vector.multi_reduction <add>, %190, %cst_96 [0] : vector<16x1xf32> to vector<1xf32>
    %192 = vector.shape_cast %191 : vector<1xf32> to vector<1x1xf32>
    %cst_97 = arith.constant 5.120000e+02 : f32
    %193 = vector.broadcast %cst_97 : f32 to vector<1x1xf32>
    %194 = arith.divf %192, %193 : vector<1x1xf32>
    %195 = vector.broadcast %194 : vector<1x1xf32> to vector<16x32xf32>
    %196 = arith.subf %187, %195 : vector<16x32xf32>
    %197 = arith.mulf %196, %196 : vector<16x32xf32>
    %cst_98 = arith.constant dense<0.000000e+00> : vector<16xf32>
    %198 = vector.multi_reduction <add>, %197, %cst_98 [1] : vector<16x32xf32> to vector<16xf32>
    %199 = vector.shape_cast %198 : vector<16xf32> to vector<16x1xf32>
    %cst_99 = arith.constant dense<0.000000e+00> : vector<1xf32>
    %200 = vector.multi_reduction <add>, %199, %cst_99 [0] : vector<16x1xf32> to vector<1xf32>
    %201 = vector.shape_cast %200 : vector<1xf32> to vector<1x1xf32>
    %cst_100 = arith.constant 5.120000e+02 : f32
    %202 = vector.broadcast %cst_100 : f32 to vector<1x1xf32>
    %203 = arith.divf %201, %202 : vector<1x1xf32>
    %cst_101 = arith.constant 9.99999974E-6 : f32
    %204 = vector.broadcast %cst_101 : f32 to vector<1x1xf32>
    %205 = arith.addf %203, %204 : vector<1x1xf32>
    %206 = math.rsqrt %205 : vector<1x1xf32>
    %207 = vector.broadcast %206 : vector<1x1xf32> to vector<16x32xf32>
    %208 = arith.mulf %196, %207 : vector<16x32xf32>
    %209 = vector.extract_strided_slice %188 {offsets = [0, 0], sizes = [1, 32], strides = [1, 1]} : vector<2x32xf32> to vector<1x32xf32>
    %210 = vector.broadcast %209 : vector<1x32xf32> to vector<16x32xf32>
    %211 = arith.mulf %208, %210 : vector<16x32xf32>
    %212 = vector.extract_strided_slice %188 {offsets = [1, 0], sizes = [1, 32], strides = [1, 1]} : vector<2x32xf32> to vector<1x32xf32>
    %213 = vector.broadcast %212 : vector<1x32xf32> to vector<16x32xf32>
    %214 = arith.addf %211, %213 : vector<16x32xf32>
    %215 = arith.addf %214, %124 : vector<16x32xf32>
    %cst_102 = arith.constant 0.000000e+00 : f32
    %216 = vector.broadcast %cst_102 : f32 to vector<16x32xf32>
    %217 = arith.maximumf %215, %216 : vector<16x32xf32>
    %218 = arith.truncf %217 : vector<16x32xf32> to vector<16x32xbf16>
    %cst_103 = arith.constant 0.000000e+00 : bf16
    %219 = vector.broadcast %cst_103 : bf16 to vector<1x32xbf16>
    %220 = vector.extract_strided_slice %218 {offsets = [0, 0], sizes = [15, 32], strides = [1, 1]} : vector<16x32xbf16> to vector<15x32xbf16>
    %221 = tpu.concatenate %219, %220 in 0 : vector<1x32xbf16>, vector<15x32xbf16> -> vector<16x32xbf16>
    %222 = vector.extract_strided_slice %218 {offsets = [1, 0], sizes = [15, 32], strides = [1, 1]} : vector<16x32xbf16> to vector<15x32xbf16>
    %223 = tpu.concatenate %222, %219 in 0 : vector<15x32xbf16>, vector<1x32xbf16> -> vector<16x32xbf16>
    %c0_104 = arith.constant 0 : index
    %c0_105 = arith.constant 0 : index
    %c0_106 = arith.constant 0 : index
    %224 = vector.load %arg19[%c0_104, %c0_105, %c0_106] : memref<3x32x64xbf16, #tpu.memory_space<vmem>>, vector<1x32x64xbf16>
    %225 = vector.shape_cast %224 : vector<1x32x64xbf16> to vector<32x64xbf16>
    %cst_107 = arith.constant dense<0.000000e+00> : vector<16x64xf32>
    %226 = tpu.matmul %221, %225, %cst_107 {dimension_numbers = #tpu.dot_dimension_numbers<[1], [0], [0], [1], [0, 0, 1, 1], [], []>} : vector<16x32xbf16>, vector<32x64xbf16>, vector<16x64xf32> -> vector<16x64xf32>
    %c1_108 = arith.constant 1 : index
    %c0_109 = arith.constant 0 : index
    %c0_110 = arith.constant 0 : index
    %227 = vector.load %arg19[%c1_108, %c0_109, %c0_110] : memref<3x32x64xbf16, #tpu.memory_space<vmem>>, vector<1x32x64xbf16>
    %228 = vector.shape_cast %227 : vector<1x32x64xbf16> to vector<32x64xbf16>
    %cst_111 = arith.constant dense<0.000000e+00> : vector<16x64xf32>
    %229 = tpu.matmul %218, %228, %cst_111 {dimension_numbers = #tpu.dot_dimension_numbers<[1], [0], [0], [1], [0, 0, 1, 1], [], []>} : vector<16x32xbf16>, vector<32x64xbf16>, vector<16x64xf32> -> vector<16x64xf32>
    %230 = arith.addf %226, %229 : vector<16x64xf32>
    %c2_112 = arith.constant 2 : index
    %c0_113 = arith.constant 0 : index
    %c0_114 = arith.constant 0 : index
    %231 = vector.load %arg19[%c2_112, %c0_113, %c0_114] : memref<3x32x64xbf16, #tpu.memory_space<vmem>>, vector<1x32x64xbf16>
    %232 = vector.shape_cast %231 : vector<1x32x64xbf16> to vector<32x64xbf16>
    %cst_115 = arith.constant dense<0.000000e+00> : vector<16x64xf32>
    %233 = tpu.matmul %223, %232, %cst_115 {dimension_numbers = #tpu.dot_dimension_numbers<[1], [0], [0], [1], [0, 0, 1, 1], [], []>} : vector<16x32xbf16>, vector<32x64xbf16>, vector<16x64xf32> -> vector<16x64xf32>
    %234 = arith.addf %230, %233 : vector<16x64xf32>
    %c0_116 = arith.constant 0 : index
    %c0_117 = arith.constant 0 : index
    %235 = vector.load %arg2[%c0_116, %c0_117] : memref<8x16xf32, #tpu.memory_space<vmem>>, vector<8x16xf32>
    %cst_118 = arith.constant dense<0.000000e+00> : vector<8x64xf32>
    %236 = tpu.matmul %235, %234, %cst_118 {dimension_numbers = #tpu.dot_dimension_numbers<[1], [0], [0], [1], [0, 0, 1, 1], [], []>} : vector<8x16xf32>, vector<16x64xf32>, vector<8x64xf32> -> vector<8x64xf32>
    %c0_119 = arith.constant 0 : index
    %c0_120 = arith.constant 0 : index
    %237 = vector.load %arg17[%c0_119, %c0_120] : memref<2x64xf32, #tpu.memory_space<vmem>>, vector<2x64xf32>
    %cst_121 = arith.constant dense<0.000000e+00> : vector<8xf32>
    %238 = vector.multi_reduction <add>, %236, %cst_121 [1] : vector<8x64xf32> to vector<8xf32>
    %239 = vector.shape_cast %238 : vector<8xf32> to vector<8x1xf32>
    %cst_122 = arith.constant dense<0.000000e+00> : vector<1xf32>
    %240 = vector.multi_reduction <add>, %239, %cst_122 [0] : vector<8x1xf32> to vector<1xf32>
    %241 = vector.shape_cast %240 : vector<1xf32> to vector<1x1xf32>
    %cst_123 = arith.constant 5.120000e+02 : f32
    %242 = vector.broadcast %cst_123 : f32 to vector<1x1xf32>
    %243 = arith.divf %241, %242 : vector<1x1xf32>
    %244 = vector.broadcast %243 : vector<1x1xf32> to vector<8x64xf32>
    %245 = arith.subf %236, %244 : vector<8x64xf32>
    %246 = arith.mulf %245, %245 : vector<8x64xf32>
    %cst_124 = arith.constant dense<0.000000e+00> : vector<8xf32>
    %247 = vector.multi_reduction <add>, %246, %cst_124 [1] : vector<8x64xf32> to vector<8xf32>
    %248 = vector.shape_cast %247 : vector<8xf32> to vector<8x1xf32>
    %cst_125 = arith.constant dense<0.000000e+00> : vector<1xf32>
    %249 = vector.multi_reduction <add>, %248, %cst_125 [0] : vector<8x1xf32> to vector<1xf32>
    %250 = vector.shape_cast %249 : vector<1xf32> to vector<1x1xf32>
    %cst_126 = arith.constant 5.120000e+02 : f32
    %251 = vector.broadcast %cst_126 : f32 to vector<1x1xf32>
    %252 = arith.divf %250, %251 : vector<1x1xf32>
    %cst_127 = arith.constant 9.99999974E-6 : f32
    %253 = vector.broadcast %cst_127 : f32 to vector<1x1xf32>
    %254 = arith.addf %252, %253 : vector<1x1xf32>
    %255 = math.rsqrt %254 : vector<1x1xf32>
    %256 = vector.broadcast %255 : vector<1x1xf32> to vector<8x64xf32>
    %257 = arith.mulf %245, %256 : vector<8x64xf32>
    %258 = vector.extract_strided_slice %237 {offsets = [0, 0], sizes = [1, 64], strides = [1, 1]} : vector<2x64xf32> to vector<1x64xf32>
    %259 = vector.broadcast %258 : vector<1x64xf32> to vector<8x64xf32>
    %260 = arith.mulf %257, %259 : vector<8x64xf32>
    %261 = vector.extract_strided_slice %237 {offsets = [1, 0], sizes = [1, 64], strides = [1, 1]} : vector<2x64xf32> to vector<1x64xf32>
    %262 = vector.broadcast %261 : vector<1x64xf32> to vector<8x64xf32>
    %263 = arith.addf %260, %262 : vector<8x64xf32>
    %cst_128 = arith.constant 0.000000e+00 : f32
    %264 = vector.broadcast %cst_128 : f32 to vector<8x64xf32>
    %265 = arith.maximumf %263, %264 : vector<8x64xf32>
    %266 = arith.truncf %265 : vector<8x64xf32> to vector<8x64xbf16>
    %cst_129 = arith.constant 0.000000e+00 : bf16
    %267 = vector.broadcast %cst_129 : bf16 to vector<1x64xbf16>
    %268 = vector.extract_strided_slice %266 {offsets = [0, 0], sizes = [7, 64], strides = [1, 1]} : vector<8x64xbf16> to vector<7x64xbf16>
    %269 = tpu.concatenate %267, %268 in 0 : vector<1x64xbf16>, vector<7x64xbf16> -> vector<8x64xbf16>
    %270 = vector.extract_strided_slice %266 {offsets = [1, 0], sizes = [7, 64], strides = [1, 1]} : vector<8x64xbf16> to vector<7x64xbf16>
    %271 = tpu.concatenate %270, %267 in 0 : vector<7x64xbf16>, vector<1x64xbf16> -> vector<8x64xbf16>
    %c0_130 = arith.constant 0 : index
    %c0_131 = arith.constant 0 : index
    %c0_132 = arith.constant 0 : index
    %272 = vector.load %arg20[%c0_130, %c0_131, %c0_132] : memref<3x64x64xbf16, #tpu.memory_space<vmem>>, vector<1x64x64xbf16>
    %273 = vector.shape_cast %272 : vector<1x64x64xbf16> to vector<64x64xbf16>
    %cst_133 = arith.constant dense<0.000000e+00> : vector<8x64xf32>
    %274 = tpu.matmul %269, %273, %cst_133 {dimension_numbers = #tpu.dot_dimension_numbers<[1], [0], [0], [1], [0, 0, 1, 1], [], []>} : vector<8x64xbf16>, vector<64x64xbf16>, vector<8x64xf32> -> vector<8x64xf32>
    %c1_134 = arith.constant 1 : index
    %c0_135 = arith.constant 0 : index
    %c0_136 = arith.constant 0 : index
    %275 = vector.load %arg20[%c1_134, %c0_135, %c0_136] : memref<3x64x64xbf16, #tpu.memory_space<vmem>>, vector<1x64x64xbf16>
    %276 = vector.shape_cast %275 : vector<1x64x64xbf16> to vector<64x64xbf16>
    %cst_137 = arith.constant dense<0.000000e+00> : vector<8x64xf32>
    %277 = tpu.matmul %266, %276, %cst_137 {dimension_numbers = #tpu.dot_dimension_numbers<[1], [0], [0], [1], [0, 0, 1, 1], [], []>} : vector<8x64xbf16>, vector<64x64xbf16>, vector<8x64xf32> -> vector<8x64xf32>
    %278 = arith.addf %274, %277 : vector<8x64xf32>
    %c2_138 = arith.constant 2 : index
    %c0_139 = arith.constant 0 : index
    %c0_140 = arith.constant 0 : index
    %279 = vector.load %arg20[%c2_138, %c0_139, %c0_140] : memref<3x64x64xbf16, #tpu.memory_space<vmem>>, vector<1x64x64xbf16>
    %280 = vector.shape_cast %279 : vector<1x64x64xbf16> to vector<64x64xbf16>
    %cst_141 = arith.constant dense<0.000000e+00> : vector<8x64xf32>
    %281 = tpu.matmul %271, %280, %cst_141 {dimension_numbers = #tpu.dot_dimension_numbers<[1], [0], [0], [1], [0, 0, 1, 1], [], []>} : vector<8x64xbf16>, vector<64x64xbf16>, vector<8x64xf32> -> vector<8x64xf32>
    %282 = arith.addf %278, %281 : vector<8x64xf32>
    %c0_142 = arith.constant 0 : index
    %c0_143 = arith.constant 0 : index
    %283 = vector.load %arg18[%c0_142, %c0_143] : memref<2x64xf32, #tpu.memory_space<vmem>>, vector<2x64xf32>
    %cst_144 = arith.constant dense<0.000000e+00> : vector<8xf32>
    %284 = vector.multi_reduction <add>, %282, %cst_144 [1] : vector<8x64xf32> to vector<8xf32>
    %285 = vector.shape_cast %284 : vector<8xf32> to vector<8x1xf32>
    %cst_145 = arith.constant dense<0.000000e+00> : vector<1xf32>
    %286 = vector.multi_reduction <add>, %285, %cst_145 [0] : vector<8x1xf32> to vector<1xf32>
    %287 = vector.shape_cast %286 : vector<1xf32> to vector<1x1xf32>
    %cst_146 = arith.constant 5.120000e+02 : f32
    %288 = vector.broadcast %cst_146 : f32 to vector<1x1xf32>
    %289 = arith.divf %287, %288 : vector<1x1xf32>
    %290 = vector.broadcast %289 : vector<1x1xf32> to vector<8x64xf32>
    %291 = arith.subf %282, %290 : vector<8x64xf32>
    %292 = arith.mulf %291, %291 : vector<8x64xf32>
    %cst_147 = arith.constant dense<0.000000e+00> : vector<8xf32>
    %293 = vector.multi_reduction <add>, %292, %cst_147 [1] : vector<8x64xf32> to vector<8xf32>
    %294 = vector.shape_cast %293 : vector<8xf32> to vector<8x1xf32>
    %cst_148 = arith.constant dense<0.000000e+00> : vector<1xf32>
    %295 = vector.multi_reduction <add>, %294, %cst_148 [0] : vector<8x1xf32> to vector<1xf32>
    %296 = vector.shape_cast %295 : vector<1xf32> to vector<1x1xf32>
    %cst_149 = arith.constant 5.120000e+02 : f32
    %297 = vector.broadcast %cst_149 : f32 to vector<1x1xf32>
    %298 = arith.divf %296, %297 : vector<1x1xf32>
    %cst_150 = arith.constant 9.99999974E-6 : f32
    %299 = vector.broadcast %cst_150 : f32 to vector<1x1xf32>
    %300 = arith.addf %298, %299 : vector<1x1xf32>
    %301 = math.rsqrt %300 : vector<1x1xf32>
    %302 = vector.broadcast %301 : vector<1x1xf32> to vector<8x64xf32>
    %303 = arith.mulf %291, %302 : vector<8x64xf32>
    %304 = vector.extract_strided_slice %283 {offsets = [0, 0], sizes = [1, 64], strides = [1, 1]} : vector<2x64xf32> to vector<1x64xf32>
    %305 = vector.broadcast %304 : vector<1x64xf32> to vector<8x64xf32>
    %306 = arith.mulf %303, %305 : vector<8x64xf32>
    %307 = vector.extract_strided_slice %283 {offsets = [1, 0], sizes = [1, 64], strides = [1, 1]} : vector<2x64xf32> to vector<1x64xf32>
    %308 = vector.broadcast %307 : vector<1x64xf32> to vector<8x64xf32>
    %309 = arith.addf %306, %308 : vector<8x64xf32>
    %310 = arith.truncf %217 : vector<16x32xf32> to vector<16x32xbf16>
    %c0_151 = arith.constant 0 : index
    %c0_152 = arith.constant 0 : index
    %311 = vector.load %arg16[%c0_151, %c0_152] : memref<32x64xbf16, #tpu.memory_space<vmem>>, vector<32x64xbf16>
    %cst_153 = arith.constant dense<0.000000e+00> : vector<16x64xf32>
    %312 = tpu.matmul %310, %311, %cst_153 {dimension_numbers = #tpu.dot_dimension_numbers<[1], [0], [0], [1], [0, 0, 1, 1], [], []>} : vector<16x32xbf16>, vector<32x64xbf16>, vector<16x64xf32> -> vector<16x64xf32>
    %c0_154 = arith.constant 0 : index
    %c0_155 = arith.constant 0 : index
    %313 = vector.load %arg2[%c0_154, %c0_155] : memref<8x16xf32, #tpu.memory_space<vmem>>, vector<8x16xf32>
    %cst_156 = arith.constant dense<0.000000e+00> : vector<8x64xf32>
    %314 = tpu.matmul %313, %312, %cst_156 {dimension_numbers = #tpu.dot_dimension_numbers<[1], [0], [0], [1], [0, 0, 1, 1], [], []>} : vector<8x16xf32>, vector<16x64xf32>, vector<8x64xf32> -> vector<8x64xf32>
    %c0_157 = arith.constant 0 : index
    %c0_158 = arith.constant 0 : index
    %315 = vector.load %arg15[%c0_157, %c0_158] : memref<2x64xf32, #tpu.memory_space<vmem>>, vector<2x64xf32>
    %cst_159 = arith.constant dense<0.000000e+00> : vector<8xf32>
    %316 = vector.multi_reduction <add>, %314, %cst_159 [1] : vector<8x64xf32> to vector<8xf32>
    %317 = vector.shape_cast %316 : vector<8xf32> to vector<8x1xf32>
    %cst_160 = arith.constant dense<0.000000e+00> : vector<1xf32>
    %318 = vector.multi_reduction <add>, %317, %cst_160 [0] : vector<8x1xf32> to vector<1xf32>
    %319 = vector.shape_cast %318 : vector<1xf32> to vector<1x1xf32>
    %cst_161 = arith.constant 5.120000e+02 : f32
    %320 = vector.broadcast %cst_161 : f32 to vector<1x1xf32>
    %321 = arith.divf %319, %320 : vector<1x1xf32>
    %322 = vector.broadcast %321 : vector<1x1xf32> to vector<8x64xf32>
    %323 = arith.subf %314, %322 : vector<8x64xf32>
    %324 = arith.mulf %323, %323 : vector<8x64xf32>
    %cst_162 = arith.constant dense<0.000000e+00> : vector<8xf32>
    %325 = vector.multi_reduction <add>, %324, %cst_162 [1] : vector<8x64xf32> to vector<8xf32>
    %326 = vector.shape_cast %325 : vector<8xf32> to vector<8x1xf32>
    %cst_163 = arith.constant dense<0.000000e+00> : vector<1xf32>
    %327 = vector.multi_reduction <add>, %326, %cst_163 [0] : vector<8x1xf32> to vector<1xf32>
    %328 = vector.shape_cast %327 : vector<1xf32> to vector<1x1xf32>
    %cst_164 = arith.constant 5.120000e+02 : f32
    %329 = vector.broadcast %cst_164 : f32 to vector<1x1xf32>
    %330 = arith.divf %328, %329 : vector<1x1xf32>
    %cst_165 = arith.constant 9.99999974E-6 : f32
    %331 = vector.broadcast %cst_165 : f32 to vector<1x1xf32>
    %332 = arith.addf %330, %331 : vector<1x1xf32>
    %333 = math.rsqrt %332 : vector<1x1xf32>
    %334 = vector.broadcast %333 : vector<1x1xf32> to vector<8x64xf32>
    %335 = arith.mulf %323, %334 : vector<8x64xf32>
    %336 = vector.extract_strided_slice %315 {offsets = [0, 0], sizes = [1, 64], strides = [1, 1]} : vector<2x64xf32> to vector<1x64xf32>
    %337 = vector.broadcast %336 : vector<1x64xf32> to vector<8x64xf32>
    %338 = arith.mulf %335, %337 : vector<8x64xf32>
    %339 = vector.extract_strided_slice %315 {offsets = [1, 0], sizes = [1, 64], strides = [1, 1]} : vector<2x64xf32> to vector<1x64xf32>
    %340 = vector.broadcast %339 : vector<1x64xf32> to vector<8x64xf32>
    %341 = arith.addf %338, %340 : vector<8x64xf32>
    %342 = arith.addf %309, %341 : vector<8x64xf32>
    %cst_166 = arith.constant 0.000000e+00 : f32
    %343 = vector.broadcast %cst_166 : f32 to vector<8x64xf32>
    %344 = arith.maximumf %342, %343 : vector<8x64xf32>
    %345 = arith.truncf %344 : vector<8x64xf32> to vector<8x64xbf16>
    %cst_167 = arith.constant 0.000000e+00 : bf16
    %346 = vector.broadcast %cst_167 : bf16 to vector<1x64xbf16>
    %347 = vector.extract_strided_slice %345 {offsets = [0, 0], sizes = [7, 64], strides = [1, 1]} : vector<8x64xbf16> to vector<7x64xbf16>
    %348 = tpu.concatenate %346, %347 in 0 : vector<1x64xbf16>, vector<7x64xbf16> -> vector<8x64xbf16>
    %349 = vector.extract_strided_slice %345 {offsets = [1, 0], sizes = [7, 64], strides = [1, 1]} : vector<8x64xbf16> to vector<7x64xbf16>
    %350 = tpu.concatenate %349, %346 in 0 : vector<7x64xbf16>, vector<1x64xbf16> -> vector<8x64xbf16>
    %c0_168 = arith.constant 0 : index
    %c0_169 = arith.constant 0 : index
    %c0_170 = arith.constant 0 : index
    %351 = vector.load %arg23[%c0_168, %c0_169, %c0_170] : memref<3x64x64xbf16, #tpu.memory_space<vmem>>, vector<1x64x64xbf16>
    %352 = vector.shape_cast %351 : vector<1x64x64xbf16> to vector<64x64xbf16>
    %cst_171 = arith.constant dense<0.000000e+00> : vector<8x64xf32>
    %353 = tpu.matmul %348, %352, %cst_171 {dimension_numbers = #tpu.dot_dimension_numbers<[1], [0], [0], [1], [0, 0, 1, 1], [], []>} : vector<8x64xbf16>, vector<64x64xbf16>, vector<8x64xf32> -> vector<8x64xf32>
    %c1_172 = arith.constant 1 : index
    %c0_173 = arith.constant 0 : index
    %c0_174 = arith.constant 0 : index
    %354 = vector.load %arg23[%c1_172, %c0_173, %c0_174] : memref<3x64x64xbf16, #tpu.memory_space<vmem>>, vector<1x64x64xbf16>
    %355 = vector.shape_cast %354 : vector<1x64x64xbf16> to vector<64x64xbf16>
    %cst_175 = arith.constant dense<0.000000e+00> : vector<8x64xf32>
    %356 = tpu.matmul %345, %355, %cst_175 {dimension_numbers = #tpu.dot_dimension_numbers<[1], [0], [0], [1], [0, 0, 1, 1], [], []>} : vector<8x64xbf16>, vector<64x64xbf16>, vector<8x64xf32> -> vector<8x64xf32>
    %357 = arith.addf %353, %356 : vector<8x64xf32>
    %c2_176 = arith.constant 2 : index
    %c0_177 = arith.constant 0 : index
    %c0_178 = arith.constant 0 : index
    %358 = vector.load %arg23[%c2_176, %c0_177, %c0_178] : memref<3x64x64xbf16, #tpu.memory_space<vmem>>, vector<1x64x64xbf16>
    %359 = vector.shape_cast %358 : vector<1x64x64xbf16> to vector<64x64xbf16>
    %cst_179 = arith.constant dense<0.000000e+00> : vector<8x64xf32>
    %360 = tpu.matmul %350, %359, %cst_179 {dimension_numbers = #tpu.dot_dimension_numbers<[1], [0], [0], [1], [0, 0, 1, 1], [], []>} : vector<8x64xbf16>, vector<64x64xbf16>, vector<8x64xf32> -> vector<8x64xf32>
    %361 = arith.addf %357, %360 : vector<8x64xf32>
    %c0_180 = arith.constant 0 : index
    %c0_181 = arith.constant 0 : index
    %362 = vector.load %arg21[%c0_180, %c0_181] : memref<2x64xf32, #tpu.memory_space<vmem>>, vector<2x64xf32>
    %cst_182 = arith.constant dense<0.000000e+00> : vector<8xf32>
    %363 = vector.multi_reduction <add>, %361, %cst_182 [1] : vector<8x64xf32> to vector<8xf32>
    %364 = vector.shape_cast %363 : vector<8xf32> to vector<8x1xf32>
    %cst_183 = arith.constant dense<0.000000e+00> : vector<1xf32>
    %365 = vector.multi_reduction <add>, %364, %cst_183 [0] : vector<8x1xf32> to vector<1xf32>
    %366 = vector.shape_cast %365 : vector<1xf32> to vector<1x1xf32>
    %cst_184 = arith.constant 5.120000e+02 : f32
    %367 = vector.broadcast %cst_184 : f32 to vector<1x1xf32>
    %368 = arith.divf %366, %367 : vector<1x1xf32>
    %369 = vector.broadcast %368 : vector<1x1xf32> to vector<8x64xf32>
    %370 = arith.subf %361, %369 : vector<8x64xf32>
    %371 = arith.mulf %370, %370 : vector<8x64xf32>
    %cst_185 = arith.constant dense<0.000000e+00> : vector<8xf32>
    %372 = vector.multi_reduction <add>, %371, %cst_185 [1] : vector<8x64xf32> to vector<8xf32>
    %373 = vector.shape_cast %372 : vector<8xf32> to vector<8x1xf32>
    %cst_186 = arith.constant dense<0.000000e+00> : vector<1xf32>
    %374 = vector.multi_reduction <add>, %373, %cst_186 [0] : vector<8x1xf32> to vector<1xf32>
    %375 = vector.shape_cast %374 : vector<1xf32> to vector<1x1xf32>
    %cst_187 = arith.constant 5.120000e+02 : f32
    %376 = vector.broadcast %cst_187 : f32 to vector<1x1xf32>
    %377 = arith.divf %375, %376 : vector<1x1xf32>
    %cst_188 = arith.constant 9.99999974E-6 : f32
    %378 = vector.broadcast %cst_188 : f32 to vector<1x1xf32>
    %379 = arith.addf %377, %378 : vector<1x1xf32>
    %380 = math.rsqrt %379 : vector<1x1xf32>
    %381 = vector.broadcast %380 : vector<1x1xf32> to vector<8x64xf32>
    %382 = arith.mulf %370, %381 : vector<8x64xf32>
    %383 = vector.extract_strided_slice %362 {offsets = [0, 0], sizes = [1, 64], strides = [1, 1]} : vector<2x64xf32> to vector<1x64xf32>
    %384 = vector.broadcast %383 : vector<1x64xf32> to vector<8x64xf32>
    %385 = arith.mulf %382, %384 : vector<8x64xf32>
    %386 = vector.extract_strided_slice %362 {offsets = [1, 0], sizes = [1, 64], strides = [1, 1]} : vector<2x64xf32> to vector<1x64xf32>
    %387 = vector.broadcast %386 : vector<1x64xf32> to vector<8x64xf32>
    %388 = arith.addf %385, %387 : vector<8x64xf32>
    %cst_189 = arith.constant 0.000000e+00 : f32
    %389 = vector.broadcast %cst_189 : f32 to vector<8x64xf32>
    %390 = arith.maximumf %388, %389 : vector<8x64xf32>
    %391 = arith.truncf %390 : vector<8x64xf32> to vector<8x64xbf16>
    %cst_190 = arith.constant 0.000000e+00 : bf16
    %392 = vector.broadcast %cst_190 : bf16 to vector<1x64xbf16>
    %393 = vector.extract_strided_slice %391 {offsets = [0, 0], sizes = [7, 64], strides = [1, 1]} : vector<8x64xbf16> to vector<7x64xbf16>
    %394 = tpu.concatenate %392, %393 in 0 : vector<1x64xbf16>, vector<7x64xbf16> -> vector<8x64xbf16>
    %395 = vector.extract_strided_slice %391 {offsets = [1, 0], sizes = [7, 64], strides = [1, 1]} : vector<8x64xbf16> to vector<7x64xbf16>
    %396 = tpu.concatenate %395, %392 in 0 : vector<7x64xbf16>, vector<1x64xbf16> -> vector<8x64xbf16>
    %c0_191 = arith.constant 0 : index
    %c0_192 = arith.constant 0 : index
    %c0_193 = arith.constant 0 : index
    %397 = vector.load %arg24[%c0_191, %c0_192, %c0_193] : memref<3x64x64xbf16, #tpu.memory_space<vmem>>, vector<1x64x64xbf16>
    %398 = vector.shape_cast %397 : vector<1x64x64xbf16> to vector<64x64xbf16>
    %cst_194 = arith.constant dense<0.000000e+00> : vector<8x64xf32>
    %399 = tpu.matmul %394, %398, %cst_194 {dimension_numbers = #tpu.dot_dimension_numbers<[1], [0], [0], [1], [0, 0, 1, 1], [], []>} : vector<8x64xbf16>, vector<64x64xbf16>, vector<8x64xf32> -> vector<8x64xf32>
    %c1_195 = arith.constant 1 : index
    %c0_196 = arith.constant 0 : index
    %c0_197 = arith.constant 0 : index
    %400 = vector.load %arg24[%c1_195, %c0_196, %c0_197] : memref<3x64x64xbf16, #tpu.memory_space<vmem>>, vector<1x64x64xbf16>
    %401 = vector.shape_cast %400 : vector<1x64x64xbf16> to vector<64x64xbf16>
    %cst_198 = arith.constant dense<0.000000e+00> : vector<8x64xf32>
    %402 = tpu.matmul %391, %401, %cst_198 {dimension_numbers = #tpu.dot_dimension_numbers<[1], [0], [0], [1], [0, 0, 1, 1], [], []>} : vector<8x64xbf16>, vector<64x64xbf16>, vector<8x64xf32> -> vector<8x64xf32>
    %403 = arith.addf %399, %402 : vector<8x64xf32>
    %c2_199 = arith.constant 2 : index
    %c0_200 = arith.constant 0 : index
    %c0_201 = arith.constant 0 : index
    %404 = vector.load %arg24[%c2_199, %c0_200, %c0_201] : memref<3x64x64xbf16, #tpu.memory_space<vmem>>, vector<1x64x64xbf16>
    %405 = vector.shape_cast %404 : vector<1x64x64xbf16> to vector<64x64xbf16>
    %cst_202 = arith.constant dense<0.000000e+00> : vector<8x64xf32>
    %406 = tpu.matmul %396, %405, %cst_202 {dimension_numbers = #tpu.dot_dimension_numbers<[1], [0], [0], [1], [0, 0, 1, 1], [], []>} : vector<8x64xbf16>, vector<64x64xbf16>, vector<8x64xf32> -> vector<8x64xf32>
    %407 = arith.addf %403, %406 : vector<8x64xf32>
    %c0_203 = arith.constant 0 : index
    %c0_204 = arith.constant 0 : index
    %408 = vector.load %arg22[%c0_203, %c0_204] : memref<2x64xf32, #tpu.memory_space<vmem>>, vector<2x64xf32>
    %cst_205 = arith.constant dense<0.000000e+00> : vector<8xf32>
    %409 = vector.multi_reduction <add>, %407, %cst_205 [1] : vector<8x64xf32> to vector<8xf32>
    %410 = vector.shape_cast %409 : vector<8xf32> to vector<8x1xf32>
    %cst_206 = arith.constant dense<0.000000e+00> : vector<1xf32>
    %411 = vector.multi_reduction <add>, %410, %cst_206 [0] : vector<8x1xf32> to vector<1xf32>
    %412 = vector.shape_cast %411 : vector<1xf32> to vector<1x1xf32>
    %cst_207 = arith.constant 5.120000e+02 : f32
    %413 = vector.broadcast %cst_207 : f32 to vector<1x1xf32>
    %414 = arith.divf %412, %413 : vector<1x1xf32>
    %415 = vector.broadcast %414 : vector<1x1xf32> to vector<8x64xf32>
    %416 = arith.subf %407, %415 : vector<8x64xf32>
    %417 = arith.mulf %416, %416 : vector<8x64xf32>
    %cst_208 = arith.constant dense<0.000000e+00> : vector<8xf32>
    %418 = vector.multi_reduction <add>, %417, %cst_208 [1] : vector<8x64xf32> to vector<8xf32>
    %419 = vector.shape_cast %418 : vector<8xf32> to vector<8x1xf32>
    %cst_209 = arith.constant dense<0.000000e+00> : vector<1xf32>
    %420 = vector.multi_reduction <add>, %419, %cst_209 [0] : vector<8x1xf32> to vector<1xf32>
    %421 = vector.shape_cast %420 : vector<1xf32> to vector<1x1xf32>
    %cst_210 = arith.constant 5.120000e+02 : f32
    %422 = vector.broadcast %cst_210 : f32 to vector<1x1xf32>
    %423 = arith.divf %421, %422 : vector<1x1xf32>
    %cst_211 = arith.constant 9.99999974E-6 : f32
    %424 = vector.broadcast %cst_211 : f32 to vector<1x1xf32>
    %425 = arith.addf %423, %424 : vector<1x1xf32>
    %426 = math.rsqrt %425 : vector<1x1xf32>
    %427 = vector.broadcast %426 : vector<1x1xf32> to vector<8x64xf32>
    %428 = arith.mulf %416, %427 : vector<8x64xf32>
    %429 = vector.extract_strided_slice %408 {offsets = [0, 0], sizes = [1, 64], strides = [1, 1]} : vector<2x64xf32> to vector<1x64xf32>
    %430 = vector.broadcast %429 : vector<1x64xf32> to vector<8x64xf32>
    %431 = arith.mulf %428, %430 : vector<8x64xf32>
    %432 = vector.extract_strided_slice %408 {offsets = [1, 0], sizes = [1, 64], strides = [1, 1]} : vector<2x64xf32> to vector<1x64xf32>
    %433 = vector.broadcast %432 : vector<1x64xf32> to vector<8x64xf32>
    %434 = arith.addf %431, %433 : vector<8x64xf32>
    %435 = arith.addf %434, %344 : vector<8x64xf32>
    %cst_212 = arith.constant 0.000000e+00 : f32
    %436 = vector.broadcast %cst_212 : f32 to vector<8x64xf32>
    %437 = arith.maximumf %435, %436 : vector<8x64xf32>
    %438 = arith.truncf %437 : vector<8x64xf32> to vector<8x64xbf16>
    %cst_213 = arith.constant 0.000000e+00 : bf16
    %439 = vector.broadcast %cst_213 : bf16 to vector<1x64xbf16>
    %440 = vector.extract_strided_slice %438 {offsets = [0, 0], sizes = [7, 64], strides = [1, 1]} : vector<8x64xbf16> to vector<7x64xbf16>
    %441 = tpu.concatenate %439, %440 in 0 : vector<1x64xbf16>, vector<7x64xbf16> -> vector<8x64xbf16>
    %442 = vector.extract_strided_slice %438 {offsets = [1, 0], sizes = [7, 64], strides = [1, 1]} : vector<8x64xbf16> to vector<7x64xbf16>
    %443 = tpu.concatenate %442, %439 in 0 : vector<7x64xbf16>, vector<1x64xbf16> -> vector<8x64xbf16>
    %c0_214 = arith.constant 0 : index
    %c0_215 = arith.constant 0 : index
    %c0_216 = arith.constant 0 : index
    %444 = vector.load %arg29[%c0_214, %c0_215, %c0_216] : memref<3x64x128xbf16, #tpu.memory_space<vmem>>, vector<1x64x128xbf16>
    %445 = vector.shape_cast %444 : vector<1x64x128xbf16> to vector<64x128xbf16>
    %cst_217 = arith.constant dense<0.000000e+00> : vector<8x128xf32>
    %446 = tpu.matmul %441, %445, %cst_217 {dimension_numbers = #tpu.dot_dimension_numbers<[1], [0], [0], [1], [0, 0, 1, 1], [], []>} : vector<8x64xbf16>, vector<64x128xbf16>, vector<8x128xf32> -> vector<8x128xf32>
    %c1_218 = arith.constant 1 : index
    %c0_219 = arith.constant 0 : index
    %c0_220 = arith.constant 0 : index
    %447 = vector.load %arg29[%c1_218, %c0_219, %c0_220] : memref<3x64x128xbf16, #tpu.memory_space<vmem>>, vector<1x64x128xbf16>
    %448 = vector.shape_cast %447 : vector<1x64x128xbf16> to vector<64x128xbf16>
    %cst_221 = arith.constant dense<0.000000e+00> : vector<8x128xf32>
    %449 = tpu.matmul %438, %448, %cst_221 {dimension_numbers = #tpu.dot_dimension_numbers<[1], [0], [0], [1], [0, 0, 1, 1], [], []>} : vector<8x64xbf16>, vector<64x128xbf16>, vector<8x128xf32> -> vector<8x128xf32>
    %450 = arith.addf %446, %449 : vector<8x128xf32>
    %c2_222 = arith.constant 2 : index
    %c0_223 = arith.constant 0 : index
    %c0_224 = arith.constant 0 : index
    %451 = vector.load %arg29[%c2_222, %c0_223, %c0_224] : memref<3x64x128xbf16, #tpu.memory_space<vmem>>, vector<1x64x128xbf16>
    %452 = vector.shape_cast %451 : vector<1x64x128xbf16> to vector<64x128xbf16>
    %cst_225 = arith.constant dense<0.000000e+00> : vector<8x128xf32>
    %453 = tpu.matmul %443, %452, %cst_225 {dimension_numbers = #tpu.dot_dimension_numbers<[1], [0], [0], [1], [0, 0, 1, 1], [], []>} : vector<8x64xbf16>, vector<64x128xbf16>, vector<8x128xf32> -> vector<8x128xf32>
    %454 = arith.addf %450, %453 : vector<8x128xf32>
    %c0_226 = arith.constant 0 : index
    %c0_227 = arith.constant 0 : index
    %455 = vector.load %arg3[%c0_226, %c0_227] : memref<4x8xf32, #tpu.memory_space<vmem>>, vector<4x8xf32>
    %cst_228 = arith.constant dense<0.000000e+00> : vector<4x128xf32>
    %456 = tpu.matmul %455, %454, %cst_228 {dimension_numbers = #tpu.dot_dimension_numbers<[1], [0], [0], [1], [0, 0, 1, 1], [], []>} : vector<4x8xf32>, vector<8x128xf32>, vector<4x128xf32> -> vector<4x128xf32>
    %c0_229 = arith.constant 0 : index
    %c0_230 = arith.constant 0 : index
    %457 = vector.load %arg27[%c0_229, %c0_230] : memref<2x128xf32, #tpu.memory_space<vmem>>, vector<2x128xf32>
    %cst_231 = arith.constant dense<0.000000e+00> : vector<4xf32>
    %458 = vector.multi_reduction <add>, %456, %cst_231 [1] : vector<4x128xf32> to vector<4xf32>
    %459 = vector.shape_cast %458 : vector<4xf32> to vector<4x1xf32>
    %cst_232 = arith.constant dense<0.000000e+00> : vector<1xf32>
    %460 = vector.multi_reduction <add>, %459, %cst_232 [0] : vector<4x1xf32> to vector<1xf32>
    %461 = vector.shape_cast %460 : vector<1xf32> to vector<1x1xf32>
    %cst_233 = arith.constant 5.120000e+02 : f32
    %462 = vector.broadcast %cst_233 : f32 to vector<1x1xf32>
    %463 = arith.divf %461, %462 : vector<1x1xf32>
    %464 = vector.broadcast %463 : vector<1x1xf32> to vector<4x128xf32>
    %465 = arith.subf %456, %464 : vector<4x128xf32>
    %466 = arith.mulf %465, %465 : vector<4x128xf32>
    %cst_234 = arith.constant dense<0.000000e+00> : vector<4xf32>
    %467 = vector.multi_reduction <add>, %466, %cst_234 [1] : vector<4x128xf32> to vector<4xf32>
    %468 = vector.shape_cast %467 : vector<4xf32> to vector<4x1xf32>
    %cst_235 = arith.constant dense<0.000000e+00> : vector<1xf32>
    %469 = vector.multi_reduction <add>, %468, %cst_235 [0] : vector<4x1xf32> to vector<1xf32>
    %470 = vector.shape_cast %469 : vector<1xf32> to vector<1x1xf32>
    %cst_236 = arith.constant 5.120000e+02 : f32
    %471 = vector.broadcast %cst_236 : f32 to vector<1x1xf32>
    %472 = arith.divf %470, %471 : vector<1x1xf32>
    %cst_237 = arith.constant 9.99999974E-6 : f32
    %473 = vector.broadcast %cst_237 : f32 to vector<1x1xf32>
    %474 = arith.addf %472, %473 : vector<1x1xf32>
    %475 = math.rsqrt %474 : vector<1x1xf32>
    %476 = vector.broadcast %475 : vector<1x1xf32> to vector<4x128xf32>
    %477 = arith.mulf %465, %476 : vector<4x128xf32>
    %478 = vector.extract_strided_slice %457 {offsets = [0, 0], sizes = [1, 128], strides = [1, 1]} : vector<2x128xf32> to vector<1x128xf32>
    %479 = vector.broadcast %478 : vector<1x128xf32> to vector<4x128xf32>
    %480 = arith.mulf %477, %479 : vector<4x128xf32>
    %481 = vector.extract_strided_slice %457 {offsets = [1, 0], sizes = [1, 128], strides = [1, 1]} : vector<2x128xf32> to vector<1x128xf32>
    %482 = vector.broadcast %481 : vector<1x128xf32> to vector<4x128xf32>
    %483 = arith.addf %480, %482 : vector<4x128xf32>
    %cst_238 = arith.constant 0.000000e+00 : f32
    %484 = vector.broadcast %cst_238 : f32 to vector<4x128xf32>
    %485 = arith.maximumf %483, %484 : vector<4x128xf32>
    %486 = arith.truncf %485 : vector<4x128xf32> to vector<4x128xbf16>
    %cst_239 = arith.constant 0.000000e+00 : bf16
    %487 = vector.broadcast %cst_239 : bf16 to vector<1x128xbf16>
    %488 = vector.extract_strided_slice %486 {offsets = [0, 0], sizes = [3, 128], strides = [1, 1]} : vector<4x128xbf16> to vector<3x128xbf16>
    %489 = tpu.concatenate %487, %488 in 0 : vector<1x128xbf16>, vector<3x128xbf16> -> vector<4x128xbf16>
    %490 = vector.extract_strided_slice %486 {offsets = [1, 0], sizes = [3, 128], strides = [1, 1]} : vector<4x128xbf16> to vector<3x128xbf16>
    %491 = tpu.concatenate %490, %487 in 0 : vector<3x128xbf16>, vector<1x128xbf16> -> vector<4x128xbf16>
    %c0_240 = arith.constant 0 : index
    %c0_241 = arith.constant 0 : index
    %c0_242 = arith.constant 0 : index
    %492 = vector.load %arg30[%c0_240, %c0_241, %c0_242] : memref<3x128x128xbf16, #tpu.memory_space<vmem>>, vector<1x128x128xbf16>
    %493 = vector.shape_cast %492 : vector<1x128x128xbf16> to vector<128x128xbf16>
    %cst_243 = arith.constant dense<0.000000e+00> : vector<4x128xf32>
    %494 = tpu.matmul %489, %493, %cst_243 {dimension_numbers = #tpu.dot_dimension_numbers<[1], [0], [0], [1], [0, 0, 1, 1], [], []>} : vector<4x128xbf16>, vector<128x128xbf16>, vector<4x128xf32> -> vector<4x128xf32>
    %c1_244 = arith.constant 1 : index
    %c0_245 = arith.constant 0 : index
    %c0_246 = arith.constant 0 : index
    %495 = vector.load %arg30[%c1_244, %c0_245, %c0_246] : memref<3x128x128xbf16, #tpu.memory_space<vmem>>, vector<1x128x128xbf16>
    %496 = vector.shape_cast %495 : vector<1x128x128xbf16> to vector<128x128xbf16>
    %cst_247 = arith.constant dense<0.000000e+00> : vector<4x128xf32>
    %497 = tpu.matmul %486, %496, %cst_247 {dimension_numbers = #tpu.dot_dimension_numbers<[1], [0], [0], [1], [0, 0, 1, 1], [], []>} : vector<4x128xbf16>, vector<128x128xbf16>, vector<4x128xf32> -> vector<4x128xf32>
    %498 = arith.addf %494, %497 : vector<4x128xf32>
    %c2_248 = arith.constant 2 : index
    %c0_249 = arith.constant 0 : index
    %c0_250 = arith.constant 0 : index
    %499 = vector.load %arg30[%c2_248, %c0_249, %c0_250] : memref<3x128x128xbf16, #tpu.memory_space<vmem>>, vector<1x128x128xbf16>
    %500 = vector.shape_cast %499 : vector<1x128x128xbf16> to vector<128x128xbf16>
    %cst_251 = arith.constant dense<0.000000e+00> : vector<4x128xf32>
    %501 = tpu.matmul %491, %500, %cst_251 {dimension_numbers = #tpu.dot_dimension_numbers<[1], [0], [0], [1], [0, 0, 1, 1], [], []>} : vector<4x128xbf16>, vector<128x128xbf16>, vector<4x128xf32> -> vector<4x128xf32>
    %502 = arith.addf %498, %501 : vector<4x128xf32>
    %c0_252 = arith.constant 0 : index
    %c0_253 = arith.constant 0 : index
    %503 = vector.load %arg28[%c0_252, %c0_253] : memref<2x128xf32, #tpu.memory_space<vmem>>, vector<2x128xf32>
    %cst_254 = arith.constant dense<0.000000e+00> : vector<4xf32>
    %504 = vector.multi_reduction <add>, %502, %cst_254 [1] : vector<4x128xf32> to vector<4xf32>
    %505 = vector.shape_cast %504 : vector<4xf32> to vector<4x1xf32>
    %cst_255 = arith.constant dense<0.000000e+00> : vector<1xf32>
    %506 = vector.multi_reduction <add>, %505, %cst_255 [0] : vector<4x1xf32> to vector<1xf32>
    %507 = vector.shape_cast %506 : vector<1xf32> to vector<1x1xf32>
    %cst_256 = arith.constant 5.120000e+02 : f32
    %508 = vector.broadcast %cst_256 : f32 to vector<1x1xf32>
    %509 = arith.divf %507, %508 : vector<1x1xf32>
    %510 = vector.broadcast %509 : vector<1x1xf32> to vector<4x128xf32>
    %511 = arith.subf %502, %510 : vector<4x128xf32>
    %512 = arith.mulf %511, %511 : vector<4x128xf32>
    %cst_257 = arith.constant dense<0.000000e+00> : vector<4xf32>
    %513 = vector.multi_reduction <add>, %512, %cst_257 [1] : vector<4x128xf32> to vector<4xf32>
    %514 = vector.shape_cast %513 : vector<4xf32> to vector<4x1xf32>
    %cst_258 = arith.constant dense<0.000000e+00> : vector<1xf32>
    %515 = vector.multi_reduction <add>, %514, %cst_258 [0] : vector<4x1xf32> to vector<1xf32>
    %516 = vector.shape_cast %515 : vector<1xf32> to vector<1x1xf32>
    %cst_259 = arith.constant 5.120000e+02 : f32
    %517 = vector.broadcast %cst_259 : f32 to vector<1x1xf32>
    %518 = arith.divf %516, %517 : vector<1x1xf32>
    %cst_260 = arith.constant 9.99999974E-6 : f32
    %519 = vector.broadcast %cst_260 : f32 to vector<1x1xf32>
    %520 = arith.addf %518, %519 : vector<1x1xf32>
    %521 = math.rsqrt %520 : vector<1x1xf32>
    %522 = vector.broadcast %521 : vector<1x1xf32> to vector<4x128xf32>
    %523 = arith.mulf %511, %522 : vector<4x128xf32>
    %524 = vector.extract_strided_slice %503 {offsets = [0, 0], sizes = [1, 128], strides = [1, 1]} : vector<2x128xf32> to vector<1x128xf32>
    %525 = vector.broadcast %524 : vector<1x128xf32> to vector<4x128xf32>
    %526 = arith.mulf %523, %525 : vector<4x128xf32>
    %527 = vector.extract_strided_slice %503 {offsets = [1, 0], sizes = [1, 128], strides = [1, 1]} : vector<2x128xf32> to vector<1x128xf32>
    %528 = vector.broadcast %527 : vector<1x128xf32> to vector<4x128xf32>
    %529 = arith.addf %526, %528 : vector<4x128xf32>
    %530 = arith.truncf %437 : vector<8x64xf32> to vector<8x64xbf16>
    %c0_261 = arith.constant 0 : index
    %c0_262 = arith.constant 0 : index
    %531 = vector.load %arg26[%c0_261, %c0_262] : memref<64x128xbf16, #tpu.memory_space<vmem>>, vector<64x128xbf16>
    %cst_263 = arith.constant dense<0.000000e+00> : vector<8x128xf32>
    %532 = tpu.matmul %530, %531, %cst_263 {dimension_numbers = #tpu.dot_dimension_numbers<[1], [0], [0], [1], [0, 0, 1, 1], [], []>} : vector<8x64xbf16>, vector<64x128xbf16>, vector<8x128xf32> -> vector<8x128xf32>
    %c0_264 = arith.constant 0 : index
    %c0_265 = arith.constant 0 : index
    %533 = vector.load %arg3[%c0_264, %c0_265] : memref<4x8xf32, #tpu.memory_space<vmem>>, vector<4x8xf32>
    %cst_266 = arith.constant dense<0.000000e+00> : vector<4x128xf32>
    %534 = tpu.matmul %533, %532, %cst_266 {dimension_numbers = #tpu.dot_dimension_numbers<[1], [0], [0], [1], [0, 0, 1, 1], [], []>} : vector<4x8xf32>, vector<8x128xf32>, vector<4x128xf32> -> vector<4x128xf32>
    %c0_267 = arith.constant 0 : index
    %c0_268 = arith.constant 0 : index
    %535 = vector.load %arg25[%c0_267, %c0_268] : memref<2x128xf32, #tpu.memory_space<vmem>>, vector<2x128xf32>
    %cst_269 = arith.constant dense<0.000000e+00> : vector<4xf32>
    %536 = vector.multi_reduction <add>, %534, %cst_269 [1] : vector<4x128xf32> to vector<4xf32>
    %537 = vector.shape_cast %536 : vector<4xf32> to vector<4x1xf32>
    %cst_270 = arith.constant dense<0.000000e+00> : vector<1xf32>
    %538 = vector.multi_reduction <add>, %537, %cst_270 [0] : vector<4x1xf32> to vector<1xf32>
    %539 = vector.shape_cast %538 : vector<1xf32> to vector<1x1xf32>
    %cst_271 = arith.constant 5.120000e+02 : f32
    %540 = vector.broadcast %cst_271 : f32 to vector<1x1xf32>
    %541 = arith.divf %539, %540 : vector<1x1xf32>
    %542 = vector.broadcast %541 : vector<1x1xf32> to vector<4x128xf32>
    %543 = arith.subf %534, %542 : vector<4x128xf32>
    %544 = arith.mulf %543, %543 : vector<4x128xf32>
    %cst_272 = arith.constant dense<0.000000e+00> : vector<4xf32>
    %545 = vector.multi_reduction <add>, %544, %cst_272 [1] : vector<4x128xf32> to vector<4xf32>
    %546 = vector.shape_cast %545 : vector<4xf32> to vector<4x1xf32>
    %cst_273 = arith.constant dense<0.000000e+00> : vector<1xf32>
    %547 = vector.multi_reduction <add>, %546, %cst_273 [0] : vector<4x1xf32> to vector<1xf32>
    %548 = vector.shape_cast %547 : vector<1xf32> to vector<1x1xf32>
    %cst_274 = arith.constant 5.120000e+02 : f32
    %549 = vector.broadcast %cst_274 : f32 to vector<1x1xf32>
    %550 = arith.divf %548, %549 : vector<1x1xf32>
    %cst_275 = arith.constant 9.99999974E-6 : f32
    %551 = vector.broadcast %cst_275 : f32 to vector<1x1xf32>
    %552 = arith.addf %550, %551 : vector<1x1xf32>
    %553 = math.rsqrt %552 : vector<1x1xf32>
    %554 = vector.broadcast %553 : vector<1x1xf32> to vector<4x128xf32>
    %555 = arith.mulf %543, %554 : vector<4x128xf32>
    %556 = vector.extract_strided_slice %535 {offsets = [0, 0], sizes = [1, 128], strides = [1, 1]} : vector<2x128xf32> to vector<1x128xf32>
    %557 = vector.broadcast %556 : vector<1x128xf32> to vector<4x128xf32>
    %558 = arith.mulf %555, %557 : vector<4x128xf32>
    %559 = vector.extract_strided_slice %535 {offsets = [1, 0], sizes = [1, 128], strides = [1, 1]} : vector<2x128xf32> to vector<1x128xf32>
    %560 = vector.broadcast %559 : vector<1x128xf32> to vector<4x128xf32>
    %561 = arith.addf %558, %560 : vector<4x128xf32>
    %562 = arith.addf %529, %561 : vector<4x128xf32>
    %cst_276 = arith.constant 0.000000e+00 : f32
    %563 = vector.broadcast %cst_276 : f32 to vector<4x128xf32>
    %564 = arith.maximumf %562, %563 : vector<4x128xf32>
    %565 = arith.truncf %564 : vector<4x128xf32> to vector<4x128xbf16>
    %cst_277 = arith.constant 0.000000e+00 : bf16
    %566 = vector.broadcast %cst_277 : bf16 to vector<1x128xbf16>
    %567 = vector.extract_strided_slice %565 {offsets = [0, 0], sizes = [3, 128], strides = [1, 1]} : vector<4x128xbf16> to vector<3x128xbf16>
    %568 = tpu.concatenate %566, %567 in 0 : vector<1x128xbf16>, vector<3x128xbf16> -> vector<4x128xbf16>
    %569 = vector.extract_strided_slice %565 {offsets = [1, 0], sizes = [3, 128], strides = [1, 1]} : vector<4x128xbf16> to vector<3x128xbf16>
    %570 = tpu.concatenate %569, %566 in 0 : vector<3x128xbf16>, vector<1x128xbf16> -> vector<4x128xbf16>
    %c0_278 = arith.constant 0 : index
    %c0_279 = arith.constant 0 : index
    %c0_280 = arith.constant 0 : index
    %571 = vector.load %arg33[%c0_278, %c0_279, %c0_280] : memref<3x128x128xbf16, #tpu.memory_space<vmem>>, vector<1x128x128xbf16>
    %572 = vector.shape_cast %571 : vector<1x128x128xbf16> to vector<128x128xbf16>
    %cst_281 = arith.constant dense<0.000000e+00> : vector<4x128xf32>
    %573 = tpu.matmul %568, %572, %cst_281 {dimension_numbers = #tpu.dot_dimension_numbers<[1], [0], [0], [1], [0, 0, 1, 1], [], []>} : vector<4x128xbf16>, vector<128x128xbf16>, vector<4x128xf32> -> vector<4x128xf32>
    %c1_282 = arith.constant 1 : index
    %c0_283 = arith.constant 0 : index
    %c0_284 = arith.constant 0 : index
    %574 = vector.load %arg33[%c1_282, %c0_283, %c0_284] : memref<3x128x128xbf16, #tpu.memory_space<vmem>>, vector<1x128x128xbf16>
    %575 = vector.shape_cast %574 : vector<1x128x128xbf16> to vector<128x128xbf16>
    %cst_285 = arith.constant dense<0.000000e+00> : vector<4x128xf32>
    %576 = tpu.matmul %565, %575, %cst_285 {dimension_numbers = #tpu.dot_dimension_numbers<[1], [0], [0], [1], [0, 0, 1, 1], [], []>} : vector<4x128xbf16>, vector<128x128xbf16>, vector<4x128xf32> -> vector<4x128xf32>
    %577 = arith.addf %573, %576 : vector<4x128xf32>
    %c2_286 = arith.constant 2 : index
    %c0_287 = arith.constant 0 : index
    %c0_288 = arith.constant 0 : index
    %578 = vector.load %arg33[%c2_286, %c0_287, %c0_288] : memref<3x128x128xbf16, #tpu.memory_space<vmem>>, vector<1x128x128xbf16>
    %579 = vector.shape_cast %578 : vector<1x128x128xbf16> to vector<128x128xbf16>
    %cst_289 = arith.constant dense<0.000000e+00> : vector<4x128xf32>
    %580 = tpu.matmul %570, %579, %cst_289 {dimension_numbers = #tpu.dot_dimension_numbers<[1], [0], [0], [1], [0, 0, 1, 1], [], []>} : vector<4x128xbf16>, vector<128x128xbf16>, vector<4x128xf32> -> vector<4x128xf32>
    %581 = arith.addf %577, %580 : vector<4x128xf32>
    %c0_290 = arith.constant 0 : index
    %c0_291 = arith.constant 0 : index
    %582 = vector.load %arg31[%c0_290, %c0_291] : memref<2x128xf32, #tpu.memory_space<vmem>>, vector<2x128xf32>
    %cst_292 = arith.constant dense<0.000000e+00> : vector<4xf32>
    %583 = vector.multi_reduction <add>, %581, %cst_292 [1] : vector<4x128xf32> to vector<4xf32>
    %584 = vector.shape_cast %583 : vector<4xf32> to vector<4x1xf32>
    %cst_293 = arith.constant dense<0.000000e+00> : vector<1xf32>
    %585 = vector.multi_reduction <add>, %584, %cst_293 [0] : vector<4x1xf32> to vector<1xf32>
    %586 = vector.shape_cast %585 : vector<1xf32> to vector<1x1xf32>
    %cst_294 = arith.constant 5.120000e+02 : f32
    %587 = vector.broadcast %cst_294 : f32 to vector<1x1xf32>
    %588 = arith.divf %586, %587 : vector<1x1xf32>
    %589 = vector.broadcast %588 : vector<1x1xf32> to vector<4x128xf32>
    %590 = arith.subf %581, %589 : vector<4x128xf32>
    %591 = arith.mulf %590, %590 : vector<4x128xf32>
    %cst_295 = arith.constant dense<0.000000e+00> : vector<4xf32>
    %592 = vector.multi_reduction <add>, %591, %cst_295 [1] : vector<4x128xf32> to vector<4xf32>
    %593 = vector.shape_cast %592 : vector<4xf32> to vector<4x1xf32>
    %cst_296 = arith.constant dense<0.000000e+00> : vector<1xf32>
    %594 = vector.multi_reduction <add>, %593, %cst_296 [0] : vector<4x1xf32> to vector<1xf32>
    %595 = vector.shape_cast %594 : vector<1xf32> to vector<1x1xf32>
    %cst_297 = arith.constant 5.120000e+02 : f32
    %596 = vector.broadcast %cst_297 : f32 to vector<1x1xf32>
    %597 = arith.divf %595, %596 : vector<1x1xf32>
    %cst_298 = arith.constant 9.99999974E-6 : f32
    %598 = vector.broadcast %cst_298 : f32 to vector<1x1xf32>
    %599 = arith.addf %597, %598 : vector<1x1xf32>
    %600 = math.rsqrt %599 : vector<1x1xf32>
    %601 = vector.broadcast %600 : vector<1x1xf32> to vector<4x128xf32>
    %602 = arith.mulf %590, %601 : vector<4x128xf32>
    %603 = vector.extract_strided_slice %582 {offsets = [0, 0], sizes = [1, 128], strides = [1, 1]} : vector<2x128xf32> to vector<1x128xf32>
    %604 = vector.broadcast %603 : vector<1x128xf32> to vector<4x128xf32>
    %605 = arith.mulf %602, %604 : vector<4x128xf32>
    %606 = vector.extract_strided_slice %582 {offsets = [1, 0], sizes = [1, 128], strides = [1, 1]} : vector<2x128xf32> to vector<1x128xf32>
    %607 = vector.broadcast %606 : vector<1x128xf32> to vector<4x128xf32>
    %608 = arith.addf %605, %607 : vector<4x128xf32>
    %cst_299 = arith.constant 0.000000e+00 : f32
    %609 = vector.broadcast %cst_299 : f32 to vector<4x128xf32>
    %610 = arith.maximumf %608, %609 : vector<4x128xf32>
    %611 = arith.truncf %610 : vector<4x128xf32> to vector<4x128xbf16>
    %cst_300 = arith.constant 0.000000e+00 : bf16
    %612 = vector.broadcast %cst_300 : bf16 to vector<1x128xbf16>
    %613 = vector.extract_strided_slice %611 {offsets = [0, 0], sizes = [3, 128], strides = [1, 1]} : vector<4x128xbf16> to vector<3x128xbf16>
    %614 = tpu.concatenate %612, %613 in 0 : vector<1x128xbf16>, vector<3x128xbf16> -> vector<4x128xbf16>
    %615 = vector.extract_strided_slice %611 {offsets = [1, 0], sizes = [3, 128], strides = [1, 1]} : vector<4x128xbf16> to vector<3x128xbf16>
    %616 = tpu.concatenate %615, %612 in 0 : vector<3x128xbf16>, vector<1x128xbf16> -> vector<4x128xbf16>
    %c0_301 = arith.constant 0 : index
    %c0_302 = arith.constant 0 : index
    %c0_303 = arith.constant 0 : index
    %617 = vector.load %arg34[%c0_301, %c0_302, %c0_303] : memref<3x128x128xbf16, #tpu.memory_space<vmem>>, vector<1x128x128xbf16>
    %618 = vector.shape_cast %617 : vector<1x128x128xbf16> to vector<128x128xbf16>
    %cst_304 = arith.constant dense<0.000000e+00> : vector<4x128xf32>
    %619 = tpu.matmul %614, %618, %cst_304 {dimension_numbers = #tpu.dot_dimension_numbers<[1], [0], [0], [1], [0, 0, 1, 1], [], []>} : vector<4x128xbf16>, vector<128x128xbf16>, vector<4x128xf32> -> vector<4x128xf32>
    %c1_305 = arith.constant 1 : index
    %c0_306 = arith.constant 0 : index
    %c0_307 = arith.constant 0 : index
    %620 = vector.load %arg34[%c1_305, %c0_306, %c0_307] : memref<3x128x128xbf16, #tpu.memory_space<vmem>>, vector<1x128x128xbf16>
    %621 = vector.shape_cast %620 : vector<1x128x128xbf16> to vector<128x128xbf16>
    %cst_308 = arith.constant dense<0.000000e+00> : vector<4x128xf32>
    %622 = tpu.matmul %611, %621, %cst_308 {dimension_numbers = #tpu.dot_dimension_numbers<[1], [0], [0], [1], [0, 0, 1, 1], [], []>} : vector<4x128xbf16>, vector<128x128xbf16>, vector<4x128xf32> -> vector<4x128xf32>
    %623 = arith.addf %619, %622 : vector<4x128xf32>
    %c2_309 = arith.constant 2 : index
    %c0_310 = arith.constant 0 : index
    %c0_311 = arith.constant 0 : index
    %624 = vector.load %arg34[%c2_309, %c0_310, %c0_311] : memref<3x128x128xbf16, #tpu.memory_space<vmem>>, vector<1x128x128xbf16>
    %625 = vector.shape_cast %624 : vector<1x128x128xbf16> to vector<128x128xbf16>
    %cst_312 = arith.constant dense<0.000000e+00> : vector<4x128xf32>
    %626 = tpu.matmul %616, %625, %cst_312 {dimension_numbers = #tpu.dot_dimension_numbers<[1], [0], [0], [1], [0, 0, 1, 1], [], []>} : vector<4x128xbf16>, vector<128x128xbf16>, vector<4x128xf32> -> vector<4x128xf32>
    %627 = arith.addf %623, %626 : vector<4x128xf32>
    %c0_313 = arith.constant 0 : index
    %c0_314 = arith.constant 0 : index
    %628 = vector.load %arg32[%c0_313, %c0_314] : memref<2x128xf32, #tpu.memory_space<vmem>>, vector<2x128xf32>
    %cst_315 = arith.constant dense<0.000000e+00> : vector<4xf32>
    %629 = vector.multi_reduction <add>, %627, %cst_315 [1] : vector<4x128xf32> to vector<4xf32>
    %630 = vector.shape_cast %629 : vector<4xf32> to vector<4x1xf32>
    %cst_316 = arith.constant dense<0.000000e+00> : vector<1xf32>
    %631 = vector.multi_reduction <add>, %630, %cst_316 [0] : vector<4x1xf32> to vector<1xf32>
    %632 = vector.shape_cast %631 : vector<1xf32> to vector<1x1xf32>
    %cst_317 = arith.constant 5.120000e+02 : f32
    %633 = vector.broadcast %cst_317 : f32 to vector<1x1xf32>
    %634 = arith.divf %632, %633 : vector<1x1xf32>
    %635 = vector.broadcast %634 : vector<1x1xf32> to vector<4x128xf32>
    %636 = arith.subf %627, %635 : vector<4x128xf32>
    %637 = arith.mulf %636, %636 : vector<4x128xf32>
    %cst_318 = arith.constant dense<0.000000e+00> : vector<4xf32>
    %638 = vector.multi_reduction <add>, %637, %cst_318 [1] : vector<4x128xf32> to vector<4xf32>
    %639 = vector.shape_cast %638 : vector<4xf32> to vector<4x1xf32>
    %cst_319 = arith.constant dense<0.000000e+00> : vector<1xf32>
    %640 = vector.multi_reduction <add>, %639, %cst_319 [0] : vector<4x1xf32> to vector<1xf32>
    %641 = vector.shape_cast %640 : vector<1xf32> to vector<1x1xf32>
    %cst_320 = arith.constant 5.120000e+02 : f32
    %642 = vector.broadcast %cst_320 : f32 to vector<1x1xf32>
    %643 = arith.divf %641, %642 : vector<1x1xf32>
    %cst_321 = arith.constant 9.99999974E-6 : f32
    %644 = vector.broadcast %cst_321 : f32 to vector<1x1xf32>
    %645 = arith.addf %643, %644 : vector<1x1xf32>
    %646 = math.rsqrt %645 : vector<1x1xf32>
    %647 = vector.broadcast %646 : vector<1x1xf32> to vector<4x128xf32>
    %648 = arith.mulf %636, %647 : vector<4x128xf32>
    %649 = vector.extract_strided_slice %628 {offsets = [0, 0], sizes = [1, 128], strides = [1, 1]} : vector<2x128xf32> to vector<1x128xf32>
    %650 = vector.broadcast %649 : vector<1x128xf32> to vector<4x128xf32>
    %651 = arith.mulf %648, %650 : vector<4x128xf32>
    %652 = vector.extract_strided_slice %628 {offsets = [1, 0], sizes = [1, 128], strides = [1, 1]} : vector<2x128xf32> to vector<1x128xf32>
    %653 = vector.broadcast %652 : vector<1x128xf32> to vector<4x128xf32>
    %654 = arith.addf %651, %653 : vector<4x128xf32>
    %655 = arith.addf %654, %564 : vector<4x128xf32>
    %cst_322 = arith.constant 0.000000e+00 : f32
    %656 = vector.broadcast %cst_322 : f32 to vector<4x128xf32>
    %657 = arith.maximumf %655, %656 : vector<4x128xf32>
    %658 = arith.truncf %657 : vector<4x128xf32> to vector<4x128xbf16>
    %cst_323 = arith.constant 0.000000e+00 : bf16
    %659 = vector.broadcast %cst_323 : bf16 to vector<1x128xbf16>
    %660 = vector.extract_strided_slice %658 {offsets = [0, 0], sizes = [3, 128], strides = [1, 1]} : vector<4x128xbf16> to vector<3x128xbf16>
    %661 = tpu.concatenate %659, %660 in 0 : vector<1x128xbf16>, vector<3x128xbf16> -> vector<4x128xbf16>
    %662 = vector.extract_strided_slice %658 {offsets = [1, 0], sizes = [3, 128], strides = [1, 1]} : vector<4x128xbf16> to vector<3x128xbf16>
    %663 = tpu.concatenate %662, %659 in 0 : vector<3x128xbf16>, vector<1x128xbf16> -> vector<4x128xbf16>
    %c0_324 = arith.constant 0 : index
    %c0_325 = arith.constant 0 : index
    %c0_326 = arith.constant 0 : index
    %664 = vector.load %arg39[%c0_324, %c0_325, %c0_326] : memref<3x128x256xbf16, #tpu.memory_space<vmem>>, vector<1x128x256xbf16>
    %665 = vector.shape_cast %664 : vector<1x128x256xbf16> to vector<128x256xbf16>
    %cst_327 = arith.constant dense<0.000000e+00> : vector<4x256xf32>
    %666 = tpu.matmul %661, %665, %cst_327 {dimension_numbers = #tpu.dot_dimension_numbers<[1], [0], [0], [1], [0, 0, 1, 1], [], []>} : vector<4x128xbf16>, vector<128x256xbf16>, vector<4x256xf32> -> vector<4x256xf32>
    %c1_328 = arith.constant 1 : index
    %c0_329 = arith.constant 0 : index
    %c0_330 = arith.constant 0 : index
    %667 = vector.load %arg39[%c1_328, %c0_329, %c0_330] : memref<3x128x256xbf16, #tpu.memory_space<vmem>>, vector<1x128x256xbf16>
    %668 = vector.shape_cast %667 : vector<1x128x256xbf16> to vector<128x256xbf16>
    %cst_331 = arith.constant dense<0.000000e+00> : vector<4x256xf32>
    %669 = tpu.matmul %658, %668, %cst_331 {dimension_numbers = #tpu.dot_dimension_numbers<[1], [0], [0], [1], [0, 0, 1, 1], [], []>} : vector<4x128xbf16>, vector<128x256xbf16>, vector<4x256xf32> -> vector<4x256xf32>
    %670 = arith.addf %666, %669 : vector<4x256xf32>
    %c2_332 = arith.constant 2 : index
    %c0_333 = arith.constant 0 : index
    %c0_334 = arith.constant 0 : index
    %671 = vector.load %arg39[%c2_332, %c0_333, %c0_334] : memref<3x128x256xbf16, #tpu.memory_space<vmem>>, vector<1x128x256xbf16>
    %672 = vector.shape_cast %671 : vector<1x128x256xbf16> to vector<128x256xbf16>
    %cst_335 = arith.constant dense<0.000000e+00> : vector<4x256xf32>
    %673 = tpu.matmul %663, %672, %cst_335 {dimension_numbers = #tpu.dot_dimension_numbers<[1], [0], [0], [1], [0, 0, 1, 1], [], []>} : vector<4x128xbf16>, vector<128x256xbf16>, vector<4x256xf32> -> vector<4x256xf32>
    %674 = arith.addf %670, %673 : vector<4x256xf32>
    %c0_336 = arith.constant 0 : index
    %c0_337 = arith.constant 0 : index
    %675 = vector.load %arg4[%c0_336, %c0_337] : memref<2x4xf32, #tpu.memory_space<vmem>>, vector<2x4xf32>
    %cst_338 = arith.constant dense<0.000000e+00> : vector<2x256xf32>
    %676 = tpu.matmul %675, %674, %cst_338 {dimension_numbers = #tpu.dot_dimension_numbers<[1], [0], [0], [1], [0, 0, 1, 1], [], []>} : vector<2x4xf32>, vector<4x256xf32>, vector<2x256xf32> -> vector<2x256xf32>
    %c0_339 = arith.constant 0 : index
    %c0_340 = arith.constant 0 : index
    %677 = vector.load %arg37[%c0_339, %c0_340] : memref<2x256xf32, #tpu.memory_space<vmem>>, vector<2x256xf32>
    %cst_341 = arith.constant dense<0.000000e+00> : vector<2xf32>
    %678 = vector.multi_reduction <add>, %676, %cst_341 [1] : vector<2x256xf32> to vector<2xf32>
    %679 = vector.shape_cast %678 : vector<2xf32> to vector<2x1xf32>
    %cst_342 = arith.constant dense<0.000000e+00> : vector<1xf32>
    %680 = vector.multi_reduction <add>, %679, %cst_342 [0] : vector<2x1xf32> to vector<1xf32>
    %681 = vector.shape_cast %680 : vector<1xf32> to vector<1x1xf32>
    %cst_343 = arith.constant 5.120000e+02 : f32
    %682 = vector.broadcast %cst_343 : f32 to vector<1x1xf32>
    %683 = arith.divf %681, %682 : vector<1x1xf32>
    %684 = vector.broadcast %683 : vector<1x1xf32> to vector<2x256xf32>
    %685 = arith.subf %676, %684 : vector<2x256xf32>
    %686 = arith.mulf %685, %685 : vector<2x256xf32>
    %cst_344 = arith.constant dense<0.000000e+00> : vector<2xf32>
    %687 = vector.multi_reduction <add>, %686, %cst_344 [1] : vector<2x256xf32> to vector<2xf32>
    %688 = vector.shape_cast %687 : vector<2xf32> to vector<2x1xf32>
    %cst_345 = arith.constant dense<0.000000e+00> : vector<1xf32>
    %689 = vector.multi_reduction <add>, %688, %cst_345 [0] : vector<2x1xf32> to vector<1xf32>
    %690 = vector.shape_cast %689 : vector<1xf32> to vector<1x1xf32>
    %cst_346 = arith.constant 5.120000e+02 : f32
    %691 = vector.broadcast %cst_346 : f32 to vector<1x1xf32>
    %692 = arith.divf %690, %691 : vector<1x1xf32>
    %cst_347 = arith.constant 9.99999974E-6 : f32
    %693 = vector.broadcast %cst_347 : f32 to vector<1x1xf32>
    %694 = arith.addf %692, %693 : vector<1x1xf32>
    %695 = math.rsqrt %694 : vector<1x1xf32>
    %696 = vector.broadcast %695 : vector<1x1xf32> to vector<2x256xf32>
    %697 = arith.mulf %685, %696 : vector<2x256xf32>
    %698 = vector.extract_strided_slice %677 {offsets = [0, 0], sizes = [1, 256], strides = [1, 1]} : vector<2x256xf32> to vector<1x256xf32>
    %699 = vector.broadcast %698 : vector<1x256xf32> to vector<2x256xf32>
    %700 = arith.mulf %697, %699 : vector<2x256xf32>
    %701 = vector.extract_strided_slice %677 {offsets = [1, 0], sizes = [1, 256], strides = [1, 1]} : vector<2x256xf32> to vector<1x256xf32>
    %702 = vector.broadcast %701 : vector<1x256xf32> to vector<2x256xf32>
    %703 = arith.addf %700, %702 : vector<2x256xf32>
    %cst_348 = arith.constant 0.000000e+00 : f32
    %704 = vector.broadcast %cst_348 : f32 to vector<2x256xf32>
    %705 = arith.maximumf %703, %704 : vector<2x256xf32>
    %706 = arith.truncf %705 : vector<2x256xf32> to vector<2x256xbf16>
    %cst_349 = arith.constant 0.000000e+00 : bf16
    %707 = vector.broadcast %cst_349 : bf16 to vector<1x256xbf16>
    %708 = vector.extract_strided_slice %706 {offsets = [0, 0], sizes = [1, 256], strides = [1, 1]} : vector<2x256xbf16> to vector<1x256xbf16>
    %709 = tpu.concatenate %707, %708 in 0 : vector<1x256xbf16>, vector<1x256xbf16> -> vector<2x256xbf16>
    %710 = vector.extract_strided_slice %706 {offsets = [1, 0], sizes = [1, 256], strides = [1, 1]} : vector<2x256xbf16> to vector<1x256xbf16>
    %711 = tpu.concatenate %710, %707 in 0 : vector<1x256xbf16>, vector<1x256xbf16> -> vector<2x256xbf16>
    %c0_350 = arith.constant 0 : index
    %c0_351 = arith.constant 0 : index
    %c0_352 = arith.constant 0 : index
    %712 = vector.load %arg40[%c0_350, %c0_351, %c0_352] : memref<3x256x256xbf16, #tpu.memory_space<vmem>>, vector<1x256x256xbf16>
    %713 = vector.shape_cast %712 : vector<1x256x256xbf16> to vector<256x256xbf16>
    %cst_353 = arith.constant dense<0.000000e+00> : vector<2x256xf32>
    %714 = tpu.matmul %709, %713, %cst_353 {dimension_numbers = #tpu.dot_dimension_numbers<[1], [0], [0], [1], [0, 0, 1, 1], [], []>} : vector<2x256xbf16>, vector<256x256xbf16>, vector<2x256xf32> -> vector<2x256xf32>
    %c1_354 = arith.constant 1 : index
    %c0_355 = arith.constant 0 : index
    %c0_356 = arith.constant 0 : index
    %715 = vector.load %arg40[%c1_354, %c0_355, %c0_356] : memref<3x256x256xbf16, #tpu.memory_space<vmem>>, vector<1x256x256xbf16>
    %716 = vector.shape_cast %715 : vector<1x256x256xbf16> to vector<256x256xbf16>
    %cst_357 = arith.constant dense<0.000000e+00> : vector<2x256xf32>
    %717 = tpu.matmul %706, %716, %cst_357 {dimension_numbers = #tpu.dot_dimension_numbers<[1], [0], [0], [1], [0, 0, 1, 1], [], []>} : vector<2x256xbf16>, vector<256x256xbf16>, vector<2x256xf32> -> vector<2x256xf32>
    %718 = arith.addf %714, %717 : vector<2x256xf32>
    %c2_358 = arith.constant 2 : index
    %c0_359 = arith.constant 0 : index
    %c0_360 = arith.constant 0 : index
    %719 = vector.load %arg40[%c2_358, %c0_359, %c0_360] : memref<3x256x256xbf16, #tpu.memory_space<vmem>>, vector<1x256x256xbf16>
    %720 = vector.shape_cast %719 : vector<1x256x256xbf16> to vector<256x256xbf16>
    %cst_361 = arith.constant dense<0.000000e+00> : vector<2x256xf32>
    %721 = tpu.matmul %711, %720, %cst_361 {dimension_numbers = #tpu.dot_dimension_numbers<[1], [0], [0], [1], [0, 0, 1, 1], [], []>} : vector<2x256xbf16>, vector<256x256xbf16>, vector<2x256xf32> -> vector<2x256xf32>
    %722 = arith.addf %718, %721 : vector<2x256xf32>
    %c0_362 = arith.constant 0 : index
    %c0_363 = arith.constant 0 : index
    %723 = vector.load %arg38[%c0_362, %c0_363] : memref<2x256xf32, #tpu.memory_space<vmem>>, vector<2x256xf32>
    %cst_364 = arith.constant dense<0.000000e+00> : vector<2xf32>
    %724 = vector.multi_reduction <add>, %722, %cst_364 [1] : vector<2x256xf32> to vector<2xf32>
    %725 = vector.shape_cast %724 : vector<2xf32> to vector<2x1xf32>
    %cst_365 = arith.constant dense<0.000000e+00> : vector<1xf32>
    %726 = vector.multi_reduction <add>, %725, %cst_365 [0] : vector<2x1xf32> to vector<1xf32>
    %727 = vector.shape_cast %726 : vector<1xf32> to vector<1x1xf32>
    %cst_366 = arith.constant 5.120000e+02 : f32
    %728 = vector.broadcast %cst_366 : f32 to vector<1x1xf32>
    %729 = arith.divf %727, %728 : vector<1x1xf32>
    %730 = vector.broadcast %729 : vector<1x1xf32> to vector<2x256xf32>
    %731 = arith.subf %722, %730 : vector<2x256xf32>
    %732 = arith.mulf %731, %731 : vector<2x256xf32>
    %cst_367 = arith.constant dense<0.000000e+00> : vector<2xf32>
    %733 = vector.multi_reduction <add>, %732, %cst_367 [1] : vector<2x256xf32> to vector<2xf32>
    %734 = vector.shape_cast %733 : vector<2xf32> to vector<2x1xf32>
    %cst_368 = arith.constant dense<0.000000e+00> : vector<1xf32>
    %735 = vector.multi_reduction <add>, %734, %cst_368 [0] : vector<2x1xf32> to vector<1xf32>
    %736 = vector.shape_cast %735 : vector<1xf32> to vector<1x1xf32>
    %cst_369 = arith.constant 5.120000e+02 : f32
    %737 = vector.broadcast %cst_369 : f32 to vector<1x1xf32>
    %738 = arith.divf %736, %737 : vector<1x1xf32>
    %cst_370 = arith.constant 9.99999974E-6 : f32
    %739 = vector.broadcast %cst_370 : f32 to vector<1x1xf32>
    %740 = arith.addf %738, %739 : vector<1x1xf32>
    %741 = math.rsqrt %740 : vector<1x1xf32>
    %742 = vector.broadcast %741 : vector<1x1xf32> to vector<2x256xf32>
    %743 = arith.mulf %731, %742 : vector<2x256xf32>
    %744 = vector.extract_strided_slice %723 {offsets = [0, 0], sizes = [1, 256], strides = [1, 1]} : vector<2x256xf32> to vector<1x256xf32>
    %745 = vector.broadcast %744 : vector<1x256xf32> to vector<2x256xf32>
    %746 = arith.mulf %743, %745 : vector<2x256xf32>
    %747 = vector.extract_strided_slice %723 {offsets = [1, 0], sizes = [1, 256], strides = [1, 1]} : vector<2x256xf32> to vector<1x256xf32>
    %748 = vector.broadcast %747 : vector<1x256xf32> to vector<2x256xf32>
    %749 = arith.addf %746, %748 : vector<2x256xf32>
    %750 = arith.truncf %657 : vector<4x128xf32> to vector<4x128xbf16>
    %c0_371 = arith.constant 0 : index
    %c0_372 = arith.constant 0 : index
    %751 = vector.load %arg36[%c0_371, %c0_372] : memref<128x256xbf16, #tpu.memory_space<vmem>>, vector<128x256xbf16>
    %cst_373 = arith.constant dense<0.000000e+00> : vector<4x256xf32>
    %752 = tpu.matmul %750, %751, %cst_373 {dimension_numbers = #tpu.dot_dimension_numbers<[1], [0], [0], [1], [0, 0, 1, 1], [], []>} : vector<4x128xbf16>, vector<128x256xbf16>, vector<4x256xf32> -> vector<4x256xf32>
    %c0_374 = arith.constant 0 : index
    %c0_375 = arith.constant 0 : index
    %753 = vector.load %arg4[%c0_374, %c0_375] : memref<2x4xf32, #tpu.memory_space<vmem>>, vector<2x4xf32>
    %cst_376 = arith.constant dense<0.000000e+00> : vector<2x256xf32>
    %754 = tpu.matmul %753, %752, %cst_376 {dimension_numbers = #tpu.dot_dimension_numbers<[1], [0], [0], [1], [0, 0, 1, 1], [], []>} : vector<2x4xf32>, vector<4x256xf32>, vector<2x256xf32> -> vector<2x256xf32>
    %c0_377 = arith.constant 0 : index
    %c0_378 = arith.constant 0 : index
    %755 = vector.load %arg35[%c0_377, %c0_378] : memref<2x256xf32, #tpu.memory_space<vmem>>, vector<2x256xf32>
    %cst_379 = arith.constant dense<0.000000e+00> : vector<2xf32>
    %756 = vector.multi_reduction <add>, %754, %cst_379 [1] : vector<2x256xf32> to vector<2xf32>
    %757 = vector.shape_cast %756 : vector<2xf32> to vector<2x1xf32>
    %cst_380 = arith.constant dense<0.000000e+00> : vector<1xf32>
    %758 = vector.multi_reduction <add>, %757, %cst_380 [0] : vector<2x1xf32> to vector<1xf32>
    %759 = vector.shape_cast %758 : vector<1xf32> to vector<1x1xf32>
    %cst_381 = arith.constant 5.120000e+02 : f32
    %760 = vector.broadcast %cst_381 : f32 to vector<1x1xf32>
    %761 = arith.divf %759, %760 : vector<1x1xf32>
    %762 = vector.broadcast %761 : vector<1x1xf32> to vector<2x256xf32>
    %763 = arith.subf %754, %762 : vector<2x256xf32>
    %764 = arith.mulf %763, %763 : vector<2x256xf32>
    %cst_382 = arith.constant dense<0.000000e+00> : vector<2xf32>
    %765 = vector.multi_reduction <add>, %764, %cst_382 [1] : vector<2x256xf32> to vector<2xf32>
    %766 = vector.shape_cast %765 : vector<2xf32> to vector<2x1xf32>
    %cst_383 = arith.constant dense<0.000000e+00> : vector<1xf32>
    %767 = vector.multi_reduction <add>, %766, %cst_383 [0] : vector<2x1xf32> to vector<1xf32>
    %768 = vector.shape_cast %767 : vector<1xf32> to vector<1x1xf32>
    %cst_384 = arith.constant 5.120000e+02 : f32
    %769 = vector.broadcast %cst_384 : f32 to vector<1x1xf32>
    %770 = arith.divf %768, %769 : vector<1x1xf32>
    %cst_385 = arith.constant 9.99999974E-6 : f32
    %771 = vector.broadcast %cst_385 : f32 to vector<1x1xf32>
    %772 = arith.addf %770, %771 : vector<1x1xf32>
    %773 = math.rsqrt %772 : vector<1x1xf32>
    %774 = vector.broadcast %773 : vector<1x1xf32> to vector<2x256xf32>
    %775 = arith.mulf %763, %774 : vector<2x256xf32>
    %776 = vector.extract_strided_slice %755 {offsets = [0, 0], sizes = [1, 256], strides = [1, 1]} : vector<2x256xf32> to vector<1x256xf32>
    %777 = vector.broadcast %776 : vector<1x256xf32> to vector<2x256xf32>
    %778 = arith.mulf %775, %777 : vector<2x256xf32>
    %779 = vector.extract_strided_slice %755 {offsets = [1, 0], sizes = [1, 256], strides = [1, 1]} : vector<2x256xf32> to vector<1x256xf32>
    %780 = vector.broadcast %779 : vector<1x256xf32> to vector<2x256xf32>
    %781 = arith.addf %778, %780 : vector<2x256xf32>
    %782 = arith.addf %749, %781 : vector<2x256xf32>
    %cst_386 = arith.constant 0.000000e+00 : f32
    %783 = vector.broadcast %cst_386 : f32 to vector<2x256xf32>
    %784 = arith.maximumf %782, %783 : vector<2x256xf32>
    %785 = arith.truncf %784 : vector<2x256xf32> to vector<2x256xbf16>
    %cst_387 = arith.constant 0.000000e+00 : bf16
    %786 = vector.broadcast %cst_387 : bf16 to vector<1x256xbf16>
    %787 = vector.extract_strided_slice %785 {offsets = [0, 0], sizes = [1, 256], strides = [1, 1]} : vector<2x256xbf16> to vector<1x256xbf16>
    %788 = tpu.concatenate %786, %787 in 0 : vector<1x256xbf16>, vector<1x256xbf16> -> vector<2x256xbf16>
    %789 = vector.extract_strided_slice %785 {offsets = [1, 0], sizes = [1, 256], strides = [1, 1]} : vector<2x256xbf16> to vector<1x256xbf16>
    %790 = tpu.concatenate %789, %786 in 0 : vector<1x256xbf16>, vector<1x256xbf16> -> vector<2x256xbf16>
    %c0_388 = arith.constant 0 : index
    %c0_389 = arith.constant 0 : index
    %c0_390 = arith.constant 0 : index
    %791 = vector.load %arg43[%c0_388, %c0_389, %c0_390] : memref<3x256x256xbf16, #tpu.memory_space<vmem>>, vector<1x256x256xbf16>
    %792 = vector.shape_cast %791 : vector<1x256x256xbf16> to vector<256x256xbf16>
    %cst_391 = arith.constant dense<0.000000e+00> : vector<2x256xf32>
    %793 = tpu.matmul %788, %792, %cst_391 {dimension_numbers = #tpu.dot_dimension_numbers<[1], [0], [0], [1], [0, 0, 1, 1], [], []>} : vector<2x256xbf16>, vector<256x256xbf16>, vector<2x256xf32> -> vector<2x256xf32>
    %c1_392 = arith.constant 1 : index
    %c0_393 = arith.constant 0 : index
    %c0_394 = arith.constant 0 : index
    %794 = vector.load %arg43[%c1_392, %c0_393, %c0_394] : memref<3x256x256xbf16, #tpu.memory_space<vmem>>, vector<1x256x256xbf16>
    %795 = vector.shape_cast %794 : vector<1x256x256xbf16> to vector<256x256xbf16>
    %cst_395 = arith.constant dense<0.000000e+00> : vector<2x256xf32>
    %796 = tpu.matmul %785, %795, %cst_395 {dimension_numbers = #tpu.dot_dimension_numbers<[1], [0], [0], [1], [0, 0, 1, 1], [], []>} : vector<2x256xbf16>, vector<256x256xbf16>, vector<2x256xf32> -> vector<2x256xf32>
    %797 = arith.addf %793, %796 : vector<2x256xf32>
    %c2_396 = arith.constant 2 : index
    %c0_397 = arith.constant 0 : index
    %c0_398 = arith.constant 0 : index
    %798 = vector.load %arg43[%c2_396, %c0_397, %c0_398] : memref<3x256x256xbf16, #tpu.memory_space<vmem>>, vector<1x256x256xbf16>
    %799 = vector.shape_cast %798 : vector<1x256x256xbf16> to vector<256x256xbf16>
    %cst_399 = arith.constant dense<0.000000e+00> : vector<2x256xf32>
    %800 = tpu.matmul %790, %799, %cst_399 {dimension_numbers = #tpu.dot_dimension_numbers<[1], [0], [0], [1], [0, 0, 1, 1], [], []>} : vector<2x256xbf16>, vector<256x256xbf16>, vector<2x256xf32> -> vector<2x256xf32>
    %801 = arith.addf %797, %800 : vector<2x256xf32>
    %c0_400 = arith.constant 0 : index
    %c0_401 = arith.constant 0 : index
    %802 = vector.load %arg41[%c0_400, %c0_401] : memref<2x256xf32, #tpu.memory_space<vmem>>, vector<2x256xf32>
    %cst_402 = arith.constant dense<0.000000e+00> : vector<2xf32>
    %803 = vector.multi_reduction <add>, %801, %cst_402 [1] : vector<2x256xf32> to vector<2xf32>
    %804 = vector.shape_cast %803 : vector<2xf32> to vector<2x1xf32>
    %cst_403 = arith.constant dense<0.000000e+00> : vector<1xf32>
    %805 = vector.multi_reduction <add>, %804, %cst_403 [0] : vector<2x1xf32> to vector<1xf32>
    %806 = vector.shape_cast %805 : vector<1xf32> to vector<1x1xf32>
    %cst_404 = arith.constant 5.120000e+02 : f32
    %807 = vector.broadcast %cst_404 : f32 to vector<1x1xf32>
    %808 = arith.divf %806, %807 : vector<1x1xf32>
    %809 = vector.broadcast %808 : vector<1x1xf32> to vector<2x256xf32>
    %810 = arith.subf %801, %809 : vector<2x256xf32>
    %811 = arith.mulf %810, %810 : vector<2x256xf32>
    %cst_405 = arith.constant dense<0.000000e+00> : vector<2xf32>
    %812 = vector.multi_reduction <add>, %811, %cst_405 [1] : vector<2x256xf32> to vector<2xf32>
    %813 = vector.shape_cast %812 : vector<2xf32> to vector<2x1xf32>
    %cst_406 = arith.constant dense<0.000000e+00> : vector<1xf32>
    %814 = vector.multi_reduction <add>, %813, %cst_406 [0] : vector<2x1xf32> to vector<1xf32>
    %815 = vector.shape_cast %814 : vector<1xf32> to vector<1x1xf32>
    %cst_407 = arith.constant 5.120000e+02 : f32
    %816 = vector.broadcast %cst_407 : f32 to vector<1x1xf32>
    %817 = arith.divf %815, %816 : vector<1x1xf32>
    %cst_408 = arith.constant 9.99999974E-6 : f32
    %818 = vector.broadcast %cst_408 : f32 to vector<1x1xf32>
    %819 = arith.addf %817, %818 : vector<1x1xf32>
    %820 = math.rsqrt %819 : vector<1x1xf32>
    %821 = vector.broadcast %820 : vector<1x1xf32> to vector<2x256xf32>
    %822 = arith.mulf %810, %821 : vector<2x256xf32>
    %823 = vector.extract_strided_slice %802 {offsets = [0, 0], sizes = [1, 256], strides = [1, 1]} : vector<2x256xf32> to vector<1x256xf32>
    %824 = vector.broadcast %823 : vector<1x256xf32> to vector<2x256xf32>
    %825 = arith.mulf %822, %824 : vector<2x256xf32>
    %826 = vector.extract_strided_slice %802 {offsets = [1, 0], sizes = [1, 256], strides = [1, 1]} : vector<2x256xf32> to vector<1x256xf32>
    %827 = vector.broadcast %826 : vector<1x256xf32> to vector<2x256xf32>
    %828 = arith.addf %825, %827 : vector<2x256xf32>
    %cst_409 = arith.constant 0.000000e+00 : f32
    %829 = vector.broadcast %cst_409 : f32 to vector<2x256xf32>
    %830 = arith.maximumf %828, %829 : vector<2x256xf32>
    %831 = arith.truncf %830 : vector<2x256xf32> to vector<2x256xbf16>
    %cst_410 = arith.constant 0.000000e+00 : bf16
    %832 = vector.broadcast %cst_410 : bf16 to vector<1x256xbf16>
    %833 = vector.extract_strided_slice %831 {offsets = [0, 0], sizes = [1, 256], strides = [1, 1]} : vector<2x256xbf16> to vector<1x256xbf16>
    %834 = tpu.concatenate %832, %833 in 0 : vector<1x256xbf16>, vector<1x256xbf16> -> vector<2x256xbf16>
    %835 = vector.extract_strided_slice %831 {offsets = [1, 0], sizes = [1, 256], strides = [1, 1]} : vector<2x256xbf16> to vector<1x256xbf16>
    %836 = tpu.concatenate %835, %832 in 0 : vector<1x256xbf16>, vector<1x256xbf16> -> vector<2x256xbf16>
    %c0_411 = arith.constant 0 : index
    %c0_412 = arith.constant 0 : index
    %c0_413 = arith.constant 0 : index
    %837 = vector.load %arg44[%c0_411, %c0_412, %c0_413] : memref<3x256x256xbf16, #tpu.memory_space<vmem>>, vector<1x256x256xbf16>
    %838 = vector.shape_cast %837 : vector<1x256x256xbf16> to vector<256x256xbf16>
    %cst_414 = arith.constant dense<0.000000e+00> : vector<2x256xf32>
    %839 = tpu.matmul %834, %838, %cst_414 {dimension_numbers = #tpu.dot_dimension_numbers<[1], [0], [0], [1], [0, 0, 1, 1], [], []>} : vector<2x256xbf16>, vector<256x256xbf16>, vector<2x256xf32> -> vector<2x256xf32>
    %c1_415 = arith.constant 1 : index
    %c0_416 = arith.constant 0 : index
    %c0_417 = arith.constant 0 : index
    %840 = vector.load %arg44[%c1_415, %c0_416, %c0_417] : memref<3x256x256xbf16, #tpu.memory_space<vmem>>, vector<1x256x256xbf16>
    %841 = vector.shape_cast %840 : vector<1x256x256xbf16> to vector<256x256xbf16>
    %cst_418 = arith.constant dense<0.000000e+00> : vector<2x256xf32>
    %842 = tpu.matmul %831, %841, %cst_418 {dimension_numbers = #tpu.dot_dimension_numbers<[1], [0], [0], [1], [0, 0, 1, 1], [], []>} : vector<2x256xbf16>, vector<256x256xbf16>, vector<2x256xf32> -> vector<2x256xf32>
    %843 = arith.addf %839, %842 : vector<2x256xf32>
    %c2_419 = arith.constant 2 : index
    %c0_420 = arith.constant 0 : index
    %c0_421 = arith.constant 0 : index
    %844 = vector.load %arg44[%c2_419, %c0_420, %c0_421] : memref<3x256x256xbf16, #tpu.memory_space<vmem>>, vector<1x256x256xbf16>
    %845 = vector.shape_cast %844 : vector<1x256x256xbf16> to vector<256x256xbf16>
    %cst_422 = arith.constant dense<0.000000e+00> : vector<2x256xf32>
    %846 = tpu.matmul %836, %845, %cst_422 {dimension_numbers = #tpu.dot_dimension_numbers<[1], [0], [0], [1], [0, 0, 1, 1], [], []>} : vector<2x256xbf16>, vector<256x256xbf16>, vector<2x256xf32> -> vector<2x256xf32>
    %847 = arith.addf %843, %846 : vector<2x256xf32>
    %c0_423 = arith.constant 0 : index
    %c0_424 = arith.constant 0 : index
    %848 = vector.load %arg42[%c0_423, %c0_424] : memref<2x256xf32, #tpu.memory_space<vmem>>, vector<2x256xf32>
    %cst_425 = arith.constant dense<0.000000e+00> : vector<2xf32>
    %849 = vector.multi_reduction <add>, %847, %cst_425 [1] : vector<2x256xf32> to vector<2xf32>
    %850 = vector.shape_cast %849 : vector<2xf32> to vector<2x1xf32>
    %cst_426 = arith.constant dense<0.000000e+00> : vector<1xf32>
    %851 = vector.multi_reduction <add>, %850, %cst_426 [0] : vector<2x1xf32> to vector<1xf32>
    %852 = vector.shape_cast %851 : vector<1xf32> to vector<1x1xf32>
    %cst_427 = arith.constant 5.120000e+02 : f32
    %853 = vector.broadcast %cst_427 : f32 to vector<1x1xf32>
    %854 = arith.divf %852, %853 : vector<1x1xf32>
    %855 = vector.broadcast %854 : vector<1x1xf32> to vector<2x256xf32>
    %856 = arith.subf %847, %855 : vector<2x256xf32>
    %857 = arith.mulf %856, %856 : vector<2x256xf32>
    %cst_428 = arith.constant dense<0.000000e+00> : vector<2xf32>
    %858 = vector.multi_reduction <add>, %857, %cst_428 [1] : vector<2x256xf32> to vector<2xf32>
    %859 = vector.shape_cast %858 : vector<2xf32> to vector<2x1xf32>
    %cst_429 = arith.constant dense<0.000000e+00> : vector<1xf32>
    %860 = vector.multi_reduction <add>, %859, %cst_429 [0] : vector<2x1xf32> to vector<1xf32>
    %861 = vector.shape_cast %860 : vector<1xf32> to vector<1x1xf32>
    %cst_430 = arith.constant 5.120000e+02 : f32
    %862 = vector.broadcast %cst_430 : f32 to vector<1x1xf32>
    %863 = arith.divf %861, %862 : vector<1x1xf32>
    %cst_431 = arith.constant 9.99999974E-6 : f32
    %864 = vector.broadcast %cst_431 : f32 to vector<1x1xf32>
    %865 = arith.addf %863, %864 : vector<1x1xf32>
    %866 = math.rsqrt %865 : vector<1x1xf32>
    %867 = vector.broadcast %866 : vector<1x1xf32> to vector<2x256xf32>
    %868 = arith.mulf %856, %867 : vector<2x256xf32>
    %869 = vector.extract_strided_slice %848 {offsets = [0, 0], sizes = [1, 256], strides = [1, 1]} : vector<2x256xf32> to vector<1x256xf32>
    %870 = vector.broadcast %869 : vector<1x256xf32> to vector<2x256xf32>
    %871 = arith.mulf %868, %870 : vector<2x256xf32>
    %872 = vector.extract_strided_slice %848 {offsets = [1, 0], sizes = [1, 256], strides = [1, 1]} : vector<2x256xf32> to vector<1x256xf32>
    %873 = vector.broadcast %872 : vector<1x256xf32> to vector<2x256xf32>
    %874 = arith.addf %871, %873 : vector<2x256xf32>
    %875 = arith.addf %874, %784 : vector<2x256xf32>
    %cst_432 = arith.constant 0.000000e+00 : f32
    %876 = vector.broadcast %cst_432 : f32 to vector<2x256xf32>
    %877 = arith.maximumf %875, %876 : vector<2x256xf32>
    %878 = arith.truncf %877 : vector<2x256xf32> to vector<2x256xbf16>
    %cst_433 = arith.constant 0.000000e+00 : bf16
    %879 = vector.broadcast %cst_433 : bf16 to vector<1x256xbf16>
    %880 = vector.extract_strided_slice %878 {offsets = [0, 0], sizes = [1, 256], strides = [1, 1]} : vector<2x256xbf16> to vector<1x256xbf16>
    %881 = tpu.concatenate %879, %880 in 0 : vector<1x256xbf16>, vector<1x256xbf16> -> vector<2x256xbf16>
    %882 = vector.extract_strided_slice %878 {offsets = [1, 0], sizes = [1, 256], strides = [1, 1]} : vector<2x256xbf16> to vector<1x256xbf16>
    %883 = tpu.concatenate %882, %879 in 0 : vector<1x256xbf16>, vector<1x256xbf16> -> vector<2x256xbf16>
    %c0_434 = arith.constant 0 : index
    %c0_435 = arith.constant 0 : index
    %c0_436 = arith.constant 0 : index
    %884 = vector.load %arg52[%c0_434, %c0_435, %c0_436] : memref<3x256x128xbf16, #tpu.memory_space<vmem>>, vector<1x256x128xbf16>
    %885 = vector.shape_cast %884 : vector<1x256x128xbf16> to vector<256x128xbf16>
    %cst_437 = arith.constant dense<0.000000e+00> : vector<2x128xf32>
    %886 = tpu.matmul %881, %885, %cst_437 {dimension_numbers = #tpu.dot_dimension_numbers<[1], [0], [0], [1], [0, 0, 1, 1], [], []>} : vector<2x256xbf16>, vector<256x128xbf16>, vector<2x128xf32> -> vector<2x128xf32>
    %c1_438 = arith.constant 1 : index
    %c0_439 = arith.constant 0 : index
    %c0_440 = arith.constant 0 : index
    %887 = vector.load %arg52[%c1_438, %c0_439, %c0_440] : memref<3x256x128xbf16, #tpu.memory_space<vmem>>, vector<1x256x128xbf16>
    %888 = vector.shape_cast %887 : vector<1x256x128xbf16> to vector<256x128xbf16>
    %cst_441 = arith.constant dense<0.000000e+00> : vector<2x128xf32>
    %889 = tpu.matmul %878, %888, %cst_441 {dimension_numbers = #tpu.dot_dimension_numbers<[1], [0], [0], [1], [0, 0, 1, 1], [], []>} : vector<2x256xbf16>, vector<256x128xbf16>, vector<2x128xf32> -> vector<2x128xf32>
    %890 = arith.addf %886, %889 : vector<2x128xf32>
    %c2_442 = arith.constant 2 : index
    %c0_443 = arith.constant 0 : index
    %c0_444 = arith.constant 0 : index
    %891 = vector.load %arg52[%c2_442, %c0_443, %c0_444] : memref<3x256x128xbf16, #tpu.memory_space<vmem>>, vector<1x256x128xbf16>
    %892 = vector.shape_cast %891 : vector<1x256x128xbf16> to vector<256x128xbf16>
    %cst_445 = arith.constant dense<0.000000e+00> : vector<2x128xf32>
    %893 = tpu.matmul %883, %892, %cst_445 {dimension_numbers = #tpu.dot_dimension_numbers<[1], [0], [0], [1], [0, 0, 1, 1], [], []>} : vector<2x256xbf16>, vector<256x128xbf16>, vector<2x128xf32> -> vector<2x128xf32>
    %894 = arith.addf %890, %893 : vector<2x128xf32>
    %c0_446 = arith.constant 0 : index
    %c0_447 = arith.constant 0 : index
    %895 = vector.load %arg51[%c0_446, %c0_447] : memref<2x128xf32, #tpu.memory_space<vmem>>, vector<2x128xf32>
    %cst_448 = arith.constant dense<0.000000e+00> : vector<2xf32>
    %896 = vector.multi_reduction <add>, %894, %cst_448 [1] : vector<2x128xf32> to vector<2xf32>
    %897 = vector.shape_cast %896 : vector<2xf32> to vector<2x1xf32>
    %cst_449 = arith.constant dense<0.000000e+00> : vector<1xf32>
    %898 = vector.multi_reduction <add>, %897, %cst_449 [0] : vector<2x1xf32> to vector<1xf32>
    %899 = vector.shape_cast %898 : vector<1xf32> to vector<1x1xf32>
    %cst_450 = arith.constant 2.560000e+02 : f32
    %900 = vector.broadcast %cst_450 : f32 to vector<1x1xf32>
    %901 = arith.divf %899, %900 : vector<1x1xf32>
    %902 = vector.broadcast %901 : vector<1x1xf32> to vector<2x128xf32>
    %903 = arith.subf %894, %902 : vector<2x128xf32>
    %904 = arith.mulf %903, %903 : vector<2x128xf32>
    %cst_451 = arith.constant dense<0.000000e+00> : vector<2xf32>
    %905 = vector.multi_reduction <add>, %904, %cst_451 [1] : vector<2x128xf32> to vector<2xf32>
    %906 = vector.shape_cast %905 : vector<2xf32> to vector<2x1xf32>
    %cst_452 = arith.constant dense<0.000000e+00> : vector<1xf32>
    %907 = vector.multi_reduction <add>, %906, %cst_452 [0] : vector<2x1xf32> to vector<1xf32>
    %908 = vector.shape_cast %907 : vector<1xf32> to vector<1x1xf32>
    %cst_453 = arith.constant 2.560000e+02 : f32
    %909 = vector.broadcast %cst_453 : f32 to vector<1x1xf32>
    %910 = arith.divf %908, %909 : vector<1x1xf32>
    %cst_454 = arith.constant 9.99999974E-6 : f32
    %911 = vector.broadcast %cst_454 : f32 to vector<1x1xf32>
    %912 = arith.addf %910, %911 : vector<1x1xf32>
    %913 = math.rsqrt %912 : vector<1x1xf32>
    %914 = vector.broadcast %913 : vector<1x1xf32> to vector<2x128xf32>
    %915 = arith.mulf %903, %914 : vector<2x128xf32>
    %916 = vector.extract_strided_slice %895 {offsets = [0, 0], sizes = [1, 128], strides = [1, 1]} : vector<2x128xf32> to vector<1x128xf32>
    %917 = vector.broadcast %916 : vector<1x128xf32> to vector<2x128xf32>
    %918 = arith.mulf %915, %917 : vector<2x128xf32>
    %919 = vector.extract_strided_slice %895 {offsets = [1, 0], sizes = [1, 128], strides = [1, 1]} : vector<2x128xf32> to vector<1x128xf32>
    %920 = vector.broadcast %919 : vector<1x128xf32> to vector<2x128xf32>
    %921 = arith.addf %918, %920 : vector<2x128xf32>
    %c0_455 = arith.constant 0 : index
    %c0_456 = arith.constant 0 : index
    %922 = vector.load %arg57[%c0_455, %c0_456] : memref<4x2xf32, #tpu.memory_space<vmem>>, vector<4x2xf32>
    %cst_457 = arith.constant dense<0.000000e+00> : vector<4x128xf32>
    %923 = tpu.matmul %922, %921, %cst_457 {dimension_numbers = #tpu.dot_dimension_numbers<[1], [0], [0], [1], [0, 0, 1, 1], [], []>} : vector<4x2xf32>, vector<2x128xf32>, vector<4x128xf32> -> vector<4x128xf32>
    %924 = arith.truncf %657 : vector<4x128xf32> to vector<4x128xbf16>
    %cst_458 = arith.constant 0.000000e+00 : bf16
    %925 = vector.broadcast %cst_458 : bf16 to vector<1x128xbf16>
    %926 = vector.extract_strided_slice %924 {offsets = [0, 0], sizes = [3, 128], strides = [1, 1]} : vector<4x128xbf16> to vector<3x128xbf16>
    %927 = tpu.concatenate %925, %926 in 0 : vector<1x128xbf16>, vector<3x128xbf16> -> vector<4x128xbf16>
    %928 = vector.extract_strided_slice %924 {offsets = [1, 0], sizes = [3, 128], strides = [1, 1]} : vector<4x128xbf16> to vector<3x128xbf16>
    %929 = tpu.concatenate %928, %925 in 0 : vector<3x128xbf16>, vector<1x128xbf16> -> vector<4x128xbf16>
    %c0_459 = arith.constant 0 : index
    %c0_460 = arith.constant 0 : index
    %c0_461 = arith.constant 0 : index
    %930 = vector.load %arg50[%c0_459, %c0_460, %c0_461] : memref<3x128x128xbf16, #tpu.memory_space<vmem>>, vector<1x128x128xbf16>
    %931 = vector.shape_cast %930 : vector<1x128x128xbf16> to vector<128x128xbf16>
    %cst_462 = arith.constant dense<0.000000e+00> : vector<4x128xf32>
    %932 = tpu.matmul %927, %931, %cst_462 {dimension_numbers = #tpu.dot_dimension_numbers<[1], [0], [0], [1], [0, 0, 1, 1], [], []>} : vector<4x128xbf16>, vector<128x128xbf16>, vector<4x128xf32> -> vector<4x128xf32>
    %c1_463 = arith.constant 1 : index
    %c0_464 = arith.constant 0 : index
    %c0_465 = arith.constant 0 : index
    %933 = vector.load %arg50[%c1_463, %c0_464, %c0_465] : memref<3x128x128xbf16, #tpu.memory_space<vmem>>, vector<1x128x128xbf16>
    %934 = vector.shape_cast %933 : vector<1x128x128xbf16> to vector<128x128xbf16>
    %cst_466 = arith.constant dense<0.000000e+00> : vector<4x128xf32>
    %935 = tpu.matmul %924, %934, %cst_466 {dimension_numbers = #tpu.dot_dimension_numbers<[1], [0], [0], [1], [0, 0, 1, 1], [], []>} : vector<4x128xbf16>, vector<128x128xbf16>, vector<4x128xf32> -> vector<4x128xf32>
    %936 = arith.addf %932, %935 : vector<4x128xf32>
    %c2_467 = arith.constant 2 : index
    %c0_468 = arith.constant 0 : index
    %c0_469 = arith.constant 0 : index
    %937 = vector.load %arg50[%c2_467, %c0_468, %c0_469] : memref<3x128x128xbf16, #tpu.memory_space<vmem>>, vector<1x128x128xbf16>
    %938 = vector.shape_cast %937 : vector<1x128x128xbf16> to vector<128x128xbf16>
    %cst_470 = arith.constant dense<0.000000e+00> : vector<4x128xf32>
    %939 = tpu.matmul %929, %938, %cst_470 {dimension_numbers = #tpu.dot_dimension_numbers<[1], [0], [0], [1], [0, 0, 1, 1], [], []>} : vector<4x128xbf16>, vector<128x128xbf16>, vector<4x128xf32> -> vector<4x128xf32>
    %940 = arith.addf %936, %939 : vector<4x128xf32>
    %c0_471 = arith.constant 0 : index
    %c0_472 = arith.constant 0 : index
    %941 = vector.load %arg49[%c0_471, %c0_472] : memref<2x128xf32, #tpu.memory_space<vmem>>, vector<2x128xf32>
    %cst_473 = arith.constant dense<0.000000e+00> : vector<4xf32>
    %942 = vector.multi_reduction <add>, %940, %cst_473 [1] : vector<4x128xf32> to vector<4xf32>
    %943 = vector.shape_cast %942 : vector<4xf32> to vector<4x1xf32>
    %cst_474 = arith.constant dense<0.000000e+00> : vector<1xf32>
    %944 = vector.multi_reduction <add>, %943, %cst_474 [0] : vector<4x1xf32> to vector<1xf32>
    %945 = vector.shape_cast %944 : vector<1xf32> to vector<1x1xf32>
    %cst_475 = arith.constant 5.120000e+02 : f32
    %946 = vector.broadcast %cst_475 : f32 to vector<1x1xf32>
    %947 = arith.divf %945, %946 : vector<1x1xf32>
    %948 = vector.broadcast %947 : vector<1x1xf32> to vector<4x128xf32>
    %949 = arith.subf %940, %948 : vector<4x128xf32>
    %950 = arith.mulf %949, %949 : vector<4x128xf32>
    %cst_476 = arith.constant dense<0.000000e+00> : vector<4xf32>
    %951 = vector.multi_reduction <add>, %950, %cst_476 [1] : vector<4x128xf32> to vector<4xf32>
    %952 = vector.shape_cast %951 : vector<4xf32> to vector<4x1xf32>
    %cst_477 = arith.constant dense<0.000000e+00> : vector<1xf32>
    %953 = vector.multi_reduction <add>, %952, %cst_477 [0] : vector<4x1xf32> to vector<1xf32>
    %954 = vector.shape_cast %953 : vector<1xf32> to vector<1x1xf32>
    %cst_478 = arith.constant 5.120000e+02 : f32
    %955 = vector.broadcast %cst_478 : f32 to vector<1x1xf32>
    %956 = arith.divf %954, %955 : vector<1x1xf32>
    %cst_479 = arith.constant 9.99999974E-6 : f32
    %957 = vector.broadcast %cst_479 : f32 to vector<1x1xf32>
    %958 = arith.addf %956, %957 : vector<1x1xf32>
    %959 = math.rsqrt %958 : vector<1x1xf32>
    %960 = vector.broadcast %959 : vector<1x1xf32> to vector<4x128xf32>
    %961 = arith.mulf %949, %960 : vector<4x128xf32>
    %962 = vector.extract_strided_slice %941 {offsets = [0, 0], sizes = [1, 128], strides = [1, 1]} : vector<2x128xf32> to vector<1x128xf32>
    %963 = vector.broadcast %962 : vector<1x128xf32> to vector<4x128xf32>
    %964 = arith.mulf %961, %963 : vector<4x128xf32>
    %965 = vector.extract_strided_slice %941 {offsets = [1, 0], sizes = [1, 128], strides = [1, 1]} : vector<2x128xf32> to vector<1x128xf32>
    %966 = vector.broadcast %965 : vector<1x128xf32> to vector<4x128xf32>
    %967 = arith.addf %964, %966 : vector<4x128xf32>
    %968 = arith.addf %923, %967 : vector<4x128xf32>
    %c0_480 = arith.constant 0 : index
    %c0_481 = arith.constant 0 : index
    %969 = vector.load %arg58[%c0_480, %c0_481] : memref<8x4xf32, #tpu.memory_space<vmem>>, vector<8x4xf32>
    %cst_482 = arith.constant dense<0.000000e+00> : vector<8x128xf32>
    %970 = tpu.matmul %969, %968, %cst_482 {dimension_numbers = #tpu.dot_dimension_numbers<[1], [0], [0], [1], [0, 0, 1, 1], [], []>} : vector<8x4xf32>, vector<4x128xf32>, vector<8x128xf32> -> vector<8x128xf32>
    %971 = arith.truncf %437 : vector<8x64xf32> to vector<8x64xbf16>
    %cst_483 = arith.constant 0.000000e+00 : bf16
    %972 = vector.broadcast %cst_483 : bf16 to vector<1x64xbf16>
    %973 = vector.extract_strided_slice %971 {offsets = [0, 0], sizes = [7, 64], strides = [1, 1]} : vector<8x64xbf16> to vector<7x64xbf16>
    %974 = tpu.concatenate %972, %973 in 0 : vector<1x64xbf16>, vector<7x64xbf16> -> vector<8x64xbf16>
    %975 = vector.extract_strided_slice %971 {offsets = [1, 0], sizes = [7, 64], strides = [1, 1]} : vector<8x64xbf16> to vector<7x64xbf16>
    %976 = tpu.concatenate %975, %972 in 0 : vector<7x64xbf16>, vector<1x64xbf16> -> vector<8x64xbf16>
    %c0_484 = arith.constant 0 : index
    %c0_485 = arith.constant 0 : index
    %c0_486 = arith.constant 0 : index
    %977 = vector.load %arg48[%c0_484, %c0_485, %c0_486] : memref<3x64x128xbf16, #tpu.memory_space<vmem>>, vector<1x64x128xbf16>
    %978 = vector.shape_cast %977 : vector<1x64x128xbf16> to vector<64x128xbf16>
    %cst_487 = arith.constant dense<0.000000e+00> : vector<8x128xf32>
    %979 = tpu.matmul %974, %978, %cst_487 {dimension_numbers = #tpu.dot_dimension_numbers<[1], [0], [0], [1], [0, 0, 1, 1], [], []>} : vector<8x64xbf16>, vector<64x128xbf16>, vector<8x128xf32> -> vector<8x128xf32>
    %c1_488 = arith.constant 1 : index
    %c0_489 = arith.constant 0 : index
    %c0_490 = arith.constant 0 : index
    %980 = vector.load %arg48[%c1_488, %c0_489, %c0_490] : memref<3x64x128xbf16, #tpu.memory_space<vmem>>, vector<1x64x128xbf16>
    %981 = vector.shape_cast %980 : vector<1x64x128xbf16> to vector<64x128xbf16>
    %cst_491 = arith.constant dense<0.000000e+00> : vector<8x128xf32>
    %982 = tpu.matmul %971, %981, %cst_491 {dimension_numbers = #tpu.dot_dimension_numbers<[1], [0], [0], [1], [0, 0, 1, 1], [], []>} : vector<8x64xbf16>, vector<64x128xbf16>, vector<8x128xf32> -> vector<8x128xf32>
    %983 = arith.addf %979, %982 : vector<8x128xf32>
    %c2_492 = arith.constant 2 : index
    %c0_493 = arith.constant 0 : index
    %c0_494 = arith.constant 0 : index
    %984 = vector.load %arg48[%c2_492, %c0_493, %c0_494] : memref<3x64x128xbf16, #tpu.memory_space<vmem>>, vector<1x64x128xbf16>
    %985 = vector.shape_cast %984 : vector<1x64x128xbf16> to vector<64x128xbf16>
    %cst_495 = arith.constant dense<0.000000e+00> : vector<8x128xf32>
    %986 = tpu.matmul %976, %985, %cst_495 {dimension_numbers = #tpu.dot_dimension_numbers<[1], [0], [0], [1], [0, 0, 1, 1], [], []>} : vector<8x64xbf16>, vector<64x128xbf16>, vector<8x128xf32> -> vector<8x128xf32>
    %987 = arith.addf %983, %986 : vector<8x128xf32>
    %c0_496 = arith.constant 0 : index
    %c0_497 = arith.constant 0 : index
    %988 = vector.load %arg47[%c0_496, %c0_497] : memref<2x128xf32, #tpu.memory_space<vmem>>, vector<2x128xf32>
    %cst_498 = arith.constant dense<0.000000e+00> : vector<8xf32>
    %989 = vector.multi_reduction <add>, %987, %cst_498 [1] : vector<8x128xf32> to vector<8xf32>
    %990 = vector.shape_cast %989 : vector<8xf32> to vector<8x1xf32>
    %cst_499 = arith.constant dense<0.000000e+00> : vector<1xf32>
    %991 = vector.multi_reduction <add>, %990, %cst_499 [0] : vector<8x1xf32> to vector<1xf32>
    %992 = vector.shape_cast %991 : vector<1xf32> to vector<1x1xf32>
    %cst_500 = arith.constant 1.024000e+03 : f32
    %993 = vector.broadcast %cst_500 : f32 to vector<1x1xf32>
    %994 = arith.divf %992, %993 : vector<1x1xf32>
    %995 = vector.broadcast %994 : vector<1x1xf32> to vector<8x128xf32>
    %996 = arith.subf %987, %995 : vector<8x128xf32>
    %997 = arith.mulf %996, %996 : vector<8x128xf32>
    %cst_501 = arith.constant dense<0.000000e+00> : vector<8xf32>
    %998 = vector.multi_reduction <add>, %997, %cst_501 [1] : vector<8x128xf32> to vector<8xf32>
    %999 = vector.shape_cast %998 : vector<8xf32> to vector<8x1xf32>
    %cst_502 = arith.constant dense<0.000000e+00> : vector<1xf32>
    %1000 = vector.multi_reduction <add>, %999, %cst_502 [0] : vector<8x1xf32> to vector<1xf32>
    %1001 = vector.shape_cast %1000 : vector<1xf32> to vector<1x1xf32>
    %cst_503 = arith.constant 1.024000e+03 : f32
    %1002 = vector.broadcast %cst_503 : f32 to vector<1x1xf32>
    %1003 = arith.divf %1001, %1002 : vector<1x1xf32>
    %cst_504 = arith.constant 9.99999974E-6 : f32
    %1004 = vector.broadcast %cst_504 : f32 to vector<1x1xf32>
    %1005 = arith.addf %1003, %1004 : vector<1x1xf32>
    %1006 = math.rsqrt %1005 : vector<1x1xf32>
    %1007 = vector.broadcast %1006 : vector<1x1xf32> to vector<8x128xf32>
    %1008 = arith.mulf %996, %1007 : vector<8x128xf32>
    %1009 = vector.extract_strided_slice %988 {offsets = [0, 0], sizes = [1, 128], strides = [1, 1]} : vector<2x128xf32> to vector<1x128xf32>
    %1010 = vector.broadcast %1009 : vector<1x128xf32> to vector<8x128xf32>
    %1011 = arith.mulf %1008, %1010 : vector<8x128xf32>
    %1012 = vector.extract_strided_slice %988 {offsets = [1, 0], sizes = [1, 128], strides = [1, 1]} : vector<2x128xf32> to vector<1x128xf32>
    %1013 = vector.broadcast %1012 : vector<1x128xf32> to vector<8x128xf32>
    %1014 = arith.addf %1011, %1013 : vector<8x128xf32>
    %1015 = arith.addf %970, %1014 : vector<8x128xf32>
    %c0_505 = arith.constant 0 : index
    %c0_506 = arith.constant 0 : index
    %1016 = vector.load %arg59[%c0_505, %c0_506] : memref<16x8xf32, #tpu.memory_space<vmem>>, vector<16x8xf32>
    %cst_507 = arith.constant dense<0.000000e+00> : vector<16x128xf32>
    %1017 = tpu.matmul %1016, %1015, %cst_507 {dimension_numbers = #tpu.dot_dimension_numbers<[1], [0], [0], [1], [0, 0, 1, 1], [], []>} : vector<16x8xf32>, vector<8x128xf32>, vector<16x128xf32> -> vector<16x128xf32>
    %1018 = arith.truncf %217 : vector<16x32xf32> to vector<16x32xbf16>
    %cst_508 = arith.constant 0.000000e+00 : bf16
    %1019 = vector.broadcast %cst_508 : bf16 to vector<1x32xbf16>
    %1020 = vector.extract_strided_slice %1018 {offsets = [0, 0], sizes = [15, 32], strides = [1, 1]} : vector<16x32xbf16> to vector<15x32xbf16>
    %1021 = tpu.concatenate %1019, %1020 in 0 : vector<1x32xbf16>, vector<15x32xbf16> -> vector<16x32xbf16>
    %1022 = vector.extract_strided_slice %1018 {offsets = [1, 0], sizes = [15, 32], strides = [1, 1]} : vector<16x32xbf16> to vector<15x32xbf16>
    %1023 = tpu.concatenate %1022, %1019 in 0 : vector<15x32xbf16>, vector<1x32xbf16> -> vector<16x32xbf16>
    %c0_509 = arith.constant 0 : index
    %c0_510 = arith.constant 0 : index
    %c0_511 = arith.constant 0 : index
    %1024 = vector.load %arg46[%c0_509, %c0_510, %c0_511] : memref<3x32x128xbf16, #tpu.memory_space<vmem>>, vector<1x32x128xbf16>
    %1025 = vector.shape_cast %1024 : vector<1x32x128xbf16> to vector<32x128xbf16>
    %cst_512 = arith.constant dense<0.000000e+00> : vector<16x128xf32>
    %1026 = tpu.matmul %1021, %1025, %cst_512 {dimension_numbers = #tpu.dot_dimension_numbers<[1], [0], [0], [1], [0, 0, 1, 1], [], []>} : vector<16x32xbf16>, vector<32x128xbf16>, vector<16x128xf32> -> vector<16x128xf32>
    %c1_513 = arith.constant 1 : index
    %c0_514 = arith.constant 0 : index
    %c0_515 = arith.constant 0 : index
    %1027 = vector.load %arg46[%c1_513, %c0_514, %c0_515] : memref<3x32x128xbf16, #tpu.memory_space<vmem>>, vector<1x32x128xbf16>
    %1028 = vector.shape_cast %1027 : vector<1x32x128xbf16> to vector<32x128xbf16>
    %cst_516 = arith.constant dense<0.000000e+00> : vector<16x128xf32>
    %1029 = tpu.matmul %1018, %1028, %cst_516 {dimension_numbers = #tpu.dot_dimension_numbers<[1], [0], [0], [1], [0, 0, 1, 1], [], []>} : vector<16x32xbf16>, vector<32x128xbf16>, vector<16x128xf32> -> vector<16x128xf32>
    %1030 = arith.addf %1026, %1029 : vector<16x128xf32>
    %c2_517 = arith.constant 2 : index
    %c0_518 = arith.constant 0 : index
    %c0_519 = arith.constant 0 : index
    %1031 = vector.load %arg46[%c2_517, %c0_518, %c0_519] : memref<3x32x128xbf16, #tpu.memory_space<vmem>>, vector<1x32x128xbf16>
    %1032 = vector.shape_cast %1031 : vector<1x32x128xbf16> to vector<32x128xbf16>
    %cst_520 = arith.constant dense<0.000000e+00> : vector<16x128xf32>
    %1033 = tpu.matmul %1023, %1032, %cst_520 {dimension_numbers = #tpu.dot_dimension_numbers<[1], [0], [0], [1], [0, 0, 1, 1], [], []>} : vector<16x32xbf16>, vector<32x128xbf16>, vector<16x128xf32> -> vector<16x128xf32>
    %1034 = arith.addf %1030, %1033 : vector<16x128xf32>
    %c0_521 = arith.constant 0 : index
    %c0_522 = arith.constant 0 : index
    %1035 = vector.load %arg45[%c0_521, %c0_522] : memref<2x128xf32, #tpu.memory_space<vmem>>, vector<2x128xf32>
    %cst_523 = arith.constant dense<0.000000e+00> : vector<16xf32>
    %1036 = vector.multi_reduction <add>, %1034, %cst_523 [1] : vector<16x128xf32> to vector<16xf32>
    %1037 = vector.shape_cast %1036 : vector<16xf32> to vector<16x1xf32>
    %cst_524 = arith.constant dense<0.000000e+00> : vector<1xf32>
    %1038 = vector.multi_reduction <add>, %1037, %cst_524 [0] : vector<16x1xf32> to vector<1xf32>
    %1039 = vector.shape_cast %1038 : vector<1xf32> to vector<1x1xf32>
    %cst_525 = arith.constant 2.048000e+03 : f32
    %1040 = vector.broadcast %cst_525 : f32 to vector<1x1xf32>
    %1041 = arith.divf %1039, %1040 : vector<1x1xf32>
    %1042 = vector.broadcast %1041 : vector<1x1xf32> to vector<16x128xf32>
    %1043 = arith.subf %1034, %1042 : vector<16x128xf32>
    %1044 = arith.mulf %1043, %1043 : vector<16x128xf32>
    %cst_526 = arith.constant dense<0.000000e+00> : vector<16xf32>
    %1045 = vector.multi_reduction <add>, %1044, %cst_526 [1] : vector<16x128xf32> to vector<16xf32>
    %1046 = vector.shape_cast %1045 : vector<16xf32> to vector<16x1xf32>
    %cst_527 = arith.constant dense<0.000000e+00> : vector<1xf32>
    %1047 = vector.multi_reduction <add>, %1046, %cst_527 [0] : vector<16x1xf32> to vector<1xf32>
    %1048 = vector.shape_cast %1047 : vector<1xf32> to vector<1x1xf32>
    %cst_528 = arith.constant 2.048000e+03 : f32
    %1049 = vector.broadcast %cst_528 : f32 to vector<1x1xf32>
    %1050 = arith.divf %1048, %1049 : vector<1x1xf32>
    %cst_529 = arith.constant 9.99999974E-6 : f32
    %1051 = vector.broadcast %cst_529 : f32 to vector<1x1xf32>
    %1052 = arith.addf %1050, %1051 : vector<1x1xf32>
    %1053 = math.rsqrt %1052 : vector<1x1xf32>
    %1054 = vector.broadcast %1053 : vector<1x1xf32> to vector<16x128xf32>
    %1055 = arith.mulf %1043, %1054 : vector<16x128xf32>
    %1056 = vector.extract_strided_slice %1035 {offsets = [0, 0], sizes = [1, 128], strides = [1, 1]} : vector<2x128xf32> to vector<1x128xf32>
    %1057 = vector.broadcast %1056 : vector<1x128xf32> to vector<16x128xf32>
    %1058 = arith.mulf %1055, %1057 : vector<16x128xf32>
    %1059 = vector.extract_strided_slice %1035 {offsets = [1, 0], sizes = [1, 128], strides = [1, 1]} : vector<2x128xf32> to vector<1x128xf32>
    %1060 = vector.broadcast %1059 : vector<1x128xf32> to vector<16x128xf32>
    %1061 = arith.addf %1058, %1060 : vector<16x128xf32>
    %1062 = arith.addf %1017, %1061 : vector<16x128xf32>
    %1063 = arith.truncf %1062 : vector<16x128xf32> to vector<16x128xbf16>
    %cst_530 = arith.constant 0.000000e+00 : bf16
    %1064 = vector.broadcast %cst_530 : bf16 to vector<1x128xbf16>
    %1065 = vector.extract_strided_slice %1063 {offsets = [0, 0], sizes = [15, 128], strides = [1, 1]} : vector<16x128xbf16> to vector<15x128xbf16>
    %1066 = tpu.concatenate %1064, %1065 in 0 : vector<1x128xbf16>, vector<15x128xbf16> -> vector<16x128xbf16>
    %1067 = vector.extract_strided_slice %1063 {offsets = [1, 0], sizes = [15, 128], strides = [1, 1]} : vector<16x128xbf16> to vector<15x128xbf16>
    %1068 = tpu.concatenate %1067, %1064 in 0 : vector<15x128xbf16>, vector<1x128xbf16> -> vector<16x128xbf16>
    %c0_531 = arith.constant 0 : index
    %c0_532 = arith.constant 0 : index
    %c0_533 = arith.constant 0 : index
    %1069 = vector.load %arg55[%c0_531, %c0_532, %c0_533] : memref<3x128x128xbf16, #tpu.memory_space<vmem>>, vector<1x128x128xbf16>
    %1070 = vector.shape_cast %1069 : vector<1x128x128xbf16> to vector<128x128xbf16>
    %cst_534 = arith.constant dense<0.000000e+00> : vector<16x128xf32>
    %1071 = tpu.matmul %1066, %1070, %cst_534 {dimension_numbers = #tpu.dot_dimension_numbers<[1], [0], [0], [1], [0, 0, 1, 1], [], []>} : vector<16x128xbf16>, vector<128x128xbf16>, vector<16x128xf32> -> vector<16x128xf32>
    %c1_535 = arith.constant 1 : index
    %c0_536 = arith.constant 0 : index
    %c0_537 = arith.constant 0 : index
    %1072 = vector.load %arg55[%c1_535, %c0_536, %c0_537] : memref<3x128x128xbf16, #tpu.memory_space<vmem>>, vector<1x128x128xbf16>
    %1073 = vector.shape_cast %1072 : vector<1x128x128xbf16> to vector<128x128xbf16>
    %cst_538 = arith.constant dense<0.000000e+00> : vector<16x128xf32>
    %1074 = tpu.matmul %1063, %1073, %cst_538 {dimension_numbers = #tpu.dot_dimension_numbers<[1], [0], [0], [1], [0, 0, 1, 1], [], []>} : vector<16x128xbf16>, vector<128x128xbf16>, vector<16x128xf32> -> vector<16x128xf32>
    %1075 = arith.addf %1071, %1074 : vector<16x128xf32>
    %c2_539 = arith.constant 2 : index
    %c0_540 = arith.constant 0 : index
    %c0_541 = arith.constant 0 : index
    %1076 = vector.load %arg55[%c2_539, %c0_540, %c0_541] : memref<3x128x128xbf16, #tpu.memory_space<vmem>>, vector<1x128x128xbf16>
    %1077 = vector.shape_cast %1076 : vector<1x128x128xbf16> to vector<128x128xbf16>
    %cst_542 = arith.constant dense<0.000000e+00> : vector<16x128xf32>
    %1078 = tpu.matmul %1068, %1077, %cst_542 {dimension_numbers = #tpu.dot_dimension_numbers<[1], [0], [0], [1], [0, 0, 1, 1], [], []>} : vector<16x128xbf16>, vector<128x128xbf16>, vector<16x128xf32> -> vector<16x128xf32>
    %1079 = arith.addf %1075, %1078 : vector<16x128xf32>
    %c0_543 = arith.constant 0 : index
    %c0_544 = arith.constant 0 : index
    %1080 = vector.load %arg53[%c0_543, %c0_544] : memref<2x128xf32, #tpu.memory_space<vmem>>, vector<2x128xf32>
    %cst_545 = arith.constant dense<0.000000e+00> : vector<16xf32>
    %1081 = vector.multi_reduction <add>, %1079, %cst_545 [1] : vector<16x128xf32> to vector<16xf32>
    %1082 = vector.shape_cast %1081 : vector<16xf32> to vector<16x1xf32>
    %cst_546 = arith.constant dense<0.000000e+00> : vector<1xf32>
    %1083 = vector.multi_reduction <add>, %1082, %cst_546 [0] : vector<16x1xf32> to vector<1xf32>
    %1084 = vector.shape_cast %1083 : vector<1xf32> to vector<1x1xf32>
    %cst_547 = arith.constant 2.048000e+03 : f32
    %1085 = vector.broadcast %cst_547 : f32 to vector<1x1xf32>
    %1086 = arith.divf %1084, %1085 : vector<1x1xf32>
    %1087 = vector.broadcast %1086 : vector<1x1xf32> to vector<16x128xf32>
    %1088 = arith.subf %1079, %1087 : vector<16x128xf32>
    %1089 = arith.mulf %1088, %1088 : vector<16x128xf32>
    %cst_548 = arith.constant dense<0.000000e+00> : vector<16xf32>
    %1090 = vector.multi_reduction <add>, %1089, %cst_548 [1] : vector<16x128xf32> to vector<16xf32>
    %1091 = vector.shape_cast %1090 : vector<16xf32> to vector<16x1xf32>
    %cst_549 = arith.constant dense<0.000000e+00> : vector<1xf32>
    %1092 = vector.multi_reduction <add>, %1091, %cst_549 [0] : vector<16x1xf32> to vector<1xf32>
    %1093 = vector.shape_cast %1092 : vector<1xf32> to vector<1x1xf32>
    %cst_550 = arith.constant 2.048000e+03 : f32
    %1094 = vector.broadcast %cst_550 : f32 to vector<1x1xf32>
    %1095 = arith.divf %1093, %1094 : vector<1x1xf32>
    %cst_551 = arith.constant 9.99999974E-6 : f32
    %1096 = vector.broadcast %cst_551 : f32 to vector<1x1xf32>
    %1097 = arith.addf %1095, %1096 : vector<1x1xf32>
    %1098 = math.rsqrt %1097 : vector<1x1xf32>
    %1099 = vector.broadcast %1098 : vector<1x1xf32> to vector<16x128xf32>
    %1100 = arith.mulf %1088, %1099 : vector<16x128xf32>
    %1101 = vector.extract_strided_slice %1080 {offsets = [0, 0], sizes = [1, 128], strides = [1, 1]} : vector<2x128xf32> to vector<1x128xf32>
    %1102 = vector.broadcast %1101 : vector<1x128xf32> to vector<16x128xf32>
    %1103 = arith.mulf %1100, %1102 : vector<16x128xf32>
    %1104 = vector.extract_strided_slice %1080 {offsets = [1, 0], sizes = [1, 128], strides = [1, 1]} : vector<2x128xf32> to vector<1x128xf32>
    %1105 = vector.broadcast %1104 : vector<1x128xf32> to vector<16x128xf32>
    %1106 = arith.addf %1103, %1105 : vector<16x128xf32>
    %cst_552 = arith.constant 0.000000e+00 : f32
    %1107 = vector.broadcast %cst_552 : f32 to vector<16x128xf32>
    %1108 = arith.maximumf %1106, %1107 : vector<16x128xf32>
    %1109 = arith.truncf %1108 : vector<16x128xf32> to vector<16x128xbf16>
    %cst_553 = arith.constant 0.000000e+00 : bf16
    %1110 = vector.broadcast %cst_553 : bf16 to vector<1x128xbf16>
    %1111 = vector.extract_strided_slice %1109 {offsets = [0, 0], sizes = [15, 128], strides = [1, 1]} : vector<16x128xbf16> to vector<15x128xbf16>
    %1112 = tpu.concatenate %1110, %1111 in 0 : vector<1x128xbf16>, vector<15x128xbf16> -> vector<16x128xbf16>
    %1113 = vector.extract_strided_slice %1109 {offsets = [1, 0], sizes = [15, 128], strides = [1, 1]} : vector<16x128xbf16> to vector<15x128xbf16>
    %1114 = tpu.concatenate %1113, %1110 in 0 : vector<15x128xbf16>, vector<1x128xbf16> -> vector<16x128xbf16>
    %c0_554 = arith.constant 0 : index
    %c0_555 = arith.constant 0 : index
    %c0_556 = arith.constant 0 : index
    %1115 = vector.load %arg56[%c0_554, %c0_555, %c0_556] : memref<3x128x128xbf16, #tpu.memory_space<vmem>>, vector<1x128x128xbf16>
    %1116 = vector.shape_cast %1115 : vector<1x128x128xbf16> to vector<128x128xbf16>
    %cst_557 = arith.constant dense<0.000000e+00> : vector<16x128xf32>
    %1117 = tpu.matmul %1112, %1116, %cst_557 {dimension_numbers = #tpu.dot_dimension_numbers<[1], [0], [0], [1], [0, 0, 1, 1], [], []>} : vector<16x128xbf16>, vector<128x128xbf16>, vector<16x128xf32> -> vector<16x128xf32>
    %c1_558 = arith.constant 1 : index
    %c0_559 = arith.constant 0 : index
    %c0_560 = arith.constant 0 : index
    %1118 = vector.load %arg56[%c1_558, %c0_559, %c0_560] : memref<3x128x128xbf16, #tpu.memory_space<vmem>>, vector<1x128x128xbf16>
    %1119 = vector.shape_cast %1118 : vector<1x128x128xbf16> to vector<128x128xbf16>
    %cst_561 = arith.constant dense<0.000000e+00> : vector<16x128xf32>
    %1120 = tpu.matmul %1109, %1119, %cst_561 {dimension_numbers = #tpu.dot_dimension_numbers<[1], [0], [0], [1], [0, 0, 1, 1], [], []>} : vector<16x128xbf16>, vector<128x128xbf16>, vector<16x128xf32> -> vector<16x128xf32>
    %1121 = arith.addf %1117, %1120 : vector<16x128xf32>
    %c2_562 = arith.constant 2 : index
    %c0_563 = arith.constant 0 : index
    %c0_564 = arith.constant 0 : index
    %1122 = vector.load %arg56[%c2_562, %c0_563, %c0_564] : memref<3x128x128xbf16, #tpu.memory_space<vmem>>, vector<1x128x128xbf16>
    %1123 = vector.shape_cast %1122 : vector<1x128x128xbf16> to vector<128x128xbf16>
    %cst_565 = arith.constant dense<0.000000e+00> : vector<16x128xf32>
    %1124 = tpu.matmul %1114, %1123, %cst_565 {dimension_numbers = #tpu.dot_dimension_numbers<[1], [0], [0], [1], [0, 0, 1, 1], [], []>} : vector<16x128xbf16>, vector<128x128xbf16>, vector<16x128xf32> -> vector<16x128xf32>
    %1125 = arith.addf %1121, %1124 : vector<16x128xf32>
    %c0_566 = arith.constant 0 : index
    %c0_567 = arith.constant 0 : index
    %1126 = vector.load %arg54[%c0_566, %c0_567] : memref<2x128xf32, #tpu.memory_space<vmem>>, vector<2x128xf32>
    %cst_568 = arith.constant dense<0.000000e+00> : vector<16xf32>
    %1127 = vector.multi_reduction <add>, %1125, %cst_568 [1] : vector<16x128xf32> to vector<16xf32>
    %1128 = vector.shape_cast %1127 : vector<16xf32> to vector<16x1xf32>
    %cst_569 = arith.constant dense<0.000000e+00> : vector<1xf32>
    %1129 = vector.multi_reduction <add>, %1128, %cst_569 [0] : vector<16x1xf32> to vector<1xf32>
    %1130 = vector.shape_cast %1129 : vector<1xf32> to vector<1x1xf32>
    %cst_570 = arith.constant 2.048000e+03 : f32
    %1131 = vector.broadcast %cst_570 : f32 to vector<1x1xf32>
    %1132 = arith.divf %1130, %1131 : vector<1x1xf32>
    %1133 = vector.broadcast %1132 : vector<1x1xf32> to vector<16x128xf32>
    %1134 = arith.subf %1125, %1133 : vector<16x128xf32>
    %1135 = arith.mulf %1134, %1134 : vector<16x128xf32>
    %cst_571 = arith.constant dense<0.000000e+00> : vector<16xf32>
    %1136 = vector.multi_reduction <add>, %1135, %cst_571 [1] : vector<16x128xf32> to vector<16xf32>
    %1137 = vector.shape_cast %1136 : vector<16xf32> to vector<16x1xf32>
    %cst_572 = arith.constant dense<0.000000e+00> : vector<1xf32>
    %1138 = vector.multi_reduction <add>, %1137, %cst_572 [0] : vector<16x1xf32> to vector<1xf32>
    %1139 = vector.shape_cast %1138 : vector<1xf32> to vector<1x1xf32>
    %cst_573 = arith.constant 2.048000e+03 : f32
    %1140 = vector.broadcast %cst_573 : f32 to vector<1x1xf32>
    %1141 = arith.divf %1139, %1140 : vector<1x1xf32>
    %cst_574 = arith.constant 9.99999974E-6 : f32
    %1142 = vector.broadcast %cst_574 : f32 to vector<1x1xf32>
    %1143 = arith.addf %1141, %1142 : vector<1x1xf32>
    %1144 = math.rsqrt %1143 : vector<1x1xf32>
    %1145 = vector.broadcast %1144 : vector<1x1xf32> to vector<16x128xf32>
    %1146 = arith.mulf %1134, %1145 : vector<16x128xf32>
    %1147 = vector.extract_strided_slice %1126 {offsets = [0, 0], sizes = [1, 128], strides = [1, 1]} : vector<2x128xf32> to vector<1x128xf32>
    %1148 = vector.broadcast %1147 : vector<1x128xf32> to vector<16x128xf32>
    %1149 = arith.mulf %1146, %1148 : vector<16x128xf32>
    %1150 = vector.extract_strided_slice %1126 {offsets = [1, 0], sizes = [1, 128], strides = [1, 1]} : vector<2x128xf32> to vector<1x128xf32>
    %1151 = vector.broadcast %1150 : vector<1x128xf32> to vector<16x128xf32>
    %1152 = arith.addf %1149, %1151 : vector<16x128xf32>
    %1153 = arith.addf %1152, %1062 : vector<16x128xf32>
    %cst_575 = arith.constant 0.000000e+00 : f32
    %1154 = vector.broadcast %cst_575 : f32 to vector<16x128xf32>
    %1155 = arith.maximumf %1153, %1154 : vector<16x128xf32>
    %1156 = vector.extract_strided_slice %1155 {offsets = [15, 0], sizes = [1, 128], strides = [1, 1]} : vector<16x128xf32> to vector<1x128xf32>
    %1157 = vector.shape_cast %1156 : vector<1x128xf32> to vector<1x1x128xf32>
    %c0_576 = arith.constant 0 : index
    %c0_577 = arith.constant 0 : index
    %c0_578 = arith.constant 0 : index
    %1158 = vector.load %arg60[%c0_576, %c0_577, %c0_578] : memref<1x1x128xf32, #tpu.memory_space<vmem>>, vector<1x1x128xf32>
    tpu.vector_store %arg60[%c0_576, %c0_577, %c0_578], %1157 {strides = array<i32>} : memref<1x1x128xf32, #tpu.memory_space<vmem>>, vector<1x1x128xf32>,
    return
  }
  func.func @transform_0(%arg0: i32) -> (i32, i32, i32) {
    %c0_i32 = arith.constant 0 : i32
    %c0_i32_0 = arith.constant 0 : i32
    %c0_i32_1 = arith.constant 0 : i32
    return %arg0, %c0_i32, %c0_i32_0 : i32, i32, i32
  }
  func.func @transform_1(%arg0: i32) -> (i32, i32) {
    %c0_i32 = arith.constant 0 : i32
    %c0_i32_0 = arith.constant 0 : i32
    %c0_i32_1 = arith.constant 0 : i32
    return %c0_i32, %c0_i32_0 : i32, i32
  }
  func.func @transform_2(%arg0: i32) -> (i32, i32) {
    %c0_i32 = arith.constant 0 : i32
    %c0_i32_0 = arith.constant 0 : i32
    %c0_i32_1 = arith.constant 0 : i32
    return %c0_i32, %c0_i32_0 : i32, i32
  }
  func.func @transform_3(%arg0: i32) -> (i32, i32) {
    %c0_i32 = arith.constant 0 : i32
    %c0_i32_0 = arith.constant 0 : i32
    %c0_i32_1 = arith.constant 0 : i32
    return %c0_i32, %c0_i32_0 : i32, i32
  }
  func.func @transform_4(%arg0: i32) -> (i32, i32) {
    %c0_i32 = arith.constant 0 : i32
    %c0_i32_0 = arith.constant 0 : i32
    %c0_i32_1 = arith.constant 0 : i32
    return %c0_i32, %c0_i32_0 : i32, i32
  }
  func.func @transform_5(%arg0: i32) -> (i32, i32) {
    %c0_i32 = arith.constant 0 : i32
    %c0_i32_0 = arith.constant 0 : i32
    %c0_i32_1 = arith.constant 0 : i32
    return %c0_i32, %c0_i32_0 : i32, i32
  }
  func.func @transform_6(%arg0: i32) -> (i32, i32) {
    %c0_i32 = arith.constant 0 : i32
    %c0_i32_0 = arith.constant 0 : i32
    %c0_i32_1 = arith.constant 0 : i32
    return %c0_i32, %c0_i32_0 : i32, i32
  }
  func.func @transform_7(%arg0: i32) -> (i32, i32) {
    %c0_i32 = arith.constant 0 : i32
    %c0_i32_0 = arith.constant 0 : i32
    %c0_i32_1 = arith.constant 0 : i32
    return %c0_i32, %c0_i32_0 : i32, i32
  }
  func.func @transform_8(%arg0: i32) -> (i32, i32, i32) {
    %c0_i32 = arith.constant 0 : i32
    %c0_i32_0 = arith.constant 0 : i32
    %c0_i32_1 = arith.constant 0 : i32
    %c0_i32_2 = arith.constant 0 : i32
    return %c0_i32, %c0_i32_0, %c0_i32_1 : i32, i32, i32
  }
  func.func @transform_9(%arg0: i32) -> (i32, i32, i32) {
    %c0_i32 = arith.constant 0 : i32
    %c0_i32_0 = arith.constant 0 : i32
    %c0_i32_1 = arith.constant 0 : i32
    %c0_i32_2 = arith.constant 0 : i32
    return %c0_i32, %c0_i32_0, %c0_i32_1 : i32, i32, i32
  }
  func.func @transform_10(%arg0: i32) -> (i32, i32) {
    %c0_i32 = arith.constant 0 : i32
    %c0_i32_0 = arith.constant 0 : i32
    %c0_i32_1 = arith.constant 0 : i32
    return %c0_i32, %c0_i32_0 : i32, i32
  }
  func.func @transform_11(%arg0: i32) -> (i32, i32) {
    %c0_i32 = arith.constant 0 : i32
    %c0_i32_0 = arith.constant 0 : i32
    %c0_i32_1 = arith.constant 0 : i32
    return %c0_i32, %c0_i32_0 : i32, i32
  }
  func.func @transform_12(%arg0: i32) -> (i32, i32, i32) {
    %c0_i32 = arith.constant 0 : i32
    %c0_i32_0 = arith.constant 0 : i32
    %c0_i32_1 = arith.constant 0 : i32
    %c0_i32_2 = arith.constant 0 : i32
    return %c0_i32, %c0_i32_0, %c0_i32_1 : i32, i32, i32
  }
  func.func @transform_13(%arg0: i32) -> (i32, i32, i32) {
    %c0_i32 = arith.constant 0 : i32
    %c0_i32_0 = arith.constant 0 : i32
    %c0_i32_1 = arith.constant 0 : i32
    %c0_i32_2 = arith.constant 0 : i32
    return %c0_i32, %c0_i32_0, %c0_i32_1 : i32, i32, i32
  }
  func.func @transform_14(%arg0: i32) -> (i32, i32) {
    %c0_i32 = arith.constant 0 : i32
    %c0_i32_0 = arith.constant 0 : i32
    %c0_i32_1 = arith.constant 0 : i32
    return %c0_i32, %c0_i32_0 : i32, i32
  }
  func.func @transform_15(%arg0: i32) -> (i32, i32) {
    %c0_i32 = arith.constant 0 : i32
    %c0_i32_0 = arith.constant 0 : i32
    %c0_i32_1 = arith.constant 0 : i32
    return %c0_i32, %c0_i32_0 : i32, i32
  }
  func.func @transform_16(%arg0: i32) -> (i32, i32) {
    %c0_i32 = arith.constant 0 : i32
    %c0_i32_0 = arith.constant 0 : i32
    %c0_i32_1 = arith.constant 0 : i32
    return %c0_i32, %c0_i32_0 : i32, i32
  }
  func.func @transform_17(%arg0: i32) -> (i32, i32) {
    %c0_i32 = arith.constant 0 : i32
    %c0_i32_0 = arith.constant 0 : i32
    %c0_i32_1 = arith.constant 0 : i32
    return %c0_i32, %c0_i32_0 : i32, i32
  }
  func.func @transform_18(%arg0: i32) -> (i32, i32, i32) {
    %c0_i32 = arith.constant 0 : i32
    %c0_i32_0 = arith.constant 0 : i32
    %c0_i32_1 = arith.constant 0 : i32
    %c0_i32_2 = arith.constant 0 : i32
    return %c0_i32, %c0_i32_0, %c0_i32_1 : i32, i32, i32
  }
  func.func @transform_19(%arg0: i32) -> (i32, i32, i32) {
    %c0_i32 = arith.constant 0 : i32
    %c0_i32_0 = arith.constant 0 : i32
    %c0_i32_1 = arith.constant 0 : i32
    %c0_i32_2 = arith.constant 0 : i32
    return %c0_i32, %c0_i32_0, %c0_i32_1 : i32, i32, i32
  }
  func.func @transform_20(%arg0: i32) -> (i32, i32) {
    %c0_i32 = arith.constant 0 : i32
    %c0_i32_0 = arith.constant 0 : i32
    %c0_i32_1 = arith.constant 0 : i32
    return %c0_i32, %c0_i32_0 : i32, i32
  }
  func.func @transform_21(%arg0: i32) -> (i32, i32) {
    %c0_i32 = arith.constant 0 : i32
    %c0_i32_0 = arith.constant 0 : i32
    %c0_i32_1 = arith.constant 0 : i32
    return %c0_i32, %c0_i32_0 : i32, i32
  }
  func.func @transform_22(%arg0: i32) -> (i32, i32, i32) {
    %c0_i32 = arith.constant 0 : i32
    %c0_i32_0 = arith.constant 0 : i32
    %c0_i32_1 = arith.constant 0 : i32
    %c0_i32_2 = arith.constant 0 : i32
    return %c0_i32, %c0_i32_0, %c0_i32_1 : i32, i32, i32
  }
  func.func @transform_23(%arg0: i32) -> (i32, i32, i32) {
    %c0_i32 = arith.constant 0 : i32
    %c0_i32_0 = arith.constant 0 : i32
    %c0_i32_1 = arith.constant 0 : i32
    %c0_i32_2 = arith.constant 0 : i32
    return %c0_i32, %c0_i32_0, %c0_i32_1 : i32, i32, i32
  }
  func.func @transform_24(%arg0: i32) -> (i32, i32) {
    %c0_i32 = arith.constant 0 : i32
    %c0_i32_0 = arith.constant 0 : i32
    %c0_i32_1 = arith.constant 0 : i32
    return %c0_i32, %c0_i32_0 : i32, i32
  }
  func.func @transform_25(%arg0: i32) -> (i32, i32) {
    %c0_i32 = arith.constant 0 : i32
    %c0_i32_0 = arith.constant 0 : i32
    %c0_i32_1 = arith.constant 0 : i32
    return %c0_i32, %c0_i32_0 : i32, i32
  }
  func.func @transform_26(%arg0: i32) -> (i32, i32) {
    %c0_i32 = arith.constant 0 : i32
    %c0_i32_0 = arith.constant 0 : i32
    %c0_i32_1 = arith.constant 0 : i32
    return %c0_i32, %c0_i32_0 : i32, i32
  }
  func.func @transform_27(%arg0: i32) -> (i32, i32) {
    %c0_i32 = arith.constant 0 : i32
    %c0_i32_0 = arith.constant 0 : i32
    %c0_i32_1 = arith.constant 0 : i32
    return %c0_i32, %c0_i32_0 : i32, i32
  }
  func.func @transform_28(%arg0: i32) -> (i32, i32, i32) {
    %c0_i32 = arith.constant 0 : i32
    %c0_i32_0 = arith.constant 0 : i32
    %c0_i32_1 = arith.constant 0 : i32
    %c0_i32_2 = arith.constant 0 : i32
    return %c0_i32, %c0_i32_0, %c0_i32_1 : i32, i32, i32
  }
  func.func @transform_29(%arg0: i32) -> (i32, i32, i32) {
    %c0_i32 = arith.constant 0 : i32
    %c0_i32_0 = arith.constant 0 : i32
    %c0_i32_1 = arith.constant 0 : i32
    %c0_i32_2 = arith.constant 0 : i32
    return %c0_i32, %c0_i32_0, %c0_i32_1 : i32, i32, i32
  }
  func.func @transform_30(%arg0: i32) -> (i32, i32) {
    %c0_i32 = arith.constant 0 : i32
    %c0_i32_0 = arith.constant 0 : i32
    %c0_i32_1 = arith.constant 0 : i32
    return %c0_i32, %c0_i32_0 : i32, i32
  }
  func.func @transform_31(%arg0: i32) -> (i32, i32) {
    %c0_i32 = arith.constant 0 : i32
    %c0_i32_0 = arith.constant 0 : i32
    %c0_i32_1 = arith.constant 0 : i32
    return %c0_i32, %c0_i32_0 : i32, i32
  }
  func.func @transform_32(%arg0: i32) -> (i32, i32, i32) {
    %c0_i32 = arith.constant 0 : i32
    %c0_i32_0 = arith.constant 0 : i32
    %c0_i32_1 = arith.constant 0 : i32
    %c0_i32_2 = arith.constant 0 : i32
    return %c0_i32, %c0_i32_0, %c0_i32_1 : i32, i32, i32
  }
  func.func @transform_33(%arg0: i32) -> (i32, i32, i32) {
    %c0_i32 = arith.constant 0 : i32
    %c0_i32_0 = arith.constant 0 : i32
    %c0_i32_1 = arith.constant 0 : i32
    %c0_i32_2 = arith.constant 0 : i32
    return %c0_i32, %c0_i32_0, %c0_i32_1 : i32, i32, i32
  }
  func.func @transform_34(%arg0: i32) -> (i32, i32) {
    %c0_i32 = arith.constant 0 : i32
    %c0_i32_0 = arith.constant 0 : i32
    %c0_i32_1 = arith.constant 0 : i32
    return %c0_i32, %c0_i32_0 : i32, i32
  }
  func.func @transform_35(%arg0: i32) -> (i32, i32) {
    %c0_i32 = arith.constant 0 : i32
    %c0_i32_0 = arith.constant 0 : i32
    %c0_i32_1 = arith.constant 0 : i32
    return %c0_i32, %c0_i32_0 : i32, i32
  }
  func.func @transform_36(%arg0: i32) -> (i32, i32) {
    %c0_i32 = arith.constant 0 : i32
    %c0_i32_0 = arith.constant 0 : i32
    %c0_i32_1 = arith.constant 0 : i32
    return %c0_i32, %c0_i32_0 : i32, i32
  }
  func.func @transform_37(%arg0: i32) -> (i32, i32) {
    %c0_i32 = arith.constant 0 : i32
    %c0_i32_0 = arith.constant 0 : i32
    %c0_i32_1 = arith.constant 0 : i32
    return %c0_i32, %c0_i32_0 : i32, i32
  }
  func.func @transform_38(%arg0: i32) -> (i32, i32, i32) {
    %c0_i32 = arith.constant 0 : i32
    %c0_i32_0 = arith.constant 0 : i32
    %c0_i32_1 = arith.constant 0 : i32
    %c0_i32_2 = arith.constant 0 : i32
    return %c0_i32, %c0_i32_0, %c0_i32_1 : i32, i32, i32
  }
  func.func @transform_39(%arg0: i32) -> (i32, i32, i32) {
    %c0_i32 = arith.constant 0 : i32
    %c0_i32_0 = arith.constant 0 : i32
    %c0_i32_1 = arith.constant 0 : i32
    %c0_i32_2 = arith.constant 0 : i32
    return %c0_i32, %c0_i32_0, %c0_i32_1 : i32, i32, i32
  }
  func.func @transform_40(%arg0: i32) -> (i32, i32) {
    %c0_i32 = arith.constant 0 : i32
    %c0_i32_0 = arith.constant 0 : i32
    %c0_i32_1 = arith.constant 0 : i32
    return %c0_i32, %c0_i32_0 : i32, i32
  }
  func.func @transform_41(%arg0: i32) -> (i32, i32) {
    %c0_i32 = arith.constant 0 : i32
    %c0_i32_0 = arith.constant 0 : i32
    %c0_i32_1 = arith.constant 0 : i32
    return %c0_i32, %c0_i32_0 : i32, i32
  }
  func.func @transform_42(%arg0: i32) -> (i32, i32, i32) {
    %c0_i32 = arith.constant 0 : i32
    %c0_i32_0 = arith.constant 0 : i32
    %c0_i32_1 = arith.constant 0 : i32
    %c0_i32_2 = arith.constant 0 : i32
    return %c0_i32, %c0_i32_0, %c0_i32_1 : i32, i32, i32
  }
  func.func @transform_43(%arg0: i32) -> (i32, i32, i32) {
    %c0_i32 = arith.constant 0 : i32
    %c0_i32_0 = arith.constant 0 : i32
    %c0_i32_1 = arith.constant 0 : i32
    %c0_i32_2 = arith.constant 0 : i32
    return %c0_i32, %c0_i32_0, %c0_i32_1 : i32, i32, i32
  }
  func.func @transform_44(%arg0: i32) -> (i32, i32) {
    %c0_i32 = arith.constant 0 : i32
    %c0_i32_0 = arith.constant 0 : i32
    %c0_i32_1 = arith.constant 0 : i32
    return %c0_i32, %c0_i32_0 : i32, i32
  }
  func.func @transform_45(%arg0: i32) -> (i32, i32, i32) {
    %c0_i32 = arith.constant 0 : i32
    %c0_i32_0 = arith.constant 0 : i32
    %c0_i32_1 = arith.constant 0 : i32
    %c0_i32_2 = arith.constant 0 : i32
    return %c0_i32, %c0_i32_0, %c0_i32_1 : i32, i32, i32
  }
  func.func @transform_46(%arg0: i32) -> (i32, i32) {
    %c0_i32 = arith.constant 0 : i32
    %c0_i32_0 = arith.constant 0 : i32
    %c0_i32_1 = arith.constant 0 : i32
    return %c0_i32, %c0_i32_0 : i32, i32
  }
  func.func @transform_47(%arg0: i32) -> (i32, i32, i32) {
    %c0_i32 = arith.constant 0 : i32
    %c0_i32_0 = arith.constant 0 : i32
    %c0_i32_1 = arith.constant 0 : i32
    %c0_i32_2 = arith.constant 0 : i32
    return %c0_i32, %c0_i32_0, %c0_i32_1 : i32, i32, i32
  }
  func.func @transform_48(%arg0: i32) -> (i32, i32) {
    %c0_i32 = arith.constant 0 : i32
    %c0_i32_0 = arith.constant 0 : i32
    %c0_i32_1 = arith.constant 0 : i32
    return %c0_i32, %c0_i32_0 : i32, i32
  }
  func.func @transform_49(%arg0: i32) -> (i32, i32, i32) {
    %c0_i32 = arith.constant 0 : i32
    %c0_i32_0 = arith.constant 0 : i32
    %c0_i32_1 = arith.constant 0 : i32
    %c0_i32_2 = arith.constant 0 : i32
    return %c0_i32, %c0_i32_0, %c0_i32_1 : i32, i32, i32
  }
  func.func @transform_50(%arg0: i32) -> (i32, i32) {
    %c0_i32 = arith.constant 0 : i32
    %c0_i32_0 = arith.constant 0 : i32
    %c0_i32_1 = arith.constant 0 : i32
    return %c0_i32, %c0_i32_0 : i32, i32
  }
  func.func @transform_51(%arg0: i32) -> (i32, i32, i32) {
    %c0_i32 = arith.constant 0 : i32
    %c0_i32_0 = arith.constant 0 : i32
    %c0_i32_1 = arith.constant 0 : i32
    %c0_i32_2 = arith.constant 0 : i32
    return %c0_i32, %c0_i32_0, %c0_i32_1 : i32, i32, i32
  }
  func.func @transform_52(%arg0: i32) -> (i32, i32) {
    %c0_i32 = arith.constant 0 : i32
    %c0_i32_0 = arith.constant 0 : i32
    %c0_i32_1 = arith.constant 0 : i32
    return %c0_i32, %c0_i32_0 : i32, i32
  }
  func.func @transform_53(%arg0: i32) -> (i32, i32) {
    %c0_i32 = arith.constant 0 : i32
    %c0_i32_0 = arith.constant 0 : i32
    %c0_i32_1 = arith.constant 0 : i32
    return %c0_i32, %c0_i32_0 : i32, i32
  }
  func.func @transform_54(%arg0: i32) -> (i32, i32, i32) {
    %c0_i32 = arith.constant 0 : i32
    %c0_i32_0 = arith.constant 0 : i32
    %c0_i32_1 = arith.constant 0 : i32
    %c0_i32_2 = arith.constant 0 : i32
    return %c0_i32, %c0_i32_0, %c0_i32_1 : i32, i32, i32
  }
  func.func @transform_55(%arg0: i32) -> (i32, i32, i32) {
    %c0_i32 = arith.constant 0 : i32
    %c0_i32_0 = arith.constant 0 : i32
    %c0_i32_1 = arith.constant 0 : i32
    %c0_i32_2 = arith.constant 0 : i32
    return %c0_i32, %c0_i32_0, %c0_i32_1 : i32, i32, i32
  }
  func.func @transform_56(%arg0: i32) -> (i32, i32) {
    %c0_i32 = arith.constant 0 : i32
    %c0_i32_0 = arith.constant 0 : i32
    %c0_i32_1 = arith.constant 0 : i32
    return %c0_i32, %c0_i32_0 : i32, i32
  }
  func.func @transform_57(%arg0: i32) -> (i32, i32) {
    %c0_i32 = arith.constant 0 : i32
    %c0_i32_0 = arith.constant 0 : i32
    %c0_i32_1 = arith.constant 0 : i32
    return %c0_i32, %c0_i32_0 : i32, i32
  }
  func.func @transform_58(%arg0: i32) -> (i32, i32) {
    %c0_i32 = arith.constant 0 : i32
    %c0_i32_0 = arith.constant 0 : i32
    %c0_i32_1 = arith.constant 0 : i32
    return %c0_i32, %c0_i32_0 : i32, i32
  }
  func.func @transform_59(%arg0: i32) -> (i32, i32, i32) {
    %c0_i32 = arith.constant 0 : i32
    %c0_i32_0 = arith.constant 0 : i32
    %c0_i32_1 = arith.constant 0 : i32
    return %arg0, %c0_i32, %c0_i32_0 : i32, i32, i32
  }
}

</mosaic_0001>

<bundles_post_ra>
// kernel: tpu_custom_call.1
= control target key start
LH: loop header
LB: loop body
LE: loop exit
PB: predicated region body
PF: predicated region fallthrough
CT: control target
= control target key end

     0   :  { %s17855_s6 = smov 1   ;;  %s17856_s10 = smov 2   ;;  %s20169_s0 = inlined_call_operand.smem [shape: u32[60], index: -1, kind: input, shape index: {}] }
   0x1   :  { %s17987_s5 = sld [smem:[%s20169_s0]]   ;;  %s17857_s14 = smov 3  }
   0x2   :  { %s17992_s9 = sld [smem:[%s20169_s0 + %s17855_s6]]   ;;  %s17858_s18 = smov 4  }
   0x3   :  { %s17997_s13 = sld [smem:[%s20169_s0 + %s17856_s10]]   ;;  %s17859_s22 = smov 5  }
   0x4   :  { %s18002_s17 = sld [smem:[%s20169_s0 + %s17857_s14]]   ;;  %s17860_s26 = smov 6  }
   0x5   :  { %s18007_s21 = sld [smem:[%s20169_s0 + %s17858_s18]]   ;;  %s17861_s30 = smov 7  }
   0x6   :  { %s18012_s25 = sld [smem:[%s20169_s0 + %s17859_s22]]   ;;  %s17862_s4 = smov 8  }
   0x7   :  { %20264 = sst [smem:[#allocation112_spill]] %s17987_s5  ;;  %s17863_s10 = smov 9  }
   0x8   :  { %20265 = sst [smem:[#allocation113_spill]] %s17992_s9  ;;  %s17864_s15 = smov 10  }
   0x9   :  { %20266 = sst [smem:[#allocation114_spill]] %s17997_s13  ;;  %s17865_s20 = smov 11  }
   0xa   :  { %20267 = sst [smem:[#allocation115_spill]] %s18002_s17  ;;  %s17867_s1 = smov 13  }
   0xb   :  { %20268 = sst [smem:[#allocation116_spill]] %s18007_s21  ;;  %s17868_s7 = smov 14  }
   0xc   :  { %20269 = sst [smem:[#allocation117_spill]] %s18012_s25  ;;  %s17870_s22 = smov 16  }
   0xd   :  { %s18017_s29 = sld [smem:[%s20169_s0 + %s17860_s26]]   ;;  %s17866_s26 = smov 12  }
   0xe   :  { %s18022_s3 = sld [smem:[%s20169_s0 + %s17861_s30]]   ;;  %s17871_s28 = smov 17  }
   0xf   :  { %s18027_s8 = sld [smem:[%s20169_s0 + %s17862_s4]]  }
  0x10   :  { %s18032_s14 = sld [smem:[%s20169_s0 + %s17863_s10]]  }
  0x11   :  { %s18037_s19 = sld [smem:[%s20169_s0 + %s17864_s15]]   ;;  %s17869_s15 = smov 15  }
  0x12   :  { %s18042_s24 = sld [smem:[%s20169_s0 + %s17865_s20]]  }
  0x13   :  { %20270 = sst [smem:[#allocation118_spill]] %s18017_s29 }
  0x14   :  { %20271 = sst [smem:[#allocation119_spill]] %s18022_s3 }
  0x15   :  { %20272 = sst [smem:[#allocation120_spill]] %s18027_s8 }
  0x16   :  { %20273 = sst [smem:[#allocation121_spill]] %s18032_s14 }
  0x17   :  { %20274 = sst [smem:[#allocation122_spill]] %s18037_s19 }
  0x18   :  { %s18047_s30 = sld [smem:[%s20169_s0 + %s17866_s26]]  }
  0x19   :  { %s18052_s6 = sld [smem:[%s20169_s0 + %s17867_s1]]  }
  0x1a   :  { %s18057_s12 = sld [smem:[%s20169_s0 + %s17868_s7]]   ;;  %s17872_s7 = smov 18  }
  0x1b   :  { %s18062_s20 = sld [smem:[%s20169_s0 + %s17869_s15]]   ;;  %s17873_s15 = smov 19  }
  0x1c   :  { %s18067_s27 = sld [smem:[%s20169_s0 + %s17870_s22]]   ;;  %s17874_s22 = smov 20  }
  0x1d   :  { %s18072_s4 = sld [smem:[%s20169_s0 + %s17871_s28]]   ;;  %s17875_s28 = smov 21  }
  0x1e   :  { %20275 = sst [smem:[#allocation123_spill]] %s18047_s30 }
  0x1f   :  { %20276 = sst [smem:[#allocation124_spill]] %s18052_s6 }
  0x20   :  { %20277 = sst [smem:[#allocation125_spill]] %s18057_s12 }
  0x21   :  { %s18077_s17 = sld [smem:[%s20169_s0 + %s17872_s7]]   ;;  %s17876_s7 = smov 22  }
  0x22   :  { %20278 = sst [smem:[#allocation126_spill]] %s18067_s27 }
  0x23   :  { %20279 = sst [smem:[#allocation127_spill]] %s18072_s4 }
  0x24   :  { %s18082_s5 = sld [smem:[%s20169_s0 + %s17873_s15]]   ;;  %s17877_s15 = smov 23  }
  0x25   :  { %s18087_s27 = sld [smem:[%s20169_s0 + %s17874_s22]]   ;;  %s17878_s22 = smov 24  }
  0x26   :  { %s18092_s12 = sld [smem:[%s20169_s0 + %s17875_s28]]   ;;  %s17879_s28 = smov 25  }
  0x27   :  { %20280 = sst [smem:[#allocation128_spill]] %s18077_s17 }
  0x28   :  { %s18097_s17 = sld [smem:[%s20169_s0 + %s17876_s7]]   ;;  %s17880_s7 = smov 26  }
  0x29   :  { %s18102_s30 = sld [smem:[%s20169_s0 + %s17877_s15]]   ;;  %s17881_s15 = smov 27  }
  0x2a   :  { %20281 = sst [smem:[#allocation129_spill]] %s18082_s5 }
  0x2b   :  { %20282 = sst [smem:[#allocation130_spill]] %s18087_s27 }
  0x2c   :  { %20283 = sst [smem:[#allocation131_spill]] %s18092_s12 }
  0x2d   :  { %s18107_s27 = sld [smem:[%s20169_s0 + %s17878_s22]]   ;;  %s17882_s22 = smov 28  }
  0x2e   :  { %20284 = sst [smem:[#allocation132_spill]] %s18097_s17 }
  0x2f   :  { %s18112_s19 = sld [smem:[%s20169_s0 + %s17879_s28]]   ;;  %s17883_s28 = smov 29  }
  0x30   :  { %s18117_s17 = sld [smem:[%s20169_s0 + %s17880_s7]]   ;;  %s17884_s7 = smov 30  }
  0x31   :  { %s18122_s8 = sld [smem:[%s20169_s0 + %s17881_s15]]   ;;  %s17885_s15 = smov 31  }
  0x32   :  { %s18132_s29 = sld [smem:[%s20169_s0 + %s17883_s28]]   ;;  %s17887_s28 = smov 33  }
  0x33   :  { %20285 = sst [smem:[#allocation133_spill]] %s18107_s27 }
  0x34   :  { %s18127_s27 = sld [smem:[%s20169_s0 + %s17882_s22]]   ;;  %s17886_s22 = smov 32  }
  0x35   :  { %s18142_s21 = sld [smem:[%s20169_s0 + %s17885_s15]]   ;;  %s17889_s15 = smov 35  }
  0x36   :  { %20286 = sst [smem:[#allocation134_spill]] %s18117_s17 }
  0x37   :  { %20287 = sst [smem:[#allocation135_spill]] %s18122_s8 }
  0x38   :  { %s18137_s17 = sld [smem:[%s20169_s0 + %s17884_s7]]   ;;  %s17888_s7 = smov 34  }
  0x39   :  { %s18152_s9 = sld [smem:[%s20169_s0 + %s17887_s28]]   ;;  %s17891_s28 = smov 37  }
  0x3a   :  { %20288 = sst [smem:[#allocation136_spill]] %s18127_s27 }
  0x3b   :  { %20290 = sst [smem:[#allocation138_spill]] %s18142_s21 }
  0x3c   :  { %s18147_s27 = sld [smem:[%s20169_s0 + %s17886_s22]]   ;;  %s17890_s22 = smov 36  }
  0x3d   :  { %s18162_s21 = sld [smem:[%s20169_s0 + %s17889_s15]]   ;;  %s17893_s15 = smov 39  }
  0x3e   :  { %20289 = sst [smem:[#allocation137_spill]] %s18137_s17 }
  0x3f   :  { %20292 = sst [smem:[#allocation140_spill]] %s18152_s9 }
  0x40   :  { %s18157_s17 = sld [smem:[%s20169_s0 + %s17888_s7]]   ;;  %s17892_s7 = smov 38  }
  0x41   :  { %s18172_s9 = sld [smem:[%s20169_s0 + %s17891_s28]]   ;;  %s17895_s28 = smov 41  }
  0x42   :  { %20291 = sst [smem:[#allocation139_spill]] %s18147_s27 }
  0x43   :  { %20294 = sst [smem:[#allocation142_spill]] %s18162_s21 }
  0x44   :  { %s18167_s27 = sld [smem:[%s20169_s0 + %s17890_s22]]   ;;  %s17894_s22 = smov 40  }
  0x45   :  { %s18182_s21 = sld [smem:[%s20169_s0 + %s17893_s15]]   ;;  %s17897_s15 = smov 43  }
  0x46   :  { %20293 = sst [smem:[#allocation141_spill]] %s18157_s17 }
  0x47   :  { %20296 = sst [smem:[#allocation144_spill]] %s18172_s9 }
  0x48   :  { %s18177_s17 = sld [smem:[%s20169_s0 + %s17892_s7]]   ;;  %s17896_s7 = smov 42  }
  0x49   :  { %s18192_s9 = sld [smem:[%s20169_s0 + %s17895_s28]]   ;;  %s17899_s28 = smov 45  }
  0x4a   :  { %20295 = sst [smem:[#allocation143_spill]] %s18167_s27 }
  0x4b   :  { %20298 = sst [smem:[#allocation146_spill]] %s18182_s21 }
  0x4c   :  { %s18187_s27 = sld [smem:[%s20169_s0 + %s17894_s22]]   ;;  %s17898_s22 = smov 44  }
  0x4d   :  { %s18202_s21 = sld [smem:[%s20169_s0 + %s17897_s15]]   ;;  %s17901_s15 = smov 47  }
  0x4e   :  { %20297 = sst [smem:[#allocation145_spill]] %s18177_s17 }
  0x4f   :  { %20300 = sst [smem:[#allocation148_spill]] %s18192_s9 }
  0x50   :  { %s18197_s17 = sld [smem:[%s20169_s0 + %s17896_s7]]   ;;  %s17900_s7 = smov 46  }
  0x51   :  { %s18212_s9 = sld [smem:[%s20169_s0 + %s17899_s28]]   ;;  %s17903_s28 = smov 49  }
  0x52   :  { %20299 = sst [smem:[#allocation147_spill]] %s18187_s27 }
  0x53   :  { %20302 = sst [smem:[#allocation150_spill]] %s18202_s21 }
  0x54   :  { %s18207_s27 = sld [smem:[%s20169_s0 + %s17898_s22]]   ;;  %s17902_s22 = smov 48  }
  0x55   :  { %s18222_s21 = sld [smem:[%s20169_s0 + %s17901_s15]]   ;;  %s17905_s15 = smov 51  }
  0x56   :  { %20301 = sst [smem:[#allocation149_spill]] %s18197_s17 }
  0x57   :  { %20304 = sst [smem:[#allocation152_spill]] %s18212_s9 }
  0x58   :  { %s18217_s17 = sld [smem:[%s20169_s0 + %s17900_s7]]   ;;  %s17904_s7 = smov 50  }
  0x59   :  { %s18232_s9 = sld [smem:[%s20169_s0 + %s17903_s28]]   ;;  %s17907_s28 = smov 53  }
  0x5a   :  { %20303 = sst [smem:[#allocation151_spill]] %s18207_s27 }
  0x5b   :  { %20306 = sst [smem:[#allocation154_spill]] %s18222_s21 }
  0x5c   :  { %s18227_s27 = sld [smem:[%s20169_s0 + %s17902_s22]]   ;;  %s17906_s22 = smov 52  }
  0x5d   :  { %s18242_s21 = sld [smem:[%s20169_s0 + %s17905_s15]]   ;;  %s17909_s15 = smov 55  }
  0x5e   :  { %20305 = sst [smem:[#allocation153_spill]] %s18217_s17 }
  0x5f   :  { %20308 = sst [smem:[#allocation156_spill]] %s18232_s9 }
  0x60   :  { %s18237_s17 = sld [smem:[%s20169_s0 + %s17904_s7]]   ;;  %s17908_s7 = smov 54  }
  0x61   :  { %s18252_s9 = sld [smem:[%s20169_s0 + %s17907_s28]]   ;;  %s17911_s28 = smov 57  }
  0x62   :  { %20307 = sst [smem:[#allocation155_spill]] %s18227_s27 }
  0x63   :  { %20310 = sst [smem:[#allocation158_spill]] %s18242_s21 }
  0x64   :  { %s18247_s27 = sld [smem:[%s20169_s0 + %s17906_s22]]   ;;  %s17910_s22 = smov 56  }
  0x65   :  { %s18262_s21 = sld [smem:[%s20169_s0 + %s17909_s15]]   ;;  %s17913_s15 = smov 59  }
  0x66   :  { %20309 = sst [smem:[#allocation157_spill]] %s18237_s17 }
  0x67   :  { %20312 = sst [smem:[#allocation160_spill]] %s18252_s9 }
  0x68   :  { %s18257_s17 = sld [smem:[%s20169_s0 + %s17908_s7]]   ;;  %s17912_s7 = smov 58  }
  0x69   :  { %s18272_s9 = sld [smem:[%s20169_s0 + %s17911_s28]]  }
  0x6a   :  { %20311 = sst [smem:[#allocation159_spill]] %s18247_s27 }
  0x6b   :  { %20314 = sst [smem:[#allocation162_spill]] %s18262_s21 }
  0x6c   :  { %s18267_s27 = sld [smem:[%s20169_s0 + %s17910_s22]]  }
  0x6d   :  { %s18282_s21 = sld [smem:[%s20169_s0 + %s17913_s15]]  }
  0x6e   :  { %20313 = sst [smem:[#allocation161_spill]] %s18257_s17 }
  0x6f   :  { %s18277_s17 = sld [smem:[%s20169_s0 + %s17912_s7]]  }
  0x70   :  { %124 = vsyncpa [#allocation3], 0 }
  0x71   :  { %125 = vsyncpa [#allocation6], 0 }
  0x72   :  { %126 = vsyncpa [#allocation9], 0 }
  0x73   :  { %127 = vsyncpa [#allocation12], 0 }
  0x74   :  { %128 = vsyncpa [#allocation15], 0 }
  0x75   :  { %129 = vsyncpa [#allocation18], 0 }
  0x76   :  { %130 = vsyncpa [#allocation21], 0 }
  0x77   :  { %131 = vsyncpa [#allocation24], 0 }
  0x78   :  { %132 = vsyncpa [#allocation27], 0 }
  0x79   :  { %133 = vsyncpa [#allocation30], 0 }
  0x7a   :  { %134 = vsyncpa [#allocation33], 0 }
  0x7b   :  { %135 = vsyncpa [#allocation36], 0 }
  0x7c   :  { %136 = vsyncpa [#allocation39], 0 }
  0x7d   :  { %137 = vsyncpa [#allocation42], 0 }
  0x7e   :  { %138 = vsyncpa [#allocation45], 0 }
  0x7f   :  { %139 = vsyncpa [#allocation48], 0 }
  0x80   :  { %140 = vsyncpa [#allocation51], 0 }
  0x81   :  { %141 = vsyncpa [#allocation54], 0 }
  0x82   :  { %142 = vsyncpa [#allocation57], 0 }
  0x83   :  { %143 = vsyncpa [#allocation60], 0 }
  0x84   :  { %144 = vsyncpa [#allocation63], 0 }
  0x85   :  { %145 = vsyncpa [#allocation66], 0 }
  0x86   :  { %146 = vsyncpa [#allocation69], 0 }
  0x87   :  { %147 = vsyncpa [#allocation72], 0 }
  0x88   :  { %148 = vsyncpa [#allocation75], 0 }
  0x89   :  { %149 = vsyncpa [#allocation78], 0 }
  0x8a   :  { %150 = vsyncpa [#allocation81], 0 }
  0x8b   :  { %151 = vsyncpa [#allocation4], 0 }
  0x8c   :  { %153 = vsyncpa [#allocation4 + $0x1], 0  ;;  %s18284_s0 = smov 0   ;;  %s18286_s22 = smov 0  }
  0x8d   :  { %s18288_s23 = smov 0   ;;  %s18290_s26 = smov 0  }
  0x8e LB: > { %s20315_s14 = sld [smem:[#allocation121_spill]]  ;;  %s20316_s12 = sld [smem:[#allocation131_spill]]  ;;  %s17841_s0 = sphi %s18284_s0, %s20394_s0   ;;  %s17853_s26 = sphi %s18290_s26, %s20391_s26   ;;  %s17849_s23 = sphi %s18288_s23, %s20393_s23   ;;  %s17845_s22 = sphi %s18286_s22, %s20395_s22  }
  0x8f   : > { %s20317_s8 = sld [smem:[#allocation135_spill]]  ;;  %s20318_s6 = sld [smem:[#allocation124_spill]] }
  0x90   : > { %s20319_s5 = sld [smem:[#allocation129_spill]]  ;;  %s20320_s4 = sld [smem:[#allocation127_spill]] }
  0x91   : > { %s20321_s25 = sld [smem:[#allocation117_spill]]  ;;  %s20322_s3 = sld [smem:[#allocation119_spill]] }
  0x92   : > { %s20323_s13 = sld [smem:[#allocation114_spill]]  ;;  %20324 = sst [smem:[#allocation163_spill]] %s17849_s23 }
  0x93   : > { %s18305_s28 = sadd.s32 4294967295, %s17853_s26   ;;  %s12787_s1 = sadd.s32 4294967294, %s17853_s26  }
  0x94   : > { %s18309_s2 = sadd.s32 1, %s17853_s26   ;;  %s1410_s7 = sadd.s32 1, %s17849_s23 }
  0x95   : > { %20325 = sst [smem:[#allocation164_spill]] %s18309_s2  ;;  %s1407_s10 = ssub.s32 %s17853_s26, %s18309_s2 }
  0x96   : > { %p1420_p0 = scmp.ne.s32.totalorder %s17849_s23, %s17845_s22  ;;  %p1408_p1 = scmp.eq.s32.totalorder %s1407_s10, 0 }
  0x97   : > { %p1421_p2 = scmp.eq.s32.totalorder %s18305_s28, 7  ;;  %p1426_p3 = scmp.ne.s32.totalorder %s17845_s22, %s17841_s0 }
  0x98   : > { %p1427_p4 = scmp.eq.s32.totalorder %s12787_s1, 7  ;;  %p12788_p7 = scmp.ge.s32.totalorder %s17853_s26, 1 }
  0x99   : > { %s18320_s11 = scalar_select %p1408_p1, %s17849_s23, %s1410_s7  }
  0x9a   : > { %p18322_p5 = por %p1421_p2, %p1420_p0  ;;  %p18326_p6 = por %p1427_p4, %p1426_p3 }
  0x9b   : > { %20326 = sst [smem:[#allocation165_spill]] %s18320_s11  ;;  %p1434_p8 = scmp.lt.s32.totalorder %s17853_s26, 9 }
  0x9c   : > { %s20327_s15 = scalar_select %p18322_p5, 1, 0 }
  0x9d   : > { %s20328_s16 = scalar_select %p18326_p6, 1, 0 }
  0x9e   : > { %p18332_p9 = pnand %p12788_p7, %p1434_p8 }
  0x9f   : > { %p15175_p10 = scmp.eq.s32.totalorder (!%p18332_p9), %s18305_s28, 0  ;;  %s17914_s1 = smov (!%p18332_p9), [#allocation5]  }
  0xa0   : > { %1438 = sbr.rel (%p18332_p9) target bundleno = 1484 (0x5cc), region = 12  ;;  %s1458_s7 = sshll.u32 (!%p18332_p9), %s17914_s1, 4  ;;  %s1459_s7 = int_to_ptr.vmem [resolvable:$true] %s1458_s7 }
  0xa1   : > { %s17915_s10 = smov (!%p18332_p9), [#allocation8]   ;;  %s16305_s23 = scalar_lea.hbm (!%p18332_p9), %s20323_s13, 64 }
  0xa2   : > { %s1483_s11 = sshll.u32 (!%p18332_p9), %s17915_s10, 4  ;;  %p16306_p11 = scmp.ne.s32.totalorder (!%p18332_p9), %s20323_s13, %s16305_s23  ;;  %s1484_s11 = int_to_ptr.vmem [resolvable:$true] %s1483_s11 }
  0xa3   : > { %p16311_p0 = scmp.lt.u32.totalorder (!%p18332_p9), %s16305_s23, %s20323_s13 }
  0xa4   : > { %p16307_p12 = pnand (!%p18332_p9), %p16306_p11, %p15175_p10 }
  0xa6   : > { %p16308_p13 = pneg (!%p18332_p9), %p16307_p12 }
  0xa8   : > { %p16313_p1 = pnand %p16311_p0, %p16308_p13 }
  0xaa   : > { %16316 = shalt.err (!%p16313_p1)
}
  0xab   : > { %s16317_s2 = scalar_lea.vmem %s1459_s7, 64  ;;  %p16324_p7 = scmp.lt.s32.totalorder %s1459_s7, %s1459_s7 }
  0xac   : > { %p16318_p2 = scmp.ne.s32.totalorder %s1459_s7, %s16317_s2  ;;  %p16325_p8 = scmp.lt.s32.totalorder %s16317_s2, %s16317_s2 }
  0xae   : > { %p16319_p3 = pnand %p16318_p2, %p15175_p10  ;;  %p16326_p6 = por %p16325_p8, %p16324_p7 }
  0xb0   : > { %p16320_p4 = pneg %p16319_p3 }
  0xb2   : > { %p16327_p5 = pnand %p16326_p6, %p16320_p4 }
  0xb4   : > { %16330 = shalt.err (!%p16327_p5)
}
  0xb5   : > { %14960 = dma.hbm_to_vmem [thread:$0]  (%p15175_p10), %s20323_s13, 64, %s1459_s7, [#allocation6]  }
  0xb6   : > { %s16331_s23 = scalar_lea.hbm %s20321_s25, 32 }
  0xb7   : > { %p16332_p11 = scmp.ne.s32.totalorder %s20321_s25, %s16331_s23  ;;  %p16337_p0 = scmp.lt.u32.totalorder %s16331_s23, %s20321_s25 }
  0xb9   : > { %p16333_p12 = pnand %p16332_p11, %p15175_p10 }
  0xbb   : > { %p16334_p13 = pneg %p16333_p12 }
  0xbd   : > { %p16339_p1 = pnand %p16337_p0, %p16334_p13 }
  0xbf   : > { %16342 = shalt.err (!%p16339_p1)
}
  0xc0   : > { %s16343_s2 = scalar_lea.vmem %s1484_s11, 32  ;;  %p16350_p3 = scmp.lt.s32.totalorder %s1484_s11, %s1484_s11 }
  0xc1   : > { %p16344_p5 = scmp.ne.s32.totalorder %s1484_s11, %s16343_s2  ;;  %p16351_p4 = scmp.lt.s32.totalorder %s16343_s2, %s16343_s2 }
  0xc3   : > { %p16345_p6 = pnand %p16344_p5, %p15175_p10  ;;  %p16352_p7 = por %p16351_p4, %p16350_p3 }
  0xc5   : > { %p16346_p2 = pneg %p16345_p6 }
  0xc7   : > { %p16353_p8 = pnand %p16352_p7, %p16346_p2 }
  0xc9   : > { %16356 = shalt.err (!%p16353_p8)
}
  0xca   : > { %14964 = dma.hbm_to_vmem [thread:$0]  (%p15175_p10), %s20321_s25, 32, %s1484_s11, [#allocation9]  }
  0xcb   : > { %s17916_s1 = smov [#allocation11]   ;;  %s17917_s10 = smov [#allocation14]  }
  0xcc   : > { %s1505_s7 = sshll.u32 %s17916_s1, 4  ;;  %s1528_s23 = sshll.u32 %s17917_s10, 4  ;;  %s1506_s7 = int_to_ptr.vmem [resolvable:$true] %s1505_s7  ;;  %s1529_s23 = int_to_ptr.vmem [resolvable:$true] %s1528_s23 }
  0xcd   : > { %s16357_s13 = scalar_lea.hbm %s20322_s3, 32 }
  0xce   : > { %p16358_p11 = scmp.ne.s32.totalorder %s20322_s3, %s16357_s13  ;;  %p16363_p0 = scmp.lt.u32.totalorder %s16357_s13, %s20322_s3 }
  0xd0   : > { %p16359_p12 = pnand %p16358_p11, %p15175_p10 }
  0xd2   : > { %p16360_p13 = pneg %p16359_p12 }
  0xd4   : > { %p16365_p1 = pnand %p16363_p0, %p16360_p13 }
  0xd6   : > { %16368 = shalt.err (!%p16365_p1)
}
  0xd7   : > { %s16369_s2 = scalar_lea.vmem %s1506_s7, 32  ;;  %p16376_p3 = scmp.lt.s32.totalorder %s1506_s7, %s1506_s7 }
  0xd8   : > { %p16370_p5 = scmp.ne.s32.totalorder %s1506_s7, %s16369_s2  ;;  %p16377_p4 = scmp.lt.s32.totalorder %s16369_s2, %s16369_s2 }
  0xda   : > { %p16371_p6 = pnand %p16370_p5, %p15175_p10  ;;  %p16378_p7 = por %p16377_p4, %p16376_p3 }
  0xdc   : > { %p16372_p2 = pneg %p16371_p6 }
  0xde   : > { %p16379_p8 = pnand %p16378_p7, %p16372_p2 }
  0xe0   : > { %16382 = shalt.err (!%p16379_p8)
}
  0xe1   : > { %14968 = dma.hbm_to_vmem [thread:$0]  (%p15175_p10), %s20322_s3, 32, %s1506_s7, [#allocation12]  }
  0xe2   : > { %s16383_s13 = scalar_lea.hbm %s20315_s14, 768 }
  0xe3   : > { %p16384_p11 = scmp.ne.s32.totalorder %s20315_s14, %s16383_s13  ;;  %p16389_p0 = scmp.lt.u32.totalorder %s16383_s13, %s20315_s14 }
  0xe5   : > { %p16385_p12 = pnand %p16384_p11, %p15175_p10 }
  0xe7   : > { %p16386_p13 = pneg %p16385_p12 }
  0xe9   : > { %p16391_p1 = pnand %p16389_p0, %p16386_p13 }
  0xeb   : > { %16394 = shalt.err (!%p16391_p1)
}
  0xec   : > { %s16395_s11 = scalar_lea.vmem %s1529_s23, 768  ;;  %p16402_p3 = scmp.lt.s32.totalorder %s1529_s23, %s1529_s23 }
  0xed   : > { %p16396_p5 = scmp.ne.s32.totalorder %s1529_s23, %s16395_s11  ;;  %p16403_p4 = scmp.lt.s32.totalorder %s16395_s11, %s16395_s11 }
  0xef   : > { %p16397_p6 = pnand %p16396_p5, %p15175_p10  ;;  %p16404_p7 = por %p16403_p4, %p16402_p3 }
  0xf1   : > { %p16398_p2 = pneg %p16397_p6 }
  0xf3   : > { %p16405_p8 = pnand %p16404_p7, %p16398_p2 }
  0xf5   : > { %16408 = shalt.err (!%p16405_p8)
}
  0xf6   : > { %s20218_s1 = smov 64   ;;  %s20220_s7 = smov 4  }
  0xf7   : > { %14972 = dma.hbm_to_vmem [thread:$0]  (%p15175_p10), %s20315_s14, 768, %s1529_s23, [#allocation15], %s20218_s1, %s20218_s1, %s20220_s7  }
  0xf8   : > { %s17920_s10 = smov [#allocation17]   ;;  %s17921_s13 = smov [#allocation20]  }
  0xf9   : > { %s1553_s2 = sshll.u32 %s17920_s10, 4  ;;  %s1576_s11 = sshll.u32 %s17921_s13, 4  ;;  %s1554_s2 = int_to_ptr.vmem [resolvable:$true] %s1553_s2  ;;  %s1577_s11 = int_to_ptr.vmem [resolvable:$true] %s1576_s11 }
  0xfa   : > { %s16409_s3 = scalar_lea.hbm %s18042_s24, 32 }
  0xfb   : > { %p16410_p11 = scmp.ne.s32.totalorder %s18042_s24, %s16409_s3  ;;  %p16415_p0 = scmp.lt.u32.totalorder %s16409_s3, %s18042_s24 }
  0xfd   : > { %p16411_p12 = pnand %p16410_p11, %p15175_p10 }
  0xff   : > { %p16412_p13 = pneg %p16411_p12 }
 0x101   : > { %p16417_p1 = pnand %p16415_p0, %p16412_p13 }
 0x103   : > { %16420 = shalt.err (!%p16417_p1)
}
 0x104   : > { %s16421_s25 = scalar_lea.vmem %s1554_s2, 32  ;;  %p16428_p3 = scmp.lt.s32.totalorder %s1554_s2, %s1554_s2 }
 0x105   : > { %p16422_p5 = scmp.ne.s32.totalorder %s1554_s2, %s16421_s25  ;;  %p16429_p4 = scmp.lt.s32.totalorder %s16421_s25, %s16421_s25 }
 0x107   : > { %p16423_p6 = pnand %p16422_p5, %p15175_p10  ;;  %p16430_p7 = por %p16429_p4, %p16428_p3 }
 0x109   : > { %p16424_p2 = pneg %p16423_p6 }
 0x10b   : > { %p16431_p8 = pnand %p16430_p7, %p16424_p2 }
 0x10d   : > { %16434 = shalt.err (!%p16431_p8)
}
 0x10e   : > { %14976 = dma.hbm_to_vmem [thread:$0]  (%p15175_p10), %s18042_s24, 32, %s1554_s2, [#allocation18]  }
 0x10f   : > { %s16435_s3 = scalar_lea.hbm %s20318_s6, 768 }
 0x110   : > { %p16436_p11 = scmp.ne.s32.totalorder %s20318_s6, %s16435_s3  ;;  %p16441_p0 = scmp.lt.u32.totalorder %s16435_s3, %s20318_s6 }
 0x112   : > { %p16437_p12 = pnand %p16436_p11, %p15175_p10 }
 0x114   : > { %p16438_p13 = pneg %p16437_p12 }
 0x116   : > { %p16443_p1 = pnand %p16441_p0, %p16438_p13 }
 0x118   : > { %16446 = shalt.err (!%p16443_p1)
}
 0x119   : > { %s16447_s25 = scalar_lea.vmem %s1577_s11, 768  ;;  %p16454_p3 = scmp.lt.s32.totalorder %s1577_s11, %s1577_s11 }
 0x11a   : > { %p16448_p5 = scmp.ne.s32.totalorder %s1577_s11, %s16447_s25  ;;  %p16455_p4 = scmp.lt.s32.totalorder %s16447_s25, %s16447_s25 }
 0x11c   : > { %p16449_p6 = pnand %p16448_p5, %p15175_p10  ;;  %p16456_p7 = por %p16455_p4, %p16454_p3 }
 0x11e   : > { %p16450_p2 = pneg %p16449_p6 }
 0x120   : > { %p16457_p8 = pnand %p16456_p7, %p16450_p2 }
 0x122   : > { %16460 = shalt.err (!%p16457_p8)
}
 0x123   : > { %14980 = dma.hbm_to_vmem [thread:$0]  (%p15175_p10), %s20318_s6, 768, %s1577_s11, [#allocation21], %s20218_s1, %s20218_s1, %s20220_s7  }
 0x124   : > { %s17922_s23 = smov [#allocation23]   ;;  %s17923_s2 = smov [#allocation26]  }
 0x125   : > { %s1600_s10 = sshll.u32 %s17922_s23, 4  ;;  %s1625_s13 = sshll.u32 %s17923_s2, 4  ;;  %s1601_s10 = int_to_ptr.vmem [resolvable:$true] %s1600_s10  ;;  %s1626_s13 = int_to_ptr.vmem [resolvable:$true] %s1625_s13 }
 0x126   : > { %s16461_s3 = scalar_lea.hbm %s18062_s20, 256 }
 0x127   : > { %p16462_p11 = scmp.ne.s32.totalorder %s18062_s20, %s16461_s3  ;;  %p16467_p0 = scmp.lt.u32.totalorder %s16461_s3, %s18062_s20 }
 0x129   : > { %p16463_p12 = pnand %p16462_p11, %p15175_p10 }
 0x12b   : > { %p16464_p13 = pneg %p16463_p12 }
 0x12d   : > { %p16469_p1 = pnand %p16467_p0, %p16464_p13 }
 0x12f   : > { %16472 = shalt.err (!%p16469_p1)
}
 0x130   : > { %s16473_s25 = scalar_lea.vmem %s1601_s10, 256  ;;  %p16480_p3 = scmp.lt.s32.totalorder %s1601_s10, %s1601_s10 }
 0x131   : > { %p16474_p5 = scmp.ne.s32.totalorder %s1601_s10, %s16473_s25  ;;  %p16481_p4 = scmp.lt.s32.totalorder %s16473_s25, %s16473_s25 }
 0x133   : > { %p16475_p6 = pnand %p16474_p5, %p15175_p10  ;;  %p16482_p7 = por %p16481_p4, %p16480_p3 }
 0x135   : > { %p16476_p2 = pneg %p16475_p6 }
 0x137   : > { %p16483_p8 = pnand %p16482_p7, %p16476_p2 }
 0x139   : > { %16486 = shalt.err (!%p16483_p8)
}
 0x13a   : > { %14984 = dma.hbm_to_vmem [thread:$0]  (%p15175_p10), %s18062_s20, 256, %s1601_s10, [#allocation24], %s20218_s1, %s20218_s1, %s20220_s7  }
 0x13b   : > { %s16487_s11 = scalar_lea.hbm %s20320_s4, 32 }
 0x13c   : > { %p16488_p11 = scmp.ne.s32.totalorder %s20320_s4, %s16487_s11  ;;  %p16493_p0 = scmp.lt.u32.totalorder %s16487_s11, %s20320_s4 }
 0x13e   : > { %p16489_p12 = pnand %p16488_p11, %p15175_p10 }
 0x140   : > { %p16490_p13 = pneg %p16489_p12 }
 0x142   : > { %p16495_p1 = pnand %p16493_p0, %p16490_p13 }
 0x144   : > { %16498 = shalt.err (!%p16495_p1)
}
 0x145   : > { %s16499_s23 = scalar_lea.vmem %s1626_s13, 32  ;;  %p16506_p3 = scmp.lt.s32.totalorder %s1626_s13, %s1626_s13 }
 0x146   : > { %p16500_p5 = scmp.ne.s32.totalorder %s1626_s13, %s16499_s23  ;;  %p16507_p4 = scmp.lt.s32.totalorder %s16499_s23, %s16499_s23 }
 0x148   : > { %p16501_p6 = pnand %p16500_p5, %p15175_p10  ;;  %p16508_p7 = por %p16507_p4, %p16506_p3 }
 0x14a   : > { %p16502_p2 = pneg %p16501_p6 }
 0x14c   : > { %p16509_p8 = pnand %p16508_p7, %p16502_p2 }
 0x14e   : > { %16512 = shalt.err (!%p16509_p8)
}
 0x14f   : > { %14988 = dma.hbm_to_vmem [thread:$0]  (%p15175_p10), %s20320_s4, 32, %s1626_s13, [#allocation27]  }
 0x150   : > { %s17924_s10 = smov [#allocation29]   ;;  %s17925_s3 = smov [#allocation32]  }
 0x151   : > { %s1648_s2 = sshll.u32 %s17924_s10, 4  ;;  %s1673_s25 = sshll.u32 %s17925_s3, 4  ;;  %s1649_s2 = int_to_ptr.vmem [resolvable:$true] %s1648_s2  ;;  %s1674_s25 = int_to_ptr.vmem [resolvable:$true] %s1673_s25 }
 0x152   : > { %s16513_s11 = scalar_lea.hbm %s20319_s5, 1536 }
 0x153   : > { %p16514_p11 = scmp.ne.s32.totalorder %s20319_s5, %s16513_s11  ;;  %p16519_p0 = scmp.lt.u32.totalorder %s16513_s11, %s20319_s5 }
 0x155   : > { %p16515_p12 = pnand %p16514_p11, %p15175_p10 }
 0x157   : > { %p16516_p13 = pneg %p16515_p12 }
 0x159   : > { %p16521_p1 = pnand %p16519_p0, %p16516_p13 }
 0x15b   : > { %16524 = shalt.err (!%p16521_p1)
}
 0x15c   : > { %s16525_s23 = scalar_lea.vmem %s1649_s2, 1536  ;;  %p16532_p3 = scmp.lt.s32.totalorder %s1649_s2, %s1649_s2 }
 0x15d   : > { %p16526_p5 = scmp.ne.s32.totalorder %s1649_s2, %s16525_s23  ;;  %p16533_p4 = scmp.lt.s32.totalorder %s16525_s23, %s16525_s23 }
 0x15f   : > { %p16527_p6 = pnand %p16526_p5, %p15175_p10  ;;  %p16534_p7 = por %p16533_p4, %p16532_p3 }
 0x161   : > { %p16528_p2 = pneg %p16527_p6 }
 0x163   : > { %p16535_p8 = pnand %p16534_p7, %p16528_p2 }
 0x165   : > { %16538 = shalt.err (!%p16535_p8)
}
 0x166   : > { %14992 = dma.hbm_to_vmem [thread:$0]  (%p15175_p10), %s20319_s5, 1536, %s1649_s2, [#allocation30], %s20218_s1, %s20218_s1, %s20220_s7  }
 0x167   : > { %s16539_s13 = scalar_lea.hbm %s20316_s12, 32 }
 0x168   : > { %p16540_p11 = scmp.ne.s32.totalorder %s20316_s12, %s16539_s13  ;;  %p16545_p0 = scmp.lt.u32.totalorder %s16539_s13, %s20316_s12 }
 0x16a   : > { %p16541_p12 = pnand %p16540_p11, %p15175_p10 }
 0x16c   : > { %p16542_p13 = pneg %p16541_p12 }
 0x16e   : > { %p16547_p1 = pnand %p16545_p0, %p16542_p13 }
 0x170   : > { %16550 = shalt.err (!%p16547_p1)
}
 0x171   : > { %s16551_s10 = scalar_lea.vmem %s1674_s25, 32  ;;  %p16558_p3 = scmp.lt.s32.totalorder %s1674_s25, %s1674_s25 }
 0x172   : > { %p16552_p5 = scmp.ne.s32.totalorder %s1674_s25, %s16551_s10  ;;  %p16559_p4 = scmp.lt.s32.totalorder %s16551_s10, %s16551_s10 }
 0x174   : > { %p16553_p6 = pnand %p16552_p5, %p15175_p10  ;;  %p16560_p7 = por %p16559_p4, %p16558_p3 }
 0x176   : > { %p16554_p2 = pneg %p16553_p6 }
 0x178   : > { %p16561_p8 = pnand %p16560_p7, %p16554_p2 }
 0x17a   : > { %16564 = shalt.err (!%p16561_p8)
}
 0x17b   : > { %14996 = dma.hbm_to_vmem [thread:$0]  (%p15175_p10), %s20316_s12, 32, %s1674_s25, [#allocation33]  }
 0x17c   : > { %s17926_s2 = smov [#allocation35]   ;;  %s17927_s11 = smov [#allocation38]  }
 0x17d   : > { %s1696_s3 = sshll.u32 %s17926_s2, 4  ;;  %s1720_s23 = sshll.u32 %s17927_s11, 4  ;;  %s1697_s3 = int_to_ptr.vmem [resolvable:$true] %s1696_s3  ;;  %s1721_s23 = int_to_ptr.vmem [resolvable:$true] %s1720_s23 }
 0x17e   : > { %s16565_s13 = scalar_lea.hbm %s18102_s30, 1536 }
 0x17f   : > { %p16566_p11 = scmp.ne.s32.totalorder %s18102_s30, %s16565_s13  ;;  %p16571_p0 = scmp.lt.u32.totalorder %s16565_s13, %s18102_s30 }
 0x181   : > { %p16567_p12 = pnand %p16566_p11, %p15175_p10 }
 0x183   : > { %p16568_p13 = pneg %p16567_p12 }
 0x185   : > { %p16573_p1 = pnand %p16571_p0, %p16568_p13 }
 0x187   : > { %16576 = shalt.err (!%p16573_p1)
}
 0x188   : > { %s16577_s10 = scalar_lea.vmem %s1697_s3, 1536  ;;  %p16584_p3 = scmp.lt.s32.totalorder %s1697_s3, %s1697_s3 }
 0x189   : > { %p16578_p5 = scmp.ne.s32.totalorder %s1697_s3, %s16577_s10  ;;  %p16585_p4 = scmp.lt.s32.totalorder %s16577_s10, %s16577_s10 }
 0x18b   : > { %p16579_p6 = pnand %p16578_p5, %p15175_p10  ;;  %p16586_p7 = por %p16585_p4, %p16584_p3 }
 0x18d   : > { %p16580_p2 = pneg %p16579_p6 }
 0x18f   : > { %p16587_p8 = pnand %p16586_p7, %p16580_p2 }
 0x191   : > { %16590 = shalt.err (!%p16587_p8)
}
 0x192   : > { %15000 = dma.hbm_to_vmem [thread:$0]  (%p15175_p10), %s18102_s30, 1536, %s1697_s3, [#allocation36], %s20218_s1, %s20218_s1, %s20220_s7  }
 0x193   : > { %s16591_s25 = scalar_lea.hbm %s18112_s19, 512 }
 0x194   : > { %p16592_p11 = scmp.ne.s32.totalorder %s18112_s19, %s16591_s25  ;;  %p16597_p0 = scmp.lt.u32.totalorder %s16591_s25, %s18112_s19 }
 0x196   : > { %p16593_p12 = pnand %p16592_p11, %p15175_p10 }
 0x198   : > { %p16594_p13 = pneg %p16593_p12 }
 0x19a   : > { %p16599_p1 = pnand %p16597_p0, %p16594_p13 }
 0x19c   : > { %16602 = shalt.err (!%p16599_p1)
}
 0x19d   : > { %s16603_s2 = scalar_lea.vmem %s1721_s23, 512  ;;  %p16610_p3 = scmp.lt.s32.totalorder %s1721_s23, %s1721_s23 }
 0x19e   : > { %p16604_p5 = scmp.ne.s32.totalorder %s1721_s23, %s16603_s2  ;;  %p16611_p4 = scmp.lt.s32.totalorder %s16603_s2, %s16603_s2 }
 0x1a0   : > { %p16605_p6 = pnand %p16604_p5, %p15175_p10  ;;  %p16612_p7 = por %p16611_p4, %p16610_p3 }
 0x1a2   : > { %p16606_p2 = pneg %p16605_p6 }
 0x1a4   : > { %p16613_p8 = pnand %p16612_p7, %p16606_p2 }
 0x1a6   : > { %16616 = shalt.err (!%p16613_p8)
}
 0x1a7   : > { %15004 = dma.hbm_to_vmem [thread:$0]  (%p15175_p10), %s18112_s19, 512, %s1721_s23, [#allocation39], %s20218_s1, %s20218_s1, %s20220_s7  }
 0x1a8   : > { %s17928_s3 = smov [#allocation41]   ;;  %s17929_s13 = smov [#allocation44]  }
 0x1a9   : > { %s1745_s11 = sshll.u32 %s17928_s3, 4  ;;  %s1768_s10 = sshll.u32 %s17929_s13, 4  ;;  %s1746_s11 = int_to_ptr.vmem [resolvable:$true] %s1745_s11  ;;  %s1769_s10 = int_to_ptr.vmem [resolvable:$true] %s1768_s10 }
 0x1aa   : > { %s16617_s25 = scalar_lea.hbm %s20317_s8, 32 }
 0x1ab   : > { %p16618_p11 = scmp.ne.s32.totalorder %s20317_s8, %s16617_s25  ;;  %p16623_p0 = scmp.lt.u32.totalorder %s16617_s25, %s20317_s8 }
 0x1ad   : > { %p16619_p12 = pnand %p16618_p11, %p15175_p10 }
 0x1af   : > { %p16620_p13 = pneg %p16619_p12 }
 0x1b1   : > { %p16625_p1 = pnand %p16623_p0, %p16620_p13 }
 0x1b3   : > { %16628 = shalt.err (!%p16625_p1)
}
 0x1b4   : > { %s16629_s2 = scalar_lea.vmem %s1746_s11, 32  ;;  %p16636_p3 = scmp.lt.s32.totalorder %s1746_s11, %s1746_s11 }
 0x1b5   : > { %p16630_p5 = scmp.ne.s32.totalorder %s1746_s11, %s16629_s2  ;;  %p16637_p4 = scmp.lt.s32.totalorder %s16629_s2, %s16629_s2 }
 0x1b7   : > { %p16631_p6 = pnand %p16630_p5, %p15175_p10  ;;  %p16638_p7 = por %p16637_p4, %p16636_p3 }
 0x1b9   : > { %p16632_p2 = pneg %p16631_p6 }
 0x1bb   : > { %p16639_p8 = pnand %p16638_p7, %p16632_p2 }
 0x1bd   : > { %16642 = shalt.err (!%p16639_p8)
}
 0x1be   : > { %15008 = dma.hbm_to_vmem [thread:$0]  (%p15175_p10), %s20317_s8, 32, %s1746_s11, [#allocation42]  }
 0x1bf   : > { %s16643_s23 = scalar_lea.hbm %s18132_s29, 3072 }
 0x1c0   : > { %p16644_p11 = scmp.ne.s32.totalorder %s18132_s29, %s16643_s23  ;;  %p16649_p0 = scmp.lt.u32.totalorder %s16643_s23, %s18132_s29 }
 0x1c2   : > { %p16645_p12 = pnand %p16644_p11, %p15175_p10 }
 0x1c4   : > { %p16646_p13 = pneg %p16645_p12 }
 0x1c6   : > { %p16651_p1 = pnand %p16649_p0, %p16646_p13 }
 0x1c8   : > { %16654 = shalt.err (!%p16651_p1)
}
 0x1c9   : > { %s16655_s3 = scalar_lea.vmem %s1769_s10, 3072  ;;  %p16662_p3 = scmp.lt.s32.totalorder %s1769_s10, %s1769_s10 }
 0x1ca   : > { %p16656_p5 = scmp.ne.s32.totalorder %s1769_s10, %s16655_s3  ;;  %p16663_p4 = scmp.lt.s32.totalorder %s16655_s3, %s16655_s3 }
 0x1cc   : > { %p16657_p6 = pnand %p16656_p5, %p15175_p10  ;;  %p16664_p7 = por %p16663_p4, %p16662_p3 }
 0x1ce   : > { %p16658_p2 = pneg %p16657_p6 }
 0x1d0   : > { %p16665_p8 = pnand %p16664_p7, %p16658_p2 }
 0x1d2   : > { %16668 = shalt.err (!%p16665_p8)
}
 0x1d3   : > { %s20330_s11 = sld [smem:[#allocation138_spill]]  ;;  %s17930_s13 = smov [#allocation47]  }
 0x1d4   : > { %15012 = dma.hbm_to_vmem [thread:$0]  (%p15175_p10), %s18132_s29, 3072, %s1769_s10, [#allocation45], %s20218_s1, %s20218_s1, %s20220_s7  }
 0x1d5   : > { %s1793_s25 = sshll.u32 %s17930_s13, 4  ;;  %s17931_s2 = smov [#allocation50]   ;;  %s1794_s25 = int_to_ptr.vmem [resolvable:$true] %s1793_s25 }
 0x1d6   : > { %s1816_s23 = sshll.u32 %s17931_s2, 4  ;;  %s1817_s23 = int_to_ptr.vmem [resolvable:$true] %s1816_s23 }
 0x1d9   : > { %s16669_s3 = scalar_lea.hbm %s20330_s11, 32 }
 0x1da   : > { %p16670_p11 = scmp.ne.s32.totalorder %s20330_s11, %s16669_s3  ;;  %p16675_p0 = scmp.lt.u32.totalorder %s16669_s3, %s20330_s11 }
 0x1dc   : > { %p16671_p12 = pnand %p16670_p11, %p15175_p10 }
 0x1de   : > { %p16672_p13 = pneg %p16671_p12 }
 0x1e0   : > { %p16677_p1 = pnand %p16675_p0, %p16672_p13 }
 0x1e2   : > { %16680 = shalt.err (!%p16677_p1)
}
 0x1e3   : > { %s16681_s4 = scalar_lea.vmem %s1794_s25, 32  ;;  %p16688_p3 = scmp.lt.s32.totalorder %s1794_s25, %s1794_s25 }
 0x1e4   : > { %p16682_p5 = scmp.ne.s32.totalorder %s1794_s25, %s16681_s4  ;;  %p16689_p4 = scmp.lt.s32.totalorder %s16681_s4, %s16681_s4 }
 0x1e6   : > { %p16683_p6 = pnand %p16682_p5, %p15175_p10  ;;  %p16690_p7 = por %p16689_p4, %p16688_p3 }
 0x1e8   : > { %p16684_p2 = pneg %p16683_p6 }
 0x1ea   : > { %p16691_p8 = pnand %p16690_p7, %p16684_p2 }
 0x1ec   : > { %16694 = shalt.err (!%p16691_p8)
}
 0x1ed   : > { %s20331_s10 = sld [smem:[#allocation140_spill]] }
 0x1ee   : > { %15016 = dma.hbm_to_vmem [thread:$0]  (%p15175_p10), %s20330_s11, 32, %s1794_s25, [#allocation48]  }
 0x1f3   : > { %s16695_s13 = scalar_lea.hbm %s20331_s10, 3072 }
 0x1f4   : > { %p16696_p11 = scmp.ne.s32.totalorder %s20331_s10, %s16695_s13  ;;  %p16701_p0 = scmp.lt.u32.totalorder %s16695_s13, %s20331_s10 }
 0x1f6   : > { %p16697_p12 = pnand %p16696_p11, %p15175_p10 }
 0x1f8   : > { %p16698_p13 = pneg %p16697_p12 }
 0x1fa   : > { %p16703_p1 = pnand %p16701_p0, %p16698_p13 }
 0x1fc   : > { %16706 = shalt.err (!%p16703_p1)
}
 0x1fd   : > { %s16707_s4 = scalar_lea.vmem %s1817_s23, 3072  ;;  %p16714_p3 = scmp.lt.s32.totalorder %s1817_s23, %s1817_s23 }
 0x1fe   : > { %p16708_p5 = scmp.ne.s32.totalorder %s1817_s23, %s16707_s4  ;;  %p16715_p4 = scmp.lt.s32.totalorder %s16707_s4, %s16707_s4 }
 0x200   : > { %p16709_p6 = pnand %p16708_p5, %p15175_p10  ;;  %p16716_p7 = por %p16715_p4, %p16714_p3 }
 0x202   : > { %p16710_p2 = pneg %p16709_p6 }
 0x204   : > { %p16717_p8 = pnand %p16716_p7, %p16710_p2 }
 0x206   : > { %16720 = shalt.err (!%p16717_p8)
}
 0x207   : > { %s20332_s25 = sld [smem:[#allocation142_spill]]  ;;  %s17932_s2 = smov [#allocation53]  }
 0x208   : > { %15020 = dma.hbm_to_vmem [thread:$0]  (%p15175_p10), %s20331_s10, 3072, %s1817_s23, [#allocation51], %s20218_s1, %s20218_s1, %s20220_s7  }
 0x209   : > { %s1840_s3 = sshll.u32 %s17932_s2, 4  ;;  %s1841_s3 = int_to_ptr.vmem [resolvable:$true] %s1840_s3 }
 0x20d   : > { %s16721_s13 = scalar_lea.hbm %s20332_s25, 2048 }
 0x20e   : > { %p16722_p11 = scmp.ne.s32.totalorder %s20332_s25, %s16721_s13  ;;  %p16727_p0 = scmp.lt.u32.totalorder %s16721_s13, %s20332_s25 }
 0x210   : > { %p16723_p12 = pnand %p16722_p11, %p15175_p10 }
 0x212   : > { %p16724_p13 = pneg %p16723_p12 }
 0x214   : > { %p16729_p1 = pnand %p16727_p0, %p16724_p13 }
 0x216   : > { %16732 = shalt.err (!%p16729_p1)
}
 0x217   : > { %s16733_s4 = scalar_lea.vmem %s1841_s3, 2048  ;;  %p16740_p3 = scmp.lt.s32.totalorder %s1841_s3, %s1841_s3 }
 0x218   : > { %p16734_p5 = scmp.ne.s32.totalorder %s1841_s3, %s16733_s4  ;;  %p16741_p4 = scmp.lt.s32.totalorder %s16733_s4, %s16733_s4 }
 0x21a   : > { %p16735_p6 = pnand %p16734_p5, %p15175_p10  ;;  %p16742_p7 = por %p16741_p4, %p16740_p3 }
 0x21c   : > { %p16736_p2 = pneg %p16735_p6 }
 0x21e   : > { %p16743_p8 = pnand %p16742_p7, %p16736_p2 }
 0x220   : > { %16746 = shalt.err (!%p16743_p8)
}
 0x221   : > { %s20229_s23 = smov 128   ;;  %s20333_s2 = sld [smem:[#allocation144_spill]] }
 0x222   : > { %s20231_s13 = smov 8   ;;  %s17935_s1 = smov [#allocation56]  }
 0x223   : > { %15024 = dma.hbm_to_vmem [thread:$0]  (%p15175_p10), %s20332_s25, 2048, %s1841_s3, [#allocation54], %s20229_s23, %s20229_s23, %s20231_s13  }
 0x224   : > { %s1865_s7 = sshll.u32 %s17935_s1, 4  ;;  %s17936_s5 = smov [#allocation59]   ;;  %s1866_s7 = int_to_ptr.vmem [resolvable:$true] %s1865_s7 }
 0x225   : > { %s1888_s4 = sshll.u32 %s17936_s5, 4  ;;  %s18536_s4 = int_to_ptr.vmem [resolvable:$true] %s1888_s4 }
 0x227   : > { %s16747_s6 = scalar_lea.hbm %s20333_s2, 64 }
 0x228   : > { %p16748_p11 = scmp.ne.s32.totalorder %s20333_s2, %s16747_s6  ;;  %p16753_p0 = scmp.lt.u32.totalorder %s16747_s6, %s20333_s2 }
 0x22a   : > { %p16749_p12 = pnand %p16748_p11, %p15175_p10 }
 0x22c   : > { %p16750_p13 = pneg %p16749_p12 }
 0x22e   : > { %p16755_p1 = pnand %p16753_p0, %p16750_p13 }
 0x230   : > { %16758 = shalt.err (!%p16755_p1)
}
 0x231   : > { %s16759_s8 = scalar_lea.vmem %s1866_s7, 64  ;;  %p16766_p3 = scmp.lt.s32.totalorder %s1866_s7, %s1866_s7 }
 0x232   : > { %p16760_p5 = scmp.ne.s32.totalorder %s1866_s7, %s16759_s8  ;;  %p16767_p4 = scmp.lt.s32.totalorder %s16759_s8, %s16759_s8 }
 0x234   : > { %p16761_p6 = pnand %p16760_p5, %p15175_p10  ;;  %p16768_p7 = por %p16767_p4, %p16766_p3 }
 0x236   : > { %p16762_p2 = pneg %p16761_p6 }
 0x238   : > { %p16769_p8 = pnand %p16768_p7, %p16762_p2 }
 0x23a   : > { %16772 = shalt.err (!%p16769_p8)
}
 0x23b   : > { %s20334_s5 = sld [smem:[#allocation146_spill]] }
 0x23c   : > { %15028 = dma.hbm_to_vmem [thread:$0]  (%p15175_p10), %s20333_s2, 64, %s1866_s7, [#allocation57]  }
 0x241   : > { %s16773_s6 = scalar_lea.hbm %s20334_s5, 12288 }
 0x242   : > { %p16774_p11 = scmp.ne.s32.totalorder %s20334_s5, %s16773_s6  ;;  %p16779_p0 = scmp.lt.u32.totalorder %s16773_s6, %s20334_s5 }
 0x244   : > { %p16775_p12 = pnand %p16774_p11, %p15175_p10 }
 0x246   : > { %p16776_p13 = pneg %p16775_p12 }
 0x248   : > { %p16781_p1 = pnand %p16779_p0, %p16776_p13 }
 0x24a   : > { %16784 = shalt.err (!%p16781_p1)
}
 0x24b   : > { %s16785_s8 = scalar_lea.vmem %s18536_s4, 12288  ;;  %p16792_p3 = scmp.lt.s32.totalorder %s18536_s4, %s18536_s4 }
 0x24c   : > { %p16786_p5 = scmp.ne.s32.totalorder %s18536_s4, %s16785_s8  ;;  %p16793_p4 = scmp.lt.s32.totalorder %s16785_s8, %s16785_s8 }
 0x24e   : > { %p16787_p6 = pnand %p16786_p5, %p15175_p10  ;;  %p16794_p7 = por %p16793_p4, %p16792_p3 }
 0x250   : > { %p16788_p2 = pneg %p16787_p6 }
 0x252   : > { %p16795_p8 = pnand %p16794_p7, %p16788_p2 }
 0x254   : > { %16798 = shalt.err (!%p16795_p8)
}
 0x255   : > { %s20335_s1 = sld [smem:[#allocation148_spill]]  ;;  %s17937_s7 = smov [#allocation62]  }
 0x256   : > { %15032 = dma.hbm_to_vmem [thread:$0]  (%p15175_p10), %s20334_s5, 12288, %s18536_s4, [#allocation60], %s20229_s23, %s20229_s23, %s20231_s13  }
 0x257   : > { %s1913_s3 = sshll.u32 %s17937_s7, 4  ;;  %s17938_s6 = smov [#allocation65]   ;;  %s1914_s3 = int_to_ptr.vmem [resolvable:$true] %s1913_s3 }
 0x258   : > { %s1936_s2 = sshll.u32 %s17938_s6, 4  ;;  %s18566_s2 = int_to_ptr.vmem [resolvable:$true] %s1936_s2 }
 0x25b   : > { %s16799_s8 = scalar_lea.hbm %s20335_s1, 64 }
 0x25c   : > { %p16800_p11 = scmp.ne.s32.totalorder %s20335_s1, %s16799_s8  ;;  %p16805_p0 = scmp.lt.u32.totalorder %s16799_s8, %s20335_s1 }
 0x25e   : > { %p16801_p12 = pnand %p16800_p11, %p15175_p10 }
 0x260   : > { %p16802_p13 = pneg %p16801_p12 }
 0x262   : > { %p16807_p1 = pnand %p16805_p0, %p16802_p13 }
 0x264   : > { %16810 = shalt.err (!%p16807_p1)
}
 0x265   : > { %s16811_s10 = scalar_lea.vmem %s1914_s3, 64  ;;  %p16818_p3 = scmp.lt.s32.totalorder %s1914_s3, %s1914_s3 }
 0x266   : > { %p16812_p5 = scmp.ne.s32.totalorder %s1914_s3, %s16811_s10  ;;  %p16819_p4 = scmp.lt.s32.totalorder %s16811_s10, %s16811_s10 }
 0x268   : > { %p16813_p6 = pnand %p16812_p5, %p15175_p10  ;;  %p16820_p7 = por %p16819_p4, %p16818_p3 }
 0x26a   : > { %p16814_p2 = pneg %p16813_p6 }
 0x26c   : > { %p16821_p8 = pnand %p16820_p7, %p16814_p2 }
 0x26e   : > { %16824 = shalt.err (!%p16821_p8)
}
 0x26f   : > { %s20336_s4 = sld [smem:[#allocation150_spill]] }
 0x270   : > { %15036 = dma.hbm_to_vmem [thread:$0]  (%p15175_p10), %s20335_s1, 64, %s1914_s3, [#allocation63]  }
 0x275   : > { %s16825_s7 = scalar_lea.hbm %s20336_s4, 12288 }
 0x276   : > { %p16826_p11 = scmp.ne.s32.totalorder %s20336_s4, %s16825_s7  ;;  %p16831_p0 = scmp.lt.u32.totalorder %s16825_s7, %s20336_s4 }
 0x278   : > { %p16827_p12 = pnand %p16826_p11, %p15175_p10 }
 0x27a   : > { %p16828_p13 = pneg %p16827_p12 }
 0x27c   : > { %p16833_p1 = pnand %p16831_p0, %p16828_p13 }
 0x27e   : > { %16836 = shalt.err (!%p16833_p1)
}
 0x27f   : > { %s16837_s10 = scalar_lea.vmem %s18566_s2, 12288  ;;  %p16844_p3 = scmp.lt.s32.totalorder %s18566_s2, %s18566_s2 }
 0x280   : > { %p16838_p5 = scmp.ne.s32.totalorder %s18566_s2, %s16837_s10  ;;  %p16845_p4 = scmp.lt.s32.totalorder %s16837_s10, %s16837_s10 }
 0x282   : > { %p16839_p6 = pnand %p16838_p5, %p15175_p10  ;;  %p16846_p7 = por %p16845_p4, %p16844_p3 }
 0x284   : > { %p16840_p2 = pneg %p16839_p6 }
 0x286   : > { %p16847_p8 = pnand %p16846_p7, %p16840_p2 }
 0x288   : > { %16850 = shalt.err (!%p16847_p8)
}
 0x289   : > { %s20337_s3 = sld [smem:[#allocation152_spill]]  ;;  %s17939_s6 = smov [#allocation68]  }
 0x28a   : > { %15040 = dma.hbm_to_vmem [thread:$0]  (%p15175_p10), %s20336_s4, 12288, %s18566_s2, [#allocation66], %s20229_s23, %s20229_s23, %s20231_s13  }
 0x28b   : > { %s1960_s8 = sshll.u32 %s17939_s6, 4  ;;  %s17940_s7 = smov [#allocation71]   ;;  %s1961_s8 = int_to_ptr.vmem [resolvable:$true] %s1960_s8 }
 0x28c   : > { %s1984_s1 = sshll.u32 %s17940_s7, 4  ;;  %s18596_s1 = int_to_ptr.vmem [resolvable:$true] %s1984_s1 }
 0x28f   : > { %s16851_s10 = scalar_lea.hbm %s20337_s3, 768 }
 0x290   : > { %p16852_p11 = scmp.ne.s32.totalorder %s20337_s3, %s16851_s10  ;;  %p16857_p0 = scmp.lt.u32.totalorder %s16851_s10, %s20337_s3 }
 0x292   : > { %p16853_p12 = pnand %p16852_p11, %p15175_p10 }
 0x294   : > { %p16854_p13 = pneg %p16853_p12 }
 0x296   : > { %p16859_p1 = pnand %p16857_p0, %p16854_p13 }
 0x298   : > { %16862 = shalt.err (!%p16859_p1)
}
 0x299   : > { %s16863_s5 = scalar_lea.vmem %s1961_s8, 768  ;;  %p16870_p3 = scmp.lt.s32.totalorder %s1961_s8, %s1961_s8 }
 0x29a   : > { %p16864_p5 = scmp.ne.s32.totalorder %s1961_s8, %s16863_s5  ;;  %p16871_p4 = scmp.lt.s32.totalorder %s16863_s5, %s16863_s5 }
 0x29c   : > { %p16865_p6 = pnand %p16864_p5, %p15175_p10  ;;  %p16872_p7 = por %p16871_p4, %p16870_p3 }
 0x29e   : > { %p16866_p2 = pneg %p16865_p6 }
 0x2a0   : > { %p16873_p8 = pnand %p16872_p7, %p16866_p2 }
 0x2a2   : > { %16876 = shalt.err (!%p16873_p8)
}
 0x2a3   : > { %s20338_s2 = smov 4   ;;  %s20339_s6 = smov 64  }
 0x2a4   : > { %s20340_s7 = sld [smem:[#allocation154_spill]] }
 0x2a5   : > { %15044 = dma.hbm_to_vmem [thread:$0]  (%p15175_p10), %s20337_s3, 768, %s1961_s8, [#allocation69], %s20339_s6, %s20339_s6, %s20338_s2  }
 0x2aa   : > { %s16877_s10 = scalar_lea.hbm %s20340_s7, 1536 }
 0x2ab   : > { %p16878_p11 = scmp.ne.s32.totalorder %s20340_s7, %s16877_s10  ;;  %p16883_p0 = scmp.lt.u32.totalorder %s16877_s10, %s20340_s7 }
 0x2ad   : > { %p16879_p12 = pnand %p16878_p11, %p15175_p10 }
 0x2af   : > { %p16880_p13 = pneg %p16879_p12 }
 0x2b1   : > { %p16885_p1 = pnand %p16883_p0, %p16880_p13 }
 0x2b3   : > { %16888 = shalt.err (!%p16885_p1)
}
 0x2b4   : > { %s16889_s5 = scalar_lea.vmem %s18596_s1, 1536  ;;  %p16896_p3 = scmp.lt.s32.totalorder %s18596_s1, %s18596_s1 }
 0x2b5   : > { %p16890_p5 = scmp.ne.s32.totalorder %s18596_s1, %s16889_s5  ;;  %p16897_p4 = scmp.lt.s32.totalorder %s16889_s5, %s16889_s5 }
 0x2b7   : > { %p16891_p6 = pnand %p16890_p5, %p15175_p10  ;;  %p16898_p7 = por %p16897_p4, %p16896_p3 }
 0x2b9   : > { %p16892_p2 = pneg %p16891_p6 }
 0x2bb   : > { %p16899_p8 = pnand %p16898_p7, %p16892_p2 }
 0x2bd   : > { %16902 = shalt.err (!%p16899_p8)
}
 0x2be   : > { %s20341_s8 = sld [smem:[#allocation156_spill]]  ;;  %s17941_s10 = smov [#allocation74]  }
 0x2bf   : > { %15048 = dma.hbm_to_vmem [thread:$0]  (%p15175_p10), %s20340_s7, 1536, %s18596_s1, [#allocation72], %s20339_s6, %s20339_s6, %s20338_s2  }
 0x2c0   : > { %s2008_s23 = sshll.u32 %s17941_s10, 4  ;;  %s17942_s13 = smov [#allocation77]   ;;  %s2009_s23 = int_to_ptr.vmem [resolvable:$true] %s2008_s23 }
 0x2c1   : > { %s2036_s3 = sshll.u32 %s17942_s13, 4  ;;  %s18629_s3 = int_to_ptr.vmem [resolvable:$true] %s2036_s3 }
 0x2c4   : > { %s16903_s5 = scalar_lea.hbm %s20341_s8, 3072 }
 0x2c5   : > { %p16904_p11 = scmp.ne.s32.totalorder %s20341_s8, %s16903_s5  ;;  %p16909_p0 = scmp.lt.u32.totalorder %s16903_s5, %s20341_s8 }
 0x2c7   : > { %p16905_p12 = pnand %p16904_p11, %p15175_p10 }
 0x2c9   : > { %p16906_p13 = pneg %p16905_p12 }
 0x2cb   : > { %p16911_p1 = pnand %p16909_p0, %p16906_p13 }
 0x2cd   : > { %16914 = shalt.err (!%p16911_p1)
}
 0x2ce   : > { %s16915_s4 = scalar_lea.vmem %s2009_s23, 3072  ;;  %p16922_p3 = scmp.lt.s32.totalorder %s2009_s23, %s2009_s23 }
 0x2cf   : > { %p16916_p5 = scmp.ne.s32.totalorder %s2009_s23, %s16915_s4  ;;  %p16923_p4 = scmp.lt.s32.totalorder %s16915_s4, %s16915_s4 }
 0x2d1   : > { %p16917_p6 = pnand %p16916_p5, %p15175_p10  ;;  %p16924_p7 = por %p16923_p4, %p16922_p3 }
 0x2d3   : > { %p16918_p2 = pneg %p16917_p6 }
 0x2d5   : > { %p16925_p8 = pnand %p16924_p7, %p16918_p2 }
 0x2d7   : > { %16928 = shalt.err (!%p16925_p8)
}
 0x2d8   : > { %s20342_s13 = sld [smem:[#allocation159_spill]] }
 0x2d9   : > { %15052 = dma.hbm_to_vmem [thread:$0]  (%p15175_p10), %s20341_s8, 3072, %s2009_s23, [#allocation75], %s20339_s6, %s20339_s6, %s20338_s2  }
 0x2de   : > { %s16929_s1 = scalar_lea.hbm %s20342_s13, 32 }
 0x2df   : > { %p16930_p11 = scmp.ne.s32.totalorder %s20342_s13, %s16929_s1  ;;  %p16935_p0 = scmp.lt.u32.totalorder %s16929_s1, %s20342_s13 }
 0x2e1   : > { %p16931_p12 = pnand %p16930_p11, %p15175_p10 }
 0x2e3   : > { %p16932_p13 = pneg %p16931_p12 }
 0x2e5   : > { %p16937_p1 = pnand %p16935_p0, %p16932_p13 }
 0x2e7   : > { %16940 = shalt.err (!%p16937_p1)
}
 0x2e8   : > { %s16941_s4 = scalar_lea.vmem %s18629_s3, 32  ;;  %p16948_p3 = scmp.lt.s32.totalorder %s18629_s3, %s18629_s3 }
 0x2e9   : > { %p16942_p5 = scmp.ne.s32.totalorder %s18629_s3, %s16941_s4  ;;  %p16949_p4 = scmp.lt.s32.totalorder %s16941_s4, %s16941_s4 }
 0x2eb   : > { %p16943_p6 = pnand %p16942_p5, %p15175_p10  ;;  %p16950_p7 = por %p16949_p4, %p16948_p3 }
 0x2ed   : > { %p16944_p2 = pneg %p16943_p6 }
 0x2ef   : > { %p16951_p8 = pnand %p16950_p7, %p16944_p2 }
 0x2f1   : > { %16954 = shalt.err (!%p16951_p8)
}
 0x2f2   : > { %s20343_s23 = sld [smem:[#allocation161_spill]]  ;;  %s17943_s5 = smov [#allocation80]  }
 0x2f3   : > { %15056 = dma.hbm_to_vmem [thread:$0]  (%p15175_p10), %s20342_s13, 32, %s18629_s3, [#allocation78]  }
 0x2f4   : > { %s2057_s1 = sshll.u32 %s17943_s5, 4  ;;  %s17944_s7 = smov [#allocation2]   ;;  %s2058_s1 = int_to_ptr.vmem [resolvable:$true] %s2057_s1 }
 0x2f5   : > { %s1447_s8 = sshll.u32 %s17944_s7, 4  ;;  %s1448_s8 = int_to_ptr.vmem [resolvable:$true] %s1447_s8 }
 0x2f8   : > { %s20344_s10 = smov %s20343_s23  ;;  %s16955_s11 = scalar_lea.hbm %s20343_s23, 3072 }
 0x2f9   : > { %p16956_p11 = scmp.ne.s32.totalorder %s20344_s10, %s16955_s11  ;;  %p16961_p0 = scmp.lt.u32.totalorder %s16955_s11, %s20344_s10 }
 0x2fb   : > { %p16957_p12 = pnand %p16956_p11, %p15175_p10 }
 0x2fd   : > { %p16958_p13 = pneg %p16957_p12 }
 0x2ff   : > { %p16963_p1 = pnand %p16961_p0, %p16958_p13 }
 0x301   : > { %16966 = shalt.err (!%p16963_p1)
}
 0x302   : > { %s16967_s4 = scalar_lea.vmem %s2058_s1, 3072  ;;  %p16974_p3 = scmp.lt.s32.totalorder %s2058_s1, %s2058_s1 }
 0x303   : > { %p16968_p5 = scmp.ne.s32.totalorder %s2058_s1, %s16967_s4  ;;  %p16975_p4 = scmp.lt.s32.totalorder %s16967_s4, %s16967_s4 }
 0x305   : > { %p16969_p6 = pnand %p16968_p5, %p15175_p10  ;;  %p16976_p7 = por %p16975_p4, %p16974_p3 }
 0x307   : > { %p16970_p2 = pneg %p16969_p6 }
 0x309   : > { %p16977_p8 = pnand %p16976_p7, %p16970_p2 }
 0x30b   : > { %16980 = shalt.err (!%p16977_p8)
}
 0x30c   : > { %s20345_s11 = sld [smem:[#allocation113_spill]] }
 0x30d   : > { %15060 = dma.hbm_to_vmem [thread:$0]  (%p15175_p10), %s20344_s10, 3072, %s2058_s1, [#allocation81], %s20339_s6, %s20339_s6, %s20338_s2  }
 0x312   : > { %s16981_s3 = scalar_lea.hbm %s20345_s11, 128 }
 0x313   : > { %p16982_p11 = scmp.ne.s32.totalorder %s20345_s11, %s16981_s3  ;;  %p16987_p0 = scmp.lt.u32.totalorder %s16981_s3, %s20345_s11 }
 0x315   : > { %p16983_p12 = pnand %p16982_p11, %p15175_p10 }
 0x317   : > { %p16984_p13 = pneg %p16983_p12 }
 0x319   : > { %p16989_p1 = pnand %p16987_p0, %p16984_p13 }
 0x31b   : > { %16992 = shalt.err (!%p16989_p1)
}
 0x31c   : > { %s16993_s7 = scalar_lea.vmem %s1448_s8, 128  ;;  %p17000_p3 = scmp.lt.s32.totalorder %s1448_s8, %s1448_s8 }
 0x31d   : > { %p16994_p5 = scmp.ne.s32.totalorder %s1448_s8, %s16993_s7  ;;  %p17001_p4 = scmp.lt.s32.totalorder %s16993_s7, %s16993_s7 }
 0x31f   : > { %p16995_p6 = pnand %p16994_p5, %p15175_p10  ;;  %p17002_p7 = por %p17001_p4, %p17000_p3 }
 0x321   : > { %p16996_p2 = pneg %p16995_p6 }
 0x323   : > { %p17003_p8 = pnand %p17002_p7, %p16996_p2 }
 0x325   : > { %17006 = shalt.err (!%p17003_p8)
}
 0x326   : > { %s20346_s23 = sld [smem:[#allocation116_spill]]  ;;  %s17945_s1 = smov [#allocation7]  }
 0x327   : > { %14958 = dma.hbm_to_vmem [thread:$0]  (%p15175_p10), %s20345_s11, 128, %s1448_s8, [#allocation3]  }
 0x328   : > { %s1472_s4 = sshll.u32 %s17945_s1, 4  ;;  %s17946_s3 = smov [#allocation10]   ;;  %s1473_s4 = int_to_ptr.vmem [resolvable:$true] %s1472_s4 }
 0x329   : > { %s1494_s10 = sshll.u32 %s17946_s3, 4  ;;  %s1495_s10 = int_to_ptr.vmem [resolvable:$true] %s1494_s10 }
 0x32c   : > { %s20347_s5 = smov %s20346_s23  ;;  %s17007_s12 = scalar_lea.hbm %s20346_s23, 32 }
 0x32d   : > { %p17008_p11 = scmp.ne.s32.totalorder %s20347_s5, %s17007_s12  ;;  %p17013_p0 = scmp.lt.u32.totalorder %s17007_s12, %s20347_s5 }
 0x32f   : > { %p17009_p12 = pnand %p17008_p11, %p15175_p10 }
 0x331   : > { %p17010_p13 = pneg %p17009_p12 }
 0x333   : > { %p17015_p1 = pnand %p17013_p0, %p17010_p13 }
 0x335   : > { %17018 = shalt.err (!%p17015_p1)
}
 0x336   : > { %s17019_s7 = scalar_lea.vmem %s1473_s4, 32  ;;  %p17026_p3 = scmp.lt.s32.totalorder %s1473_s4, %s1473_s4 }
 0x337   : > { %p17020_p5 = scmp.ne.s32.totalorder %s1473_s4, %s17019_s7  ;;  %p17027_p4 = scmp.lt.s32.totalorder %s17019_s7, %s17019_s7 }
 0x339   : > { %p17021_p6 = pnand %p17020_p5, %p15175_p10  ;;  %p17028_p7 = por %p17027_p4, %p17026_p3 }
 0x33b   : > { %p17022_p2 = pneg %p17021_p6 }
 0x33d   : > { %p17029_p8 = pnand %p17028_p7, %p17022_p2 }
 0x33f   : > { %17032 = shalt.err (!%p17029_p8)
}
 0x340   : > { %s20348_s8 = sld [smem:[#allocation118_spill]] }
 0x341   : > { %14962 = dma.hbm_to_vmem [thread:$0]  (%p15175_p10), %s20347_s5, 32, %s1473_s4, [#allocation6]  }
 0x346   : > { %s17033_s12 = scalar_lea.hbm %s20348_s8, 32 }
 0x347   : > { %p17034_p11 = scmp.ne.s32.totalorder %s20348_s8, %s17033_s12  ;;  %p17039_p0 = scmp.lt.u32.totalorder %s17033_s12, %s20348_s8 }
 0x349   : > { %p17035_p12 = pnand %p17034_p11, %p15175_p10 }
 0x34b   : > { %p17036_p13 = pneg %p17035_p12 }
 0x34d   : > { %p17041_p1 = pnand %p17039_p0, %p17036_p13 }
 0x34f   : > { %17044 = shalt.err (!%p17041_p1)
}
 0x350   : > { %s17045_s23 = scalar_lea.vmem %s1495_s10, 32  ;;  %p17052_p3 = scmp.lt.s32.totalorder %s1495_s10, %s1495_s10 }
 0x351   : > { %p17046_p5 = scmp.ne.s32.totalorder %s1495_s10, %s17045_s23  ;;  %p17053_p4 = scmp.lt.s32.totalorder %s17045_s23, %s17045_s23 }
 0x353   : > { %p17047_p6 = pnand %p17046_p5, %p15175_p10  ;;  %p17054_p7 = por %p17053_p4, %p17052_p3 }
 0x355   : > { %p17048_p2 = pneg %p17047_p6 }
 0x357   : > { %p17055_p8 = pnand %p17054_p7, %p17048_p2 }
 0x359   : > { %17058 = shalt.err (!%p17055_p8)
}
 0x35a   : > { %s20349_s1 = sld [smem:[#allocation120_spill]]  ;;  %s17947_s4 = smov [#allocation13]  }
 0x35b   : > { %14966 = dma.hbm_to_vmem [thread:$0]  (%p15175_p10), %s20348_s8, 32, %s1495_s10, [#allocation9]  }
 0x35c   : > { %s1515_s3 = sshll.u32 %s17947_s4, 4  ;;  %s1516_s3 = int_to_ptr.vmem [resolvable:$true] %s1515_s3 }
 0x360   : > { %s17059_s7 = scalar_lea.hbm %s20349_s1, 96 }
 0x361   : > { %p17060_p11 = scmp.ne.s32.totalorder %s20349_s1, %s17059_s7  ;;  %p17065_p0 = scmp.lt.u32.totalorder %s17059_s7, %s20349_s1 }
 0x363   : > { %p17061_p12 = pnand %p17060_p11, %p15175_p10 }
 0x365   : > { %p17062_p13 = pneg %p17061_p12 }
 0x367   : > { %p17067_p1 = pnand %p17065_p0, %p17062_p13 }
 0x369   : > { %17070 = shalt.err (!%p17067_p1)
}
 0x36a   : > { %s17071_s12 = scalar_lea.vmem %s1516_s3, 96  ;;  %p17078_p3 = scmp.lt.s32.totalorder %s1516_s3, %s1516_s3 }
 0x36b   : > { %p17072_p5 = scmp.ne.s32.totalorder %s1516_s3, %s17071_s12  ;;  %p17079_p4 = scmp.lt.s32.totalorder %s17071_s12, %s17071_s12 }
 0x36d   : > { %p17073_p6 = pnand %p17072_p5, %p15175_p10  ;;  %p17080_p7 = por %p17079_p4, %p17078_p3 }
 0x36f   : > { %p17074_p2 = pneg %p17073_p6 }
 0x371   : > { %p17081_p8 = pnand %p17080_p7, %p17074_p2 }
 0x373   : > { %17084 = shalt.err (!%p17081_p8)
}
 0x374   : > { %s17948_s10 = smov 32   ;;  %s20350_s23 = sld [smem:[#allocation122_spill]] }
 0x375   : > { %s17949_s7 = smov 2   ;;  %s17950_s5 = smov [#allocation16]  }
 0x376   : > { %14970 = dma.hbm_to_vmem [thread:$0]  (%p15175_p10), %s20349_s1, 96, %s1516_s3, [#allocation12], %s17948_s10, %s17948_s10, %s17949_s7  }
 0x377   : > { %s1542_s8 = sshll.u32 %s17950_s5, 4  ;;  %s17951_s11 = smov [#allocation19]   ;;  %s1543_s8 = int_to_ptr.vmem [resolvable:$true] %s1542_s8 }
 0x378   : > { %s1563_s13 = sshll.u32 %s17951_s11, 4  ;;  %s18712_s13 = int_to_ptr.vmem [resolvable:$true] %s1563_s13 }
 0x37a   : > { %s20351_s4 = smov %s20350_s23  ;;  %s17085_s12 = scalar_lea.hbm %s20350_s23, 32 }
 0x37b   : > { %p17086_p11 = scmp.ne.s32.totalorder %s20351_s4, %s17085_s12  ;;  %p17091_p0 = scmp.lt.u32.totalorder %s17085_s12, %s20351_s4 }
 0x37d   : > { %p17087_p12 = pnand %p17086_p11, %p15175_p10 }
 0x37f   : > { %p17088_p13 = pneg %p17087_p12 }
 0x381   : > { %p17093_p1 = pnand %p17091_p0, %p17088_p13 }
 0x383   : > { %17096 = shalt.err (!%p17093_p1)
}
 0x384   : > { %s17097_s14 = scalar_lea.vmem %s1543_s8, 32  ;;  %p17104_p3 = scmp.lt.s32.totalorder %s1543_s8, %s1543_s8 }
 0x385   : > { %p17098_p5 = scmp.ne.s32.totalorder %s1543_s8, %s17097_s14  ;;  %p17105_p4 = scmp.lt.s32.totalorder %s17097_s14, %s17097_s14 }
 0x387   : > { %p17099_p6 = pnand %p17098_p5, %p15175_p10  ;;  %p17106_p7 = por %p17105_p4, %p17104_p3 }
 0x389   : > { %p17100_p2 = pneg %p17099_p6 }
 0x38b   : > { %p17107_p8 = pnand %p17106_p7, %p17100_p2 }
 0x38d   : > { %17110 = shalt.err (!%p17107_p8)
}
 0x38e   : > { %s20352_s11 = sld [smem:[#allocation123_spill]] }
 0x38f   : > { %14974 = dma.hbm_to_vmem [thread:$0]  (%p15175_p10), %s20351_s4, 32, %s1543_s8, [#allocation15]  }
 0x394   : > { %s17111_s5 = scalar_lea.hbm %s20352_s11, 768 }
 0x395   : > { %p17112_p11 = scmp.ne.s32.totalorder %s20352_s11, %s17111_s5  ;;  %p17117_p0 = scmp.lt.u32.totalorder %s17111_s5, %s20352_s11 }
 0x397   : > { %p17113_p12 = pnand %p17112_p11, %p15175_p10 }
 0x399   : > { %p17114_p13 = pneg %p17113_p12 }
 0x39b   : > { %p17119_p1 = pnand %p17117_p0, %p17114_p13 }
 0x39d   : > { %17122 = shalt.err (!%p17119_p1)
}
 0x39e   : > { %s17123_s14 = scalar_lea.vmem %s18712_s13, 768  ;;  %p17130_p3 = scmp.lt.s32.totalorder %s18712_s13, %s18712_s13 }
 0x39f   : > { %p17124_p5 = scmp.ne.s32.totalorder %s18712_s13, %s17123_s14  ;;  %p17131_p4 = scmp.lt.s32.totalorder %s17123_s14, %s17123_s14 }
 0x3a1   : > { %p17125_p6 = pnand %p17124_p5, %p15175_p10  ;;  %p17132_p7 = por %p17131_p4, %p17130_p3 }
 0x3a3   : > { %p17126_p2 = pneg %p17125_p6 }
 0x3a5   : > { %p17133_p8 = pnand %p17132_p7, %p17126_p2 }
 0x3a7   : > { %17136 = shalt.err (!%p17133_p8)
}
 0x3a8   : > { %s20353_s8 = sld [smem:[#allocation125_spill]]  ;;  %s17952_s3 = smov [#allocation22]  }
 0x3a9   : > { %14978 = dma.hbm_to_vmem [thread:$0]  (%p15175_p10), %s20352_s11, 768, %s18712_s13, [#allocation18], %s20339_s6, %s20339_s6, %s20338_s2  }
 0x3aa   : > { %s1590_s10 = sshll.u32 %s17952_s3, 4  ;;  %s17953_s23 = smov [#allocation25]   ;;  %s1591_s10 = int_to_ptr.vmem [resolvable:$true] %s1590_s10 }
 0x3ab   : > { %s1614_s7 = sshll.u32 %s17953_s23, 4  ;;  %s18742_s7 = int_to_ptr.vmem [resolvable:$true] %s1614_s7 }
 0x3ae   : > { %s17137_s12 = scalar_lea.hbm %s20353_s8, 32 }
 0x3af   : > { %p17138_p11 = scmp.ne.s32.totalorder %s20353_s8, %s17137_s12  ;;  %p17143_p0 = scmp.lt.u32.totalorder %s17137_s12, %s20353_s8 }
 0x3b1   : > { %p17139_p12 = pnand %p17138_p11, %p15175_p10 }
 0x3b3   : > { %p17140_p13 = pneg %p17139_p12 }
 0x3b5   : > { %p17145_p1 = pnand %p17143_p0, %p17140_p13 }
 0x3b7   : > { %17148 = shalt.err (!%p17145_p1)
}
 0x3b8   : > { %s17149_s5 = scalar_lea.vmem %s1591_s10, 32  ;;  %p17156_p3 = scmp.lt.s32.totalorder %s1591_s10, %s1591_s10 }
 0x3b9   : > { %p17150_p5 = scmp.ne.s32.totalorder %s1591_s10, %s17149_s5  ;;  %p17157_p4 = scmp.lt.s32.totalorder %s17149_s5, %s17149_s5 }
 0x3bb   : > { %p17151_p6 = pnand %p17150_p5, %p15175_p10  ;;  %p17158_p7 = por %p17157_p4, %p17156_p3 }
 0x3bd   : > { %p17152_p2 = pneg %p17151_p6 }
 0x3bf   : > { %p17159_p8 = pnand %p17158_p7, %p17152_p2 }
 0x3c1   : > { %17162 = shalt.err (!%p17159_p8)
}
 0x3c2   : > { %s20354_s13 = sld [smem:[#allocation126_spill]] }
 0x3c3   : > { %14982 = dma.hbm_to_vmem [thread:$0]  (%p15175_p10), %s20353_s8, 32, %s1591_s10, [#allocation21]  }
 0x3c8   : > { %s17163_s14 = scalar_lea.hbm %s20354_s13, 32 }
 0x3c9   : > { %p17164_p11 = scmp.ne.s32.totalorder %s20354_s13, %s17163_s14  ;;  %p17169_p0 = scmp.lt.u32.totalorder %s17163_s14, %s20354_s13 }
 0x3cb   : > { %p17165_p12 = pnand %p17164_p11, %p15175_p10 }
 0x3cd   : > { %p17166_p13 = pneg %p17165_p12 }
 0x3cf   : > { %p17171_p1 = pnand %p17169_p0, %p17166_p13 }
 0x3d1   : > { %17174 = shalt.err (!%p17171_p1)
}
 0x3d2   : > { %s17175_s3 = scalar_lea.vmem %s18742_s7, 32  ;;  %p17182_p3 = scmp.lt.s32.totalorder %s18742_s7, %s18742_s7 }
 0x3d3   : > { %p17176_p5 = scmp.ne.s32.totalorder %s18742_s7, %s17175_s3  ;;  %p17183_p4 = scmp.lt.s32.totalorder %s17175_s3, %s17175_s3 }
 0x3d5   : > { %p17177_p6 = pnand %p17176_p5, %p15175_p10  ;;  %p17184_p7 = por %p17183_p4, %p17182_p3 }
 0x3d7   : > { %p17178_p2 = pneg %p17177_p6 }
 0x3d9   : > { %p17185_p8 = pnand %p17184_p7, %p17178_p2 }
 0x3db   : > { %17188 = shalt.err (!%p17185_p8)
}
 0x3dc   : > { %s20355_s10 = sld [smem:[#allocation128_spill]]  ;;  %s17954_s23 = smov [#allocation28]  }
 0x3dd   : > { %14986 = dma.hbm_to_vmem [thread:$0]  (%p15175_p10), %s20354_s13, 32, %s18742_s7, [#allocation24]  }
 0x3de   : > { %s1635_s12 = sshll.u32 %s17954_s23, 4  ;;  %s17955_s5 = smov [#allocation31]   ;;  %s1636_s12 = int_to_ptr.vmem [resolvable:$true] %s1635_s12 }
 0x3df   : > { %s1662_s14 = sshll.u32 %s17955_s5, 4  ;;  %s18769_s14 = int_to_ptr.vmem [resolvable:$true] %s1662_s14 }
 0x3e2   : > { %s17189_s3 = scalar_lea.hbm %s20355_s10, 768 }
 0x3e3   : > { %p17190_p11 = scmp.ne.s32.totalorder %s20355_s10, %s17189_s3  ;;  %p17195_p0 = scmp.lt.u32.totalorder %s17189_s3, %s20355_s10 }
 0x3e5   : > { %p17191_p12 = pnand %p17190_p11, %p15175_p10 }
 0x3e7   : > { %p17192_p13 = pneg %p17191_p12 }
 0x3e9   : > { %p17197_p1 = pnand %p17195_p0, %p17192_p13 }
 0x3eb   : > { %17200 = shalt.err (!%p17197_p1)
}
 0x3ec   : > { %s17201_s1 = scalar_lea.vmem %s1636_s12, 768  ;;  %p17208_p3 = scmp.lt.s32.totalorder %s1636_s12, %s1636_s12 }
 0x3ed   : > { %p17202_p5 = scmp.ne.s32.totalorder %s1636_s12, %s17201_s1  ;;  %p17209_p4 = scmp.lt.s32.totalorder %s17201_s1, %s17201_s1 }
 0x3ef   : > { %p17203_p6 = pnand %p17202_p5, %p15175_p10  ;;  %p17210_p7 = por %p17209_p4, %p17208_p3 }
 0x3f1   : > { %p17204_p2 = pneg %p17203_p6 }
 0x3f3   : > { %p17211_p8 = pnand %p17210_p7, %p17204_p2 }
 0x3f5   : > { %17214 = shalt.err (!%p17211_p8)
}
 0x3f6   : > { %s20356_s7 = sld [smem:[#allocation130_spill]] }
 0x3f7   : > { %14990 = dma.hbm_to_vmem [thread:$0]  (%p15175_p10), %s20355_s10, 768, %s1636_s12, [#allocation27], %s20339_s6, %s20339_s6, %s20338_s2  }
 0x3fc   : > { %s17215_s23 = scalar_lea.hbm %s20356_s7, 32 }
 0x3fd   : > { %p17216_p11 = scmp.ne.s32.totalorder %s20356_s7, %s17215_s23  ;;  %p17221_p0 = scmp.lt.u32.totalorder %s17215_s23, %s20356_s7 }
 0x3ff   : > { %p17217_p12 = pnand %p17216_p11, %p15175_p10 }
 0x401   : > { %p17218_p13 = pneg %p17217_p12 }
 0x403   : > { %p17223_p1 = pnand %p17221_p0, %p17218_p13 }
 0x405   : > { %17226 = shalt.err (!%p17223_p1)
}
 0x406   : > { %s17227_s1 = scalar_lea.vmem %s18769_s14, 32  ;;  %p17234_p3 = scmp.lt.s32.totalorder %s18769_s14, %s18769_s14 }
 0x407   : > { %p17228_p5 = scmp.ne.s32.totalorder %s18769_s14, %s17227_s1  ;;  %p17235_p4 = scmp.lt.s32.totalorder %s17227_s1, %s17227_s1 }
 0x409   : > { %p17229_p6 = pnand %p17228_p5, %p15175_p10  ;;  %p17236_p7 = por %p17235_p4, %p17234_p3 }
 0x40b   : > { %p17230_p2 = pneg %p17229_p6 }
 0x40d   : > { %p17237_p8 = pnand %p17236_p7, %p17230_p2 }
 0x40f   : > { %17240 = shalt.err (!%p17237_p8)
}
 0x410   : > { %s20357_s12 = sld [smem:[#allocation132_spill]]  ;;  %s17956_s5 = smov [#allocation34]  }
 0x411   : > { %14994 = dma.hbm_to_vmem [thread:$0]  (%p15175_p10), %s20356_s7, 32, %s18769_s14, [#allocation30]  }
 0x412   : > { %s1683_s3 = sshll.u32 %s17956_s5, 4  ;;  %s17957_s23 = smov [#allocation37]   ;;  %s1684_s3 = int_to_ptr.vmem [resolvable:$true] %s1683_s3 }
 0x413   : > { %s1710_s4 = sshll.u32 %s17957_s23, 4  ;;  %s18799_s4 = int_to_ptr.vmem [resolvable:$true] %s1710_s4 }
 0x416   : > { %s17241_s1 = scalar_lea.hbm %s20357_s12, 1536 }
 0x417   : > { %p17242_p11 = scmp.ne.s32.totalorder %s20357_s12, %s17241_s1  ;;  %p17247_p0 = scmp.lt.u32.totalorder %s17241_s1, %s20357_s12 }
 0x419   : > { %p17243_p12 = pnand %p17242_p11, %p15175_p10 }
 0x41b   : > { %p17244_p13 = pneg %p17243_p12 }
 0x41d   : > { %p17249_p1 = pnand %p17247_p0, %p17244_p13 }
 0x41f   : > { %17252 = shalt.err (!%p17249_p1)
}
 0x420   : > { %s17253_s8 = scalar_lea.vmem %s1684_s3, 1536  ;;  %p17260_p3 = scmp.lt.s32.totalorder %s1684_s3, %s1684_s3 }
 0x421   : > { %p17254_p5 = scmp.ne.s32.totalorder %s1684_s3, %s17253_s8  ;;  %p17261_p4 = scmp.lt.s32.totalorder %s17253_s8, %s17253_s8 }
 0x423   : > { %p17255_p6 = pnand %p17254_p5, %p15175_p10  ;;  %p17262_p7 = por %p17261_p4, %p17260_p3 }
 0x425   : > { %p17256_p2 = pneg %p17255_p6 }
 0x427   : > { %p17263_p8 = pnand %p17262_p7, %p17256_p2 }
 0x429   : > { %17266 = shalt.err (!%p17263_p8)
}
 0x42a   : > { %s20358_s14 = sld [smem:[#allocation133_spill]] }
 0x42b   : > { %14998 = dma.hbm_to_vmem [thread:$0]  (%p15175_p10), %s20357_s12, 1536, %s1684_s3, [#allocation33], %s20339_s6, %s20339_s6, %s20338_s2  }
 0x430   : > { %s17267_s5 = scalar_lea.hbm %s20358_s14, 32 }
 0x431   : > { %p17268_p11 = scmp.ne.s32.totalorder %s20358_s14, %s17267_s5  ;;  %p17273_p0 = scmp.lt.u32.totalorder %s17267_s5, %s20358_s14 }
 0x433   : > { %p17269_p12 = pnand %p17268_p11, %p15175_p10 }
 0x435   : > { %p17270_p13 = pneg %p17269_p12 }
 0x437   : > { %p17275_p1 = pnand %p17273_p0, %p17270_p13 }
 0x439   : > { %17278 = shalt.err (!%p17275_p1)
}
 0x43a   : > { %s17279_s8 = scalar_lea.vmem %s18799_s4, 32  ;;  %p17286_p3 = scmp.lt.s32.totalorder %s18799_s4, %s18799_s4 }
 0x43b   : > { %p17280_p5 = scmp.ne.s32.totalorder %s18799_s4, %s17279_s8  ;;  %p17287_p4 = scmp.lt.s32.totalorder %s17279_s8, %s17279_s8 }
 0x43d   : > { %p17281_p6 = pnand %p17280_p5, %p15175_p10  ;;  %p17288_p7 = por %p17287_p4, %p17286_p3 }
 0x43f   : > { %p17282_p2 = pneg %p17281_p6 }
 0x441   : > { %p17289_p8 = pnand %p17288_p7, %p17282_p2 }
 0x443   : > { %17292 = shalt.err (!%p17289_p8)
}
 0x444   : > { %s20359_s3 = sld [smem:[#allocation134_spill]]  ;;  %s17958_s23 = smov [#allocation40]  }
 0x445   : > { %15002 = dma.hbm_to_vmem [thread:$0]  (%p15175_p10), %s20358_s14, 32, %s18799_s4, [#allocation36]  }
 0x446   : > { %s1734_s1 = sshll.u32 %s17958_s23, 4  ;;  %s17959_s5 = smov [#allocation43]   ;;  %s1735_s1 = int_to_ptr.vmem [resolvable:$true] %s1734_s1 }
 0x447   : > { %s1755_s7 = sshll.u32 %s17959_s5, 4  ;;  %s18829_s7 = int_to_ptr.vmem [resolvable:$true] %s1755_s7 }
 0x44a   : > { %s17293_s8 = scalar_lea.hbm %s20359_s3, 32 }
 0x44b   : > { %p17294_p11 = scmp.ne.s32.totalorder %s20359_s3, %s17293_s8  ;;  %p17299_p0 = scmp.lt.u32.totalorder %s17293_s8, %s20359_s3 }
 0x44d   : > { %p17295_p12 = pnand %p17294_p11, %p15175_p10 }
 0x44f   : > { %p17296_p13 = pneg %p17295_p12 }
 0x451   : > { %p17301_p1 = pnand %p17299_p0, %p17296_p13 }
 0x453   : > { %17304 = shalt.err (!%p17301_p1)
}
 0x454   : > { %s17305_s10 = scalar_lea.vmem %s1735_s1, 32  ;;  %p17312_p3 = scmp.lt.s32.totalorder %s1735_s1, %s1735_s1 }
 0x455   : > { %p17306_p5 = scmp.ne.s32.totalorder %s1735_s1, %s17305_s10  ;;  %p17313_p4 = scmp.lt.s32.totalorder %s17305_s10, %s17305_s10 }
 0x457   : > { %p17307_p6 = pnand %p17306_p5, %p15175_p10  ;;  %p17314_p7 = por %p17313_p4, %p17312_p3 }
 0x459   : > { %p17308_p2 = pneg %p17307_p6 }
 0x45b   : > { %p17315_p8 = pnand %p17314_p7, %p17308_p2 }
 0x45d   : > { %17318 = shalt.err (!%p17315_p8)
}
 0x45e   : > { %s20360_s4 = sld [smem:[#allocation136_spill]] }
 0x45f   : > { %15006 = dma.hbm_to_vmem [thread:$0]  (%p15175_p10), %s20359_s3, 32, %s1735_s1, [#allocation39]  }
 0x464   : > { %s17319_s23 = scalar_lea.hbm %s20360_s4, 1536 }
 0x465   : > { %p17320_p11 = scmp.ne.s32.totalorder %s20360_s4, %s17319_s23  ;;  %p17325_p0 = scmp.lt.u32.totalorder %s17319_s23, %s20360_s4 }
 0x467   : > { %p17321_p12 = pnand %p17320_p11, %p15175_p10 }
 0x469   : > { %p17322_p13 = pneg %p17321_p12 }
 0x46b   : > { %p17327_p1 = pnand %p17325_p0, %p17322_p13 }
 0x46d   : > { %17330 = shalt.err (!%p17327_p1)
}
 0x46e   : > { %s17331_s10 = scalar_lea.vmem %s18829_s7, 1536  ;;  %p17338_p3 = scmp.lt.s32.totalorder %s18829_s7, %s18829_s7 }
 0x46f   : > { %p17332_p5 = scmp.ne.s32.totalorder %s18829_s7, %s17331_s10  ;;  %p17339_p4 = scmp.lt.s32.totalorder %s17331_s10, %s17331_s10 }
 0x471   : > { %p17333_p6 = pnand %p17332_p5, %p15175_p10  ;;  %p17340_p7 = por %p17339_p4, %p17338_p3 }
 0x473   : > { %p17334_p2 = pneg %p17333_p6 }
 0x475   : > { %p17341_p8 = pnand %p17340_p7, %p17334_p2 }
 0x477   : > { %17344 = shalt.err (!%p17341_p8)
}
 0x478   : > { %s20361_s1 = sld [smem:[#allocation137_spill]]  ;;  %s17960_s5 = smov [#allocation46]  }
 0x479   : > { %15010 = dma.hbm_to_vmem [thread:$0]  (%p15175_p10), %s20360_s4, 1536, %s18829_s7, [#allocation42], %s20339_s6, %s20339_s6, %s20338_s2  }
 0x47a   : > { %s1782_s8 = sshll.u32 %s17960_s5, 4  ;;  %s17961_s23 = smov [#allocation49]   ;;  %s1783_s8 = int_to_ptr.vmem [resolvable:$true] %s1782_s8 }
 0x47b   : > { %s1803_s3 = sshll.u32 %s17961_s23, 4  ;;  %s18859_s3 = int_to_ptr.vmem [resolvable:$true] %s1803_s3 }
 0x47e   : > { %s17345_s10 = scalar_lea.hbm %s20361_s1, 32 }
 0x47f   : > { %p17346_p11 = scmp.ne.s32.totalorder %s20361_s1, %s17345_s10  ;;  %p17351_p0 = scmp.lt.u32.totalorder %s17345_s10, %s20361_s1 }
 0x481   : > { %p17347_p12 = pnand %p17346_p11, %p15175_p10 }
 0x483   : > { %p17348_p13 = pneg %p17347_p12 }
 0x485   : > { %p17353_p1 = pnand %p17351_p0, %p17348_p13 }
 0x487   : > { %17356 = shalt.err (!%p17353_p1)
}
 0x488   : > { %s17357_s11 = scalar_lea.vmem %s1783_s8, 32  ;;  %p17364_p3 = scmp.lt.s32.totalorder %s1783_s8, %s1783_s8 }
 0x489   : > { %p17358_p5 = scmp.ne.s32.totalorder %s1783_s8, %s17357_s11  ;;  %p17365_p4 = scmp.lt.s32.totalorder %s17357_s11, %s17357_s11 }
 0x48b   : > { %p17359_p6 = pnand %p17358_p5, %p15175_p10  ;;  %p17366_p7 = por %p17365_p4, %p17364_p3 }
 0x48d   : > { %p17360_p2 = pneg %p17359_p6 }
 0x48f   : > { %p17367_p8 = pnand %p17366_p7, %p17360_p2 }
 0x491   : > { %17370 = shalt.err (!%p17367_p8)
}
 0x492   : > { %s20362_s7 = sld [smem:[#allocation139_spill]] }
 0x493   : > { %15014 = dma.hbm_to_vmem [thread:$0]  (%p15175_p10), %s20361_s1, 32, %s1783_s8, [#allocation45]  }
 0x498   : > { %s17371_s5 = scalar_lea.hbm %s20362_s7, 3072 }
 0x499   : > { %p17372_p11 = scmp.ne.s32.totalorder %s20362_s7, %s17371_s5  ;;  %p17377_p0 = scmp.lt.u32.totalorder %s17371_s5, %s20362_s7 }
 0x49b   : > { %p17373_p12 = pnand %p17372_p11, %p15175_p10 }
 0x49d   : > { %p17374_p13 = pneg %p17373_p12 }
 0x49f   : > { %p17379_p1 = pnand %p17377_p0, %p17374_p13 }
 0x4a1   : > { %17382 = shalt.err (!%p17379_p1)
}
 0x4a2   : > { %s17383_s11 = scalar_lea.vmem %s18859_s3, 3072  ;;  %p17390_p3 = scmp.lt.s32.totalorder %s18859_s3, %s18859_s3 }
 0x4a3   : > { %p17384_p5 = scmp.ne.s32.totalorder %s18859_s3, %s17383_s11  ;;  %p17391_p4 = scmp.lt.s32.totalorder %s17383_s11, %s17383_s11 }
 0x4a5   : > { %p17385_p6 = pnand %p17384_p5, %p15175_p10  ;;  %p17392_p7 = por %p17391_p4, %p17390_p3 }
 0x4a7   : > { %p17386_p2 = pneg %p17385_p6 }
 0x4a9   : > { %p17393_p8 = pnand %p17392_p7, %p17386_p2 }
 0x4ab   : > { %17396 = shalt.err (!%p17393_p8)
}
 0x4ac   : > { %s20363_s8 = sld [smem:[#allocation141_spill]]  ;;  %s17962_s23 = smov [#allocation52]  }
 0x4ad   : > { %15018 = dma.hbm_to_vmem [thread:$0]  (%p15175_p10), %s20362_s7, 3072, %s18859_s3, [#allocation48], %s20339_s6, %s20339_s6, %s20338_s2  }
 0x4ae   : > { %s1830_s10 = sshll.u32 %s17962_s23, 4  ;;  %s17963_s5 = smov [#allocation55]   ;;  %s1831_s10 = int_to_ptr.vmem [resolvable:$true] %s1830_s10 }
 0x4af   : > { %s1854_s1 = sshll.u32 %s17963_s5, 4  ;;  %s18889_s1 = int_to_ptr.vmem [resolvable:$true] %s1854_s1 }
 0x4b2   : > { %s17397_s11 = scalar_lea.hbm %s20363_s8, 64 }
 0x4b3   : > { %p17398_p11 = scmp.ne.s32.totalorder %s20363_s8, %s17397_s11  ;;  %p17403_p0 = scmp.lt.u32.totalorder %s17397_s11, %s20363_s8 }
 0x4b5   : > { %p17399_p12 = pnand %p17398_p11, %p15175_p10 }
 0x4b7   : > { %p17400_p13 = pneg %p17399_p12 }
 0x4b9   : > { %p17405_p1 = pnand %p17403_p0, %p17400_p13 }
 0x4bb   : > { %17408 = shalt.err (!%p17405_p1)
}
 0x4bc   : > { %s17409_s4 = scalar_lea.vmem %s1831_s10, 64  ;;  %p17416_p3 = scmp.lt.s32.totalorder %s1831_s10, %s1831_s10 }
 0x4bd   : > { %p17410_p5 = scmp.ne.s32.totalorder %s1831_s10, %s17409_s4  ;;  %p17417_p4 = scmp.lt.s32.totalorder %s17409_s4, %s17409_s4 }
 0x4bf   : > { %p17411_p6 = pnand %p17410_p5, %p15175_p10  ;;  %p17418_p7 = por %p17417_p4, %p17416_p3 }
 0x4c1   : > { %p17412_p2 = pneg %p17411_p6 }
 0x4c3   : > { %p17419_p8 = pnand %p17418_p7, %p17412_p2 }
 0x4c5   : > { %17422 = shalt.err (!%p17419_p8)
}
 0x4c6   : > { %s20364_s3 = sld [smem:[#allocation143_spill]] }
 0x4c7   : > { %15022 = dma.hbm_to_vmem [thread:$0]  (%p15175_p10), %s20363_s8, 64, %s1831_s10, [#allocation51]  }
 0x4cc   : > { %s17423_s23 = scalar_lea.hbm %s20364_s3, 64 }
 0x4cd   : > { %p17424_p11 = scmp.ne.s32.totalorder %s20364_s3, %s17423_s23  ;;  %p17429_p0 = scmp.lt.u32.totalorder %s17423_s23, %s20364_s3 }
 0x4cf   : > { %p17425_p12 = pnand %p17424_p11, %p15175_p10 }
 0x4d1   : > { %p17426_p13 = pneg %p17425_p12 }
 0x4d3   : > { %p17431_p1 = pnand %p17429_p0, %p17426_p13 }
 0x4d5   : > { %17434 = shalt.err (!%p17431_p1)
}
 0x4d6   : > { %s17435_s4 = scalar_lea.vmem %s18889_s1, 64  ;;  %p17442_p3 = scmp.lt.s32.totalorder %s18889_s1, %s18889_s1 }
 0x4d7   : > { %p17436_p5 = scmp.ne.s32.totalorder %s18889_s1, %s17435_s4  ;;  %p17443_p4 = scmp.lt.s32.totalorder %s17435_s4, %s17435_s4 }
 0x4d9   : > { %p17437_p6 = pnand %p17436_p5, %p15175_p10  ;;  %p17444_p7 = por %p17443_p4, %p17442_p3 }
 0x4db   : > { %p17438_p2 = pneg %p17437_p6 }
 0x4dd   : > { %p17445_p8 = pnand %p17444_p7, %p17438_p2 }
 0x4df   : > { %17448 = shalt.err (!%p17445_p8)
}
 0x4e0   : > { %s20365_s10 = sld [smem:[#allocation145_spill]]  ;;  %s17964_s5 = smov [#allocation58]  }
 0x4e1   : > { %15026 = dma.hbm_to_vmem [thread:$0]  (%p15175_p10), %s20364_s3, 64, %s18889_s1, [#allocation54]  }
 0x4e2   : > { %s1875_s11 = sshll.u32 %s17964_s5, 4  ;;  %s17965_s23 = smov [#allocation61]   ;;  %s1876_s11 = int_to_ptr.vmem [resolvable:$true] %s1875_s11 }
 0x4e3   : > { %s1902_s7 = sshll.u32 %s17965_s23, 4  ;;  %s18916_s7 = int_to_ptr.vmem [resolvable:$true] %s1902_s7 }
 0x4e6   : > { %s17449_s4 = scalar_lea.hbm %s20365_s10, 6144 }
 0x4e7   : > { %p17450_p11 = scmp.ne.s32.totalorder %s20365_s10, %s17449_s4  ;;  %p17455_p0 = scmp.lt.u32.totalorder %s17449_s4, %s20365_s10 }
 0x4e9   : > { %p17451_p12 = pnand %p17450_p11, %p15175_p10 }
 0x4eb   : > { %p17452_p13 = pneg %p17451_p12 }
 0x4ed   : > { %p17457_p1 = pnand %p17455_p0, %p17452_p13 }
 0x4ef   : > { %17460 = shalt.err (!%p17457_p1)
}
 0x4f0   : > { %s17461_s8 = scalar_lea.vmem %s1876_s11, 6144  ;;  %p17468_p3 = scmp.lt.s32.totalorder %s1876_s11, %s1876_s11 }
 0x4f1   : > { %p17462_p5 = scmp.ne.s32.totalorder %s1876_s11, %s17461_s8  ;;  %p17469_p4 = scmp.lt.s32.totalorder %s17461_s8, %s17461_s8 }
 0x4f3   : > { %p17463_p6 = pnand %p17462_p5, %p15175_p10  ;;  %p17470_p7 = por %p17469_p4, %p17468_p3 }
 0x4f5   : > { %p17464_p2 = pneg %p17463_p6 }
 0x4f7   : > { %p17471_p8 = pnand %p17470_p7, %p17464_p2 }
 0x4f9   : > { %17474 = shalt.err (!%p17471_p8)
}
 0x4fa   : > { %s20366_s1 = smov 8   ;;  %s20367_s5 = smov 128  }
 0x4fb   : > { %s20368_s23 = sld [smem:[#allocation147_spill]] }
 0x4fc   : > { %15030 = dma.hbm_to_vmem [thread:$0]  (%p15175_p10), %s20365_s10, 6144, %s1876_s11, [#allocation57], %s20367_s5, %s20367_s5, %s20366_s1  }
 0x501   : > { %s20369_s4 = smov %s20368_s23  ;;  %s17475_s3 = scalar_lea.hbm %s20368_s23, 64 }
 0x502   : > { %p17476_p11 = scmp.ne.s32.totalorder %s20369_s4, %s17475_s3  ;;  %p17481_p0 = scmp.lt.u32.totalorder %s17475_s3, %s20369_s4 }
 0x504   : > { %p17477_p12 = pnand %p17476_p11, %p15175_p10 }
 0x506   : > { %p17478_p13 = pneg %p17477_p12 }
 0x508   : > { %p17483_p1 = pnand %p17481_p0, %p17478_p13 }
 0x50a   : > { %17486 = shalt.err (!%p17483_p1)
}
 0x50b   : > { %s17487_s8 = scalar_lea.vmem %s18916_s7, 64  ;;  %p17494_p3 = scmp.lt.s32.totalorder %s18916_s7, %s18916_s7 }
 0x50c   : > { %p17488_p5 = scmp.ne.s32.totalorder %s18916_s7, %s17487_s8  ;;  %p17495_p4 = scmp.lt.s32.totalorder %s17487_s8, %s17487_s8 }
 0x50e   : > { %p17489_p6 = pnand %p17488_p5, %p15175_p10  ;;  %p17496_p7 = por %p17495_p4, %p17494_p3 }
 0x510   : > { %p17490_p2 = pneg %p17489_p6 }
 0x512   : > { %p17497_p8 = pnand %p17496_p7, %p17490_p2 }
 0x514   : > { %17500 = shalt.err (!%p17497_p8)
}
 0x515   : > { %s20370_s3 = sld [smem:[#allocation149_spill]]  ;;  %s17966_s11 = smov [#allocation64]  }
 0x516   : > { %15034 = dma.hbm_to_vmem [thread:$0]  (%p15175_p10), %s20369_s4, 64, %s18916_s7, [#allocation60]  }
 0x517   : > { %s1923_s23 = sshll.u32 %s17966_s11, 4  ;;  %s17967_s10 = smov [#allocation67]   ;;  %s1924_s23 = int_to_ptr.vmem [resolvable:$true] %s1923_s23 }
 0x518   : > { %s1950_s12 = sshll.u32 %s17967_s10, 4  ;;  %s18946_s12 = int_to_ptr.vmem [resolvable:$true] %s1950_s12 }
 0x51b   : > { %s17501_s8 = scalar_lea.hbm %s20370_s3, 12288 }
 0x51c   : > { %p17502_p11 = scmp.ne.s32.totalorder %s20370_s3, %s17501_s8  ;;  %p17507_p0 = scmp.lt.u32.totalorder %s17501_s8, %s20370_s3 }
 0x51e   : > { %p17503_p12 = pnand %p17502_p11, %p15175_p10 }
 0x520   : > { %p17504_p13 = pneg %p17503_p12 }
 0x522   : > { %p17509_p1 = pnand %p17507_p0, %p17504_p13 }
 0x524   : > { %17512 = shalt.err (!%p17509_p1)
}
 0x525   : > { %s17513_s13 = scalar_lea.vmem %s1924_s23, 12288  ;;  %p17520_p3 = scmp.lt.s32.totalorder %s1924_s23, %s1924_s23 }
 0x526   : > { %p17514_p5 = scmp.ne.s32.totalorder %s1924_s23, %s17513_s13  ;;  %p17521_p4 = scmp.lt.s32.totalorder %s17513_s13, %s17513_s13 }
 0x528   : > { %p17515_p6 = pnand %p17514_p5, %p15175_p10  ;;  %p17522_p7 = por %p17521_p4, %p17520_p3 }
 0x52a   : > { %p17516_p2 = pneg %p17515_p6 }
 0x52c   : > { %p17523_p8 = pnand %p17522_p7, %p17516_p2 }
 0x52e   : > { %17526 = shalt.err (!%p17523_p8)
}
 0x52f   : > { %s20371_s7 = sld [smem:[#allocation151_spill]] }
 0x530   : > { %15038 = dma.hbm_to_vmem [thread:$0]  (%p15175_p10), %s20370_s3, 12288, %s1924_s23, [#allocation63], %s20367_s5, %s20367_s5, %s20366_s1  }
 0x535   : > { %s17527_s10 = scalar_lea.hbm %s20371_s7, 32 }
 0x536   : > { %p17528_p11 = scmp.ne.s32.totalorder %s20371_s7, %s17527_s10  ;;  %p17533_p0 = scmp.lt.u32.totalorder %s17527_s10, %s20371_s7 }
 0x538   : > { %p17529_p12 = pnand %p17528_p11, %p15175_p10 }
 0x53a   : > { %p17530_p13 = pneg %p17529_p12 }
 0x53c   : > { %p17535_p1 = pnand %p17533_p0, %p17530_p13 }
 0x53e   : > { %17538 = shalt.err (!%p17535_p1)
}
 0x53f   : > { %s17539_s13 = scalar_lea.vmem %s18946_s12, 32  ;;  %p17546_p3 = scmp.lt.s32.totalorder %s18946_s12, %s18946_s12 }
 0x540   : > { %p17540_p5 = scmp.ne.s32.totalorder %s18946_s12, %s17539_s13  ;;  %p17547_p4 = scmp.lt.s32.totalorder %s17539_s13, %s17539_s13 }
 0x542   : > { %p17541_p6 = pnand %p17540_p5, %p15175_p10  ;;  %p17548_p7 = por %p17547_p4, %p17546_p3 }
 0x544   : > { %p17542_p2 = pneg %p17541_p6 }
 0x546   : > { %p17549_p8 = pnand %p17548_p7, %p17542_p2 }
 0x548   : > { %17552 = shalt.err (!%p17549_p8)
}
 0x549   : > { %s20372_s1 = sld [smem:[#allocation153_spill]]  ;;  %s17968_s5 = smov [#allocation70]  }
 0x54a   : > { %15042 = dma.hbm_to_vmem [thread:$0]  (%p15175_p10), %s20371_s7, 32, %s18946_s12, [#allocation66]  }
 0x54b   : > { %s1974_s11 = sshll.u32 %s17968_s5, 4  ;;  %s17969_s23 = smov [#allocation73]   ;;  %s1975_s11 = int_to_ptr.vmem [resolvable:$true] %s1974_s11 }
 0x54c   : > { %s1998_s8 = sshll.u32 %s17969_s23, 4  ;;  %s18976_s8 = int_to_ptr.vmem [resolvable:$true] %s1998_s8 }
 0x54f   : > { %s17553_s10 = scalar_lea.hbm %s20372_s1, 32 }
 0x550   : > { %p17554_p11 = scmp.ne.s32.totalorder %s20372_s1, %s17553_s10  ;;  %p17559_p0 = scmp.lt.u32.totalorder %s17553_s10, %s20372_s1 }
 0x552   : > { %p17555_p12 = pnand %p17554_p11, %p15175_p10 }
 0x554   : > { %p17556_p13 = pneg %p17555_p12 }
 0x556   : > { %p17561_p1 = pnand %p17559_p0, %p17556_p13 }
 0x558   : > { %17564 = shalt.err (!%p17561_p1)
}
 0x559   : > { %s17565_s13 = scalar_lea.vmem %s1975_s11, 32  ;;  %p17572_p3 = scmp.lt.s32.totalorder %s1975_s11, %s1975_s11 }
 0x55a   : > { %p17566_p5 = scmp.ne.s32.totalorder %s1975_s11, %s17565_s13  ;;  %p17573_p4 = scmp.lt.s32.totalorder %s17565_s13, %s17565_s13 }
 0x55c   : > { %p17567_p6 = pnand %p17566_p5, %p15175_p10  ;;  %p17574_p7 = por %p17573_p4, %p17572_p3 }
 0x55e   : > { %p17568_p2 = pneg %p17567_p6 }
 0x560   : > { %p17575_p8 = pnand %p17574_p7, %p17568_p2 }
 0x562   : > { %17578 = shalt.err (!%p17575_p8)
}
 0x563   : > { %s20373_s12 = sld [smem:[#allocation155_spill]] }
 0x564   : > { %15046 = dma.hbm_to_vmem [thread:$0]  (%p15175_p10), %s20372_s1, 32, %s1975_s11, [#allocation69]  }
 0x569   : > { %s17579_s5 = scalar_lea.hbm %s20373_s12, 32 }
 0x56a   : > { %p17580_p11 = scmp.ne.s32.totalorder %s20373_s12, %s17579_s5  ;;  %p17585_p0 = scmp.lt.u32.totalorder %s17579_s5, %s20373_s12 }
 0x56c   : > { %p17581_p12 = pnand %p17580_p11, %p15175_p10 }
 0x56e   : > { %p17582_p13 = pneg %p17581_p12 }
 0x570   : > { %p17587_p1 = pnand %p17585_p0, %p17582_p13 }
 0x572   : > { %17590 = shalt.err (!%p17587_p1)
}
 0x573   : > { %s17591_s23 = scalar_lea.vmem %s18976_s8, 32  ;;  %p17598_p3 = scmp.lt.s32.totalorder %s18976_s8, %s18976_s8 }
 0x574   : > { %p17592_p5 = scmp.ne.s32.totalorder %s18976_s8, %s17591_s23  ;;  %p17599_p4 = scmp.lt.s32.totalorder %s17591_s23, %s17591_s23 }
 0x576   : > { %p17593_p6 = pnand %p17592_p5, %p15175_p10  ;;  %p17600_p7 = por %p17599_p4, %p17598_p3 }
 0x578   : > { %p17594_p2 = pneg %p17593_p6 }
 0x57a   : > { %p17601_p8 = pnand %p17600_p7, %p17594_p2 }
 0x57c   : > { %17604 = shalt.err (!%p17601_p8)
}
 0x57d   : > { %s20374_s11 = sld [smem:[#allocation157_spill]]  ;;  %s17970_s10 = smov [#allocation76]  }
 0x57e   : > { %15050 = dma.hbm_to_vmem [thread:$0]  (%p15175_p10), %s20373_s12, 32, %s18976_s8, [#allocation72]  }
 0x57f   : > { %s2022_s13 = sshll.u32 %s17970_s10, 4  ;;  %s17971_s5 = smov [#allocation79]   ;;  %s2023_s13 = int_to_ptr.vmem [resolvable:$true] %s2022_s13 }
 0x580   : > { %s2047_s1 = sshll.u32 %s17971_s5, 4  ;;  %s19003_s1 = int_to_ptr.vmem [resolvable:$true] %s2047_s1 }
 0x583   : > { %s17605_s23 = scalar_lea.hbm %s20374_s11, 32 }
 0x584   : > { %p17606_p11 = scmp.ne.s32.totalorder %s20374_s11, %s17605_s23  ;;  %p17611_p0 = scmp.lt.u32.totalorder %s17605_s23, %s20374_s11 }
 0x586   : > { %p17607_p12 = pnand %p17606_p11, %p15175_p10 }
 0x588   : > { %p17608_p13 = pneg %p17607_p12 }
 0x58a   : > { %p17613_p1 = pnand %p17611_p0, %p17608_p13 }
 0x58c   : > { %17616 = shalt.err (!%p17613_p1)
}
 0x58d   : > { %s17617_s3 = scalar_lea.vmem %s2023_s13, 32  ;;  %p17624_p3 = scmp.lt.s32.totalorder %s2023_s13, %s2023_s13 }
 0x58e   : > { %p17618_p5 = scmp.ne.s32.totalorder %s2023_s13, %s17617_s3  ;;  %p17625_p4 = scmp.lt.s32.totalorder %s17617_s3, %s17617_s3 }
 0x590   : > { %p17619_p6 = pnand %p17618_p5, %p15175_p10  ;;  %p17626_p7 = por %p17625_p4, %p17624_p3 }
 0x592   : > { %p17620_p2 = pneg %p17619_p6 }
 0x594   : > { %p17627_p8 = pnand %p17626_p7, %p17620_p2 }
 0x596   : > { %17630 = shalt.err (!%p17627_p8)
}
 0x597   : > { %s20375_s8 = sld [smem:[#allocation160_spill]] }
 0x598   : > { %15054 = dma.hbm_to_vmem [thread:$0]  (%p15175_p10), %s20374_s11, 32, %s2023_s13, [#allocation75]  }
 0x59d   : > { %s17631_s10 = scalar_lea.hbm %s20375_s8, 32 }
 0x59e   : > { %p17632_p11 = scmp.ne.s32.totalorder %s20375_s8, %s17631_s10  ;;  %p17637_p0 = scmp.lt.u32.totalorder %s17631_s10, %s20375_s8 }
 0x5a0   : > { %p17633_p12 = pnand %p17632_p11, %p15175_p10 }
 0x5a2   : > { %p17634_p13 = pneg %p17633_p12 }
 0x5a4   : > { %p17639_p1 = pnand %p17637_p0, %p17634_p13 }
 0x5a6   : > { %17642 = shalt.err (!%p17639_p1)
}
 0x5a7   : > { %s17643_s3 = scalar_lea.vmem %s19003_s1, 32  ;;  %p17650_p3 = scmp.lt.s32.totalorder %s19003_s1, %s19003_s1 }
 0x5a8   : > { %p17644_p5 = scmp.ne.s32.totalorder %s19003_s1, %s17643_s3  ;;  %p17651_p4 = scmp.lt.s32.totalorder %s17643_s3, %s17643_s3 }
 0x5aa   : > { %p17645_p6 = pnand %p17644_p5, %p15175_p10  ;;  %p17652_p7 = por %p17651_p4, %p17650_p3 }
 0x5ac   : > { %p17646_p2 = pneg %p17645_p6 }
 0x5ae   : > { %p17653_p8 = pnand %p17652_p7, %p17646_p2 }
 0x5b0   : > { %17656 = shalt.err (!%p17653_p8)
}
 0x5b1   : > { %s20376_s13 = sld [smem:[#allocation162_spill]]  ;;  %s17972_s5 = smov [#allocation82]  }
 0x5b2   : > { %15058 = dma.hbm_to_vmem [thread:$0]  (%p15175_p10), %s20375_s8, 32, %s19003_s1, [#allocation78]  }
 0x5b3   : > { %s2070_s23 = sshll.u32 %s17972_s5, 4  ;;  %s2071_s23 = int_to_ptr.vmem [resolvable:$true] %s2070_s23 }
 0x5b7   : > { %s17657_s10 = scalar_lea.hbm %s20376_s13, 3072 }
 0x5b8   : > { %p17658_p11 = scmp.ne.s32.totalorder %s20376_s13, %s17657_s10  ;;  %p17663_p0 = scmp.lt.u32.totalorder %s17657_s10, %s20376_s13 }
 0x5ba   : > { %p17659_p12 = pnand %p17658_p11, %p15175_p10 }
 0x5bc   : > { %p17660_p13 = pneg %p17659_p12 }
 0x5be   : > { %p17665_p1 = pnand %p17663_p0, %p17660_p13 }
 0x5c0   : > { %17668 = shalt.err (!%p17665_p1)
}
 0x5c1   : > { %s17669_s3 = scalar_lea.vmem %s2071_s23, 3072  ;;  %p17676_p3 = scmp.lt.s32.totalorder %s2071_s23, %s2071_s23 }
 0x5c2   : > { %p17670_p5 = scmp.ne.s32.totalorder %s2071_s23, %s17669_s3  ;;  %p17677_p4 = scmp.lt.s32.totalorder %s17669_s3, %s17669_s3 }
 0x5c4   : > { %p17671_p6 = pnand %p17670_p5, %p15175_p10  ;;  %p17678_p7 = por %p17677_p4, %p17676_p3 }
 0x5c6   : > { %p17672_p2 = pneg %p17671_p6 }
 0x5c8   : > { %p17679_p8 = pnand %p17678_p7, %p17672_p2 }
 0x5ca   : > { %17682 = shalt.err (!%p17679_p8)
}
 0x5cb   : > { %15062 = dma.hbm_to_vmem [thread:$0]  (%p15175_p10), %s20376_s13, 3072, %s2071_s23, [#allocation81], %s20339_s6, %s20339_s6, %s20338_s2  }
 0x5cc PF: > { %2103 = sbr.rel (%p18332_p9) target bundleno = 14720 (0x3980), region = 256  ;;  %p15228_p11 = scmp.eq.s32.totalorder (!%p18332_p9), %s18305_s28, 0 }
 0x5d3   : > { %17728 = dma.done.wait (%p15228_p11), [#allocation3], 128  }
 0x5d4   : > { %17730 = vsyncadd (%p15228_p11), [#allocation3], 4294967168 }
 0x5d5   : > { %17732 = dma.done.wait (%p15228_p11), [#allocation6], 96  }
 0x5d6   : > { %17734 = vsyncadd (%p15228_p11), [#allocation6], 4294967200 }
 0x5d7   : > { %17736 = dma.done.wait (%p15228_p11), [#allocation9], 64  }
 0x5d8   : > { %17738 = vsyncadd (%p15228_p11), [#allocation9], 4294967232 }
 0x5d9   : > { %17740 = dma.done.wait (%p15228_p11), [#allocation12], 128  }
 0x5da   : > { %17742 = vsyncadd (%p15228_p11), [#allocation12], 4294967168 }
 0x5db   : > { %17744 = dma.done.wait (%p15228_p11), [#allocation15], 800  }
 0x5dc   : > { %17746 = vsyncadd (%p15228_p11), [#allocation15], 4294966496 }
 0x5dd   : > { %17748 = dma.done.wait (%p15228_p11), [#allocation18], 800  }
 0x5de   : > { %17750 = vsyncadd (%p15228_p11), [#allocation18], 4294966496 }
 0x5df   : > { %17752 = dma.done.wait (%p15228_p11), [#allocation21], 800  }
 0x5e0   : > { %17754 = vsyncadd (%p15228_p11), [#allocation21], 4294966496 }
 0x5e1   : > { %17756 = dma.done.wait (%p15228_p11), [#allocation24], 288  }
 0x5e2   : > { %17758 = vsyncadd (%p15228_p11), [#allocation24], 4294967008 }
 0x5e3   : > { %17760 = dma.done.wait (%p15228_p11), [#allocation27], 800  }
 0x5e4   : > { %17762 = vsyncadd (%p15228_p11), [#allocation27], 4294966496 }
 0x5e5   : > { %17764 = dma.done.wait (%p15228_p11), [#allocation30], 1568  }
 0x5e6   : > { %17766 = vsyncadd (%p15228_p11), [#allocation30], 4294965728 }
 0x5e7   : > { %17768 = dma.done.wait (%p15228_p11), [#allocation33], 1568  }
 0x5e8   : > { %17770 = vsyncadd (%p15228_p11), [#allocation33], 4294965728 }
 0x5e9   : > { %17772 = dma.done.wait (%p15228_p11), [#allocation36], 1568  }
 0x5ea   : > { %17774 = vsyncadd (%p15228_p11), [#allocation36], 4294965728 }
 0x5eb   : > { %17776 = dma.done.wait (%p15228_p11), [#allocation39], 544  }
 0x5ec   : > { %17778 = vsyncadd (%p15228_p11), [#allocation39], 4294966752 }
 0x5ed   : > { %17780 = dma.done.wait (%p15228_p11), [#allocation42], 1568  }
 0x5ee   : > { %17782 = vsyncadd (%p15228_p11), [#allocation42], 4294965728 }
 0x5ef   : > { %17784 = dma.done.wait (%p15228_p11), [#allocation45], 3104  }
 0x5f0   : > { %17786 = vsyncadd (%p15228_p11), [#allocation45], 4294964192 }
 0x5f1   : > { %17788 = dma.done.wait (%p15228_p11), [#allocation48], 3104  }
 0x5f2   : > { %17790 = vsyncadd (%p15228_p11), [#allocation48], 4294964192 }
 0x5f3   : > { %17792 = dma.done.wait (%p15228_p11), [#allocation51], 3136  }
 0x5f4   : > { %17794 = vsyncadd (%p15228_p11), [#allocation51], 4294964160 }
 0x5f5   : > { %17796 = dma.done.wait (%p15228_p11), [#allocation54], 2112  }
 0x5f6   : > { %17798 = vsyncadd (%p15228_p11), [#allocation54], 4294965184 }
 0x5f7   : > { %17800 = dma.done.wait (%p15228_p11), [#allocation57], 6208  }
 0x5f8   : > { %17802 = vsyncadd (%p15228_p11), [#allocation57], 4294961088 }
 0x5f9   : > { %17804 = dma.done.wait (%p15228_p11), [#allocation60], 12352  }
 0x5fa   : > { %17806 = vsyncadd (%p15228_p11), [#allocation60], 4294954944 }
 0x5fb   : > { %17808 = dma.done.wait (%p15228_p11), [#allocation63], 12352  }
 0x5fc   : > { %17810 = vsyncadd (%p15228_p11), [#allocation63], 4294954944 }
 0x5fd   : > { %17812 = dma.done.wait (%p15228_p11), [#allocation66], 12320  }
 0x5fe   : > { %17814 = vsyncadd (%p15228_p11), [#allocation66], 4294954976 }
 0x5ff   : > { %17816 = dma.done.wait (%p15228_p11), [#allocation69], 800  }
 0x600   : > { %17818 = vsyncadd (%p15228_p11), [#allocation69], 4294966496 }
 0x601   : > { %17820 = dma.done.wait (%p15228_p11), [#allocation72], 1568  }
 0x602   : > { %17822 = vsyncadd (%p15228_p11), [#allocation72], 4294965728 }
 0x603   : > { %17824 = dma.done.wait (%p15228_p11), [#allocation75], 3104  }
 0x604   : > { %17826 = vsyncadd (%p15228_p11), [#allocation75], 4294964192 }
 0x605   : > { %17828 = dma.done.wait (%p15228_p11), [#allocation78], 64  }
 0x606   : > { %17830 = vsyncadd (%p15228_p11), [#allocation78], 4294967232 }
 0x607   : > { %17832 = dma.done.wait (%p15228_p11), [#allocation81], 6144  }
 0x608   : > { %17834 = vsyncadd (%p15228_p11), [#allocation81], 4294961152  ;;  %s20377_s18 = sld [smem:[#allocation112_spill]]  ;;  %vm2463_vm0 = vcmask 1040384   ;;  %v17973_v0 = vmov 0.0   ;;  %p2446_p9 = scmp.lt.s32.totalorder %s18305_s28, 7  ;;  %v2665_v59 = vlaneseq }
 0x609   : > { %14040 = vmatprep.subr.bf16.mxu0 %v17973_v0  ;;  %14058 = vmatprep.subr.bf16.mxu1 %v17973_v0  ;;  %vm2481_vm1 = vcmask 1041408   ;;  %v17974_v1 = vmov 65535   ;;  %vm17975_vm2 = vmmov 0   ;;  %vm2464_vm3 = vsmask.f32 256  ;;  %v15437_v45 = vld [vmem:[#allocation14 + $0x10] sm:$0xff]  }
 0x60a   : > { %v2482_v2 = vsel %vm2463_vm0, 4294967295, %v17974_v1  ;;  %14042 = vmatprep.mubr.msk.bf16.mxu0 %vm17975_vm2, %v17973_v0  ;;  %14062 = vmatprep.mubr.msk.bf16.mxu1 %vm17975_vm2, %v17973_v0  ;;  %s2447_s2 = scalar_select %p2446_p9, %s18305_s28, 7  ;;  %v2476_v4 = vld [vmem:[#allocation13 + $0x2] sm:$0x3]  ;;  %vm2477_vm4 = vcmask 23552   ;;  %vm2470_vm5 = vcmask 1047552   ;;  %vm19171_vm7 = vmand %vm2463_vm0, %vm2464_vm3 }
 0x60b   : > { %v19164_v3 = vsel %vm2481_vm1, %v2482_v2, 0  ;;  %v2474_v9 = vld [vmem:[#allocation13] sm:$0x3]  ;;  %vm2471_vm6 = vsmask.f32 7424  ;;  %vm2627_vm9 = vcmask 261120   ;;  %14059 = vmatpush3.bf16.msra.mxu1 %v15437_v45 }
 0x60c   : > { %s13658_s6 = sshll.u32 %s2447_s2, 4  ;;  %v2485_v7 = vand.u32 %v19164_v3, %v2476_v4  ;;  %v2532_v11 = vand.u32 %v19164_v3, %v2474_v9  ;;  %vm19179_vm8 = vmand %vm2470_vm5, %vm2471_vm6  ;;  %v2576_v21 = vld [vmem:[#allocation13 + $0x4] sm:$0x3]  ;;  %14060 = vmatprep.subr.bf16.mxu1 %v17973_v0  ;;  %v2925_v47 = vld [vmem:[#allocation8] sm:$0x3]  ;;  %v19212_v61 = vshrl.u32 %v2665_v59, 7 }
 0x60d   : > { %v2581_v22 = vand.u32 %v2576_v21, %v19164_v3  ;;  %v15438_v46 = vld [vmem:[#allocation14 + $0x18] sm:$0xff]   ;;  %v2927_v48 = vand.u32 %v2925_v47, %v19164_v3  ;;  %v2626_v63 = vld [vmem:[#allocation10] sm:$0x3]  ;;  %vm3719_vm10 = vcmask 130048   ;;  %vm3794_vm11 = vcmask 523264   ;;  %s20386_s5 = sld [smem:[#allocation115_spill]] }
 0x60e   : > { %s2450_s1 = scalar_lea.vmem %s20377_s18, %s13658_s6  ;;  %14041 = vmatpush3.bf16.msra.mxu0 %v2485_v7  ;;  %v19215_v62 = vsub.s32 0, %v19212_v61  ;;  %v19218_v1 = vsub.s32 1, %v19212_v61  ;;  %vm3844_vm12 = vcmask 1043456   ;;  %vm3845_vm13 = vsmask.f32 3328  ;;  %s20387_s23 = sld [smem:[#allocation158_spill]] }
 0x60f   : > { %v2452_v5 = vld [vmem:[%s2450_s1] sm:$0xff]  ;;  %v2453_v6 = vld [vmem:[%s2450_s1 + $0x8] sm:$0xff]  ;;  %14046 = vmatprep.subr.bf16.mxu0 %v17973_v0  ;;  %14061 = vmatpush3.bf16.msra.mxu1 %v15438_v46  ;;  %vm19385_vm14 = vmand %vm3844_vm12, %vm3845_vm13  ;;  %vm5075_vm15 = vcmask 64512   ;;  %vm5203_vm0 = vsmask.f32 1280  ;;  %vm10684_vm5 = vcmask 15360  }
 0x610   : > { %v19168_v8 = vpack.c.bf16 %v2453_v6, %v2452_v5  ;;  %14066 = vmatprep.subr.bf16.mxu1 %v17973_v0  ;;  %v2668_v2 = vrot.slane %v2626_v63, %v19215_v62  ;;  %v2674_v6 = vrot.slane %v2626_v63, %v19218_v1  ;;  %vm19560_vm3 = vmand %vm2481_vm1, %vm5203_vm0  ;;  %v16250_v10 = vld [vmem:[#allocation82 + $0xa8] sm:$0xff]   ;;  %s2444_s3 = sand.u32 1, %s17845_s22   ;;  %s13655_s18 = sshll.u32 %s18305_s28, 4 }
 0x611   : > { %s2445_s2 = scalar_lea.vmem [#allocation83], %s2444_s3  ;;  %s20131_s1 = scalar_lea.hbm %s18282_s21, %s13655_s18 }
 0x612   : > { %v2456_v12 = vshrl.u32 %v19168_v8, 16  ;;  %v2459_v13 = vshll.u32 %v19168_v8, 16  ;;  %14043 = vmatmul.mubr.msk.bf16.vlgmr.msra.gmra.mrb[0].mxu0 %vm2477_vm4, %v19168_v8  ;;  %s12167_s6 = sshll.u32 %s2445_s2, 4  ;;  %p20389_p12 = scmp.ne.s32.totalorder %s20327_s15, 0  ;;  %s20133_s6 = int_to_ptr.vmem [resolvable:$true] %s12167_s6 }
 0x613   : > { %14047 = vmatpush3.bf16.msra.mxu0 %v2532_v11  ;;  %14048 = vmatprep.mubr.msk.bf16.mxu0 %vm17975_vm2, %v17973_v0  ;;  %s17978_s28 = smov [#allocation83]  }
 0x614   : > { %v2458_v14 = vrot.slane %v2456_v12, 7  ;;  %v2467_v15 = vrot.slane %v2459_v13, 1  ;;  %14052 = vmatprep.subr.bf16.mxu0 %v17973_v0  ;;  %s20388_s10 = smov %s20387_s23  ;;  %s17687_s4 = sshll.u32 %s17978_s28, 4  ;;  %s17688_s4 = int_to_ptr.vmem [resolvable:$false] %s17687_s4 }
 0x615   : > { %s17689_s7 = scalar_lea.vmem %s17688_s4, 32  ;;  %p17690_p1 = scmp.lt.s32.totalorder %s20133_s6, %s17688_s4 }
 0x616   : > { %v2461_v17 = vor.u32 %v2459_v13, %v2458_v14  ;;  %v2468_v18 = vor.u32 %v2467_v15, %v2456_v12  ;;  %v15439_v14 = vld [vmem:[#allocation14] sm:$0xff]  }
 0x618   : > { %v2466_v19 = vsel %vm19171_vm7, 0, %v2461_v17  ;;  %v2473_v20 = vsel %vm19179_vm8, %v2468_v18, 0  ;;  %v15440_v18 = vld [vmem:[#allocation14 + $0x8] sm:$0xff]  }
 0x61e   : > { %14049 = vmatmul.mubr.msk.bf16.vlgmr.msra.gmra.mrb[0].mxu0 %vm2477_vm4, %v2466_v19 }
 0x61f   : > { %14053 = vmatpush3.bf16.msra.mxu0 %v2581_v22  ;;  %14054 = vmatprep.mubr.msk.bf16.mxu0 %vm17975_vm2, %v17973_v0  ;;  %v15441_v22 = vld [vmem:[#allocation14 + $0x20] sm:$0xff]  }
 0x620   : > { %14082 = vmatprep.subr.bf16.mxu0 %v17973_v0 }
 0x62a   : > { %14055 = vmatmul.mubr.msk.bf16.vlgmr.msra.gmra.mrb[0].mxu0 %vm2477_vm4, %v2473_v20 }
 0x62b   : > { %14084 = vmatprep.mubr.msk.bf16.mxu0 %vm17975_vm2, %v17973_v0  ;;  %14083 = vmatpush3.bf16.msra.mxu0 %v2927_v48 }
 0x62c   : > { %14112 = vmatprep.subr.bf16.mxu0 %v17973_v0 }
 0x632   : > { %14085 = vmatmul.mubr.msk.bf16.vlgmr.msra.gmra.mrb[4].mxu0 %vm2477_vm4, %v19168_v8  ;;  %vm6908_vm4 = vcmask 31744  }
 0x633   : > { %14116 = vmatprep.mubr.msk.bf16.mxu0 %vm17975_vm2, %v17973_v0 }
 0x6fd   : > { %v2617_v23 = vpop.f32.mrb[0].mxu0 }
 0x6fe   : > { %v14056_v24 = vpop.f32.mrb[1].mxu0  ;;  %v2628_v25 = vsel %vm2627_vm9, %v2617_v23, 0.0 }
 0x6ff   : > { %2629 = vadd.xlane.f32.xlu0 %v2628_v25  ;;  %v2620_v26 = vpop.f32.mrb[2].mxu0  ;;  %v15442_v24 = vld [vmem:[#allocation14 + $0x28] sm:$0xff]  }
 0x700   : > { %v14057_v27 = vpop.f32.mrb[3].mxu0  ;;  %v2631_v28 = vsel %vm2627_vm9, %v2620_v26, 0.0 }
 0x703   : > { %2632 = vadd.xlane.f32.xlu0 %v2631_v28 }
 0x705   : > { %v2963_v28 = vpop.f32.mrb[4].mxu0 }
 0x78c   : > { %v2630_v29 = vpop.xlane.xlu0 %2629 }
 0x790   : > { %v2633_v30 = vpop.xlane.xlu0 %2632 }
 0x791   : > { %v2634_v31 = vadd.f32 %v2633_v30, %v2630_v29  ;;  %v14086_v29 = vpop.f32.mrb[5].mxu0 }
 0x792   : > { %v2966_v30 = vpop.f32.mrb[6].mxu0 }
 0x793   : > { %v2635_v32 = vrot.slane %v2634_v31, 4 }
 0x795   : > { %v2636_v33 = vadd.f32 %v2635_v32, %v2634_v31  ;;  %v14087_v31 = vpop.f32.mrb[7].mxu0 }
 0x797   : > { %v2637_v34 = vrot.slane %v2636_v33, 2 }
 0x799   : > { %v2638_v35 = vadd.f32 %v2637_v34, %v2636_v33 }
 0x79b   : > { %v2639_v36 = vrot.slane %v2638_v35, 1 }
 0x79d   : > { %v2640_v37 = vadd.f32 %v2639_v36, %v2638_v35 }
 0x79f   : > { %v2642_v38 = vmul.f32 0.001953125, %v2640_v37 }
 0x7a1   : > { %v2643_v39 = vsub.f32 %v2617_v23, %v2642_v38  ;;  %v2644_v40 = vsub.f32 %v2620_v26, %v2642_v38  ;;  %v2971_v38 = vsel %vm2627_vm9, %v2963_v28, 0.0 }
 0x7a3   : > { %v2645_v41 = vmul.f32 %v2643_v39, %v2643_v39  ;;  %v2646_v43 = vmul.f32 %v2644_v40, %v2644_v40 }
 0x7a5   : > { %v2647_v42 = vsel %vm2627_vm9, %v2645_v41, 0.0  ;;  %v2650_v44 = vsel %vm2627_vm9, %v2646_v43, 0.0 }
 0x7a6   : > { %2648 = vadd.xlane.f32.xlu1 %v2647_v42 }
 0x7aa   : > { %2651 = vadd.xlane.f32.xlu1 %v2650_v44 }
 0x833   : > { %v2649_v49 = vpop.xlane.xlu1 %2648 }
 0x837   : > { %v2652_v50 = vpop.xlane.xlu1 %2651 }
 0x838   : > { %v2653_v51 = vadd.f32 %v2652_v50, %v2649_v49 }
 0x83a   : > { %v2654_v52 = vrot.slane %v2653_v51, 4 }
 0x83c   : > { %v2655_v53 = vadd.f32 %v2654_v52, %v2653_v51 }
 0x83e   : > { %v2656_v54 = vrot.slane %v2655_v53, 2 }
 0x840   : > { %v2657_v55 = vadd.f32 %v2656_v54, %v2655_v53 }
 0x842   : > { %v2658_v56 = vrot.slane %v2657_v55, 1 }
 0x844   : > { %v2659_v57 = vadd.f32 %v2658_v56, %v2657_v55 }
 0x846   : > { %v2660_v58 = vmul.f32 0.001953125, %v2659_v57 }
 0x848   : > { %v2661_v60 = vadd.f32 1e-05, %v2660_v58 }
 0x84a   : > { %16253 = vrsqrt.f32 %v2661_v60 }
 0x854   : > { %v16254_v3 = vpop.eup %16253 }
 0x855   : > { %v2663_v4 = vmul.f32 %v16254_v3, %v2643_v39  ;;  %v2664_v5 = vmul.f32 %v16254_v3, %v2644_v40  ;;  %v2974_v39 = vsel %vm2627_vm9, %v2966_v30, 0.0 }
 0x857   : > { %v2669_v7 = vmul.f32 %v2668_v2, %v2663_v4  ;;  %v2670_v8 = vmul.f32 %v2668_v2, %v2664_v5 }
 0x859   : > { %v2675_v9 = vadd.f32 %v2674_v6, %v2669_v7  ;;  %v2676_v11 = vadd.f32 %v2674_v6, %v2670_v8 }
 0x85b   : > { %v2677_v12 = vmax.f32 %v2675_v9, 0.0  ;;  %v2678_v13 = vmax.f32 %v2676_v11, 0.0 }
 0x85d   : > { %v2679_v15 = vpack.c.bf16 %v2678_v13, %v2677_v12  ;;  %v15443_v13 = vld [vmem:[#allocation19 + $0x10] sm:$0xff]  }
 0x85f   : > { %14063 = vmatmul.mubr.msk.bf16.vlgmr.msra.gmra.mrb[0].mxu1 %vm2627_vm9, %v2679_v15  ;;  %v2681_v17 = vshrl.u32 %v2679_v15, 16  ;;  %v2684_v20 = vshll.u32 %v2679_v15, 16 }
 0x860   : > { %14067 = vmatpush3.bf16.msra.mxu1 %v15439_v14  ;;  %14070 = vmatprep.mubr.msk.bf16.mxu1 %vm17975_vm2, %v17973_v0  ;;  %v15444_v14 = vld [vmem:[#allocation19 + $0x18] sm:$0xff]  }
 0x861   : > { %14068 = vmatprep.subr.bf16.mxu1 %v17973_v0  ;;  %v2683_v19 = vrot.slane %v2681_v17, 7  ;;  %v2689_v25 = vrot.slane %v2684_v20, 1 }
 0x863   : > { %v2686_v21 = vor.u32 %v2684_v20, %v2683_v19  ;;  %v2690_v26 = vor.u32 %v2689_v25, %v2681_v17 }
 0x864   : > { %14069 = vmatpush3.bf16.msra.mxu1 %v15440_v18 }
 0x865   : > { %14074 = vmatprep.subr.bf16.mxu1 %v17973_v0  ;;  %v2688_v23 = vsel %vm19171_vm7, 0, %v2686_v21  ;;  %v2692_v27 = vsel %vm19179_vm8, %v2690_v26, 0 }
 0x86b   : > { %14071 = vmatmul.mubr.msk.bf16.vlgmr.msra.gmra.mrb[0].mxu1 %vm2627_vm9, %v2688_v23 }
 0x86c   : > { %14075 = vmatpush3.bf16.msra.mxu1 %v15441_v22  ;;  %14078 = vmatprep.mubr.msk.bf16.mxu1 %vm17975_vm2, %v17973_v0 }
 0x86d   : > { %14076 = vmatprep.subr.bf16.mxu1 %v17973_v0 }
 0x870   : > { %14077 = vmatpush3.bf16.msra.mxu1 %v15442_v24 }
 0x871   : > { %14088 = vmatprep.subr.bf16.mxu1 %v17973_v0 }
 0x877   : > { %14079 = vmatmul.mubr.msk.bf16.vlgmr.msra.gmra.mrb[0].mxu1 %vm2627_vm9, %v2692_v27 }
 0x878   : > { %14092 = vmatprep.mubr.msk.bf16.mxu1 %vm17975_vm2, %v17973_v0  ;;  %14089 = vmatpush3.bf16.msra.mxu1 %v15443_v13 }
 0x879   : > { %14090 = vmatprep.subr.bf16.mxu1 %v17973_v0 }
 0x87c   : > { %14091 = vmatpush3.bf16.msra.mxu1 %v15444_v14 }
 0x87d   : > { %14096 = vmatprep.subr.bf16.mxu1 %v17973_v0 }
 0x94a   : > { %v2867_v32 = vpop.f32.mrb[0].mxu1 }
 0x94b   : > { %v14080_v33 = vpop.f32.mrb[1].mxu1  ;;  %v2877_v34 = vsel %vm2627_vm9, %v2867_v32, 0.0 }
 0x94c   : > { %2878 = vadd.xlane.f32.xlu0 %v2877_v34  ;;  %v2870_v35 = vpop.f32.mrb[2].mxu1 }
 0x94d   : > { %v14081_v36 = vpop.f32.mrb[3].mxu1  ;;  %v2880_v37 = vsel %vm2627_vm9, %v2870_v35, 0.0 }
 0x94e   : > { %2881 = vadd.xlane.f32.xlu1 %v2880_v37 }
 0x950   : > { %2972 = vadd.xlane.f32.xlu0 %v2971_v38  ;;  %v2876_v38 = vld [vmem:[#allocation11] sm:$0x3] }
 0x952   : > { %2975 = vadd.xlane.f32.xlu1 %v2974_v39 }
 0x9d9   : > { %v2879_v40 = vpop.xlane.xlu0 %2878 }
 0x9db   : > { %v2882_v41 = vpop.xlane.xlu1 %2881 }
 0x9dc   : > { %v2883_v42 = vadd.f32 %v2882_v41, %v2879_v40  ;;  %v2970_v40 = vld [vmem:[#allocation7] sm:$0x3] }
 0x9dd   : > { %v2973_v44 = vpop.xlane.xlu0 %2972 }
 0x9de   : > { %v2884_v43 = vrot.slane %v2883_v42, 4 }
 0x9df   : > { %v2976_v45 = vpop.xlane.xlu1 %2975 }
 0x9e0   : > { %v2885_v46 = vadd.f32 %v2884_v43, %v2883_v42  ;;  %v2977_v47 = vadd.f32 %v2976_v45, %v2973_v44  ;;  %v2916_v43 = vrot.slane %v2876_v38, %v19215_v62  ;;  %v3010_v44 = vrot.slane %v2970_v40, %v19215_v62 }
 0x9e2   : > { %v2886_v48 = vrot.slane %v2885_v46, 2  ;;  %v2978_v49 = vrot.slane %v2977_v47, 4 }
 0x9e4   : > { %v2887_v50 = vadd.f32 %v2886_v48, %v2885_v46  ;;  %v2979_v51 = vadd.f32 %v2978_v49, %v2977_v47  ;;  %v2922_v46 = vrot.slane %v2876_v38, %v19218_v1  ;;  %v3016_v47 = vrot.slane %v2970_v40, %v19218_v1  ;;  %v15450_v40 = vld [vmem:[#allocation20 + $0x18] sm:$0xff]  }
 0x9e6   : > { %v2888_v52 = vrot.slane %v2887_v50, 1  ;;  %v2980_v53 = vrot.slane %v2979_v51, 2 }
 0x9e8   : > { %v2889_v54 = vadd.f32 %v2888_v52, %v2887_v50  ;;  %v2981_v55 = vadd.f32 %v2980_v53, %v2979_v51 }
 0x9ea   : > { %v2982_v56 = vrot.slane %v2981_v55, 1  ;;  %v2890_v57 = vmul.f32 0.001953125, %v2889_v54 }
 0x9ec   : > { %v2983_v58 = vadd.f32 %v2982_v56, %v2981_v55  ;;  %v2891_v59 = vsub.f32 %v2867_v32, %v2890_v57  ;;  %v2892_v60 = vsub.f32 %v2870_v35, %v2890_v57 }
 0x9ee   : > { %v2893_v63 = vmul.f32 %v2891_v59, %v2891_v59  ;;  %v2894_v2 = vmul.f32 %v2892_v60, %v2892_v60  ;;  %v2984_v3 = vmul.f32 0.001953125, %v2983_v58 }
 0x9f0   : > { %v2895_v4 = vsel %vm2627_vm9, %v2893_v63, 0.0  ;;  %v2898_v5 = vsel %vm2627_vm9, %v2894_v2, 0.0  ;;  %v2986_v6 = vsub.f32 %v2966_v30, %v2984_v3  ;;  %v2985_v7 = vsub.f32 %v2963_v28, %v2984_v3  ;;  %v15445_v2 = vld [vmem:[#allocation19] sm:$0xff]  }
 0x9f1   : > { %2896 = vadd.xlane.f32.xlu0 %v2895_v4  ;;  %2899 = vadd.xlane.f32.xlu1 %v2898_v5  ;;  %v15446_v5 = vld [vmem:[#allocation19 + $0x8] sm:$0xff]  }
 0x9f2   : > { %v2988_v8 = vmul.f32 %v2986_v6, %v2986_v6  ;;  %v2987_v9 = vmul.f32 %v2985_v7, %v2985_v7 }
 0x9f4   : > { %v2992_v11 = vsel %vm2627_vm9, %v2988_v8, 0.0  ;;  %v2989_v12 = vsel %vm2627_vm9, %v2987_v9, 0.0  ;;  %v15447_v9 = vld [vmem:[#allocation19 + $0x20] sm:$0xff]  }
 0x9f5   : > { %2993 = vadd.xlane.f32.xlu1 %v2992_v11  ;;  %2990 = vadd.xlane.f32.xlu0 %v2989_v12  ;;  %v15448_v12 = vld [vmem:[#allocation19 + $0x28] sm:$0xff]  }
 0xa7e   : > { %v2897_v15 = vpop.xlane.xlu0 %2896  ;;  %v2900_v17 = vpop.xlane.xlu1 %2899 }
 0xa7f   : > { %v2901_v18 = vadd.f32 %v2900_v17, %v2897_v15 }
 0xa81   : > { %v2902_v19 = vrot.slane %v2901_v18, 4 }
 0xa82   : > { %v2991_v20 = vpop.xlane.xlu0 %2990  ;;  %v2994_v21 = vpop.xlane.xlu1 %2993 }
 0xa83   : > { %v2903_v22 = vadd.f32 %v2902_v19, %v2901_v18  ;;  %v2995_v23 = vadd.f32 %v2994_v21, %v2991_v20 }
 0xa85   : > { %v2904_v24 = vrot.slane %v2903_v22, 2  ;;  %v2996_v25 = vrot.slane %v2995_v23, 4 }
 0xa87   : > { %v2905_v26 = vadd.f32 %v2904_v24, %v2903_v22  ;;  %v2997_v27 = vadd.f32 %v2996_v25, %v2995_v23 }
 0xa89   : > { %v2906_v28 = vrot.slane %v2905_v26, 1  ;;  %v2998_v29 = vrot.slane %v2997_v27, 2 }
 0xa8b   : > { %v2907_v30 = vadd.f32 %v2906_v28, %v2905_v26  ;;  %v2999_v31 = vadd.f32 %v2998_v29, %v2997_v27 }
 0xa8d   : > { %v2908_v32 = vmul.f32 0.001953125, %v2907_v30  ;;  %v3000_v33 = vrot.slane %v2999_v31, 1 }
 0xa8f   : > { %v2909_v34 = vadd.f32 1e-05, %v2908_v32  ;;  %v3001_v35 = vadd.f32 %v3000_v33, %v2999_v31 }
 0xa91   : > { %16255 = vrsqrt.f32 %v2909_v34  ;;  %v3002_v36 = vmul.f32 0.001953125, %v3001_v35 }
 0xa93   : > { %v3003_v37 = vadd.f32 1e-05, %v3002_v36 }
 0xa95   : > { %16257 = vrsqrt.f32 %v3003_v37 }
 0xa9b   : > { %v16256_v39 = vpop.eup %16255 }
 0xa9c   : > { %v2911_v41 = vmul.f32 %v16256_v39, %v2891_v59  ;;  %v2912_v42 = vmul.f32 %v16256_v39, %v2892_v60  ;;  %v15449_v39 = vld [vmem:[#allocation20 + $0x10] sm:$0xff]  }
 0xa9d   : > { %14113 = vmatpush3.bf16.msra.mxu0 %v15449_v39 }
 0xa9e   : > { %v2917_v50 = vmul.f32 %v2916_v43, %v2911_v41  ;;  %v2918_v51 = vmul.f32 %v2916_v43, %v2912_v42  ;;  %14114 = vmatprep.subr.bf16.mxu0 %v17973_v0 }
 0xa9f   : > { %v16258_v45 = vpop.eup %16257 }
 0xaa0   : > { %v3005_v48 = vmul.f32 %v16258_v45, %v2985_v7  ;;  %v3006_v49 = vmul.f32 %v16258_v45, %v2986_v6  ;;  %v2923_v54 = vadd.f32 %v2922_v46, %v2917_v50  ;;  %v2924_v55 = vadd.f32 %v2922_v46, %v2918_v51 }
 0xaa1   : > { %14115 = vmatpush3.bf16.msra.mxu0 %v15450_v40 }
 0xaa2   : > { %v3011_v52 = vmul.f32 %v3010_v44, %v3005_v48  ;;  %v3012_v53 = vmul.f32 %v3010_v44, %v3006_v49  ;;  %14120 = vmatprep.subr.bf16.mxu0 %v17973_v0 }
 0xaa4   : > { %v3017_v56 = vadd.f32 %v3016_v47, %v3011_v52  ;;  %v3018_v57 = vadd.f32 %v3016_v47, %v3012_v53  ;;  %v3220_v52 = vld [vmem:[#allocation16] sm:$0x3] }
 0xaa5   : > { %v3260_v53 = vrot.slane %v3220_v52, %v19215_v62 }
 0xaa6   : > { %v19253_v58 = vadd.f32 %v3017_v56, %v2923_v54  ;;  %v19255_v59 = vadd.f32 %v3018_v57, %v2924_v55  ;;  %v3266_v57 = vrot.slane %v3220_v52, %v19218_v1 }
 0xaa8   : > { %v3021_v60 = vmax.f32 %v19253_v58, 0.0  ;;  %v3022_v63 = vmax.f32 %v19255_v59, 0.0 }
 0xaaa   : > { %v3023_v3 = vpack.c.bf16 %v3022_v63, %v3021_v60 }
 0xaac   : > { %14093 = vmatmul.mubr.msk.bf16.vlgmr.msra.gmra.mrb[4].mxu1 %vm2627_vm9, %v3023_v3  ;;  %v3025_v4 = vshrl.u32 %v3023_v3, 16  ;;  %v3028_v7 = vshll.u32 %v3023_v3, 16 }
 0xaad   : > { %14097 = vmatpush3.bf16.msra.mxu1 %v15445_v2  ;;  %14100 = vmatprep.mubr.msk.bf16.mxu1 %vm17975_vm2, %v17973_v0 }
 0xaae   : > { %14098 = vmatprep.subr.bf16.mxu1 %v17973_v0  ;;  %v3027_v6 = vrot.slane %v3025_v4, 7  ;;  %v3033_v13 = vrot.slane %v3028_v7, 1 }
 0xab0   : > { %v3030_v8 = vor.u32 %v3028_v7, %v3027_v6  ;;  %v3034_v14 = vor.u32 %v3033_v13, %v3025_v4 }
 0xab1   : > { %14099 = vmatpush3.bf16.msra.mxu1 %v15446_v5 }
 0xab2   : > { %14104 = vmatprep.subr.bf16.mxu1 %v17973_v0  ;;  %v3032_v11 = vsel %vm19171_vm7, 0, %v3030_v8  ;;  %v3036_v15 = vsel %vm19179_vm8, %v3034_v14, 0  ;;  %v15451_v8 = vld [vmem:[#allocation20] sm:$0xff]  }
 0xab8   : > { %14101 = vmatmul.mubr.msk.bf16.vlgmr.msra.gmra.mrb[4].mxu1 %vm2627_vm9, %v3032_v11 }
 0xab9   : > { %14105 = vmatpush3.bf16.msra.mxu1 %v15447_v9  ;;  %14108 = vmatprep.mubr.msk.bf16.mxu1 %vm17975_vm2, %v17973_v0 }
 0xaba   : > { %14106 = vmatprep.subr.bf16.mxu1 %v17973_v0 }
 0xabd   : > { %14107 = vmatpush3.bf16.msra.mxu1 %v15448_v12  ;;  %v15452_v12 = vld [vmem:[#allocation20 + $0x8] sm:$0xff]  }
 0xabe   : > { %14136 = vmatprep.subr.bf16.mxu1 %v17973_v0 }
 0xac4   : > { %14109 = vmatmul.mubr.msk.bf16.vlgmr.msra.gmra.mrb[4].mxu1 %vm2627_vm9, %v3036_v15 }
 0xac5   : > { %14140 = vmatprep.mubr.msk.bf16.mxu1 %vm17975_vm2, %v17973_v0 }
 0xb97   : > { %v3211_v17 = vpop.f32.mrb[4].mxu1 }
 0xb98   : > { %v14110_v18 = vpop.f32.mrb[5].mxu1  ;;  %v3221_v19 = vsel %vm2627_vm9, %v3211_v17, 0.0 }
 0xb99   : > { %3222 = vadd.xlane.f32.xlu0 %v3221_v19  ;;  %v3214_v20 = vpop.f32.mrb[6].mxu1  ;;  %v15454_v19 = vld [vmem:[#allocation20 + $0x28] sm:$0xff]  }
 0xb9a   : > { %v14111_v21 = vpop.f32.mrb[7].mxu1  ;;  %v3224_v22 = vsel %vm2627_vm9, %v3214_v20, 0.0 }
 0xb9b   : > { %3225 = vadd.xlane.f32.xlu1 %v3224_v22 }
 0xc26   : > { %v3223_v23 = vpop.xlane.xlu0 %3222 }
 0xc28   : > { %v3226_v24 = vpop.xlane.xlu1 %3225 }
 0xc29   : > { %v3227_v25 = vadd.f32 %v3226_v24, %v3223_v23 }
 0xc2b   : > { %v3228_v26 = vrot.slane %v3227_v25, 4 }
 0xc2d   : > { %v3229_v27 = vadd.f32 %v3228_v26, %v3227_v25 }
 0xc2f   : > { %v3230_v28 = vrot.slane %v3229_v27, 2 }
 0xc31   : > { %v3231_v29 = vadd.f32 %v3230_v28, %v3229_v27 }
 0xc33   : > { %v3232_v30 = vrot.slane %v3231_v29, 1 }
 0xc35   : > { %v3233_v31 = vadd.f32 %v3232_v30, %v3231_v29 }
 0xc37   : > { %v3234_v32 = vmul.f32 0.001953125, %v3233_v31 }
 0xc39   : > { %v3236_v33 = vsub.f32 %v3214_v20, %v3234_v32  ;;  %v3235_v34 = vsub.f32 %v3211_v17, %v3234_v32  ;;  %v15453_v17 = vld [vmem:[#allocation20 + $0x20] sm:$0xff]  }
 0xc3b   : > { %v3238_v35 = vmul.f32 %v3236_v33, %v3236_v33  ;;  %v3237_v36 = vmul.f32 %v3235_v34, %v3235_v34 }
 0xc3d   : > { %v3242_v37 = vsel %vm2627_vm9, %v3238_v35, 0.0  ;;  %v3239_v38 = vsel %vm2627_vm9, %v3237_v36, 0.0 }
 0xc3e   : > { %3243 = vadd.xlane.f32.xlu1 %v3242_v37  ;;  %3240 = vadd.xlane.f32.xlu0 %v3239_v38 }
 0xccb   : > { %v3244_v41 = vpop.xlane.xlu1 %3243  ;;  %v3241_v42 = vpop.xlane.xlu0 %3240 }
 0xccc   : > { %v3245_v43 = vadd.f32 %v3244_v41, %v3241_v42 }
 0xcce   : > { %v3246_v44 = vrot.slane %v3245_v43, 4 }
 0xcd0   : > { %v3247_v45 = vadd.f32 %v3246_v44, %v3245_v43 }
 0xcd2   : > { %v3248_v46 = vrot.slane %v3247_v45, 2 }
 0xcd4   : > { %v3249_v47 = vadd.f32 %v3248_v46, %v3247_v45  ;;  %v15455_v45 = vld [vmem:[#allocation28 + $0x10] sm:$0xff]   ;;  %v15456_v46 = vld [vmem:[#allocation28 + $0x18] sm:$0xff]  }
 0xcd5   : > { %14137 = vmatpush3.bf16.msra.mxu1 %v15455_v45 }
 0xcd6   : > { %v3250_v48 = vrot.slane %v3249_v47, 1  ;;  %14138 = vmatprep.subr.bf16.mxu1 %v17973_v0 }
 0xcd8   : > { %v3251_v49 = vadd.f32 %v3250_v48, %v3249_v47 }
 0xcd9   : > { %14139 = vmatpush3.bf16.msra.mxu1 %v15456_v46 }
 0xcda   : > { %v3252_v50 = vmul.f32 0.001953125, %v3251_v49  ;;  %14144 = vmatprep.subr.bf16.mxu1 %v17973_v0 }
 0xcdc   : > { %v3253_v51 = vadd.f32 1e-05, %v3252_v50 }
 0xcde   : > { %16259 = vrsqrt.f32 %v3253_v51 }
 0xce8   : > { %v16260_v54 = vpop.eup %16259 }
 0xce9   : > { %v3255_v55 = vmul.f32 %v16260_v54, %v3235_v34  ;;  %v3256_v56 = vmul.f32 %v16260_v54, %v3236_v33 }
 0xceb   : > { %v3261_v2 = vmul.f32 %v3260_v53, %v3255_v55  ;;  %v3262_v3 = vmul.f32 %v3260_v53, %v3256_v56 }
 0xced   : > { %v3267_v4 = vadd.f32 %v3266_v57, %v3261_v2  ;;  %v3268_v5 = vadd.f32 %v3266_v57, %v3262_v3  ;;  %v3468_v2 = vld [vmem:[#allocation17] sm:$0x3] }
 0xcee   : > { %v3508_v3 = vrot.slane %v3468_v2, %v19215_v62 }
 0xcef   : > { %v3269_v6 = vmax.f32 %v3267_v4, 0.0  ;;  %v3270_v7 = vmax.f32 %v3268_v5, 0.0 }
 0xcf1   : > { %v3271_v9 = vpack.c.bf16 %v3270_v7, %v3269_v6  ;;  %v3514_v7 = vrot.slane %v3468_v2, %v19218_v1  ;;  %v15463_v2 = vld [vmem:[#allocation29 + $0x20] sm:$0xff]  }
 0xcf3   : > { %14117 = vmatmul.mubr.msk.bf16.vlgmr.msra.gmra.mrb[8].mxu0 %vm2627_vm9, %v3271_v9  ;;  %v3273_v11 = vshrl.u32 %v3271_v9, 16  ;;  %v3276_v14 = vshll.u32 %v3271_v9, 16 }
 0xcf4   : > { %14121 = vmatpush3.bf16.msra.mxu0 %v15451_v8  ;;  %14124 = vmatprep.mubr.msk.bf16.mxu0 %vm17975_vm2, %v17973_v0 }
 0xcf5   : > { %14122 = vmatprep.subr.bf16.mxu0 %v17973_v0  ;;  %v3275_v13 = vrot.slane %v3273_v11, 7  ;;  %v3281_v20 = vrot.slane %v3276_v14, 1 }
 0xcf7   : > { %v3278_v15 = vor.u32 %v3276_v14, %v3275_v13  ;;  %v3282_v21 = vor.u32 %v3281_v20, %v3273_v11 }
 0xcf8   : > { %14123 = vmatpush3.bf16.msra.mxu0 %v15452_v12 }
 0xcf9   : > { %14128 = vmatprep.subr.bf16.mxu0 %v17973_v0  ;;  %v3280_v18 = vsel %vm19171_vm7, 0, %v3278_v15  ;;  %v3284_v22 = vsel %vm19179_vm8, %v3282_v21, 0  ;;  %v15458_v21 = vld [vmem:[#allocation28 + $0x8] sm:$0xff]  }
 0xcff   : > { %14125 = vmatmul.mubr.msk.bf16.vlgmr.msra.gmra.mrb[8].mxu0 %vm2627_vm9, %v3280_v18  ;;  %v15457_v18 = vld [vmem:[#allocation28] sm:$0xff]  }
 0xd00   : > { %14129 = vmatpush3.bf16.msra.mxu0 %v15453_v17  ;;  %14132 = vmatprep.mubr.msk.bf16.mxu0 %vm17975_vm2, %v17973_v0 }
 0xd01   : > { %14130 = vmatprep.subr.bf16.mxu0 %v17973_v0 }
 0xd04   : > { %14131 = vmatpush3.bf16.msra.mxu0 %v15454_v19 }
 0xd0b   : > { %14133 = vmatmul.mubr.msk.bf16.vlgmr.msra.gmra.mrb[8].mxu0 %vm2627_vm9, %v3284_v22 }
 0xd0c   : > { %14164 = vmatprep.mubr.msk.f32.mxu0 %vm17975_vm2, %v17973_v0 }
 0xdde   : > { %v3459_v23 = vpop.f32.mrb[8].mxu0 }
 0xddf   : > { %v14134_v24 = vpop.f32.mrb[9].mxu0  ;;  %v3469_v25 = vsel %vm2627_vm9, %v3459_v23, 0.0 }
 0xde0   : > { %3470 = vadd.xlane.f32.xlu0 %v3469_v25  ;;  %v3462_v26 = vpop.f32.mrb[10].mxu0 }
 0xde1   : > { %v14135_v27 = vpop.f32.mrb[11].mxu0  ;;  %v3472_v28 = vsel %vm2627_vm9, %v3462_v26, 0.0 }
 0xde2   : > { %3473 = vadd.xlane.f32.xlu1 %v3472_v28  ;;  %v15462_v28 = vld [vmem:[#allocation23 + $0x8] sm:$0xff]  }
 0xe6d   : > { %v3471_v29 = vpop.xlane.xlu0 %3470 }
 0xe6f   : > { %v3474_v30 = vpop.xlane.xlu1 %3473 }
 0xe70   : > { %v3475_v31 = vadd.f32 %v3474_v30, %v3471_v29  ;;  %v17976_v29 = vmov 0.0|0.0  }
 0xe71   : > { %14783 = vmatprep.subr.bf16.mxu0 %v17976_v29 }
 0xe72   : > { %v3476_v32 = vrot.slane %v3475_v31, 4 }
 0xe74   : > { %v3477_v33 = vadd.f32 %v3476_v32, %v3475_v31 }
 0xe76   : > { %v3478_v34 = vrot.slane %v3477_v33, 2 }
 0xe78   : > { %v3479_v35 = vadd.f32 %v3478_v34, %v3477_v33 }
 0xe7a   : > { %v3480_v36 = vrot.slane %v3479_v35, 1 }
 0xe7c   : > { %v3481_v37 = vadd.f32 %v3480_v36, %v3479_v35  ;;  %v3718_v35 = vld [vmem:[#allocation2] sm:$0xff] }
 0xe7e   : > { %v3482_v38 = vmul.f32 0.001953125, %v3481_v37 }
 0xe80   : > { %v3484_v39 = vsub.f32 %v3462_v26, %v3482_v38  ;;  %v3483_v40 = vsub.f32 %v3459_v23, %v3482_v38  ;;  %v15460_v23 = vld [vmem:[#allocation28 + $0x28] sm:$0xff]  }
 0xe81   : > { %v15461_v26 = vld [vmem:[#allocation23] sm:$0xff]  }
 0xe82   : > { %v3486_v41 = vmul.f32 %v3484_v39, %v3484_v39  ;;  %v3485_v42 = vmul.f32 %v3483_v40, %v3483_v40 }
 0xe84   : > { %v3490_v43 = vsel %vm2627_vm9, %v3486_v41, 0.0  ;;  %v3487_v44 = vsel %vm2627_vm9, %v3485_v42, 0.0 }
 0xe85   : > { %3491 = vadd.xlane.f32.xlu1 %v3490_v43  ;;  %3488 = vadd.xlane.f32.xlu0 %v3487_v44 }
 0xf12   : > { %v3492_v47 = vpop.xlane.xlu1 %3491  ;;  %v3489_v48 = vpop.xlane.xlu0 %3488 }
 0xf13   : > { %v3493_v49 = vadd.f32 %v3492_v47, %v3489_v48 }
 0xf15   : > { %v3494_v50 = vrot.slane %v3493_v49, 4 }
 0xf17   : > { %v3495_v51 = vadd.f32 %v3494_v50, %v3493_v49 }
 0xf19   : > { %v3496_v52 = vrot.slane %v3495_v51, 2 }
 0xf1b   : > { %v3497_v53 = vadd.f32 %v3496_v52, %v3495_v51 }
 0xf1d   : > { %v3498_v54 = vrot.slane %v3497_v53, 1 }
 0xf1f   : > { %v3499_v55 = vadd.f32 %v3498_v54, %v3497_v53 }
 0xf21   : > { %v3500_v56 = vmul.f32 0.001953125, %v3499_v55 }
 0xf23   : > { %v3501_v57 = vadd.f32 1e-05, %v3500_v56 }
 0xf25   : > { %16261 = vrsqrt.f32 %v3501_v57 }
 0xf2f   : > { %v16262_v4 = vpop.eup %16261 }
 0xf30   : > { %v3503_v5 = vmul.f32 %v16262_v4, %v3483_v40  ;;  %v3504_v6 = vmul.f32 %v16262_v4, %v3484_v39  ;;  %v15465_v4 = vld [vmem:[#allocation29 + $0x30] sm:$0xff]  }
 0xf32   : > { %v3509_v8 = vmul.f32 %v3508_v3, %v3503_v5  ;;  %v3510_v9 = vmul.f32 %v3508_v3, %v3504_v6  ;;  %v15464_v3 = vld [vmem:[#allocation29 + $0x28] sm:$0xff]   ;;  %v15466_v5 = vld [vmem:[#allocation29 + $0x38] sm:$0xff]  }
 0xf34   : > { %v3515_v11 = vadd.f32 %v3514_v7, %v3509_v8  ;;  %v3516_v12 = vadd.f32 %v3514_v7, %v3510_v9 }
 0xf36   : > { %v3517_v13 = vadd.f32 %v3515_v11, %v3021_v60  ;;  %v3518_v14 = vadd.f32 %v3516_v12, %v3022_v63  ;;  %v15459_v63 = vld [vmem:[#allocation28 + $0x20] sm:$0xff]  }
 0xf38   : > { %v3519_v15 = vmax.f32 %v3517_v13, 0.0  ;;  %v3520_v17 = vmax.f32 %v3518_v14, 0.0 }
 0xf3a   : > { %v19316_v19 = vpack.c.bf16 %v3520_v17, %v3519_v15 }
 0xf3c   : > { %14141 = vmatmul.mubr.msk.bf16.vlgmr.msra.gmra.mrb[8].mxu1 %vm2627_vm9, %v19316_v19  ;;  %v3523_v20 = vshrl.u32 %v19316_v19, 16  ;;  %v3526_v59 = vshll.u32 %v19316_v19, 16 }
 0xf3d   : > { %14145 = vmatpush3.bf16.msra.mxu1 %v15457_v18  ;;  %14148 = vmatprep.mubr.msk.bf16.mxu1 %vm17975_vm2, %v17973_v0 }
 0xf3e   : > { %14146 = vmatprep.subr.bf16.mxu1 %v17973_v0  ;;  %v3525_v58 = vrot.slane %v3523_v20, 7  ;;  %v3531_v24 = vrot.slane %v3526_v59, 1 }
 0xf40   : > { %v3528_v60 = vor.u32 %v3526_v59, %v3525_v58  ;;  %v3532_v25 = vor.u32 %v3531_v24, %v3523_v20 }
 0xf41   : > { %14147 = vmatpush3.bf16.msra.mxu1 %v15458_v21 }
 0xf42   : > { %14152 = vmatprep.subr.bf16.mxu1 %v17973_v0  ;;  %v19328_v22 = vsel %vm19171_vm7, 0, %v3528_v60  ;;  %v19338_v27 = vsel %vm19179_vm8, %v3532_v25, 0  ;;  %v3793_v25 = vld [vmem:[#allocation25] sm:$0x3] }
 0xf48   : > { %14149 = vmatmul.mubr.msk.bf16.vlgmr.msra.gmra.mrb[8].mxu1 %vm2627_vm9, %v19328_v22 }
 0xf49   : > { %14153 = vmatpush3.bf16.msra.mxu1 %v15459_v63  ;;  %14156 = vmatprep.mubr.msk.bf16.mxu1 %vm17975_vm2, %v17973_v0 }
 0xf4a   : > { %14154 = vmatprep.subr.bf16.mxu1 %v17973_v0 }
 0xf4d   : > { %14155 = vmatpush3.bf16.msra.mxu1 %v15460_v23 }
 0xf4e   : > { %14203 = vmatprep.subr.bf16.mxu1 %v17973_v0 }
 0xf54   : > { %14157 = vmatmul.mubr.msk.bf16.vlgmr.msra.gmra.mrb[8].mxu1 %vm2627_vm9, %v19338_v27 }
 0xf55   : > { %14204 = vmatpush3.bf16.msra.mxu1 %v15461_v26  ;;  %14207 = vmatprep.mubr.msk.bf16.mxu1 %vm17975_vm2, %v17973_v0 }
 0xf56   : > { %14205 = vmatprep.subr.bf16.mxu1 %v17973_v0 }
 0xf59   : > { %14206 = vmatpush3.bf16.msra.mxu1 %v15462_v28  ;;  %v3823_v28 = vrot.slane %v3793_v25, %v19215_v62 }
 0xf5a   : > { %14786 = vmatprep.subr.bf16.mxu1 %v17976_v29 }
 0xf5c   : > { %14208 = vmatmul.mubr.msk.bf16.vlgmr.msra.gmra.mrb[12].mxu1 %vm2627_vm9, %v19316_v19 }
 0xf5d   : > { %14215 = vmatprep.mubr.msk.f32.mxu1 %vm17975_vm2, %v17973_v0 }
0x1027   : > { %v3709_v30 = vpop.f32.mrb[8].mxu1 }
0x1028   : > { %v14158_v31 = vpop.f32.mrb[9].mxu1 }
0x1029   : > { %v3712_v32 = vpop.f32.mrb[10].mxu1  ;;  %v3828_v31 = vrot.slane %v3793_v25, %v19218_v1 }
0x102a   : > { %v14784_v33 = vpack.c.bf16 %v3712_v32, %v3709_v30  ;;  %v14159_v34 = vpop.f32.mrb[11].mxu1 }
0x102c   : > { %14785 = vmatpush3.bf16.msra.mxu0 %v14784_v33 }
0x102d   : > { %14167 = vmatprep.subr.bf16.mxu0 %v17973_v0 }
0x102f   : > { %14165 = vmatmul.mubr.msk.f32.vlgmr.msra.gmra.mrb[12].mxu0 %vm3719_vm10, %v3718_v35  ;;  %v4161_v36 = vpop.f32.mrb[12].mxu1 }
0x1030   : > { %v14209_v37 = vpop.f32.mrb[13].mxu1  ;;  %14175 = vmatprep.mubr.msk.bf16.mxu0 %vm17975_vm2, %v17973_v0  ;;  %14168 = vmatpush3.bf16.msra.mxu0 %v15463_v2 }
0x1031   : > { %v4164_v38 = vpop.f32.mrb[14].mxu1  ;;  %14169 = vmatprep.subr.bf16.mxu0 %v17973_v0  ;;  %v15468_v37 = vld [vmem:[#allocation29 + $0x8] sm:$0xff]  }
0x1032   : > { %v14787_v39 = vpack.c.bf16 %v4164_v38, %v4161_v36  ;;  %v14210_v40 = vpop.f32.mrb[15].mxu1 }
0x1034   : > { %14788 = vmatpush3.bf16.msra.mxu1 %v14787_v39  ;;  %14170 = vmatpush3.bf16.msra.mxu0 %v15464_v3  ;;  %v15469_v39 = vld [vmem:[#allocation29 + $0x10] sm:$0xff]  }
0x1035   : > { %14218 = vmatprep.subr.bf16.mxu1 %v17973_v0  ;;  %14171 = vmatprep.subr.bf16.mxu0 %v17973_v0 }
0x1037   : > { %14216 = vmatmul.mubr.msk.f32.vlgmr.msra.gmra.mrb[16].mxu1 %vm3719_vm10, %v3718_v35  ;;  %v15467_v35 = vld [vmem:[#allocation29] sm:$0xff]  }
0x1038   : > { %14226 = vmatprep.mubr.msk.bf16.mxu1 %vm17975_vm2, %v17973_v0  ;;  %14172 = vmatpush3.bf16.msra.mxu0 %v15465_v4 }
0x1039   : > { %14173 = vmatprep.subr.bf16.mxu0 %v17973_v0 }
0x103c   : > { %14174 = vmatpush3.bf16.msra.mxu0 %v15466_v5 }
0x103d   : > { %14179 = vmatprep.subr.bf16.mxu0 %v17973_v0 }
0x1102   : > { %v3789_v41 = vpop.f32.mrb[12].mxu0 }
0x1103   : > { %v14166_v42 = vpop.f32.mrb[13].mxu0  ;;  %v3795_v43 = vsel %vm3794_vm11, %v3789_v41, 0.0 }
0x1104   : > { %3796 = vadd.xlane.f32.xlu0 %v3795_v43 }
0x110a   : > { %v4234_v44 = vpop.f32.mrb[16].mxu1 }
0x110b   : > { %v14217_v45 = vpop.f32.mrb[17].mxu1  ;;  %v4239_v57 = vsel %vm3794_vm11, %v4234_v44, 0.0 }
0x1191   : > { %v3797_v46 = vpop.xlane.xlu0 %3796 }
0x1192   : > { %v3798_v47 = vrot.slane %v3797_v46, 4 }
0x1194   : > { %v3799_v48 = vadd.f32 %v3798_v47, %v3797_v46  ;;  %v15472_v46 = vld [vmem:[#allocation29 + $0x48] sm:$0xff]   ;;  %v15473_v47 = vld [vmem:[#allocation29 + $0x50] sm:$0xff]  }
0x1196   : > { %v3800_v49 = vrot.slane %v3799_v48, 2 }
0x1198   : > { %v3801_v50 = vadd.f32 %v3800_v49, %v3799_v48  ;;  %v15474_v49 = vld [vmem:[#allocation29 + $0x58] sm:$0xff]  }
0x119a   : > { %v3802_v51 = vrot.slane %v3801_v50, 1 }
0x119c   : > { %v3803_v52 = vadd.f32 %v3802_v51, %v3801_v50  ;;  %v5074_v51 = vld [vmem:[#allocation5] sm:$0xf] }
0x119e   : > { %v3804_v53 = vmul.f32 0.001953125, %v3803_v52 }
0x11a0   : > { %v3805_v54 = vsub.f32 %v3789_v41, %v3804_v53  ;;  %v15470_v41 = vld [vmem:[#allocation29 + $0x18] sm:$0xff]  }
0x11a2   : > { %v3806_v55 = vmul.f32 %v3805_v54, %v3805_v54 }
0x11a4   : > { %v3807_v56 = vsel %vm3794_vm11, %v3806_v55, 0.0 }
0x11a5   : > { %3808 = vadd.xlane.f32.xlu1 %v3807_v56 }
0x11a9   : > { %4240 = vadd.xlane.f32.xlu1 %v4239_v57 }
0x1232   : > { %v3809_v6 = vpop.xlane.xlu1 %3808 }
0x1233   : > { %v3810_v7 = vrot.slane %v3809_v6, 4 }
0x1235   : > { %v3811_v8 = vadd.f32 %v3810_v7, %v3809_v6 }
0x1236   : > { %v4241_v9 = vpop.xlane.xlu1 %4240 }
0x1237   : > { %v3812_v11 = vrot.slane %v3811_v8, 2  ;;  %v4242_v12 = vrot.slane %v4241_v9, 4 }
0x1239   : > { %v3813_v13 = vadd.f32 %v3812_v11, %v3811_v8  ;;  %v4243_v14 = vadd.f32 %v4242_v12, %v4241_v9 }
0x123b   : > { %v3814_v15 = vrot.slane %v3813_v13, 1  ;;  %v4244_v17 = vrot.slane %v4243_v14, 2 }
0x123d   : > { %v3815_v18 = vadd.f32 %v3814_v15, %v3813_v13  ;;  %v4245_v20 = vadd.f32 %v4244_v17, %v4243_v14  ;;  %v15475_v14 = vld [vmem:[#allocation34 + $0x20] sm:$0xff]   ;;  %v15476_v15 = vld [vmem:[#allocation34 + $0x28] sm:$0xff]   ;;  %v15477_v17 = vld [vmem:[#allocation34 + $0x30] sm:$0xff]  }
0x123e   : > { %14219 = vmatpush3.bf16.msra.mxu1 %v15475_v14 }
0x123f   : > { %v3816_v21 = vmul.f32 0.001953125, %v3815_v18  ;;  %v4246_v58 = vrot.slane %v4245_v20, 1  ;;  %14220 = vmatprep.subr.bf16.mxu1 %v17973_v0  ;;  %v15478_v18 = vld [vmem:[#allocation34 + $0x38] sm:$0xff]  }
0x1241   : > { %v3817_v59 = vadd.f32 1e-05, %v3816_v21  ;;  %v4247_v60 = vadd.f32 %v4246_v58, %v4245_v20 }
0x1242   : > { %14221 = vmatpush3.bf16.msra.mxu1 %v15476_v15 }
0x1243   : > { %16263 = vrsqrt.f32 %v3817_v59  ;;  %v4248_v63 = vmul.f32 0.001953125, %v4247_v60  ;;  %14222 = vmatprep.subr.bf16.mxu1 %v17973_v0 }
0x1245   : > { %v19362_v23 = vsub.f32 %v4234_v44, %v4248_v63  ;;  %v15471_v44 = vld [vmem:[#allocation29 + $0x40] sm:$0xff]  }
0x1246   : > { %14223 = vmatpush3.bf16.msra.mxu1 %v15477_v17 }
0x1247   : > { %v4250_v24 = vmul.f32 %v19362_v23, %v19362_v23  ;;  %14224 = vmatprep.subr.bf16.mxu1 %v17973_v0 }
0x1249   : > { %v4251_v26 = vsel %vm3794_vm11, %v4250_v24, 0.0 }
0x124a   : > { %4252 = vadd.xlane.f32.xlu1 %v4251_v26  ;;  %14225 = vmatpush3.bf16.msra.mxu1 %v15478_v18 }
0x124b   : > { %14230 = vmatprep.subr.bf16.mxu1 %v17973_v0 }
0x124d   : > { %v16264_v29 = vpop.eup %16263 }
0x124e   : > { %v3819_v30 = vmul.f32 %v16264_v29, %v3805_v54 }
0x1250   : > { %v3824_v32 = vmul.f32 %v3823_v28, %v3819_v30 }
0x1252   : > { %v3829_v33 = vadd.f32 %v3828_v31, %v3824_v32 }
0x1254   : > { %v3830_v34 = vmax.f32 %v3829_v33, 0.0 }
0x1256   : > { %v3831_v36 = vpack.c.bf16 %v3830_v34, %v3830_v34 }
0x1258   : > { %14176 = vmatmul.mubr.msk.bf16.vlgmr.msra.gmra.mrb[16].mxu0 %vm3794_vm11, %v3831_v36  ;;  %v3833_v38 = vshrl.u32 %v3831_v36, 16  ;;  %v3836_v42 = vshll.u32 %v3831_v36, 16 }
0x1259   : > { %14180 = vmatpush3.bf16.msra.mxu0 %v15467_v35  ;;  %14187 = vmatprep.mubr.msk.bf16.mxu0 %vm17975_vm2, %v17973_v0 }
0x125a   : > { %14181 = vmatprep.subr.bf16.mxu0 %v17973_v0  ;;  %v3835_v40 = vrot.slane %v3833_v38, 7  ;;  %v3841_v48 = vrot.slane %v3836_v42, 1 }
0x125c   : > { %v3838_v43 = vor.u32 %v3836_v42, %v3835_v40  ;;  %v3842_v50 = vor.u32 %v3841_v48, %v3833_v38  ;;  %v4238_v38 = vld [vmem:[#allocation22] sm:$0x3] }
0x125d   : > { %14182 = vmatpush3.bf16.msra.mxu0 %v15468_v37 }
0x125e   : > { %14183 = vmatprep.subr.bf16.mxu0 %v17973_v0  ;;  %v3840_v45 = vsel %vm19171_vm7, 0, %v3838_v43  ;;  %v3847_v52 = vsel %vm19385_vm14, %v3842_v50, 0 }
0x1261   : > { %14184 = vmatpush3.bf16.msra.mxu0 %v15469_v39  ;;  %v4075_v39 = vld [vmem:[#allocation26] sm:$0x3] }
0x1262   : > { %14185 = vmatprep.subr.bf16.mxu0 %v17973_v0  ;;  %v4104_v42 = vrot.slane %v4075_v39, %v19215_v62 }
0x1265   : > { %14186 = vmatpush3.bf16.msra.mxu0 %v15470_v41  ;;  %v4267_v41 = vrot.slane %v4238_v38, %v19215_v62 }
0x1266   : > { %14191 = vmatprep.subr.bf16.mxu0 %v17973_v0 }
0x1268   : > { %14188 = vmatmul.mubr.msk.bf16.vlgmr.msra.gmra.mrb[16].mxu0 %vm3794_vm11, %v3840_v45  ;;  %v4109_v45 = vrot.slane %v4075_v39, %v19218_v1 }
0x1269   : > { %14192 = vmatpush3.bf16.msra.mxu0 %v15471_v44  ;;  %14199 = vmatprep.mubr.msk.bf16.mxu0 %vm17975_vm2, %v17973_v0 }
0x126a   : > { %14193 = vmatprep.subr.bf16.mxu0 %v17973_v0 }
0x126d   : > { %14194 = vmatpush3.bf16.msra.mxu0 %v15472_v46 }
0x126e   : > { %14195 = vmatprep.subr.bf16.mxu0 %v17973_v0 }
0x1271   : > { %14196 = vmatpush3.bf16.msra.mxu0 %v15473_v47  ;;  %v4272_v47 = vrot.slane %v4238_v38, %v19218_v1 }
0x1272   : > { %14197 = vmatprep.subr.bf16.mxu0 %v17973_v0 }
0x1275   : > { %14198 = vmatpush3.bf16.msra.mxu0 %v15474_v49 }
0x1276   : > { %14254 = vmatprep.subr.bf16.mxu0 %v17973_v0 }
0x1278   : > { %14200 = vmatmul.mubr.msk.bf16.vlgmr.msra.gmra.mrb[16].mxu0 %vm3794_vm11, %v3847_v52 }
0x1279   : > { %14262 = vmatprep.mubr.msk.bf16.mxu0 %vm17975_vm2, %v17973_v0 }
0x12d7   : > { %v4253_v20 = vpop.xlane.xlu1 %4252 }
0x12d8   : > { %v4254_v21 = vrot.slane %v4253_v20, 4 }
0x12da   : > { %v4255_v58 = vadd.f32 %v4254_v21, %v4253_v20 }
0x12dc   : > { %v4256_v59 = vrot.slane %v4255_v58, 2 }
0x12de   : > { %v4257_v60 = vadd.f32 %v4256_v59, %v4255_v58 }
0x12e0   : > { %v4258_v63 = vrot.slane %v4257_v60, 1 }
0x12e2   : > { %v4259_v24 = vadd.f32 %v4258_v63, %v4257_v60 }
0x12e4   : > { %v4260_v28 = vmul.f32 0.001953125, %v4259_v24 }
0x12e6   : > { %v4261_v31 = vadd.f32 1e-05, %v4260_v28 }
0x12e8   : > { %16265 = vrsqrt.f32 %v4261_v31 }
0x12f2   : > { %v16266_v37 = vpop.eup %16265 }
0x12f3   : > { %v4263_v40 = vmul.f32 %v16266_v37, %v19362_v23 }
0x12f5   : > { %v4268_v46 = vmul.f32 %v4267_v41, %v4263_v40 }
0x12f7   : > { %v4273_v50 = vadd.f32 %v4272_v47, %v4268_v46 }
0x134b   : > { %v4068_v53 = vpop.f32.mrb[16].mxu0 }
0x134c   : > { %v14201_v54 = vpop.f32.mrb[17].mxu0  ;;  %v4076_v55 = vsel %vm3794_vm11, %v4068_v53, 0.0 }
0x134d   : > { %4077 = vadd.xlane.f32.xlu0 %v4076_v55  ;;  %v4071_v56 = vpop.f32.mrb[18].mxu0  ;;  %v15479_v54 = vld [vmem:[#allocation34] sm:$0xff]   ;;  %v15480_v55 = vld [vmem:[#allocation34 + $0x8] sm:$0xff]  }
0x134e   : > { %v14202_v57 = vpop.f32.mrb[19].mxu0 }
0x134f   : > { %v15481_v57 = vld [vmem:[#allocation34 + $0x10] sm:$0xff]  }
0x13da   : > { %v4078_v2 = vpop.xlane.xlu0 %4077 }
0x13db   : > { %v4079_v3 = vrot.slane %v4078_v2, 4 }
0x13dd   : > { %v4080_v4 = vadd.f32 %v4079_v3, %v4078_v2  ;;  %v15482_v3 = vld [vmem:[#allocation34 + $0x18] sm:$0xff]  }
0x13df   : > { %v4081_v5 = vrot.slane %v4080_v4, 2 }
0x13e1   : > { %v4082_v6 = vadd.f32 %v4081_v5, %v4080_v4 }
0x13e3   : > { %v4083_v7 = vrot.slane %v4082_v6, 1 }
0x13e5   : > { %v4084_v8 = vadd.f32 %v4083_v7, %v4082_v6  ;;  %v15483_v6 = vld [vmem:[#allocation34 + $0x40] sm:$0xff]  }
0x13e7   : > { %v4085_v9 = vmul.f32 0.001953125, %v4084_v8  ;;  %v15484_v8 = vld [vmem:[#allocation34 + $0x48] sm:$0xff]  }
0x13e9   : > { %v4086_v11 = vsub.f32 %v4068_v53, %v4085_v9  ;;  %v15485_v9 = vld [vmem:[#allocation34 + $0x50] sm:$0xff]  }
0x13eb   : > { %v4087_v12 = vmul.f32 %v4086_v11, %v4086_v11 }
0x13ed   : > { %v4088_v13 = vsel %vm3794_vm11, %v4087_v12, 0.0  ;;  %v15486_v12 = vld [vmem:[#allocation34 + $0x58] sm:$0xff]  }
0x13ee   : > { %4089 = vadd.xlane.f32.xlu0 %v4088_v13 }
0x147b   : > { %v4090_v25 = vpop.xlane.xlu0 %4089 }
0x147c   : > { %v4091_v26 = vrot.slane %v4090_v25, 4 }
0x147e   : > { %v4092_v29 = vadd.f32 %v4091_v26, %v4090_v25 }
0x1480   : > { %v4093_v30 = vrot.slane %v4092_v29, 2 }
0x1482   : > { %v4094_v32 = vadd.f32 %v4093_v30, %v4092_v29 }
0x1484   : > { %v4095_v33 = vrot.slane %v4094_v32, 1 }
0x1486   : > { %v4096_v34 = vadd.f32 %v4095_v33, %v4094_v32  ;;  %v15487_v32 = vld [vmem:[#allocation35 + $0x20] sm:$0xff]   ;;  %v15488_v33 = vld [vmem:[#allocation35 + $0x28] sm:$0xff]  }
0x1487   : > { %14255 = vmatpush3.bf16.msra.mxu0 %v15487_v32 }
0x1488   : > { %v4097_v35 = vmul.f32 0.001953125, %v4096_v34  ;;  %14256 = vmatprep.subr.bf16.mxu0 %v17973_v0  ;;  %v15489_v34 = vld [vmem:[#allocation35 + $0x30] sm:$0xff]  }
0x148a   : > { %v4098_v36 = vadd.f32 1e-05, %v4097_v35  ;;  %v15490_v35 = vld [vmem:[#allocation35 + $0x38] sm:$0xff]  }
0x148b   : > { %14257 = vmatpush3.bf16.msra.mxu0 %v15488_v33  ;;  %v15499_v33 = vld [vmem:[#allocation43 + $0x20] sm:$0xff]  }
0x148c   : > { %16267 = vrsqrt.f32 %v4098_v36  ;;  %14258 = vmatprep.subr.bf16.mxu0 %v17973_v0 }
0x148f   : > { %14259 = vmatpush3.bf16.msra.mxu0 %v15489_v34  ;;  %v15500_v34 = vld [vmem:[#allocation43 + $0x28] sm:$0xff]  }
0x1490   : > { %14260 = vmatprep.subr.bf16.mxu0 %v17973_v0 }
0x1493   : > { %14261 = vmatpush3.bf16.msra.mxu0 %v15490_v35  ;;  %v15501_v35 = vld [vmem:[#allocation43 + $0x30] sm:$0xff]  }
0x1494   : > { %14266 = vmatprep.subr.bf16.mxu0 %v17973_v0 }
0x1496   : > { %v16268_v43 = vpop.eup %16267 }
0x1497   : > { %v4100_v44 = vmul.f32 %v16268_v43, %v4086_v11 }
0x1499   : > { %v4105_v48 = vmul.f32 %v4104_v42, %v4100_v44 }
0x149b   : > { %v4110_v49 = vadd.f32 %v4109_v45, %v4105_v48  ;;  %v4517_v45 = vld [vmem:[#allocation31] sm:$0x3] }
0x149c   : > { %v4546_v46 = vrot.slane %v4517_v45, %v19215_v62 }
0x149d   : > { %v4274_v52 = vadd.f32 %v4273_v50, %v4110_v49  ;;  %v4551_v49 = vrot.slane %v4517_v45, %v19218_v1 }
0x149f   : > { %v19406_v53 = vmax.f32 %v4274_v52, 0.0 }
0x14a1   : > { %v4276_v23 = vpack.c.bf16 %v19406_v53, %v19406_v53 }
0x14a3   : > { %14227 = vmatmul.mubr.msk.bf16.vlgmr.msra.gmra.mrb[20].mxu1 %vm3794_vm11, %v4276_v23  ;;  %v4278_v56 = vshrl.u32 %v4276_v23, 16  ;;  %v4281_v4 = vshll.u32 %v4276_v23, 16  ;;  %v15491_v23 = vld [vmem:[#allocation35] sm:$0xff]  }
0x14a4   : > { %14231 = vmatpush3.bf16.msra.mxu1 %v15479_v54  ;;  %14238 = vmatprep.mubr.msk.bf16.mxu1 %vm17975_vm2, %v17973_v0 }
0x14a5   : > { %14232 = vmatprep.subr.bf16.mxu1 %v17973_v0  ;;  %v4280_v2 = vrot.slane %v4278_v56, 7  ;;  %v4286_v11 = vrot.slane %v4281_v4, 1 }
0x14a7   : > { %v4283_v5 = vor.u32 %v4281_v4, %v4280_v2  ;;  %v4287_v13 = vor.u32 %v4286_v11, %v4278_v56  ;;  %v15492_v56 = vld [vmem:[#allocation35 + $0x8] sm:$0xff]   ;;  %v15493_v2 = vld [vmem:[#allocation35 + $0x10] sm:$0xff]   ;;  %v15494_v4 = vld [vmem:[#allocation35 + $0x18] sm:$0xff]  }
0x14a8   : > { %14233 = vmatpush3.bf16.msra.mxu1 %v15480_v55  ;;  %v15497_v11 = vld [vmem:[#allocation35 + $0x50] sm:$0xff]  }
0x14a9   : > { %14234 = vmatprep.subr.bf16.mxu1 %v17973_v0  ;;  %v4285_v7 = vsel %vm19171_vm7, 0, %v4283_v5  ;;  %v4289_v14 = vsel %vm19385_vm14, %v4287_v13, 0  ;;  %v15498_v13 = vld [vmem:[#allocation35 + $0x58] sm:$0xff]  }
0x14ac   : > { %14235 = vmatpush3.bf16.msra.mxu1 %v15481_v57 }
0x14ad   : > { %14236 = vmatprep.subr.bf16.mxu1 %v17973_v0 }
0x14b0   : > { %14237 = vmatpush3.bf16.msra.mxu1 %v15482_v3 }
0x14b1   : > { %14242 = vmatprep.subr.bf16.mxu1 %v17973_v0 }
0x14b3   : > { %14239 = vmatmul.mubr.msk.bf16.vlgmr.msra.gmra.mrb[20].mxu1 %vm3794_vm11, %v4285_v7  ;;  %v15495_v7 = vld [vmem:[#allocation35 + $0x40] sm:$0xff]  }
0x14b4   : > { %14243 = vmatpush3.bf16.msra.mxu1 %v15483_v6  ;;  %14250 = vmatprep.mubr.msk.bf16.mxu1 %vm17975_vm2, %v17973_v0 }
0x14b5   : > { %14244 = vmatprep.subr.bf16.mxu1 %v17973_v0 }
0x14b8   : > { %14245 = vmatpush3.bf16.msra.mxu1 %v15484_v8 }
0x14b9   : > { %14246 = vmatprep.subr.bf16.mxu1 %v17973_v0 }
0x14bc   : > { %14247 = vmatpush3.bf16.msra.mxu1 %v15485_v9  ;;  %v15496_v9 = vld [vmem:[#allocation35 + $0x48] sm:$0xff]  }
0x14bd   : > { %14248 = vmatprep.subr.bf16.mxu1 %v17973_v0 }
0x14c0   : > { %14249 = vmatpush3.bf16.msra.mxu1 %v15486_v12 }
0x14c1   : > { %14290 = vmatprep.subr.bf16.mxu1 %v17973_v0 }
0x14c3   : > { %14251 = vmatmul.mubr.msk.bf16.vlgmr.msra.gmra.mrb[20].mxu1 %vm3794_vm11, %v4289_v14 }
0x14c4   : > { %14298 = vmatprep.mubr.msk.bf16.mxu1 %vm17975_vm2, %v17973_v0  ;;  %14291 = vmatpush3.bf16.msra.mxu1 %v15499_v33 }
0x14c5   : > { %14292 = vmatprep.subr.bf16.mxu1 %v17973_v0 }
0x14c8   : > { %14293 = vmatpush3.bf16.msra.mxu1 %v15500_v34 }
0x14c9   : > { %14294 = vmatprep.subr.bf16.mxu1 %v17973_v0 }
0x14cc   : > { %14295 = vmatpush3.bf16.msra.mxu1 %v15501_v35 }
0x14cd   : > { %14296 = vmatprep.subr.bf16.mxu1 %v17973_v0 }
0x1596   : > { %v4510_v15 = vpop.f32.mrb[20].mxu1 }
0x1597   : > { %v14252_v17 = vpop.f32.mrb[21].mxu1  ;;  %v4518_v18 = vsel %vm3794_vm11, %v4510_v15, 0.0 }
0x1598   : > { %4519 = vadd.xlane.f32.xlu0 %v4518_v18  ;;  %v4513_v20 = vpop.f32.mrb[22].mxu1 }
0x1599   : > { %v14253_v21 = vpop.f32.mrb[23].mxu1 }
0x1625   : > { %v4520_v58 = vpop.xlane.xlu0 %4519 }
0x1626   : > { %v4521_v59 = vrot.slane %v4520_v58, 4 }
0x1628   : > { %v4522_v60 = vadd.f32 %v4521_v59, %v4520_v58 }
0x162a   : > { %v4523_v63 = vrot.slane %v4522_v60, 2 }
0x162c   : > { %v4524_v24 = vadd.f32 %v4523_v63, %v4522_v60 }
0x162e   : > { %v4525_v25 = vrot.slane %v4524_v24, 1 }
0x1630   : > { %v4526_v26 = vadd.f32 %v4525_v25, %v4524_v24 }
0x1632   : > { %v4527_v28 = vmul.f32 0.001953125, %v4526_v26 }
0x1634   : > { %v4528_v29 = vsub.f32 %v4510_v15, %v4527_v28 }
0x1636   : > { %v4529_v30 = vmul.f32 %v4528_v29, %v4528_v29 }
0x1638   : > { %v4530_v31 = vsel %vm3794_vm11, %v4529_v30, 0.0 }
0x1639   : > { %4531 = vadd.xlane.f32.xlu1 %v4530_v31 }
0x16c6   : > { %v4532_v36 = vpop.xlane.xlu1 %4531 }
0x16c7   : > { %v4533_v37 = vrot.slane %v4532_v36, 4 }
0x16c9   : > { %v4534_v38 = vadd.f32 %v4533_v37, %v4532_v36  ;;  %v15502_v36 = vld [vmem:[#allocation43 + $0x38] sm:$0xff]  }
0x16ca   : > { %14297 = vmatpush3.bf16.msra.mxu1 %v15502_v36 }
0x16cb   : > { %v4535_v39 = vrot.slane %v4534_v38, 2  ;;  %14302 = vmatprep.subr.bf16.mxu1 %v17973_v0 }
0x16cd   : > { %v4536_v40 = vadd.f32 %v4535_v39, %v4534_v38 }
0x16cf   : > { %v4537_v41 = vrot.slane %v4536_v40, 1 }
0x16d1   : > { %v4538_v42 = vadd.f32 %v4537_v41, %v4536_v40 }
0x16d3   : > { %v4539_v43 = vmul.f32 0.001953125, %v4538_v42 }
0x16d5   : > { %v4540_v44 = vadd.f32 1e-05, %v4539_v43 }
0x16d7   : > { %16269 = vrsqrt.f32 %v4540_v44 }
0x16e1   : > { %v16270_v47 = vpop.eup %16269 }
0x16e2   : > { %v4542_v48 = vmul.f32 %v16270_v47, %v4528_v29 }
0x16e4   : > { %v4547_v50 = vmul.f32 %v4546_v46, %v4542_v48  ;;  %v4795_v46 = vld [vmem:[#allocation32] sm:$0x3] }
0x16e5   : > { %v4824_v47 = vrot.slane %v4795_v46, %v19215_v62 }
0x16e6   : > { %v4552_v52 = vadd.f32 %v4551_v49, %v4547_v50  ;;  %v4829_v50 = vrot.slane %v4795_v46, %v19218_v1 }
0x16e8   : > { %v4553_v54 = vmax.f32 %v4552_v52, 0.0 }
0x16ea   : > { %v4554_v55 = vpack.c.bf16 %v4553_v54, %v4553_v54 }
0x16ec   : > { %14263 = vmatmul.mubr.msk.bf16.vlgmr.msra.gmra.mrb[20].mxu0 %vm3794_vm11, %v4554_v55  ;;  %v4556_v57 = vshrl.u32 %v4554_v55, 16  ;;  %v4559_v5 = vshll.u32 %v4554_v55, 16 }
0x16ed   : > { %14267 = vmatpush3.bf16.msra.mxu0 %v15491_v23  ;;  %14274 = vmatprep.mubr.msk.bf16.mxu0 %vm17975_vm2, %v17973_v0 }
0x16ee   : > { %14268 = vmatprep.subr.bf16.mxu0 %v17973_v0  ;;  %v4558_v3 = vrot.slane %v4556_v57, 7  ;;  %v4564_v12 = vrot.slane %v4559_v5, 1 }
0x16f0   : > { %v4561_v6 = vor.u32 %v4559_v5, %v4558_v3  ;;  %v4565_v14 = vor.u32 %v4564_v12, %v4556_v57  ;;  %v15506_v5 = vld [vmem:[#allocation43 + $0x18] sm:$0xff]   ;;  %v15509_v12 = vld [vmem:[#allocation43 + $0x50] sm:$0xff]  }
0x16f1   : > { %14269 = vmatpush3.bf16.msra.mxu0 %v15492_v56  ;;  %v15503_v56 = vld [vmem:[#allocation43] sm:$0xff]  }
0x16f2   : > { %14270 = vmatprep.subr.bf16.mxu0 %v17973_v0  ;;  %v4563_v8 = vsel %vm19171_vm7, 0, %v4561_v6  ;;  %v4567_v15 = vsel %vm19385_vm14, %v4565_v14, 0  ;;  %v15510_v14 = vld [vmem:[#allocation43 + $0x58] sm:$0xff]  }
0x16f5   : > { %14271 = vmatpush3.bf16.msra.mxu0 %v15493_v2  ;;  %v15504_v2 = vld [vmem:[#allocation43 + $0x8] sm:$0xff]  }
0x16f6   : > { %14272 = vmatprep.subr.bf16.mxu0 %v17973_v0 }
0x16f9   : > { %14273 = vmatpush3.bf16.msra.mxu0 %v15494_v4  ;;  %v15505_v4 = vld [vmem:[#allocation43 + $0x10] sm:$0xff]  }
0x16fa   : > { %14278 = vmatprep.subr.bf16.mxu0 %v17973_v0 }
0x16fc   : > { %14275 = vmatmul.mubr.msk.bf16.vlgmr.msra.gmra.mrb[20].mxu0 %vm3794_vm11, %v4563_v8  ;;  %v15507_v8 = vld [vmem:[#allocation43 + $0x40] sm:$0xff]  }
0x16fd   : > { %14279 = vmatpush3.bf16.msra.mxu0 %v15495_v7  ;;  %14286 = vmatprep.mubr.msk.bf16.mxu0 %vm17975_vm2, %v17973_v0 }
0x16fe   : > { %14280 = vmatprep.subr.bf16.mxu0 %v17973_v0 }
0x1701   : > { %14281 = vmatpush3.bf16.msra.mxu0 %v15496_v9 }
0x1702   : > { %14282 = vmatprep.subr.bf16.mxu0 %v17973_v0 }
0x1705   : > { %14283 = vmatpush3.bf16.msra.mxu0 %v15497_v11  ;;  %v15508_v11 = vld [vmem:[#allocation43 + $0x48] sm:$0xff]  }
0x1706   : > { %14284 = vmatprep.subr.bf16.mxu0 %v17973_v0 }
0x1709   : > { %14285 = vmatpush3.bf16.msra.mxu0 %v15498_v13 }
0x170a   : > { %14326 = vmatprep.subr.mxu0 %v17973_v0 }
0x170c   : > { %14287 = vmatmul.mubr.msk.bf16.vlgmr.msra.gmra.mrb[20].mxu0 %vm3794_vm11, %v4567_v15 }
0x170d   : > { %14328 = vmatprep.mubr.msk.f32.mxu0 %vm17975_vm2, %v17973_v0 }
0x17df   : > { %v4788_v17 = vpop.f32.mrb[20].mxu0 }
0x17e0   : > { %v14288_v18 = vpop.f32.mrb[21].mxu0  ;;  %v4796_v20 = vsel %vm3794_vm11, %v4788_v17, 0.0 }
0x17e1   : > { %4797 = vadd.xlane.f32.xlu0 %v4796_v20  ;;  %v4791_v21 = vpop.f32.mrb[22].mxu0  ;;  %v15512_v20 = vld [vmem:[#allocation38 + $0x8] sm:$0xff]  }
0x17e2   : > { %v14289_v58 = vpop.f32.mrb[23].mxu0  ;;  %v15513_v21 = vld [vmem:[#allocation38 + $0x10] sm:$0xff]  }
0x17e3   : > { %v15514_v58 = vld [vmem:[#allocation38 + $0x18] sm:$0xff]  }
0x186e   : > { %v4798_v59 = vpop.xlane.xlu0 %4797 }
0x186f   : > { %v4799_v60 = vrot.slane %v4798_v59, 4 }
0x1871   : > { %v4800_v63 = vadd.f32 %v4799_v60, %v4798_v59 }
0x1873   : > { %v4801_v24 = vrot.slane %v4800_v63, 2 }
0x1875   : > { %v4802_v25 = vadd.f32 %v4801_v24, %v4800_v63 }
0x1877   : > { %v4803_v26 = vrot.slane %v4802_v25, 1 }
0x1879   : > { %v4804_v28 = vadd.f32 %v4803_v26, %v4802_v25 }
0x187b   : > { %v4805_v29 = vmul.f32 0.001953125, %v4804_v28 }
0x187d   : > { %v4806_v30 = vsub.f32 %v4788_v17, %v4805_v29  ;;  %v15511_v17 = vld [vmem:[#allocation38] sm:$0xff]  }
0x187f   : > { %v4807_v31 = vmul.f32 %v4806_v30, %v4806_v30 }
0x1881   : > { %v4808_v32 = vsel %vm3794_vm11, %v4807_v31, 0.0 }
0x1882   : > { %4809 = vadd.xlane.f32.xlu1 %v4808_v32 }
0x190f   : > { %v4810_v37 = vpop.xlane.xlu1 %4809 }
0x1910   : > { %v4811_v38 = vrot.slane %v4810_v37, 4 }
0x1912   : > { %v4812_v39 = vadd.f32 %v4811_v38, %v4810_v37 }
0x1914   : > { %v4813_v40 = vrot.slane %v4812_v39, 2 }
0x1916   : > { %v4814_v41 = vadd.f32 %v4813_v40, %v4812_v39 }
0x1918   : > { %v4815_v42 = vrot.slane %v4814_v41, 1 }
0x191a   : > { %v4816_v43 = vadd.f32 %v4815_v42, %v4814_v41 }
0x191c   : > { %v4817_v44 = vmul.f32 0.001953125, %v4816_v43 }
0x191e   : > { %v4818_v45 = vadd.f32 1e-05, %v4817_v44 }
0x1920   : > { %16271 = vrsqrt.f32 %v4818_v45 }
0x192a   : > { %v16272_v48 = vpop.eup %16271 }
0x192b   : > { %v4820_v49 = vmul.f32 %v16272_v48, %v4806_v30  ;;  %v15515_v48 = vld [vmem:[#allocation44 + $0x40] sm:$0xff]  }
0x192d   : > { %v4825_v52 = vmul.f32 %v4824_v47, %v4820_v49  ;;  %v15516_v49 = vld [vmem:[#allocation44 + $0x48] sm:$0xff]  }
0x192f   : > { %v4830_v54 = vadd.f32 %v4829_v50, %v4825_v52  ;;  %v15517_v50 = vld [vmem:[#allocation44 + $0x50] sm:$0xff]   ;;  %v15518_v52 = vld [vmem:[#allocation44 + $0x58] sm:$0xff]  }
0x1931   : > { %v4831_v23 = vadd.f32 %v4830_v54, %v19406_v53  ;;  %v15519_v54 = vld [vmem:[#allocation44 + $0x60] sm:$0xff]  }
0x1933   : > { %v4832_v55 = vmax.f32 %v4831_v23, 0.0  ;;  %v15520_v23 = vld [vmem:[#allocation44 + $0x68] sm:$0xff]  }
0x1935   : > { %v19469_v57 = vpack.c.bf16 %v4832_v55, %v4832_v55  ;;  %v15521_v55 = vld [vmem:[#allocation44 + $0x70] sm:$0xff]  }
0x1937   : > { %14299 = vmatmul.mubr.msk.bf16.vlgmr.msra.gmra.mrb[24].mxu1 %vm3794_vm11, %v19469_v57  ;;  %v4835_v3 = vshrl.u32 %v19469_v57, 16  ;;  %v4838_v6 = vshll.u32 %v19469_v57, 16 }
0x1938   : > { %14303 = vmatpush3.bf16.msra.mxu1 %v15503_v56  ;;  %14310 = vmatprep.mubr.msk.bf16.mxu1 %vm17975_vm2, %v17973_v0  ;;  %v15522_v56 = vld [vmem:[#allocation44 + $0x78] sm:$0xff]  }
0x1939   : > { %14304 = vmatprep.subr.bf16.mxu1 %v17973_v0  ;;  %v4837_v53 = vrot.slane %v4835_v3, 7  ;;  %v4843_v13 = vrot.slane %v4838_v6, 1 }
0x193b   : > { %v4840_v7 = vor.u32 %v4838_v6, %v4837_v53  ;;  %v4844_v15 = vor.u32 %v4843_v13, %v4835_v3 }
0x193c   : > { %14305 = vmatpush3.bf16.msra.mxu1 %v15504_v2 }
0x193d   : > { %14306 = vmatprep.subr.bf16.mxu1 %v17973_v0  ;;  %v19483_v9 = vsel %vm19171_vm7, 0, %v4840_v7  ;;  %v19495_v18 = vsel %vm19385_vm14, %v4844_v15, 0 }
0x1940   : > { %14307 = vmatpush3.bf16.msra.mxu1 %v15505_v4 }
0x1941   : > { %14308 = vmatprep.subr.bf16.mxu1 %v17973_v0 }
0x1944   : > { %14309 = vmatpush3.bf16.msra.mxu1 %v15506_v5 }
0x1945   : > { %14314 = vmatprep.subr.bf16.mxu1 %v17973_v0 }
0x1947   : > { %14311 = vmatmul.mubr.msk.bf16.vlgmr.msra.gmra.mrb[24].mxu1 %vm3794_vm11, %v19483_v9 }
0x1948   : > { %14315 = vmatpush3.bf16.msra.mxu1 %v15507_v8  ;;  %14322 = vmatprep.mubr.msk.bf16.mxu1 %vm17975_vm2, %v17973_v0 }
0x1949   : > { %14316 = vmatprep.subr.bf16.mxu1 %v17973_v0 }
0x194c   : > { %14317 = vmatpush3.bf16.msra.mxu1 %v15508_v11 }
0x194d   : > { %14318 = vmatprep.subr.bf16.mxu1 %v17973_v0 }
0x1950   : > { %14319 = vmatpush3.bf16.msra.mxu1 %v15509_v12 }
0x1951   : > { %14320 = vmatprep.subr.bf16.mxu1 %v17973_v0 }
0x1954   : > { %14321 = vmatpush3.bf16.msra.mxu1 %v15510_v14 }
0x1955   : > { %14391 = vmatprep.subr.bf16.mxu1 %v17973_v0 }
0x1957   : > { %14323 = vmatmul.mubr.msk.bf16.vlgmr.msra.gmra.mrb[24].mxu1 %vm3794_vm11, %v19495_v18 }
0x1958   : > { %14392 = vmatpush3.bf16.msra.mxu1 %v15511_v17  ;;  %14399 = vmatprep.mubr.msk.bf16.mxu1 %vm17975_vm2, %v17973_v0 }
0x1959   : > { %14393 = vmatprep.subr.bf16.mxu1 %v17973_v0 }
0x195c   : > { %14394 = vmatpush3.bf16.msra.mxu1 %v15512_v20 }
0x195d   : > { %14395 = vmatprep.subr.bf16.mxu1 %v17973_v0 }
0x1960   : > { %14396 = vmatpush3.bf16.msra.mxu1 %v15513_v21 }
0x1961   : > { %14397 = vmatprep.subr.bf16.mxu1 %v17973_v0 }
0x1964   : > { %14398 = vmatpush3.bf16.msra.mxu1 %v15514_v58 }
0x1965   : > { %14403 = vmatprep.subr.mxu1 %v17973_v0 }
0x1967   : > { %14400 = vmatmul.mubr.msk.bf16.vlgmr.msra.gmra.mrb[28].mxu1 %vm3794_vm11, %v19469_v57 }
0x1968   : > { %14405 = vmatprep.mubr.msk.f32.mxu1 %vm17975_vm2, %v17973_v0 }
0x1a2a   : > { %v5067_v59 = vpop.f32.mrb[24].mxu1 }
0x1a2b   : > { %v14324_v60 = vpop.f32.mrb[25].mxu1  ;;  %14327 = vmatpush3.msra.mxu0 %v5067_v59 }
0x1a2c   : > { %v5070_v63 = vpop.f32.mrb[26].mxu1  ;;  %14329 = vmatmul.mubr.msk.f32.vlgmr.msra.gmra.mrb[14].mxu0 %vm5075_vm15, %v5074_v51  ;;  %14331 = vmatprep.subr.bf16.mxu0 %v17973_v0 }
0x1a2d   : > { %v14325_v24 = vpop.f32.mrb[27].mxu1  ;;  %14347 = vmatprep.mubr.msk.bf16.mxu0 %vm17975_vm2, %v17973_v0  ;;  %14332 = vmatpush3.bf16.msra.mxu0 %v15515_v48 }
0x1a2e   : > { %14333 = vmatprep.subr.bf16.mxu0 %v17973_v0  ;;  %v5149_v24 = vld [vmem:[#allocation40] sm:$0x3] }
0x1a31   : > { %14334 = vmatpush3.bf16.msra.mxu0 %v15516_v49  ;;  %v15532_v49 = vld [vmem:[#allocation44 + $0x88] sm:$0xff]  }
0x1a32   : > { %14335 = vmatprep.subr.bf16.mxu0 %v17973_v0 }
0x1a35   : > { %14336 = vmatpush3.bf16.msra.mxu0 %v15517_v50  ;;  %v15533_v50 = vld [vmem:[#allocation44 + $0x90] sm:$0xff]  }
0x1a36   : > { %14337 = vmatprep.subr.bf16.mxu0 %v17973_v0 }
0x1a39   : > { %14338 = vmatpush3.bf16.msra.mxu0 %v15518_v52  ;;  %v15534_v52 = vld [vmem:[#allocation44 + $0x98] sm:$0xff]  }
0x1a3a   : > { %v5625_v25 = vpop.f32.mrb[28].mxu1  ;;  %14339 = vmatprep.subr.bf16.mxu0 %v17973_v0 }
0x1a3b   : > { %v14401_v26 = vpop.f32.mrb[29].mxu1  ;;  %14404 = vmatpush3.msra.mxu1 %v5625_v25 }
0x1a3c   : > { %v5628_v28 = vpop.f32.mrb[30].mxu1  ;;  %14406 = vmatmul.mubr.msk.f32.vlgmr.msra.gmra.mrb[18].mxu1 %vm5075_vm15, %v5074_v51  ;;  %14408 = vmatprep.subr.bf16.mxu1 %v17973_v0  ;;  %v5181_v26 = vrot.slane %v5149_v24, %v19215_v62 }
0x1a3d   : > { %v14402_v29 = vpop.f32.mrb[31].mxu1  ;;  %14424 = vmatprep.mubr.msk.bf16.mxu1 %vm17975_vm2, %v17973_v0  ;;  %14340 = vmatpush3.bf16.msra.mxu0 %v15519_v54  ;;  %v15535_v54 = vld [vmem:[#allocation44 + $0xa0] sm:$0xff]  }
0x1a3e   : > { %14341 = vmatprep.subr.bf16.mxu0 %v17973_v0 }
0x1a41   : > { %14342 = vmatpush3.bf16.msra.mxu0 %v15520_v23  ;;  %v15536_v23 = vld [vmem:[#allocation44 + $0xa8] sm:$0xff]  }
0x1a42   : > { %14343 = vmatprep.subr.bf16.mxu0 %v17973_v0 }
0x1a45   : > { %14344 = vmatpush3.bf16.msra.mxu0 %v15521_v55  ;;  %v15537_v55 = vld [vmem:[#allocation44 + $0xb0] sm:$0xff]  }
0x1a46   : > { %14345 = vmatprep.subr.bf16.mxu0 %v17973_v0 }
0x1a49   : > { %14346 = vmatpush3.bf16.msra.mxu0 %v15522_v56 }
0x1a4a   : > { %14351 = vmatprep.subr.bf16.mxu0 %v17973_v0 }
0x1aff   : > { %v5145_v30 = vpop.f32.mrb[14].mxu0 }
0x1b00   : > { %v14330_v31 = vpop.f32.mrb[15].mxu0  ;;  %v5151_v32 = vsel %vm3844_vm12, %v5145_v30, 0.0 }
0x1b01   : > { %5152 = vadd.xlane.f32.xlu0 %v5151_v32 }
0x1b0f   : > { %v5697_v33 = vpop.f32.mrb[18].mxu1 }
0x1b10   : > { %v14407_v34 = vpop.f32.mrb[19].mxu1  ;;  %v5702_v47 = vsel %vm3844_vm12, %v5697_v33, 0.0 }
0x1b8e   : > { %v5153_v35 = vpop.xlane.xlu0 %5152 }
0x1b8f   : > { %v5154_v36 = vsel %vm3844_vm12, %v5153_v35, 0.0  ;;  %v15523_v35 = vld [vmem:[#allocation44] sm:$0xff]  }
0x1b90   : > { %v5155_v37 = vrot.slane %v5154_v36, 4 }
0x1b92   : > { %v5156_v38 = vadd.f32 %v5155_v37, %v5154_v36  ;;  %v15525_v37 = vld [vmem:[#allocation44 + $0x10] sm:$0xff]  }
0x1b94   : > { %v5157_v39 = vrot.slane %v5156_v38, 2 }
0x1b96   : > { %v5158_v40 = vadd.f32 %v5157_v39, %v5156_v38  ;;  %v15526_v38 = vld [vmem:[#allocation44 + $0x18] sm:$0xff]   ;;  %v15527_v39 = vld [vmem:[#allocation44 + $0x20] sm:$0xff]  }
0x1b98   : > { %v5159_v41 = vrot.slane %v5158_v40, 1 }
0x1b9a   : > { %v5160_v42 = vadd.f32 %v5159_v41, %v5158_v40  ;;  %v15528_v40 = vld [vmem:[#allocation44 + $0x28] sm:$0xff]  }
0x1b9c   : > { %v5161_v43 = vmul.f32 0.001953125, %v5160_v42  ;;  %v15529_v42 = vld [vmem:[#allocation44 + $0x30] sm:$0xff]  }
0x1b9e   : > { %v5162_v44 = vsub.f32 %v5145_v30, %v5161_v43  ;;  %v5186_v30 = vrot.slane %v5149_v24, %v19218_v1 }
0x1ba0   : > { %v5163_v45 = vmul.f32 %v5162_v44, %v5162_v44 }
0x1ba2   : > { %v5164_v46 = vsel %vm3844_vm12, %v5163_v45, 0.0 }
0x1ba3   : > { %5165 = vadd.xlane.f32.xlu1 %v5164_v46 }
0x1ba7   : > { %5703 = vadd.xlane.f32.xlu1 %v5702_v47  ;;  %v15531_v47 = vld [vmem:[#allocation44 + $0x80] sm:$0xff]  }
0x1c30   : > { %v5166_v2 = vpop.xlane.xlu1 %5165 }
0x1c31   : > { %v5167_v3 = vsel %vm3844_vm12, %v5166_v2, 0.0  ;;  %v15538_v2 = vld [vmem:[#allocation44 + $0xb8] sm:$0xff]  }
0x1c32   : > { %v5168_v4 = vrot.slane %v5167_v3, 4 }
0x1c34   : > { %v5169_v53 = vadd.f32 %v5168_v4, %v5167_v3  ;;  %v5704_v5 = vpop.xlane.xlu1 %5703  ;;  %v15671_v4 = vld [vmem:[#allocation53 + $0x40] ss:$8 sps:$4 sm:$0xff]  }
0x1c35   : > { %v5705_v6 = vsel %vm3844_vm12, %v5704_v5, 0.0 }
0x1c36   : > { %v5170_v7 = vrot.slane %v5169_v53, 2  ;;  %v5706_v8 = vrot.slane %v5705_v6, 4 }
0x1c38   : > { %v5171_v11 = vadd.f32 %v5170_v7, %v5169_v53  ;;  %v5707_v12 = vadd.f32 %v5706_v8, %v5705_v6 }
0x1c3a   : > { %v5172_v13 = vrot.slane %v5171_v11, 1  ;;  %v5708_v14 = vrot.slane %v5707_v12, 2 }
0x1c3c   : > { %v5173_v15 = vadd.f32 %v5172_v13, %v5171_v11  ;;  %v5709_v17 = vadd.f32 %v5708_v14, %v5707_v12 }
0x1c3e   : > { %v5174_v20 = vmul.f32 0.001953125, %v5173_v15  ;;  %v5710_v21 = vrot.slane %v5709_v17, 1 }
0x1c40   : > { %v5175_v58 = vadd.f32 1e-05, %v5174_v20  ;;  %v5711_v51 = vadd.f32 %v5710_v21, %v5709_v17 }
0x1c42   : > { %16273 = vrsqrt.f32 %v5175_v58  ;;  %v5712_v59 = vmul.f32 0.001953125, %v5711_v51 }
0x1c44   : > { %v19531_v60 = vsub.f32 %v5697_v33, %v5712_v59  ;;  %v15524_v33 = vld [vmem:[#allocation44 + $0x8] sm:$0xff]  }
0x1c46   : > { %v5714_v63 = vmul.f32 %v19531_v60, %v19531_v60 }
0x1c48   : > { %v5715_v25 = vsel %vm3844_vm12, %v5714_v63, 0.0 }
0x1c49   : > { %5716 = vadd.xlane.f32.xlu1 %v5715_v25  ;;  %v15539_v25 = vld [vmem:[#allocation49 + $0x40] sm:$0xff]  }
0x1c4a   : > { %14409 = vmatpush3.bf16.msra.mxu1 %v15539_v25 }
0x1c4b   : > { %14410 = vmatprep.subr.bf16.mxu1 %v17973_v0 }
0x1c4c   : > { %v16274_v28 = vpop.eup %16273 }
0x1c4d   : > { %v5177_v29 = vmul.f32 %v16274_v28, %v5162_v44  ;;  %v15530_v44 = vld [vmem:[#allocation44 + $0x38] sm:$0xff]  }
0x1c4e   : > { %v15541_v28 = vld [vmem:[#allocation49 + $0x50] sm:$0xff]  }
0x1c4f   : > { %v5182_v31 = vmul.f32 %v5181_v26, %v5177_v29  ;;  %v15540_v26 = vld [vmem:[#allocation49 + $0x48] sm:$0xff]   ;;  %v15542_v29 = vld [vmem:[#allocation49 + $0x58] sm:$0xff]  }
0x1c50   : > { %14411 = vmatpush3.bf16.msra.mxu1 %v15540_v26  ;;  %v15553_v26 = vld [vmem:[#allocation49 + $0x30] sm:$0xff]  }
0x1c51   : > { %v5187_v32 = vadd.f32 %v5186_v30, %v5182_v31  ;;  %14412 = vmatprep.subr.bf16.mxu1 %v17973_v0  ;;  %v15543_v30 = vld [vmem:[#allocation49 + $0x60] sm:$0xff]   ;;  %v15544_v31 = vld [vmem:[#allocation49 + $0x68] sm:$0xff]  }
0x1c53   : > { %v5188_v34 = vmax.f32 %v5187_v32, 0.0  ;;  %v15545_v32 = vld [vmem:[#allocation49 + $0x70] sm:$0xff]  }
0x1c54   : > { %14413 = vmatpush3.bf16.msra.mxu1 %v15541_v28 }
0x1c55   : > { %v5189_v36 = vpack.c.bf16 %v5188_v34, %v5188_v34  ;;  %14414 = vmatprep.subr.bf16.mxu1 %v17973_v0  ;;  %v15546_v34 = vld [vmem:[#allocation49 + $0x78] sm:$0xff]  }
0x1c57   : > { %14348 = vmatmul.mubr.bf16.vlgmr.msra.gmra.mrb[24].mxu0 %v5189_v36  ;;  %v5191_v41 = vshrl.u32 %v5189_v36, 16  ;;  %v5194_v45 = vshll.u32 %v5189_v36, 16 }
0x1c58   : > { %14352 = vmatpush3.bf16.msra.mxu0 %v15523_v35  ;;  %14367 = vmatprep.mubr.msk.bf16.mxu0 %vm17975_vm2, %v17973_v0 }
0x1c59   : > { %14353 = vmatprep.subr.bf16.mxu0 %v17973_v0  ;;  %v5193_v43 = vrot.slane %v5191_v41, 7  ;;  %v5199_v56 = vrot.slane %v5194_v45, 1  ;;  %14415 = vmatpush3.bf16.msra.mxu1 %v15542_v29  ;;  %v15554_v29 = vld [vmem:[#allocation49 + $0x38] sm:$0xff]  }
0x1c5a   : > { %14416 = vmatprep.subr.bf16.mxu1 %v17973_v0 }
0x1c5b   : > { %v5196_v46 = vor.u32 %v5194_v45, %v5193_v43  ;;  %v5200_v3 = vor.u32 %v5199_v56, %v5191_v41  ;;  %v5701_v56 = vld [vmem:[#allocation37] sm:$0x3] }
0x1c5c   : > { %14354 = vmatpush3.bf16.msra.mxu0 %v15524_v33 }
0x1c5d   : > { %14355 = vmatprep.subr.bf16.mxu0 %v17973_v0  ;;  %v5198_v48 = vsel %vm19171_vm7, 0, %v5196_v46  ;;  %v5205_v53 = vsel %vm19560_vm3, %v5200_v3, 0  ;;  %14417 = vmatpush3.bf16.msra.mxu1 %v15543_v30 }
0x1c5e   : > { %14418 = vmatprep.subr.bf16.mxu1 %v17973_v0 }
0x1c60   : > { %14356 = vmatpush3.bf16.msra.mxu0 %v15525_v37 }
0x1c61   : > { %14357 = vmatprep.subr.bf16.mxu0 %v17973_v0  ;;  %14419 = vmatpush3.bf16.msra.mxu1 %v15544_v31 }
0x1c62   : > { %14420 = vmatprep.subr.bf16.mxu1 %v17973_v0 }
0x1c64   : > { %14358 = vmatpush3.bf16.msra.mxu0 %v15526_v38 }
0x1c65   : > { %14359 = vmatprep.subr.bf16.mxu0 %v17973_v0  ;;  %14421 = vmatpush3.bf16.msra.mxu1 %v15545_v32  ;;  %v15555_v32 = vld [vmem:[#allocation49 + $0x80] sm:$0xff]  }
0x1c66   : > { %14422 = vmatprep.subr.bf16.mxu1 %v17973_v0 }
0x1c68   : > { %14360 = vmatpush3.bf16.msra.mxu0 %v15527_v39 }
0x1c69   : > { %14361 = vmatprep.subr.bf16.mxu0 %v17973_v0  ;;  %14423 = vmatpush3.bf16.msra.mxu1 %v15546_v34 }
0x1c6a   : > { %14428 = vmatprep.subr.bf16.mxu1 %v17973_v0 }
0x1c6c   : > { %14362 = vmatpush3.bf16.msra.mxu0 %v15528_v40 }
0x1c6d   : > { %14363 = vmatprep.subr.bf16.mxu0 %v17973_v0 }
0x1c70   : > { %14364 = vmatpush3.bf16.msra.mxu0 %v15529_v42 }
0x1c71   : > { %14365 = vmatprep.subr.bf16.mxu0 %v17973_v0 }
0x1c74   : > { %14366 = vmatpush3.bf16.msra.mxu0 %v15530_v44 }
0x1c75   : > { %14371 = vmatprep.subr.bf16.mxu0 %v17973_v0 }
0x1c77   : > { %14368 = vmatmul.mubr.bf16.vlgmr.msra.gmra.mrb[24].mxu0 %v5198_v48 }
0x1c78   : > { %14372 = vmatpush3.bf16.msra.mxu0 %v15531_v47  ;;  %14387 = vmatprep.mubr.msk.bf16.mxu0 %vm17975_vm2, %v17973_v0 }
0x1c79   : > { %14373 = vmatprep.subr.bf16.mxu0 %v17973_v0 }
0x1c7c   : > { %14374 = vmatpush3.bf16.msra.mxu0 %v15532_v49 }
0x1c7d   : > { %14375 = vmatprep.subr.bf16.mxu0 %v17973_v0 }
0x1c80   : > { %14376 = vmatpush3.bf16.msra.mxu0 %v15533_v50 }
0x1c81   : > { %14377 = vmatprep.subr.bf16.mxu0 %v17973_v0 }
0x1c84   : > { %14378 = vmatpush3.bf16.msra.mxu0 %v15534_v52 }
0x1c85   : > { %14379 = vmatprep.subr.bf16.mxu0 %v17973_v0 }
0x1c88   : > { %14380 = vmatpush3.bf16.msra.mxu0 %v15535_v54 }
0x1c89   : > { %14381 = vmatprep.subr.bf16.mxu0 %v17973_v0 }
0x1c8c   : > { %14382 = vmatpush3.bf16.msra.mxu0 %v15536_v23 }
0x1c8d   : > { %14383 = vmatprep.subr.bf16.mxu0 %v17973_v0 }
0x1c90   : > { %14384 = vmatpush3.bf16.msra.mxu0 %v15537_v55 }
0x1c91   : > { %14385 = vmatprep.subr.bf16.mxu0 %v17973_v0 }
0x1c94   : > { %14386 = vmatpush3.bf16.msra.mxu0 %v15538_v2  ;;  %v5521_v2 = vld [vmem:[#allocation41] sm:$0x3] }
0x1c95   : > { %14468 = vmatprep.subr.bf16.mxu0 %v17973_v0 }
0x1c97   : > { %14388 = vmatmul.mubr.bf16.vlgmr.msra.gmra.mrb[24].mxu0 %v5205_v53  ;;  %v5732_v53 = vrot.slane %v5701_v56, %v19215_v62 }
0x1c98   : > { %14484 = vmatprep.mubr.msk.bf16.mxu0 %vm17975_vm2, %v17973_v0 }
0x1cd6   : > { %v5717_v35 = vpop.xlane.xlu1 %5716 }
0x1cd7   : > { %v5718_v36 = vsel %vm3844_vm12, %v5717_v35, 0.0  ;;  %v15556_v35 = vld [vmem:[#allocation49 + $0x88] sm:$0xff]  }
0x1cd8   : > { %v5719_v33 = vrot.slane %v5718_v36, 4 }
0x1cda   : > { %v5720_v37 = vadd.f32 %v5719_v33, %v5718_v36  ;;  %v15557_v36 = vld [vmem:[#allocation49 + $0x90] sm:$0xff]   ;;  %v15558_v33 = vld [vmem:[#allocation49 + $0x98] sm:$0xff]  }
0x1cdc   : > { %v5721_v38 = vrot.slane %v5720_v37, 2 }
0x1cde   : > { %v5722_v39 = vadd.f32 %v5721_v38, %v5720_v37  ;;  %v15559_v37 = vld [vmem:[#allocation49 + $0xa0] sm:$0xff]   ;;  %v15560_v38 = vld [vmem:[#allocation49 + $0xa8] sm:$0xff]  }
0x1ce0   : > { %v5723_v40 = vrot.slane %v5722_v39, 1 }
0x1ce2   : > { %v5724_v41 = vadd.f32 %v5723_v40, %v5722_v39  ;;  %v15561_v39 = vld [vmem:[#allocation49 + $0xb0] sm:$0xff]  }
0x1ce4   : > { %v5725_v45 = vmul.f32 0.001953125, %v5724_v41  ;;  %v15562_v41 = vld [vmem:[#allocation49 + $0xb8] sm:$0xff]  }
0x1ce6   : > { %v5726_v48 = vadd.f32 1e-05, %v5725_v45 }
0x1ce8   : > { %16275 = vrsqrt.f32 %v5726_v48 }
0x1cf2   : > { %v16276_v55 = vpop.eup %16275 }
0x1cf3   : > { %v5728_v3 = vmul.f32 %v16276_v55, %v19531_v60 }
0x1d6a   : > { %v5514_v5 = vpop.f32.mrb[24].mxu0 }
0x1d6b   : > { %v14389_v6 = vpop.f32.mrb[25].mxu0  ;;  %v5522_v7 = vsel %vm3844_vm12, %v5514_v5, 0.0 }
0x1d6c   : > { %5523 = vadd.xlane.f32.xlu0 %v5522_v7  ;;  %v5517_v8 = vpop.f32.mrb[26].mxu0 }
0x1d6d   : > { %v14390_v11 = vpop.f32.mrb[27].mxu0  ;;  %v5557_v8 = vrot.slane %v5521_v2, %v19218_v1 }
0x1d6e   : > { %v5733_v11 = vmul.f32 %v5732_v53, %v5728_v3 }
0x1df9   : > { %v5524_v12 = vpop.xlane.xlu0 %5523 }
0x1dfa   : > { %v5525_v13 = vsel %vm3844_vm12, %v5524_v12, 0.0  ;;  %v5737_v12 = vrot.slane %v5701_v56, %v19218_v1 }
0x1dfb   : > { %v5526_v14 = vrot.slane %v5525_v13, 4 }
0x1dfd   : > { %v5527_v15 = vadd.f32 %v5526_v14, %v5525_v13 }
0x1dff   : > { %v5528_v17 = vrot.slane %v5527_v15, 2 }
0x1e01   : > { %v5529_v20 = vadd.f32 %v5528_v17, %v5527_v15  ;;  %v5738_v15 = vadd.f32 %v5737_v12, %v5733_v11  ;;  %v15565_v11 = vld [vmem:[#allocation50 + $0x50] sm:$0xff]   ;;  %v15566_v12 = vld [vmem:[#allocation50 + $0x58] sm:$0xff]  }
0x1e03   : > { %v5530_v21 = vrot.slane %v5529_v20, 1 }
0x1e05   : > { %v5531_v58 = vadd.f32 %v5530_v21, %v5529_v20  ;;  %v15547_v21 = vld [vmem:[#allocation49] sm:$0xff]  }
0x1e07   : > { %v5532_v51 = vmul.f32 0.001953125, %v5531_v58  ;;  %v15548_v58 = vld [vmem:[#allocation49 + $0x8] sm:$0xff]  }
0x1e09   : > { %v5533_v59 = vsub.f32 %v5514_v5, %v5532_v51  ;;  %v5552_v5 = vrot.slane %v5521_v2, %v19215_v62  ;;  %v15549_v51 = vld [vmem:[#allocation49 + $0x10] sm:$0xff]  }
0x1e0b   : > { %v5534_v63 = vmul.f32 %v5533_v59, %v5533_v59 }
0x1e0d   : > { %v5535_v24 = vsel %vm3844_vm12, %v5534_v63, 0.0  ;;  %v15551_v63 = vld [vmem:[#allocation49 + $0x20] sm:$0xff]  }
0x1e0e   : > { %5536 = vadd.xlane.f32.xlu0 %v5535_v24  ;;  %v15552_v24 = vld [vmem:[#allocation49 + $0x28] sm:$0xff]  }
0x1e9b   : > { %v5537_v42 = vpop.xlane.xlu0 %5536 }
0x1e9c   : > { %v5538_v43 = vsel %vm3844_vm12, %v5537_v42, 0.0 }
0x1e9d   : > { %v5539_v44 = vrot.slane %v5538_v43, 4 }
0x1e9f   : > { %v5540_v46 = vadd.f32 %v5539_v44, %v5538_v43 }
0x1ea1   : > { %v5541_v47 = vrot.slane %v5540_v46, 2 }
0x1ea3   : > { %v5542_v49 = vadd.f32 %v5541_v47, %v5540_v46 }
0x1ea5   : > { %v5543_v50 = vrot.slane %v5542_v49, 1 }
0x1ea7   : > { %v5544_v52 = vadd.f32 %v5543_v50, %v5542_v49 }
0x1ea9   : > { %v5545_v54 = vmul.f32 0.001953125, %v5544_v52 }
0x1eab   : > { %v5546_v23 = vadd.f32 1e-05, %v5545_v54 }
0x1ead   : > { %16277 = vrsqrt.f32 %v5546_v23 }
0x1eb7   : > { %v16278_v6 = vpop.eup %16277 }
0x1eb8   : > { %v5548_v7 = vmul.f32 %v16278_v6, %v5533_v59  ;;  %v15550_v59 = vld [vmem:[#allocation49 + $0x18] sm:$0xff]  }
0x1eba   : > { %v5553_v13 = vmul.f32 %v5552_v5, %v5548_v7  ;;  %v15563_v7 = vld [vmem:[#allocation50 + $0x40] sm:$0xff]  }
0x1ebb   : > { %14469 = vmatpush3.bf16.msra.mxu0 %v15563_v7 }
0x1ebc   : > { %v5558_v14 = vadd.f32 %v5557_v8, %v5553_v13  ;;  %14470 = vmatprep.subr.bf16.mxu0 %v17973_v0  ;;  %v15564_v8 = vld [vmem:[#allocation50 + $0x48] sm:$0xff]   ;;  %v15567_v13 = vld [vmem:[#allocation50 + $0x60] sm:$0xff]  }
0x1ebe   : > { %v5739_v17 = vadd.f32 %v5738_v15, %v5558_v14  ;;  %v15568_v14 = vld [vmem:[#allocation50 + $0x68] sm:$0xff]   ;;  %v15569_v15 = vld [vmem:[#allocation50 + $0x70] sm:$0xff]  }
0x1ebf   : > { %14471 = vmatpush3.bf16.msra.mxu0 %v15564_v8 }
0x1ec0   : > { %v19587_v20 = vmax.f32 %v5739_v17, 0.0  ;;  %14472 = vmatprep.subr.bf16.mxu0 %v17973_v0  ;;  %v15570_v17 = vld [vmem:[#allocation50 + $0x78] sm:$0xff]  }
0x1ec2   : > { %v5741_v60 = vpack.c.bf16 %v19587_v20, %v19587_v20 }
0x1ec3   : > { %14473 = vmatpush3.bf16.msra.mxu0 %v15565_v11 }
0x1ec4   : > { %14425 = vmatmul.mubr.bf16.vlgmr.msra.gmra.mrb[32].mxu1 %v5741_v60  ;;  %v5743_v25 = vshrl.u32 %v5741_v60, 16  ;;  %v5746_v30 = vshll.u32 %v5741_v60, 16  ;;  %14474 = vmatprep.subr.bf16.mxu0 %v17973_v0 }
0x1ec5   : > { %14429 = vmatpush3.bf16.msra.mxu1 %v15547_v21  ;;  %14444 = vmatprep.mubr.msk.bf16.mxu1 %vm17975_vm2, %v17973_v0 }
0x1ec6   : > { %14430 = vmatprep.subr.bf16.mxu1 %v17973_v0  ;;  %v5745_v28 = vrot.slane %v5743_v25, 7  ;;  %v5751_v40 = vrot.slane %v5746_v30, 1 }
0x1ec7   : > { %14475 = vmatpush3.bf16.msra.mxu0 %v15566_v12 }
0x1ec8   : > { %v5748_v31 = vor.u32 %v5746_v30, %v5745_v28  ;;  %v5752_v42 = vor.u32 %v5751_v40, %v5743_v25  ;;  %14476 = vmatprep.subr.bf16.mxu0 %v17973_v0  ;;  %v15573_v40 = vld [vmem:[#allocation50 + $0x10] sm:$0xff]  }
0x1ec9   : > { %14431 = vmatpush3.bf16.msra.mxu1 %v15548_v58 }
0x1eca   : > { %14432 = vmatprep.subr.bf16.mxu1 %v17973_v0  ;;  %v5750_v34 = vsel %vm19171_vm7, 0, %v5748_v31  ;;  %v5754_v43 = vsel %vm19560_vm3, %v5752_v42, 0  ;;  %v15575_v42 = vld [vmem:[#allocation50 + $0x20] sm:$0xff]  }
0x1ecb   : > { %14477 = vmatpush3.bf16.msra.mxu0 %v15567_v13 }
0x1ecc   : > { %14478 = vmatprep.subr.bf16.mxu0 %v17973_v0 }
0x1ecd   : > { %14433 = vmatpush3.bf16.msra.mxu1 %v15549_v51 }
0x1ece   : > { %14434 = vmatprep.subr.bf16.mxu1 %v17973_v0 }
0x1ecf   : > { %14479 = vmatpush3.bf16.msra.mxu0 %v15568_v14 }
0x1ed0   : > { %14480 = vmatprep.subr.bf16.mxu0 %v17973_v0 }
0x1ed1   : > { %14435 = vmatpush3.bf16.msra.mxu1 %v15550_v59 }
0x1ed2   : > { %14436 = vmatprep.subr.bf16.mxu1 %v17973_v0 }
0x1ed3   : > { %14481 = vmatpush3.bf16.msra.mxu0 %v15569_v15 }
0x1ed4   : > { %14482 = vmatprep.subr.bf16.mxu0 %v17973_v0 }
0x1ed5   : > { %14437 = vmatpush3.bf16.msra.mxu1 %v15551_v63 }
0x1ed6   : > { %14438 = vmatprep.subr.bf16.mxu1 %v17973_v0 }
0x1ed7   : > { %14483 = vmatpush3.bf16.msra.mxu0 %v15570_v17 }
0x1ed8   : > { %14488 = vmatprep.subr.bf16.mxu0 %v17973_v0 }
0x1ed9   : > { %14439 = vmatpush3.bf16.msra.mxu1 %v15552_v24 }
0x1eda   : > { %14440 = vmatprep.subr.bf16.mxu1 %v17973_v0 }
0x1edd   : > { %14441 = vmatpush3.bf16.msra.mxu1 %v15553_v26 }
0x1ede   : > { %14442 = vmatprep.subr.bf16.mxu1 %v17973_v0 }
0x1ee1   : > { %14443 = vmatpush3.bf16.msra.mxu1 %v15554_v29  ;;  %v6070_v29 = vld [vmem:[#allocation46] sm:$0x3] }
0x1ee2   : > { %14448 = vmatprep.subr.bf16.mxu1 %v17973_v0  ;;  %v6101_v30 = vrot.slane %v6070_v29, %v19215_v62 }
0x1ee4   : > { %14445 = vmatmul.mubr.bf16.vlgmr.msra.gmra.mrb[32].mxu1 %v5750_v34  ;;  %v6106_v34 = vrot.slane %v6070_v29, %v19218_v1  ;;  %v15589_v29 = vld [vmem:[#allocation58 + $0x84] ss:$8 sps:$4 sm:$0xff]  }
0x1ee5   : > { %14449 = vmatpush3.bf16.msra.mxu1 %v15555_v32  ;;  %14464 = vmatprep.mubr.msk.bf16.mxu1 %vm17975_vm2, %v17973_v0 }
0x1ee6   : > { %14450 = vmatprep.subr.bf16.mxu1 %v17973_v0 }
0x1ee9   : > { %14451 = vmatpush3.bf16.msra.mxu1 %v15556_v35 }
0x1eea   : > { %14452 = vmatprep.subr.bf16.mxu1 %v17973_v0 }
0x1eed   : > { %14453 = vmatpush3.bf16.msra.mxu1 %v15557_v36 }
0x1eee   : > { %14454 = vmatprep.subr.bf16.mxu1 %v17973_v0 }
0x1ef1   : > { %14455 = vmatpush3.bf16.msra.mxu1 %v15558_v33 }
0x1ef2   : > { %14456 = vmatprep.subr.bf16.mxu1 %v17973_v0 }
0x1ef5   : > { %14457 = vmatpush3.bf16.msra.mxu1 %v15559_v37  ;;  %v15571_v37 = vld [vmem:[#allocation50] sm:$0xff]  }
0x1ef6   : > { %14458 = vmatprep.subr.bf16.mxu1 %v17973_v0 }
0x1ef9   : > { %14459 = vmatpush3.bf16.msra.mxu1 %v15560_v38 }
0x1efa   : > { %14460 = vmatprep.subr.bf16.mxu1 %v17973_v0 }
0x1efd   : > { %14461 = vmatpush3.bf16.msra.mxu1 %v15561_v39  ;;  %v15572_v39 = vld [vmem:[#allocation50 + $0x8] sm:$0xff]  }
0x1efe   : > { %14462 = vmatprep.subr.bf16.mxu1 %v17973_v0 }
0x1f01   : > { %14463 = vmatpush3.bf16.msra.mxu1 %v15562_v41  ;;  %v15574_v41 = vld [vmem:[#allocation50 + $0x18] sm:$0xff]  }
0x1f02   : > { %6605 = vmatprep.subr.bf16.mxu1 %v15589_v29  ;;  %v15629_v29 = vld [vmem:[#allocation58 + $0x60] ss:$8 sps:$4 sm:$0xff]  }
0x1f04   : > { %14465 = vmatmul.mubr.bf16.vlgmr.msra.gmra.mrb[32].mxu1 %v5754_v43  ;;  %v15576_v43 = vld [vmem:[#allocation50 + $0x28] sm:$0xff]  }
0x1fd7   : > { %v6063_v44 = vpop.f32.mrb[32].mxu1 }
0x1fd8   : > { %v14466_v45 = vpop.f32.mrb[33].mxu1  ;;  %v6071_v46 = vsel %vm3844_vm12, %v6063_v44, 0.0 }
0x1fd9   : > { %6072 = vadd.xlane.f32.xlu0 %v6071_v46  ;;  %v6066_v47 = vpop.f32.mrb[34].mxu1  ;;  %v15577_v45 = vld [vmem:[#allocation50 + $0x30] sm:$0xff]  }
0x1fda   : > { %v14467_v48 = vpop.f32.mrb[35].mxu1  ;;  %v15578_v47 = vld [vmem:[#allocation50 + $0x38] sm:$0xff]  }
0x2066   : > { %v6073_v49 = vpop.xlane.xlu0 %6072 }
0x2067   : > { %v6074_v50 = vsel %vm3844_vm12, %v6073_v49, 0.0 }
0x2068   : > { %v6075_v52 = vrot.slane %v6074_v50, 4 }
0x206a   : > { %v6076_v54 = vadd.f32 %v6075_v52, %v6074_v50  ;;  %v15579_v50 = vld [vmem:[#allocation50 + $0x80] sm:$0xff]  }
0x206c   : > { %v6077_v23 = vrot.slane %v6076_v54, 2 }
0x206e   : > { %v6078_v55 = vadd.f32 %v6077_v23, %v6076_v54  ;;  %v15580_v54 = vld [vmem:[#allocation50 + $0x88] sm:$0xff]   ;;  %v15581_v23 = vld [vmem:[#allocation50 + $0x90] sm:$0xff]  }
0x2070   : > { %v6079_v56 = vrot.slane %v6078_v55, 1 }
0x2072   : > { %v6080_v2 = vadd.f32 %v6079_v56, %v6078_v55  ;;  %v15582_v55 = vld [vmem:[#allocation50 + $0x98] sm:$0xff]   ;;  %v15583_v56 = vld [vmem:[#allocation50 + $0xa0] sm:$0xff]  }
0x2074   : > { %v6081_v3 = vmul.f32 0.001953125, %v6080_v2  ;;  %v15584_v2 = vld [vmem:[#allocation50 + $0xa8] sm:$0xff]  }
0x2076   : > { %v6082_v53 = vsub.f32 %v6063_v44, %v6081_v3  ;;  %v15585_v3 = vld [vmem:[#allocation50 + $0xb0] sm:$0xff]  }
0x2078   : > { %v6083_v5 = vmul.f32 %v6082_v53, %v6082_v53 }
0x207a   : > { %v6084_v6 = vsel %vm3844_vm12, %v6083_v5, 0.0  ;;  %v15586_v5 = vld [vmem:[#allocation50 + $0xb8] sm:$0xff]  }
0x207b   : > { %6085 = vadd.xlane.f32.xlu1 %v6084_v6 }
0x2108   : > { %v6086_v21 = vpop.xlane.xlu1 %6085 }
0x2109   : > { %v6087_v60 = vsel %vm3844_vm12, %v6086_v21, 0.0 }
0x210a   : > { %v6088_v58 = vrot.slane %v6087_v60, 4 }
0x210c   : > { %v6089_v51 = vadd.f32 %v6088_v58, %v6087_v60 }
0x210e   : > { %v6090_v59 = vrot.slane %v6089_v51, 2 }
0x2110   : > { %v6091_v63 = vadd.f32 %v6090_v59, %v6089_v51 }
0x2112   : > { %v6092_v24 = vrot.slane %v6091_v63, 1 }
0x2114   : > { %v6093_v25 = vadd.f32 %v6092_v24, %v6091_v63 }
0x2116   : > { %v6094_v26 = vmul.f32 0.001953125, %v6093_v25 }
0x2118   : > { %v6095_v28 = vadd.f32 1e-05, %v6094_v26 }
0x211a   : > { %16279 = vrsqrt.f32 %v6095_v28 }
0x2124   : > { %v16280_v31 = vpop.eup %16279 }
0x2125   : > { %v6097_v32 = vmul.f32 %v16280_v31, %v6082_v53  ;;  %v15592_v31 = vld [vmem:[#allocation58 + $0x94] ss:$8 sps:$4 sm:$0xff]  }
0x2127   : > { %v6102_v35 = vmul.f32 %v6101_v30, %v6097_v32  ;;  %v15587_v30 = vld [vmem:[#allocation58 + $0x80] ss:$8 sps:$4 sm:$0xff]   ;;  %v15590_v32 = vld [vmem:[#allocation58 + $0x90] ss:$8 sps:$4 sm:$0xff]  }
0x2128   : > { %6606 = vmatpush1.bf16.msra.mxu1 %v15587_v30  ;;  %v15634_v30 = vld [vmem:[#allocation58 + $0x74] ss:$8 sps:$4 sm:$0xff]  }
0x2129   : > { %v6107_v36 = vadd.f32 %v6106_v34, %v6102_v35  ;;  %6607 = vmatprep.subr.bf16.mxu1 %v15592_v31  ;;  %v15595_v34 = vld [vmem:[#allocation58 + $0xa4] ss:$8 sps:$4 sm:$0xff]   ;;  %v15593_v35 = vld [vmem:[#allocation58 + $0xa0] ss:$8 sps:$4 sm:$0xff]  }
0x212b   : > { %v6108_v33 = vmax.f32 %v6107_v36, 0.0  ;;  %v15598_v36 = vld [vmem:[#allocation58 + $0xb4] ss:$8 sps:$4 sm:$0xff]  }
0x212c   : > { %6608 = vmatpush1.bf16.msra.mxu1 %v15590_v32  ;;  %v15632_v32 = vld [vmem:[#allocation58 + $0x70] ss:$8 sps:$4 sm:$0xff]  }
0x212d   : > { %v6109_v38 = vpack.c.bf16 %v6108_v33, %v6108_v33  ;;  %6609 = vmatprep.subr.bf16.mxu1 %v15595_v34  ;;  %v15596_v33 = vld [vmem:[#allocation58 + $0xb0] ss:$8 sps:$4 sm:$0xff]  }
0x212f   : > { %14485 = vmatmul.mubr.bf16.vlgmr.msra.gmra.mrb[28].mxu0 %v6109_v38  ;;  %v6111_v44 = vshrl.u32 %v6109_v38, 16  ;;  %v6114_v48 = vshll.u32 %v6109_v38, 16  ;;  %v15599_v38 = vld [vmem:[#allocation58 + $0xc0] ss:$8 sps:$4 sm:$0xff]  }
0x2130   : > { %14489 = vmatpush3.bf16.msra.mxu0 %v15571_v37  ;;  %14504 = vmatprep.mubr.msk.bf16.mxu0 %vm17975_vm2, %v17973_v0  ;;  %v15601_v37 = vld [vmem:[#allocation58 + $0xc4] ss:$8 sps:$4 sm:$0xff]  }
0x2131   : > { %14490 = vmatprep.subr.bf16.mxu0 %v17973_v0  ;;  %v6113_v46 = vrot.slane %v6111_v44, 7  ;;  %v6119_v53 = vrot.slane %v6114_v48, 1  ;;  %6610 = vmatpush1.bf16.msra.mxu1 %v15593_v35  ;;  %v15637_v35 = vld [vmem:[#allocation58 + $0x104] ss:$8 sps:$4 sm:$0xff]  }
0x2132   : > { %6611 = vmatprep.subr.bf16.mxu1 %v15598_v36 }
0x2133   : > { %v6116_v49 = vor.u32 %v6114_v48, %v6113_v46  ;;  %v6120_v6 = vor.u32 %v6119_v53, %v6111_v44  ;;  %v17977_v44 = vmov 0   ;;  %v15613_v46 = vld [vmem:[#allocation58 + $0x4] ss:$8 sps:$4 sm:$0xff]  }
0x2134   : > { %14491 = vmatpush3.bf16.msra.mxu0 %v15572_v39  ;;  %v15604_v39 = vld [vmem:[#allocation58 + $0xd4] ss:$8 sps:$4 sm:$0xff]   ;;  %6637 = vmatprep.mubr.bf16.mxu1 %v17977_v44 }
0x2135   : > { %14492 = vmatprep.subr.bf16.mxu0 %v17973_v0  ;;  %v6118_v52 = vsel %vm19171_vm7, 0, %v6116_v49  ;;  %v6122_v7 = vsel %vm19560_vm3, %v6120_v6, 0  ;;  %6612 = vmatpush1.bf16.msra.mxu1 %v15596_v33  ;;  %v15635_v33 = vld [vmem:[#allocation58 + $0x100] ss:$8 sps:$4 sm:$0xff]  }
0x2136   : > { %6613 = vmatprep.subr.bf16.mxu1 %v15601_v37  ;;  %v15640_v37 = vld [vmem:[#allocation58 + $0x114] ss:$8 sps:$4 sm:$0xff]  }
0x2138   : > { %14493 = vmatpush3.bf16.msra.mxu0 %v15573_v40  ;;  %v15602_v40 = vld [vmem:[#allocation58 + $0xd0] ss:$8 sps:$4 sm:$0xff]  }
0x2139   : > { %14494 = vmatprep.subr.bf16.mxu0 %v17973_v0  ;;  %6614 = vmatpush1.bf16.msra.mxu1 %v15599_v38 }
0x213a   : > { %6615 = vmatprep.subr.bf16.mxu1 %v15604_v39  ;;  %v15638_v39 = vld [vmem:[#allocation58 + $0x110] ss:$8 sps:$4 sm:$0xff]  }
0x213c   : > { %14495 = vmatpush3.bf16.msra.mxu0 %v15574_v41  ;;  %v15605_v41 = vld [vmem:[#allocation58 + $0xe0] ss:$8 sps:$4 sm:$0xff]  }
0x213d   : > { %14496 = vmatprep.subr.bf16.mxu0 %v17973_v0  ;;  %6616 = vmatpush1.bf16.msra.mxu1 %v15602_v40  ;;  %v15643_v40 = vld [vmem:[#allocation58 + $0x124] ss:$8 sps:$4 sm:$0xff]  }
0x2140   : > { %14497 = vmatpush3.bf16.msra.mxu0 %v15575_v42  ;;  %v15607_v42 = vld [vmem:[#allocation58 + $0xe4] ss:$8 sps:$4 sm:$0xff]  }
0x2141   : > { %14498 = vmatprep.subr.bf16.mxu0 %v17973_v0  ;;  %6617 = vmatprep.subr.bf16.mxu1 %v15607_v42  ;;  %v15646_v42 = vld [vmem:[#allocation58 + $0x134] ss:$8 sps:$4 sm:$0xff]  }
0x2142   : > { %6618 = vmatpush1.bf16.msra.mxu1 %v15605_v41  ;;  %v15641_v41 = vld [vmem:[#allocation58 + $0x120] ss:$8 sps:$4 sm:$0xff]  }
0x2144   : > { %14499 = vmatpush3.bf16.msra.mxu0 %v15576_v43  ;;  %v15610_v43 = vld [vmem:[#allocation58 + $0xf4] ss:$8 sps:$4 sm:$0xff]  }
0x2145   : > { %14500 = vmatprep.subr.bf16.mxu0 %v17973_v0  ;;  %6619 = vmatprep.subr.bf16.mxu1 %v15610_v43  ;;  %v15644_v43 = vld [vmem:[#allocation58 + $0x130] ss:$8 sps:$4 sm:$0xff]  }
0x2148   : > { %14501 = vmatpush3.bf16.msra.mxu0 %v15577_v45  ;;  %v15608_v45 = vld [vmem:[#allocation58 + $0xf0] ss:$8 sps:$4 sm:$0xff]  }
0x2149   : > { %14502 = vmatprep.subr.bf16.mxu0 %v17973_v0  ;;  %6620 = vmatpush1.bf16.msra.mxu1 %v15608_v45  ;;  %v15649_v45 = vld [vmem:[#allocation58 + $0x144] ss:$8 sps:$4 sm:$0xff]  }
0x214a   : > { %6726 = vmatprep.subr.bf16.mxu1 %v15613_v46  ;;  %v15647_v46 = vld [vmem:[#allocation58 + $0x140] ss:$8 sps:$4 sm:$0xff]  }
0x214c   : > { %14503 = vmatpush3.bf16.msra.mxu0 %v15578_v47 }
0x214d   : > { %14508 = vmatprep.subr.bf16.mxu0 %v17973_v0 }
0x214f   : > { %14505 = vmatmul.mubr.bf16.vlgmr.msra.gmra.mrb[28].mxu0 %v6118_v52 }
0x2150   : > { %14509 = vmatpush3.bf16.msra.mxu0 %v15579_v50  ;;  %14524 = vmatprep.mubr.msk.bf16.mxu0 %vm17975_vm2, %v17973_v0 }
0x2151   : > { %14510 = vmatprep.subr.bf16.mxu0 %v17973_v0 }
0x2154   : > { %14511 = vmatpush3.bf16.msra.mxu0 %v15580_v54 }
0x2155   : > { %14512 = vmatprep.subr.bf16.mxu0 %v17973_v0 }
0x2158   : > { %14513 = vmatpush3.bf16.msra.mxu0 %v15581_v23 }
0x2159   : > { %14514 = vmatprep.subr.bf16.mxu0 %v17973_v0 }
0x215c   : > { %14515 = vmatpush3.bf16.msra.mxu0 %v15582_v55 }
0x215d   : > { %14516 = vmatprep.subr.bf16.mxu0 %v17973_v0 }
0x2160   : > { %14517 = vmatpush3.bf16.msra.mxu0 %v15583_v56 }
0x2161   : > { %14518 = vmatprep.subr.bf16.mxu0 %v17973_v0 }
0x2164   : > { %14519 = vmatpush3.bf16.msra.mxu0 %v15584_v2 }
0x2165   : > { %14520 = vmatprep.subr.bf16.mxu0 %v17973_v0 }
0x2168   : > { %14521 = vmatpush3.bf16.msra.mxu0 %v15585_v3  ;;  %v6438_v3 = vld [vmem:[#allocation47] sm:$0x3] }
0x2169   : > { %14522 = vmatprep.subr.bf16.mxu0 %v17973_v0  ;;  %v6469_v53 = vrot.slane %v6438_v3, %v19215_v62 }
0x216c   : > { %14523 = vmatpush3.bf16.msra.mxu0 %v15586_v5 }
0x216f   : > { %14525 = vmatmul.mubr.bf16.vlgmr.msra.gmra.mrb[28].mxu0 %v6122_v7  ;;  %v6474_v7 = vrot.slane %v6438_v3, %v19218_v1  ;;  %v15664_v3 = vld [vmem:[#allocation53 + $0x14] ss:$8 sps:$4 sm:$0xff]  }
0x2170   : > { %6982 = vmatprep.mubr.f32.mxu0 %v17973_v0 }
0x2242   : > { %v6431_v8 = vpop.f32.mrb[28].mxu0 }
0x2243   : > { %v14526_v11 = vpop.f32.mrb[29].mxu0  ;;  %v6439_v12 = vsel %vm3844_vm12, %v6431_v8, 0.0 }
0x2244   : > { %6440 = vadd.xlane.f32.xlu0 %v6439_v12  ;;  %v6434_v13 = vpop.f32.mrb[30].mxu0 }
0x2245   : > { %v14527_v14 = vpop.f32.mrb[31].mxu0 }
0x2246   : > { %v15611_v14 = vld [vmem:[#allocation58] ss:$8 sps:$4 sm:$0xff]  }
0x22d1   : > { %v6441_v15 = vpop.xlane.xlu0 %6440 }
0x22d2   : > { %v6442_v17 = vsel %vm3844_vm12, %v6441_v15, 0.0 }
0x22d3   : > { %v6443_v21 = vrot.slane %v6442_v17, 4 }
0x22d5   : > { %v6444_v60 = vadd.f32 %v6443_v21, %v6442_v17  ;;  %v15616_v17 = vld [vmem:[#allocation58 + $0x14] ss:$8 sps:$4 sm:$0xff]   ;;  %v15614_v21 = vld [vmem:[#allocation58 + $0x10] ss:$8 sps:$4 sm:$0xff]  }
0x22d7   : > { %v6445_v58 = vrot.slane %v6444_v60, 2 }
0x22d9   : > { %v6446_v51 = vadd.f32 %v6445_v58, %v6444_v60  ;;  %v15619_v60 = vld [vmem:[#allocation58 + $0x24] ss:$8 sps:$4 sm:$0xff]   ;;  %v15617_v58 = vld [vmem:[#allocation58 + $0x20] ss:$8 sps:$4 sm:$0xff]  }
0x22db   : > { %v6447_v59 = vrot.slane %v6446_v51, 1 }
0x22dd   : > { %v6448_v63 = vadd.f32 %v6447_v59, %v6446_v51  ;;  %v15622_v51 = vld [vmem:[#allocation58 + $0x34] ss:$8 sps:$4 sm:$0xff]   ;;  %v15620_v59 = vld [vmem:[#allocation58 + $0x30] ss:$8 sps:$4 sm:$0xff]  }
0x22df   : > { %v6449_v24 = vmul.f32 0.001953125, %v6448_v63  ;;  %v15623_v63 = vld [vmem:[#allocation58 + $0x40] ss:$8 sps:$4 sm:$0xff]  }
0x22e1   : > { %v6450_v25 = vsub.f32 %v6431_v8, %v6449_v24  ;;  %v15628_v24 = vld [vmem:[#allocation58 + $0x54] ss:$8 sps:$4 sm:$0xff]  }
0x22e3   : > { %v6451_v26 = vmul.f32 %v6450_v25, %v6450_v25 }
0x22e5   : > { %v6452_v28 = vsel %vm3844_vm12, %v6451_v26, 0.0  ;;  %v15631_v26 = vld [vmem:[#allocation58 + $0x64] ss:$8 sps:$4 sm:$0xff]  }
0x22e6   : > { %6453 = vadd.xlane.f32.xlu1 %v6452_v28 }
0x2373   : > { %v6454_v47 = vpop.xlane.xlu1 %6453 }
0x2374   : > { %v6455_v48 = vsel %vm3844_vm12, %v6454_v47, 0.0  ;;  %v15652_v47 = vld [vmem:[#allocation58 + $0x154] ss:$8 sps:$4 sm:$0xff]  }
0x2375   : > { %v6456_v49 = vrot.slane %v6455_v48, 4 }
0x2377   : > { %v6457_v50 = vadd.f32 %v6456_v49, %v6455_v48  ;;  %v15650_v48 = vld [vmem:[#allocation58 + $0x150] ss:$8 sps:$4 sm:$0xff]   ;;  %v15655_v49 = vld [vmem:[#allocation58 + $0x164] ss:$8 sps:$4 sm:$0xff]  }
0x2379   : > { %v6458_v52 = vrot.slane %v6457_v50, 2 }
0x237b   : > { %v6459_v54 = vadd.f32 %v6458_v52, %v6457_v50  ;;  %v15653_v50 = vld [vmem:[#allocation58 + $0x160] ss:$8 sps:$4 sm:$0xff]   ;;  %v15658_v52 = vld [vmem:[#allocation58 + $0x174] ss:$8 sps:$4 sm:$0xff]  }
0x237d   : > { %v6460_v23 = vrot.slane %v6459_v54, 1 }
0x237f   : > { %v6461_v55 = vadd.f32 %v6460_v23, %v6459_v54  ;;  %v15656_v23 = vld [vmem:[#allocation58 + $0x170] ss:$8 sps:$4 sm:$0xff]  }
0x2381   : > { %v6462_v56 = vmul.f32 0.001953125, %v6461_v55  ;;  %v15661_v55 = vld [vmem:[#allocation53 + $0x4] ss:$8 sps:$4 sm:$0xff]  }
0x2383   : > { %v6463_v2 = vadd.f32 1e-05, %v6462_v56 }
0x2385   : > { %16281 = vrsqrt.f32 %v6463_v2  ;;  %v15659_v2 = vld [vmem:[#allocation53] ss:$8 sps:$4 sm:$0xff]  }
0x238f   : > { %v16282_v5 = vpop.eup %16281 }
0x2390   : > { %v6465_v6 = vmul.f32 %v16282_v5, %v6450_v25  ;;  %v15626_v25 = vld [vmem:[#allocation58 + $0x50] ss:$8 sps:$4 sm:$0xff]  }
0x2391   : > { %v15662_v5 = vld [vmem:[#allocation53 + $0x10] ss:$8 sps:$4 sm:$0xff]  }
0x2392   : > { %v6470_v8 = vmul.f32 %v6469_v53, %v6465_v6  ;;  %v15667_v6 = vld [vmem:[#allocation53 + $0x24] ss:$8 sps:$4 sm:$0xff]  }
0x2394   : > { %v6475_v11 = vadd.f32 %v6474_v7, %v6470_v8  ;;  %v15665_v7 = vld [vmem:[#allocation53 + $0x20] ss:$8 sps:$4 sm:$0xff]   ;;  %v15670_v8 = vld [vmem:[#allocation53 + $0x34] ss:$8 sps:$4 sm:$0xff]  }
0x2396   : > { %v6476_v12 = vadd.f32 %v6475_v11, %v19587_v20  ;;  %v15625_v20 = vld [vmem:[#allocation58 + $0x44] ss:$8 sps:$4 sm:$0xff]   ;;  %v15668_v11 = vld [vmem:[#allocation53 + $0x30] ss:$8 sps:$4 sm:$0xff]  }
0x2398   : > { %v6477_v13 = vmax.f32 %v6476_v12, 0.0  ;;  %v15673_v12 = vld [vmem:[#allocation53 + $0x44] ss:$8 sps:$4 sm:$0xff]  }
0x239a   : > { %v19660_v15 = vpack.c.bf16 %v6477_v13, %v6477_v13  ;;  %v15676_v13 = vld [vmem:[#allocation53 + $0x54] ss:$8 sps:$4 sm:$0xff]  }
0x239c   : > { %6638 = vmatmul.mubr.bf16.vlgmr.msra.gmra.mrb[36].mxu1 %v19660_v15  ;;  %v6480_v28 = vshrl.u32 %v19660_v15, 16  ;;  %v6483_v34 = vshll.u32 %v19660_v15, 16 }
0x239d   : > { %6727 = vmatpush1.bf16.msra.mxu1 %v15611_v14  ;;  %6758 = vmatprep.mubr.bf16.mxu1 %v17977_v44  ;;  %v15674_v14 = vld [vmem:[#allocation53 + $0x50] ss:$8 sps:$4 sm:$0xff]  }
0x239e   : > { %6728 = vmatprep.subr.bf16.mxu1 %v15616_v17  ;;  %v6482_v31 = vrot.slane %v6480_v28, 7  ;;  %v6488_v54 = vrot.slane %v6483_v34, 1  ;;  %v15679_v17 = vld [vmem:[#allocation53 + $0x64] ss:$8 sps:$4 sm:$0xff]  }
0x23a0   : > { %v6485_v36 = vor.u32 %v6483_v34, %v6482_v31  ;;  %v6489_v56 = vor.u32 %v6488_v54, %v6480_v28 }
0x23a1   : > { %6729 = vmatpush1.bf16.msra.mxu1 %v15614_v21  ;;  %v15682_v21 = vld [vmem:[#allocation53 + $0x74] ss:$8 sps:$4 sm:$0xff]  }
0x23a2   : > { %6730 = vmatprep.subr.bf16.mxu1 %v15619_v60  ;;  %v19668_v38 = vsel %vm19171_vm7, 0, %v6485_v36  ;;  %v19674_v53 = vsel %vm19560_vm3, %v6489_v56, 0  ;;  %v15680_v60 = vld [vmem:[#allocation53 + $0x70] ss:$8 sps:$4 sm:$0xff]   ;;  %v15685_v36 = vld [vmem:[#allocation59 + $0x104] ss:$8 sps:$4 sm:$0xff]  }
0x23a5   : > { %6731 = vmatpush1.bf16.msra.mxu1 %v15617_v58 }
0x23a6   : > { %6732 = vmatprep.subr.bf16.mxu1 %v15622_v51 }
0x23a9   : > { %6733 = vmatpush1.bf16.msra.mxu1 %v15620_v59  ;;  %v6907_v59 = vld [vmem:[%s20386_s5] sm:$0x3]  ;;  %s12155_s5 = scalar_lea.sflag [#allocation4], %s2444_s3 }
0x23aa   : > { %6734 = vmatprep.subr.bf16.mxu1 %v15625_v20 }
0x23ad   : > { %6735 = vmatpush1.bf16.msra.mxu1 %v15623_v63 }
0x23ae   : > { %6736 = vmatprep.subr.bf16.mxu1 %v15628_v24 }
0x23b1   : > { %6737 = vmatpush1.bf16.msra.mxu1 %v15626_v25 }
0x23b2   : > { %6738 = vmatprep.subr.bf16.mxu1 %v15631_v26 }
0x23b5   : > { %6739 = vmatpush1.bf16.msra.mxu1 %v15629_v29 }
0x23b6   : > { %6740 = vmatprep.subr.bf16.mxu1 %v15634_v30 }
0x23b9   : > { %6741 = vmatpush1.bf16.msra.mxu1 %v15632_v32 }
0x23ba   : > { %6864 = vmatprep.subr.bf16.mxu1 %v15637_v35  ;;  %v15683_v35 = vld [vmem:[#allocation59 + $0x100] ss:$8 sps:$4 sm:$0xff]  }
0x23bc   : > { %6759 = vmatmul.mubr.bf16.vlgmr.msra.gmra.mrb[36].mxu1 %v19668_v38 }
0x23bd   : > { %6865 = vmatpush1.bf16.msra.mxu1 %v15635_v33  ;;  %6896 = vmatprep.mubr.bf16.mxu1 %v17977_v44  ;;  %v15688_v33 = vld [vmem:[#allocation59 + $0x114] ss:$8 sps:$4 sm:$0xff]  }
0x23be   : > { %6866 = vmatprep.subr.bf16.mxu1 %v15640_v37  ;;  %v15686_v37 = vld [vmem:[#allocation59 + $0x110] ss:$8 sps:$4 sm:$0xff]  }
0x23c1   : > { %6867 = vmatpush1.bf16.msra.mxu1 %v15638_v39  ;;  %v15691_v39 = vld [vmem:[#allocation59 + $0x124] ss:$8 sps:$4 sm:$0xff]  }
0x23c2   : > { %6868 = vmatprep.subr.bf16.mxu1 %v15643_v40  ;;  %v15689_v40 = vld [vmem:[#allocation59 + $0x120] ss:$8 sps:$4 sm:$0xff]  }
0x23c5   : > { %6869 = vmatpush1.bf16.msra.mxu1 %v15641_v41  ;;  %v15694_v41 = vld [vmem:[#allocation59 + $0x134] ss:$8 sps:$4 sm:$0xff]  }
0x23c6   : > { %6870 = vmatprep.subr.bf16.mxu1 %v15646_v42  ;;  %v15692_v42 = vld [vmem:[#allocation59 + $0x130] ss:$8 sps:$4 sm:$0xff]  }
0x23c9   : > { %6871 = vmatpush1.bf16.msra.mxu1 %v15644_v43  ;;  %v15697_v43 = vld [vmem:[#allocation59 + $0x144] ss:$8 sps:$4 sm:$0xff]  }
0x23ca   : > { %6872 = vmatprep.subr.bf16.mxu1 %v15649_v45  ;;  %v15695_v45 = vld [vmem:[#allocation59 + $0x140] ss:$8 sps:$4 sm:$0xff]  }
0x23cd   : > { %6873 = vmatpush1.bf16.msra.mxu1 %v15647_v46  ;;  %v15700_v46 = vld [vmem:[#allocation59 + $0x154] ss:$8 sps:$4 sm:$0xff]  }
0x23ce   : > { %6874 = vmatprep.subr.bf16.mxu1 %v15652_v47  ;;  %v15698_v47 = vld [vmem:[#allocation59 + $0x150] ss:$8 sps:$4 sm:$0xff]  }
0x23d1   : > { %6875 = vmatpush1.bf16.msra.mxu1 %v15650_v48  ;;  %v15703_v48 = vld [vmem:[#allocation59 + $0x164] ss:$8 sps:$4 sm:$0xff]  }
0x23d2   : > { %6876 = vmatprep.subr.bf16.mxu1 %v15655_v49  ;;  %v15701_v49 = vld [vmem:[#allocation59 + $0x160] ss:$8 sps:$4 sm:$0xff]  }
0x23d5   : > { %6877 = vmatpush1.bf16.msra.mxu1 %v15653_v50 }
0x23d6   : > { %6878 = vmatprep.subr.bf16.mxu1 %v15658_v52 }
0x23d9   : > { %6879 = vmatpush1.bf16.msra.mxu1 %v15656_v23 }
0x23da   : > { %7962 = vmatprep.subr.bf16.mxu1 %v15661_v55 }
0x23dc   : > { %6897 = vmatmul.mubr.bf16.vlgmr.msra.gmra.mrb[36].mxu1 %v19674_v53 }
0x23dd   : > { %7963 = vmatpush1.bf16.msra.mxu1 %v15659_v2  ;;  %7994 = vmatprep.mubr.bf16.mxu1 %v17977_v44  ;;  %v15677_v44 = vld [vmem:[#allocation53 + $0x60] ss:$8 sps:$4 sm:$0xff]  }
0x23de   : > { %7964 = vmatprep.subr.bf16.mxu1 %v15664_v3 }
0x23e1   : > { %7965 = vmatpush1.bf16.msra.mxu1 %v15662_v5 }
0x23e2   : > { %7966 = vmatprep.subr.bf16.mxu1 %v15667_v6 }
0x23e5   : > { %7967 = vmatpush1.bf16.msra.mxu1 %v15665_v7 }
0x23e6   : > { %7968 = vmatprep.subr.bf16.mxu1 %v15670_v8 }
0x23e9   : > { %7969 = vmatpush1.bf16.msra.mxu1 %v15668_v11 }
0x23ea   : > { %7970 = vmatprep.subr.bf16.mxu1 %v15673_v12 }
0x23ed   : > { %7971 = vmatpush1.bf16.msra.mxu1 %v15671_v4 }
0x23ee   : > { %7972 = vmatprep.subr.bf16.mxu1 %v15676_v13 }
0x23f1   : > { %7973 = vmatpush1.bf16.msra.mxu1 %v15674_v14  ;;  %v15706_v14 = vld [vmem:[#allocation59 + $0x174] ss:$8 sps:$4 sm:$0xff]  }
0x23f2   : > { %7974 = vmatprep.subr.bf16.mxu1 %v15679_v17  ;;  %v15704_v17 = vld [vmem:[#allocation59 + $0x170] ss:$8 sps:$4 sm:$0xff]  }
0x23f5   : > { %7975 = vmatpush1.bf16.msra.mxu1 %v15677_v44  ;;  %v15709_v44 = vld [vmem:[#allocation59 + $0x184] ss:$8 sps:$4 sm:$0xff]  }
0x23f6   : > { %7976 = vmatprep.subr.bf16.mxu1 %v15682_v21  ;;  %v15707_v21 = vld [vmem:[#allocation59 + $0x180] ss:$8 sps:$4 sm:$0xff]  }
0x23f9   : > { %7977 = vmatpush1.bf16.msra.mxu1 %v15680_v60  ;;  %v15712_v60 = vld [vmem:[#allocation59 + $0x194] ss:$8 sps:$4 sm:$0xff]  }
0x23fc   : > { %7995 = vmatmul.mubr.bf16.vlgmr.msra.gmra.mrb[40].mxu1 %v19660_v15 }
0x23fd   : > { %8073 = vmatprep.mubr.f32.mxu1 %v17973_v0 }
0x24af   : > { %v6898_v58 = vpop.f32.mrb[36].mxu1 }
0x24b0   : > { %v6900_v51 = vpop.f32.mrb[37].mxu1 }
0x24b1   : > { %v6902_v20 = vpop.f32.mrb[38].mxu1  ;;  %13131 = vmatprep.subr.msk.mxu0 %vm3844_vm12, %v6900_v51  ;;  %v15715_v51 = vld [vmem:[#allocation59 + $0x1a4] ss:$8 sps:$4 sm:$0xff]  }
0x24b2   : > { %v6903_v63 = vpop.f32.mrb[39].mxu1  ;;  %13132 = vmatpush1.msk.msra.mxu0 %vm3844_vm12, %v6898_v58  ;;  %v15710_v58 = vld [vmem:[#allocation59 + $0x190] ss:$8 sps:$4 sm:$0xff]   ;;  %v15718_v20 = vld [vmem:[#allocation59 + $0x1b4] ss:$8 sps:$4 sm:$0xff]  }
0x24b3   : > { %13133 = vmatmul.mubr.msk.f32.vlgmr.msra.gmra.mrb[32].mxu0 %vm6908_vm4, %v6907_v59  ;;  %7312 = vmatprep.subr.bf16.mxu0 %v15685_v36  ;;  %v15716_v63 = vld [vmem:[#allocation59 + $0x1b0] ss:$8 sps:$4 sm:$0xff]  }
0x24b4   : > { %7313 = vmatpush1.bf16.msra.mxu0 %v15683_v35 }
0x24b5   : > { %7314 = vmatprep.subr.bf16.mxu0 %v15688_v33 }
0x24b8   : > { %7315 = vmatpush1.bf16.msra.mxu0 %v15686_v37 }
0x24b9   : > { %7316 = vmatprep.subr.bf16.mxu0 %v15691_v39 }
0x24bc   : > { %7317 = vmatpush1.bf16.msra.mxu0 %v15689_v40 }
0x24bd   : > { %7318 = vmatprep.subr.bf16.mxu0 %v15694_v41 }
0x24c0   : > { %7319 = vmatpush1.bf16.msra.mxu0 %v15692_v42 }
0x24c1   : > { %7320 = vmatprep.subr.bf16.mxu0 %v15697_v43 }
0x24c4   : > { %7321 = vmatpush1.bf16.msra.mxu0 %v15695_v45 }
0x24c5   : > { %7322 = vmatprep.subr.bf16.mxu0 %v15700_v46 }
0x24c8   : > { %7323 = vmatpush1.bf16.msra.mxu0 %v15698_v47 }
0x24c9   : > { %7324 = vmatprep.subr.bf16.mxu0 %v15703_v48 }
0x24cc   : > { %7325 = vmatpush1.bf16.msra.mxu0 %v15701_v49 }
0x24cd   : > { %7326 = vmatprep.subr.bf16.mxu0 %v15706_v14 }
0x24cf   : > { %v7996_v24 = vpop.f32.mrb[40].mxu1 }
0x24d0   : > { %v7998_v25 = vpop.f32.mrb[41].mxu1  ;;  %7327 = vmatpush1.bf16.msra.mxu0 %v15704_v17 }
0x24d1   : > { %v8000_v26 = vpop.f32.mrb[42].mxu1  ;;  %13246 = vmatprep.subr.msk.mxu1 %vm3844_vm12, %v7998_v25  ;;  %7328 = vmatprep.subr.bf16.mxu0 %v15709_v44  ;;  %v15719_v25 = vld [vmem:[#allocation59 + $0x1c0] ss:$8 sps:$4 sm:$0xff]  }
0x24d2   : > { %v8001_v28 = vpop.f32.mrb[43].mxu1  ;;  %13247 = vmatpush1.msk.msra.mxu1 %vm3844_vm12, %v7996_v24  ;;  %v15721_v24 = vld [vmem:[#allocation59 + $0x1c4] ss:$8 sps:$4 sm:$0xff]   ;;  %v15724_v26 = vld [vmem:[#allocation59 + $0x1d4] ss:$8 sps:$4 sm:$0xff]  }
0x24d3   : > { %13248 = vmatmul.mubr.msk.f32.vlgmr.msra.gmra.mrb[44].mxu1 %vm6908_vm4, %v6907_v59  ;;  %v15713_v59 = vld [vmem:[#allocation59 + $0x1a0] ss:$8 sps:$4 sm:$0xff]   ;;  %v15722_v28 = vld [vmem:[#allocation59 + $0x1d0] ss:$8 sps:$4 sm:$0xff]  }
0x24d4   : > { %7329 = vmatpush1.bf16.msra.mxu0 %v15707_v21 }
0x24d5   : > { %7330 = vmatprep.subr.bf16.mxu0 %v15712_v60 }
0x24d8   : > { %7331 = vmatpush1.bf16.msra.mxu0 %v15710_v58 }
0x24d9   : > { %7332 = vmatprep.subr.bf16.mxu0 %v15715_v51 }
0x24dc   : > { %7333 = vmatpush1.bf16.msra.mxu0 %v15713_v59  ;;  %v15731_v59 = vld [vmem:[#allocation59] ss:$8 sps:$4 sm:$0xff]  }
0x24dd   : > { %7334 = vmatprep.subr.bf16.mxu0 %v15718_v20 }
0x24e0   : > { %7335 = vmatpush1.bf16.msra.mxu0 %v15716_v63  ;;  %v15736_v63 = vld [vmem:[#allocation59 + $0x14] ss:$8 sps:$4 sm:$0xff]  }
0x24e1   : > { %7336 = vmatprep.subr.bf16.mxu0 %v15721_v24  ;;  %v15734_v24 = vld [vmem:[#allocation59 + $0x10] ss:$8 sps:$4 sm:$0xff]  }
0x24e4   : > { %7337 = vmatpush1.bf16.msra.mxu0 %v15719_v25  ;;  %v15739_v25 = vld [vmem:[#allocation59 + $0x24] ss:$8 sps:$4 sm:$0xff]  }
0x24e5   : > { %7338 = vmatprep.subr.bf16.mxu0 %v15724_v26  ;;  %v15737_v26 = vld [vmem:[#allocation59 + $0x20] ss:$8 sps:$4 sm:$0xff]  }
0x24e8   : > { %7339 = vmatpush1.bf16.msra.mxu0 %v15722_v28  ;;  %v15742_v28 = vld [vmem:[#allocation59 + $0x34] ss:$8 sps:$4 sm:$0xff]  }
0x2586   : > { %v6984_v29 = vpop.f32.mrb[32].mxu0 }
0x2587   : > { %v6990_v30 = vsel %vm2481_vm1, %v6984_v29, 0.0  ;;  %v6986_v31 = vpop.f32.mrb[33].mxu0 }
0x2588   : > { %v6991_v32 = vsel %vm2481_vm1, %v6986_v31, 0.0 }
0x2589   : > { %v6992_v34 = vadd.f32 %v6991_v32, %v6990_v30  ;;  %v15725_v30 = vld [vmem:[#allocation59 + $0x1e0] ss:$8 sps:$4 sm:$0xff]   ;;  %v15728_v32 = vld [vmem:[#allocation59 + $0x1f0] ss:$8 sps:$4 sm:$0xff]  }
0x258b   : > { %6993 = vadd.xlane.f32.xlu0 %v6992_v34  ;;  %v15733_v34 = vld [vmem:[#allocation59 + $0x4] ss:$8 sps:$4 sm:$0xff]  }
0x25a6   : > { %v19700_v35 = vpop.f32.mrb[44].mxu1 }
0x25a7   : > { %v8081_v36 = vsel %vm2481_vm1, %v19700_v35, 0.0  ;;  %v19704_v33 = vpop.f32.mrb[45].mxu1 }
0x25a8   : > { %v8082_v37 = vsel %vm2481_vm1, %v19704_v33, 0.0 }
0x25a9   : > { %v8083_v39 = vadd.f32 %v8082_v37, %v8081_v36  ;;  %v15751_v36 = vld [vmem:[#allocation59 + $0x64] ss:$8 sps:$4 sm:$0xff]  }
0x2618   : > { %v6994_v50 = vpop.xlane.xlu0 %6993 }
0x2619   : > { %v6995_v52 = vsel %vm2481_vm1, %v6994_v50, 0.0 }
0x261a   : > { %v6996_v54 = vrot.slane %v6995_v52, 4 }
0x261c   : > { %v6997_v23 = vadd.f32 %v6996_v54, %v6995_v52  ;;  %v19710_v52 = vsub.s32 2, %v19212_v61  ;;  %v6989_v54 = vld [vmem:[#allocation55] sm:$0xf] }
0x261e   : > { %v6998_v55 = vrot.slane %v6997_v23, 2 }
0x2620   : > { %v6999_v56 = vadd.f32 %v6998_v55, %v6997_v23  ;;  %v19713_v23 = vsub.s32 3, %v19212_v61  ;;  %v7032_v55 = vrot.slane %v6989_v54, %v19710_v52 }
0x2622   : > { %v7000_v2 = vrot.slane %v6999_v56, 1 }
0x2624   : > { %v7001_v3 = vadd.f32 %v7000_v2, %v6999_v56  ;;  %v7028_v56 = vrot.slane %v6989_v54, %v19215_v62  ;;  %v7052_v2 = vrot.slane %v6989_v54, %v19713_v23 }
0x2626   : > { %v7002_v5 = vmul.f32 0.001953125, %v7001_v3  ;;  %v7048_v3 = vrot.slane %v6989_v54, %v19218_v1 }
0x2628   : > { %v19690_v6 = vsub.f32 %v6984_v29, %v7002_v5  ;;  %v19692_v7 = vsub.f32 %v6986_v31, %v7002_v5  ;;  %v15727_v29 = vld [vmem:[#allocation59 + $0x1e4] ss:$8 sps:$4 sm:$0xff]   ;;  %v15730_v31 = vld [vmem:[#allocation59 + $0x1f4] ss:$8 sps:$4 sm:$0xff]   ;;  %v7042_v5 = vrot.slane %v7032_v55, %v19215_v62 }
0x2629   : > { %7340 = vmatprep.subr.bf16.mxu0 %v15727_v29  ;;  %v15740_v29 = vld [vmem:[#allocation59 + $0x30] ss:$8 sps:$4 sm:$0xff]  }
0x262a   : > { %v7005_v8 = vmul.f32 %v19690_v6, %v19690_v6  ;;  %v7006_v11 = vmul.f32 %v19692_v7, %v19692_v7  ;;  %7341 = vmatpush1.bf16.msra.mxu0 %v15725_v30  ;;  %v15745_v30 = vld [vmem:[#allocation59 + $0x44] ss:$8 sps:$4 sm:$0xff]  }
0x262b   : > { %7342 = vmatprep.subr.bf16.mxu0 %v15730_v31  ;;  %v15743_v31 = vld [vmem:[#allocation59 + $0x40] ss:$8 sps:$4 sm:$0xff]  }
0x262c   : > { %v7007_v12 = vsel %vm2481_vm1, %v7005_v8, 0.0  ;;  %v7008_v4 = vsel %vm2481_vm1, %v7006_v11, 0.0  ;;  %v7038_v8 = vrot.slane %v7028_v56, %v19215_v62  ;;  %v15758_v56 = vld [vmem:[#allocation59 + $0x90] ss:$8 sps:$4 sm:$0xff]  }
0x262d   : > { %v7009_v13 = vadd.f32 %v7008_v4, %v7007_v12  ;;  %v7062_v4 = vrot.slane %v7052_v2, %v19218_v1  ;;  %v15763_v2 = vld [vmem:[#allocation59 + $0xa4] ss:$8 sps:$4 sm:$0xff]  }
0x262e   : > { %7343 = vmatpush1.bf16.msra.mxu0 %v15728_v32  ;;  %v15748_v32 = vld [vmem:[#allocation59 + $0x54] ss:$8 sps:$4 sm:$0xff]  }
0x262f   : > { %7010 = vadd.xlane.f32.xlu1 %v7009_v13  ;;  %7513 = vmatprep.subr.bf16.mxu0 %v15733_v34  ;;  %v7058_v13 = vrot.slane %v7048_v3, %v19218_v1  ;;  %v15746_v34 = vld [vmem:[#allocation59 + $0x50] ss:$8 sps:$4 sm:$0xff]  }
0x2633   : > { %8084 = vadd.xlane.f32.xlu1 %v8083_v39  ;;  %v15749_v39 = vld [vmem:[#allocation59 + $0x60] ss:$8 sps:$4 sm:$0xff]  }
0x26bc   : > { %v7011_v40 = vpop.xlane.xlu1 %7010 }
0x26bd   : > { %v7012_v41 = vsel %vm2481_vm1, %v7011_v40, 0.0 }
0x26be   : > { %v7013_v42 = vrot.slane %v7012_v41, 4 }
0x26c0   : > { %v7014_v43 = vadd.f32 %v7013_v42, %v7012_v41  ;;  %v8085_v37 = vpop.xlane.xlu1 %8084  ;;  %v15754_v41 = vld [vmem:[#allocation59 + $0x74] ss:$8 sps:$4 sm:$0xff]  }
0x26c1   : > { %v8086_v40 = vsel %vm2481_vm1, %v8085_v37, 0.0  ;;  %v15793_v37 = vld [vmem:[#allocation59 + $0x244] ss:$8 sps:$4 sm:$0xff]  }
0x26c2   : > { %v7015_v45 = vrot.slane %v7014_v43, 2  ;;  %v8087_v42 = vrot.slane %v8086_v40, 4 }
0x26c4   : > { %v7016_v46 = vadd.f32 %v7015_v45, %v7014_v43  ;;  %v8088_v43 = vadd.f32 %v8087_v42, %v8086_v40  ;;  %v15752_v45 = vld [vmem:[#allocation59 + $0x70] ss:$8 sps:$4 sm:$0xff]   ;;  %v15796_v40 = vld [vmem:[#allocation59 + $0x254] ss:$8 sps:$4 sm:$0xff]   ;;  %v15799_v42 = vld [vmem:[#allocation59 + $0x264] ss:$8 sps:$4 sm:$0xff]  }
0x26c6   : > { %v7017_v47 = vrot.slane %v7016_v46, 1 }
0x26c8   : > { %v7018_v48 = vadd.f32 %v7017_v47, %v7016_v46  ;;  %v15757_v46 = vld [vmem:[#allocation59 + $0x84] ss:$8 sps:$4 sm:$0xff]   ;;  %v8089_v47 = vrot.slane %v8088_v43, 2 }
0x26ca   : > { %v7019_v49 = vmul.f32 0.001953125, %v7018_v48  ;;  %v8090_v48 = vadd.f32 %v8089_v47, %v8088_v43  ;;  %v15797_v43 = vld [vmem:[#allocation59 + $0x260] ss:$8 sps:$4 sm:$0xff]   ;;  %v15805_v47 = vld [vmem:[#allocation59 + $0x284] ss:$8 sps:$4 sm:$0xff]  }
0x26cc   : > { %v7020_v50 = vadd.f32 1e-05, %v7019_v49  ;;  %v15755_v49 = vld [vmem:[#allocation59 + $0x80] ss:$8 sps:$4 sm:$0xff]   ;;  %v8091_v54 = vrot.slane %v8090_v48, 1 }
0x26ce   : > { %16283 = vrsqrt.f32 %v7020_v50  ;;  %v15760_v50 = vld [vmem:[#allocation59 + $0x94] ss:$8 sps:$4 sm:$0xff]   ;;  %v8092_v55 = vadd.f32 %v8091_v54, %v8090_v48  ;;  %v15803_v48 = vld [vmem:[#allocation59 + $0x280] ss:$8 sps:$4 sm:$0xff]   ;;  %v15811_v54 = vld [vmem:[#allocation59 + $0x2a4] ss:$8 sps:$4 sm:$0xff]  }
0x26d0   : > { %v8093_v3 = vmul.f32 0.001953125, %v8092_v55  ;;  %v15809_v55 = vld [vmem:[#allocation59 + $0x2a0] ss:$8 sps:$4 sm:$0xff]  }
0x26d8   : > { %v16284_v11 = vpop.eup %16283 }
0x26d9   : > { %v7023_v12 = vmul.f32 %v16284_v11, %v19692_v7  ;;  %v7022_v61 = vmul.f32 %v16284_v11, %v19690_v6  ;;  %v15761_v11 = vld [vmem:[#allocation59 + $0xa0] ss:$8 sps:$4 sm:$0xff]  }
0x26db   : > { %v7044_v14 = vmul.f32 %v7042_v5, %v7023_v12  ;;  %v7043_v17 = vmul.f32 %v7038_v8, %v7022_v61  ;;  %v19736_v5 = vsub.f32 %v19700_v35, %v8093_v3  ;;  %v19739_v8 = vsub.f32 %v19704_v33, %v8093_v3  ;;  %v15766_v12 = vld [vmem:[#allocation59 + $0xb4] ss:$8 sps:$4 sm:$0xff]   ;;  %v15764_v35 = vld [vmem:[#allocation59 + $0xb0] ss:$8 sps:$4 sm:$0xff]   ;;  %v15769_v33 = vld [vmem:[#allocation59 + $0xc4] ss:$8 sps:$4 sm:$0xff]  }
0x26dc   : > { %v15817_v3 = vld [vmem:[#allocation59 + $0x2c4] ss:$8 sps:$4 sm:$0xff]  }
0x26dd   : > { %v7064_v44 = vadd.f32 %v7062_v4, %v7044_v14  ;;  %v7063_v21 = vadd.f32 %v7058_v13, %v7043_v17  ;;  %v8096_v4 = vmul.f32 %v19736_v5, %v19736_v5  ;;  %v8097_v61 = vmul.f32 %v19739_v8, %v19739_v8 }
0x26df   : > { %v7066_v60 = vmax.f32 %v7064_v44, 0.0  ;;  %v7065_v58 = vmax.f32 %v7063_v21, 0.0  ;;  %v8098_v13 = vsel %vm2481_vm1, %v8096_v4, 0.0  ;;  %v8099_v14 = vsel %vm2481_vm1, %v8097_v61, 0.0  ;;  %v15767_v44 = vld [vmem:[#allocation59 + $0xc0] ss:$8 sps:$4 sm:$0xff]  }
0x26e0   : > { %v8100_v17 = vadd.f32 %v8099_v14, %v8098_v13  ;;  %v15772_v21 = vld [vmem:[#allocation59 + $0xd4] ss:$8 sps:$4 sm:$0xff]   ;;  %v15818_v4 = vld [vmem:[#allocation59 + $0x2d0] ss:$8 sps:$4 sm:$0xff]   ;;  %v15823_v61 = vld [vmem:[#allocation59 + $0x2e4] ss:$8 sps:$4 sm:$0xff]  }
0x26e1   : > { %v19725_v51 = vpack.c.bf16 %v7066_v60, %v7066_v60  ;;  %v19727_v20 = vpack.c.bf16 %v7065_v58, %v7065_v58  ;;  %v15770_v60 = vld [vmem:[#allocation59 + $0xd0] ss:$8 sps:$4 sm:$0xff]   ;;  %v15775_v58 = vld [vmem:[#allocation59 + $0xe4] ss:$8 sps:$4 sm:$0xff]   ;;  %v15821_v13 = vld [vmem:[#allocation59 + $0x2e0] ss:$8 sps:$4 sm:$0xff]  }
0x26e2   : > { %8101 = vadd.xlane.f32.xlu1 %v8100_v17  ;;  %v15826_v14 = vld [vmem:[#allocation59 + $0x2f4] ss:$8 sps:$4 sm:$0xff]  }
0x26e3   : > { %7344 = vmatprep.mubr.bf16.mxu0 %v19725_v51  ;;  %v7073_v7 = vshll.u32 %v19725_v51, 16  ;;  %v7079_v17 = vshrl.u32 %v19727_v20, 16 }
0x26e4   : > { %7345 = vmatmul.mubr.bf16.vlgmr.msra.gmra.mrb[36].mxu0 %v19727_v20 }
0x26e5   : > { %7514 = vmatpush1.bf16.msra.mxu0 %v15731_v59  ;;  %v7078_v6 = vsel %vm19171_vm7, 0, %v7073_v7  ;;  %v15773_v59 = vld [vmem:[#allocation59 + $0xe0] ss:$8 sps:$4 sm:$0xff]   ;;  %v15776_v7 = vld [vmem:[#allocation59 + $0xf0] ss:$8 sps:$4 sm:$0xff]  }
0x26e6   : > { %7545 = vmatprep.mubr.bf16.mxu0 %v7078_v6  ;;  %7515 = vmatprep.subr.bf16.mxu0 %v15736_v63  ;;  %v15778_v63 = vld [vmem:[#allocation59 + $0xf4] ss:$8 sps:$4 sm:$0xff]   ;;  %v15781_v6 = vld [vmem:[#allocation59 + $0x204] ss:$8 sps:$4 sm:$0xff]  }
0x26e9   : > { %7516 = vmatpush1.bf16.msra.mxu0 %v15734_v24  ;;  %v7070_v24 = vshll.u32 %v19727_v20, 16  ;;  %v15830_v20 = vld [vmem:[#allocation64 + $0x110] ss:$8 sps:$4 sm:$0xff]  }
0x26ea   : > { %7517 = vmatprep.subr.bf16.mxu0 %v15739_v25  ;;  %v7081_v25 = vshrl.u32 %v19725_v51, 16  ;;  %v15790_v51 = vld [vmem:[#allocation59 + $0x234] ss:$8 sps:$4 sm:$0xff]  }
0x26ed   : > { %7518 = vmatpush1.bf16.msra.mxu0 %v15737_v26  ;;  %v15779_v26 = vld [vmem:[#allocation59 + $0x200] ss:$8 sps:$4 sm:$0xff]  }
0x26ee   : > { %7519 = vmatprep.subr.bf16.mxu0 %v15742_v28  ;;  %v15784_v28 = vld [vmem:[#allocation59 + $0x214] ss:$8 sps:$4 sm:$0xff]  }
0x26f1   : > { %7520 = vmatpush1.bf16.msra.mxu0 %v15740_v29  ;;  %v7077_v29 = vsel %vm19171_vm7, 0, %v7070_v24  ;;  %v15829_v24 = vld [vmem:[#allocation64 + $0x104] ss:$8 sps:$4 sm:$0xff]  }
0x26f2   : > { %7521 = vmatprep.subr.bf16.mxu0 %v15745_v30  ;;  %v7086_v30 = vsel %vm19171_vm7, %v7081_v25, 0  ;;  %v15832_v25 = vld [vmem:[#allocation64 + $0x114] ss:$8 sps:$4 sm:$0xff]   ;;  %8405 = vmatprep.subr.bf16.mxu1 %v15829_v24  ;;  %v15872_v24 = vld [vmem:[#allocation64 + $0x1f0] ss:$8 sps:$4 sm:$0xff]  }
0x26f5   : > { %7522 = vmatpush1.bf16.msra.mxu0 %v15743_v31  ;;  %v15782_v31 = vld [vmem:[#allocation59 + $0x210] ss:$8 sps:$4 sm:$0xff]  }
0x26f6   : > { %7523 = vmatprep.subr.bf16.mxu0 %v15748_v32  ;;  %v15787_v32 = vld [vmem:[#allocation59 + $0x224] ss:$8 sps:$4 sm:$0xff]  }
0x26f9   : > { %7524 = vmatpush1.bf16.msra.mxu0 %v15746_v34  ;;  %v15785_v34 = vld [vmem:[#allocation59 + $0x220] ss:$8 sps:$4 sm:$0xff]  }
0x26fa   : > { %7525 = vmatprep.subr.bf16.mxu0 %v15751_v36  ;;  %v15788_v36 = vld [vmem:[#allocation59 + $0x230] ss:$8 sps:$4 sm:$0xff]  }
0x26fd   : > { %7526 = vmatpush1.bf16.msra.mxu0 %v15749_v39  ;;  %v15791_v39 = vld [vmem:[#allocation59 + $0x240] ss:$8 sps:$4 sm:$0xff]  }
0x26fe   : > { %7527 = vmatprep.subr.bf16.mxu0 %v15754_v41  ;;  %v15794_v41 = vld [vmem:[#allocation59 + $0x250] ss:$8 sps:$4 sm:$0xff]  }
0x2701   : > { %7528 = vmatpush1.bf16.msra.mxu0 %v15752_v45  ;;  %v15802_v45 = vld [vmem:[#allocation59 + $0x274] ss:$8 sps:$4 sm:$0xff]  }
0x2702   : > { %7529 = vmatprep.subr.bf16.mxu0 %v15757_v46  ;;  %v15800_v46 = vld [vmem:[#allocation59 + $0x270] ss:$8 sps:$4 sm:$0xff]  }
0x2705   : > { %7530 = vmatpush1.bf16.msra.mxu0 %v15755_v49  ;;  %v15808_v49 = vld [vmem:[#allocation59 + $0x294] ss:$8 sps:$4 sm:$0xff]  }
0x2706   : > { %7531 = vmatprep.subr.bf16.mxu0 %v15760_v50  ;;  %v15806_v50 = vld [vmem:[#allocation59 + $0x290] ss:$8 sps:$4 sm:$0xff]  }
0x2709   : > { %7532 = vmatpush1.bf16.msra.mxu0 %v15758_v56  ;;  %v15814_v56 = vld [vmem:[#allocation59 + $0x2b4] ss:$8 sps:$4 sm:$0xff]  }
0x270a   : > { %7533 = vmatprep.subr.bf16.mxu0 %v15763_v2  ;;  %v15812_v2 = vld [vmem:[#allocation59 + $0x2b0] ss:$8 sps:$4 sm:$0xff]  }
0x270d   : > { %7534 = vmatpush1.bf16.msra.mxu0 %v15761_v11  ;;  %v15815_v11 = vld [vmem:[#allocation59 + $0x2c0] ss:$8 sps:$4 sm:$0xff]  }
0x270e   : > { %7535 = vmatprep.subr.bf16.mxu0 %v15766_v12  ;;  %v15820_v12 = vld [vmem:[#allocation59 + $0x2d4] ss:$8 sps:$4 sm:$0xff]  }
0x2711   : > { %7536 = vmatpush1.bf16.msra.mxu0 %v15764_v35  ;;  %v15824_v35 = vld [vmem:[#allocation59 + $0x2f0] ss:$8 sps:$4 sm:$0xff]  }
0x2712   : > { %7537 = vmatprep.subr.bf16.mxu0 %v15769_v33  ;;  %v7085_v33 = vsel %vm19171_vm7, %v7079_v17, 0  ;;  %v15857_v17 = vld [vmem:[#allocation64 + $0x1a0] ss:$8 sps:$4 sm:$0xff]  }
0x2715   : > { %7538 = vmatpush1.bf16.msra.mxu0 %v15767_v44 }
0x2716   : > { %7539 = vmatprep.subr.bf16.mxu0 %v15772_v21 }
0x2719   : > { %7540 = vmatpush1.bf16.msra.mxu0 %v15770_v60 }
0x271a   : > { %7541 = vmatprep.subr.bf16.mxu0 %v15775_v58 }
0x271d   : > { %7542 = vmatpush1.bf16.msra.mxu0 %v15773_v59 }
0x271e   : > { %7543 = vmatprep.subr.bf16.mxu0 %v15778_v63 }
0x2721   : > { %7544 = vmatpush1.bf16.msra.mxu0 %v15776_v7 }
0x2722   : > { %7747 = vmatprep.subr.bf16.mxu0 %v15781_v6  ;;  %v15827_v6 = vld [vmem:[#allocation64 + $0x100] ss:$8 sps:$4 sm:$0xff]  }
0x2723   : > { %8406 = vmatpush1.bf16.msra.mxu1 %v15827_v6  ;;  %v15874_v6 = vld [vmem:[#allocation64 + $0x1f4] ss:$8 sps:$4 sm:$0xff]  }
0x2724   : > { %7546 = vmatmul.mubr.bf16.vlgmr.msra.gmra.mrb[36].mxu0 %v7077_v29  ;;  %8407 = vmatprep.subr.bf16.mxu1 %v15832_v25  ;;  %v15838_v29 = vld [vmem:[#allocation64 + $0x134] ss:$8 sps:$4 sm:$0xff]   ;;  %v15877_v25 = vld [vmem:[#allocation64 + $0x4] ss:$8 sps:$4 sm:$0xff]  }
0x2725   : > { %7748 = vmatpush1.bf16.msra.mxu0 %v15779_v26  ;;  %7779 = vmatprep.mubr.bf16.mxu0 %v7086_v30  ;;  %v15835_v26 = vld [vmem:[#allocation64 + $0x124] ss:$8 sps:$4 sm:$0xff]   ;;  %v15836_v30 = vld [vmem:[#allocation64 + $0x130] ss:$8 sps:$4 sm:$0xff]  }
0x2726   : > { %7749 = vmatprep.subr.bf16.mxu0 %v15784_v28  ;;  %v15833_v28 = vld [vmem:[#allocation64 + $0x120] ss:$8 sps:$4 sm:$0xff]  }
0x2727   : > { %8408 = vmatpush1.bf16.msra.mxu1 %v15830_v20 }
0x2728   : > { %8409 = vmatprep.subr.bf16.mxu1 %v15835_v26 }
0x2729   : > { %7750 = vmatpush1.bf16.msra.mxu0 %v15782_v31  ;;  %v15841_v31 = vld [vmem:[#allocation64 + $0x144] ss:$8 sps:$4 sm:$0xff]  }
0x272a   : > { %7751 = vmatprep.subr.bf16.mxu0 %v15787_v32  ;;  %v15839_v32 = vld [vmem:[#allocation64 + $0x140] ss:$8 sps:$4 sm:$0xff]  }
0x272b   : > { %8410 = vmatpush1.bf16.msra.mxu1 %v15833_v28 }
0x272c   : > { %8411 = vmatprep.subr.bf16.mxu1 %v15838_v29 }
0x272d   : > { %7752 = vmatpush1.bf16.msra.mxu0 %v15785_v34  ;;  %v15844_v34 = vld [vmem:[#allocation64 + $0x154] ss:$8 sps:$4 sm:$0xff]  }
0x272e   : > { %7753 = vmatprep.subr.bf16.mxu0 %v15790_v51  ;;  %v15842_v51 = vld [vmem:[#allocation64 + $0x150] ss:$8 sps:$4 sm:$0xff]  }
0x272f   : > { %8412 = vmatpush1.bf16.msra.mxu1 %v15836_v30 }
0x2730   : > { %8413 = vmatprep.subr.bf16.mxu1 %v15841_v31 }
0x2731   : > { %7754 = vmatpush1.bf16.msra.mxu0 %v15788_v36 }
0x2732   : > { %7755 = vmatprep.subr.bf16.mxu0 %v15793_v37 }
0x2733   : > { %8414 = vmatpush1.bf16.msra.mxu1 %v15839_v32 }
0x2734   : > { %8415 = vmatprep.subr.bf16.mxu1 %v15844_v34 }
0x2735   : > { %7756 = vmatpush1.bf16.msra.mxu0 %v15791_v39 }
0x2736   : > { %7757 = vmatprep.subr.bf16.mxu0 %v15796_v40 }
0x2737   : > { %8416 = vmatpush1.bf16.msra.mxu1 %v15842_v51 }
0x2739   : > { %7758 = vmatpush1.bf16.msra.mxu0 %v15794_v41 }
0x273a   : > { %7759 = vmatprep.subr.bf16.mxu0 %v15799_v42 }
0x273d   : > { %7760 = vmatpush1.bf16.msra.mxu0 %v15797_v43 }
0x273e   : > { %7761 = vmatprep.subr.bf16.mxu0 %v15802_v45 }
0x2741   : > { %7762 = vmatpush1.bf16.msra.mxu0 %v15800_v46 }
0x2742   : > { %7763 = vmatprep.subr.bf16.mxu0 %v15805_v47 }
0x2745   : > { %7764 = vmatpush1.bf16.msra.mxu0 %v15803_v48 }
0x2746   : > { %7765 = vmatprep.subr.bf16.mxu0 %v15808_v49 }
0x2749   : > { %7766 = vmatpush1.bf16.msra.mxu0 %v15806_v50 }
0x274a   : > { %7767 = vmatprep.subr.bf16.mxu0 %v15811_v54 }
0x274d   : > { %7768 = vmatpush1.bf16.msra.mxu0 %v15809_v55 }
0x274e   : > { %7769 = vmatprep.subr.bf16.mxu0 %v15814_v56 }
0x2751   : > { %7770 = vmatpush1.bf16.msra.mxu0 %v15812_v2  ;;  %v15847_v2 = vld [vmem:[#allocation64 + $0x164] ss:$8 sps:$4 sm:$0xff]  }
0x2752   : > { %7771 = vmatprep.subr.bf16.mxu0 %v15817_v3  ;;  %v15845_v3 = vld [vmem:[#allocation64 + $0x160] ss:$8 sps:$4 sm:$0xff]   ;;  %8417 = vmatprep.subr.bf16.mxu1 %v15847_v2  ;;  %v7790_v2 = vld [vmem:[#allocation56] sm:$0xf] }
0x2753   : > { %8418 = vmatpush1.bf16.msra.mxu1 %v15845_v3 }
0x2755   : > { %7772 = vmatpush1.bf16.msra.mxu0 %v15815_v11  ;;  %v15850_v11 = vld [vmem:[#allocation64 + $0x174] ss:$8 sps:$4 sm:$0xff]  }
0x2756   : > { %7773 = vmatprep.subr.bf16.mxu0 %v15820_v12  ;;  %v15848_v12 = vld [vmem:[#allocation64 + $0x170] ss:$8 sps:$4 sm:$0xff]   ;;  %8419 = vmatprep.subr.bf16.mxu1 %v15850_v11  ;;  %v7833_v11 = vrot.slane %v7790_v2, %v19710_v52 }
0x2757   : > { %8420 = vmatpush1.bf16.msra.mxu1 %v15848_v12 }
0x2759   : > { %7774 = vmatpush1.bf16.msra.mxu0 %v15818_v4  ;;  %v15853_v4 = vld [vmem:[#allocation64 + $0x184] ss:$8 sps:$4 sm:$0xff]  }
0x275a   : > { %7775 = vmatprep.subr.bf16.mxu0 %v15823_v61  ;;  %v15851_v61 = vld [vmem:[#allocation64 + $0x180] ss:$8 sps:$4 sm:$0xff]   ;;  %8421 = vmatprep.subr.bf16.mxu1 %v15853_v4 }
0x275b   : > { %8422 = vmatpush1.bf16.msra.mxu1 %v15851_v61  ;;  %v7829_v61 = vrot.slane %v7790_v2, %v19215_v62 }
0x275d   : > { %7776 = vmatpush1.bf16.msra.mxu0 %v15821_v13  ;;  %v15856_v13 = vld [vmem:[#allocation64 + $0x194] ss:$8 sps:$4 sm:$0xff]  }
0x275e   : > { %7777 = vmatprep.subr.bf16.mxu0 %v15826_v14  ;;  %v15854_v14 = vld [vmem:[#allocation64 + $0x190] ss:$8 sps:$4 sm:$0xff]   ;;  %8423 = vmatprep.subr.bf16.mxu1 %v15856_v13 }
0x275f   : > { %8424 = vmatpush1.bf16.msra.mxu1 %v15854_v14 }
0x2761   : > { %7778 = vmatpush1.bf16.msra.mxu0 %v15824_v35  ;;  %v15859_v35 = vld [vmem:[#allocation64 + $0x1a4] ss:$8 sps:$4 sm:$0xff]  }
0x2762   : > { %8425 = vmatprep.subr.bf16.mxu1 %v15859_v35 }
0x2763   : > { %8426 = vmatpush1.bf16.msra.mxu1 %v15857_v17 }
0x2764   : > { %7780 = vmatmul.mubr.bf16.vlgmr.msra.gmra.mrb[36].mxu0 %v7085_v33  ;;  %v15860_v33 = vld [vmem:[#allocation64 + $0x1b0] ss:$8 sps:$4 sm:$0xff]  }
0x276f   : > { %v8102_v20 = vpop.xlane.xlu1 %8101 }
0x2770   : > { %v8103_v26 = vsel %vm2481_vm1, %v8102_v20, 0.0 }
0x2771   : > { %v8104_v28 = vrot.slane %v8103_v26, 4 }
0x2773   : > { %v8105_v29 = vadd.f32 %v8104_v28, %v8103_v26 }
0x2775   : > { %v8106_v30 = vrot.slane %v8105_v29, 2 }
0x2777   : > { %v8107_v31 = vadd.f32 %v8106_v30, %v8105_v29 }
0x2779   : > { %v8108_v32 = vrot.slane %v8107_v31, 1 }
0x277b   : > { %v8109_v34 = vadd.f32 %v8108_v32, %v8107_v31 }
0x2837   : > { %v7781_v44 = vpop.f32.mrb[36].mxu0 }
0x2838   : > { %v7791_v21 = vsel %vm2481_vm1, %v7781_v44, 0.0  ;;  %v7783_v60 = vpop.f32.mrb[37].mxu0 }
0x2839   : > { %v7792_v58 = vsel %vm2481_vm1, %v7783_v60, 0.0  ;;  %v7785_v59 = vpop.f32.mrb[38].mxu0 }
0x283a   : > { %v7786_v63 = vpop.f32.mrb[39].mxu0  ;;  %v7793_v7 = vadd.f32 %v7792_v58, %v7791_v21  ;;  %v15865_v21 = vld [vmem:[#allocation64 + $0x1c4] ss:$8 sps:$4 sm:$0xff]   ;;  %v15868_v58 = vld [vmem:[#allocation64 + $0x1d4] ss:$8 sps:$4 sm:$0xff]  }
0x283b   : > { %v15866_v59 = vld [vmem:[#allocation64 + $0x1d0] ss:$8 sps:$4 sm:$0xff]   ;;  %v15871_v63 = vld [vmem:[#allocation64 + $0x1e4] ss:$8 sps:$4 sm:$0xff]  }
0x283c   : > { %7794 = vadd.xlane.f32.xlu0 %v7793_v7  ;;  %v15869_v7 = vld [vmem:[#allocation64 + $0x1e0] ss:$8 sps:$4 sm:$0xff]  }
0x28c9   : > { %v7795_v36 = vpop.xlane.xlu0 %7794 }
0x28ca   : > { %v7796_v37 = vsel %vm2481_vm1, %v7795_v36, 0.0 }
0x28cb   : > { %v7797_v39 = vrot.slane %v7796_v37, 4 }
0x28cd   : > { %v7798_v40 = vadd.f32 %v7797_v39, %v7796_v37  ;;  %v8110_v37 = vmul.f32 0.001953125, %v8109_v34 }
0x28cf   : > { %v7799_v41 = vrot.slane %v7798_v40, 2 }
0x28d1   : > { %v7800_v42 = vadd.f32 %v7799_v41, %v7798_v40  ;;  %v8111_v41 = vadd.f32 1e-05, %v8110_v37  ;;  %v15875_v37 = vld [vmem:[#allocation64] ss:$8 sps:$4 sm:$0xff]  }
0x28d3   : > { %v7801_v43 = vrot.slane %v7800_v42, 1  ;;  %16285 = vrsqrt.f32 %v8111_v41 }
0x28d5   : > { %v7802_v45 = vadd.f32 %v7801_v43, %v7800_v42 }
0x28d7   : > { %v7803_v46 = vmul.f32 0.001953125, %v7802_v45 }
0x28d9   : > { %v19759_v47 = vsub.f32 %v7781_v44, %v7803_v46  ;;  %v19761_v48 = vsub.f32 %v7783_v60, %v7803_v46  ;;  %v15862_v44 = vld [vmem:[#allocation64 + $0x1b4] ss:$8 sps:$4 sm:$0xff]   ;;  %v15863_v60 = vld [vmem:[#allocation64 + $0x1c0] ss:$8 sps:$4 sm:$0xff]  }
0x28da   : > { %8427 = vmatprep.subr.bf16.mxu1 %v15862_v44  ;;  %v7849_v44 = vrot.slane %v7790_v2, %v19218_v1 }
0x28db   : > { %v7806_v49 = vmul.f32 %v19759_v47, %v19759_v47  ;;  %v7807_v50 = vmul.f32 %v19761_v48, %v19761_v48  ;;  %8428 = vmatpush1.bf16.msra.mxu1 %v15860_v33  ;;  %v7853_v33 = vrot.slane %v7790_v2, %v19713_v23  ;;  %v15895_v2 = vld [vmem:[#allocation64 + $0x64] ss:$8 sps:$4 sm:$0xff]  }
0x28dc   : > { %8429 = vmatprep.subr.bf16.mxu1 %v15865_v21  ;;  %v7843_v21 = vrot.slane %v7833_v11, %v19215_v62  ;;  %v15898_v11 = vld [vmem:[#allocation64 + $0x74] ss:$8 sps:$4 sm:$0xff]  }
0x28dd   : > { %v7808_v54 = vsel %vm2481_vm1, %v7806_v49, 0.0  ;;  %v7809_v55 = vsel %vm2481_vm1, %v7807_v50, 0.0 }
0x28de   : > { %v7810_v56 = vadd.f32 %v7809_v55, %v7808_v54  ;;  %v8080_v54 = vld [vmem:[#allocation52] sm:$0xf] }
0x28df   : > { %8430 = vmatpush1.bf16.msra.mxu1 %v15863_v60  ;;  %v8123_v55 = vrot.slane %v8080_v54, %v19710_v52  ;;  %v8119_v3 = vrot.slane %v8080_v54, %v19215_v62  ;;  %v8143_v13 = vrot.slane %v8080_v54, %v19713_v23  ;;  %v8139_v17 = vrot.slane %v8080_v54, %v19218_v1  ;;  %v15887_v54 = vld [vmem:[#allocation64 + $0x40] ss:$8 sps:$4 sm:$0xff]  }
0x28e0   : > { %7811 = vadd.xlane.f32.xlu0 %v7810_v56  ;;  %8431 = vmatprep.subr.bf16.mxu1 %v15868_v58  ;;  %v16286_v56 = vpop.eup %16285 }
0x28e1   : > { %v8114_v12 = vmul.f32 %v16286_v56, %v19739_v8  ;;  %v8133_v4 = vrot.slane %v8123_v55, %v19215_v62  ;;  %v8113_v14 = vmul.f32 %v16286_v56, %v19736_v5  ;;  %v8129_v35 = vrot.slane %v8119_v3, %v19215_v62  ;;  %v15892_v55 = vld [vmem:[#allocation64 + $0x54] ss:$8 sps:$4 sm:$0xff]   ;;  %v15890_v56 = vld [vmem:[#allocation64 + $0x50] ss:$8 sps:$4 sm:$0xff]   ;;  %v15893_v3 = vld [vmem:[#allocation64 + $0x60] ss:$8 sps:$4 sm:$0xff]  }
0x28e2   : > { %v7839_v8 = vrot.slane %v7829_v61, %v19215_v62  ;;  %v15899_v61 = vld [vmem:[#allocation64 + $0x80] ss:$8 sps:$4 sm:$0xff]  }
0x28e3   : > { %8432 = vmatpush1.bf16.msra.mxu1 %v15866_v59  ;;  %v8135_v58 = vmul.f32 %v8133_v4, %v8114_v12  ;;  %v8153_v59 = vrot.slane %v8143_v13, %v19218_v1  ;;  %v15896_v12 = vld [vmem:[#allocation64 + $0x70] ss:$8 sps:$4 sm:$0xff]   ;;  %v15901_v4 = vld [vmem:[#allocation64 + $0x84] ss:$8 sps:$4 sm:$0xff]   ;;  %v15904_v13 = vld [vmem:[#allocation64 + $0x94] ss:$8 sps:$4 sm:$0xff]  }
0x28e4   : > { %8433 = vmatprep.subr.bf16.mxu1 %v15871_v63  ;;  %v8134_v63 = vmul.f32 %v8129_v35, %v8113_v14  ;;  %v15902_v14 = vld [vmem:[#allocation64 + $0x90] ss:$8 sps:$4 sm:$0xff]   ;;  %v15907_v35 = vld [vmem:[#allocation64 + $0xa4] ss:$8 sps:$4 sm:$0xff]  }
0x28e5   : > { %v8155_v29 = vadd.f32 %v8153_v59, %v8135_v58  ;;  %v15914_v58 = vld [vmem:[#allocation64 + $0xd0] ss:$8 sps:$4 sm:$0xff]   ;;  %v15919_v59 = vld [vmem:[#allocation64 + $0xe4] ss:$8 sps:$4 sm:$0xff]  }
0x28e7   : > { %8434 = vmatpush1.bf16.msra.mxu1 %v15869_v7  ;;  %v8149_v7 = vrot.slane %v8139_v17, %v19218_v1  ;;  %v15905_v17 = vld [vmem:[#allocation64 + $0xa0] ss:$8 sps:$4 sm:$0xff]  }
0x28e8   : > { %8435 = vmatprep.subr.bf16.mxu1 %v15874_v6  ;;  %v7863_v6 = vrot.slane %v7853_v33, %v19218_v1  ;;  %v15910_v33 = vld [vmem:[#allocation64 + $0xb4] ss:$8 sps:$4 sm:$0xff]  }
0x28e9   : > { %v8154_v31 = vadd.f32 %v8149_v7, %v8134_v63  ;;  %v15917_v63 = vld [vmem:[#allocation64 + $0xe0] ss:$8 sps:$4 sm:$0xff]   ;;  %v15922_v7 = vld [vmem:[#allocation64 + $0xf4] ss:$8 sps:$4 sm:$0xff]  }
0x28eb   : > { %8436 = vmatpush1.bf16.msra.mxu1 %v15872_v24 }
0x28ec   : > { %8606 = vmatprep.subr.bf16.mxu1 %v15877_v25  ;;  %v7859_v25 = vrot.slane %v7849_v44, %v19218_v1  ;;  %v15908_v44 = vld [vmem:[#allocation64 + $0xb0] ss:$8 sps:$4 sm:$0xff]  }
0x296d   : > { %v7812_v51 = vpop.xlane.xlu0 %7811 }
0x296e   : > { %v7813_v36 = vsel %vm2481_vm1, %v7812_v51, 0.0 }
0x296f   : > { %v7814_v39 = vrot.slane %v7813_v36, 4 }
0x2971   : > { %v7815_v40 = vadd.f32 %v7814_v39, %v7813_v36  ;;  %v15880_v39 = vld [vmem:[#allocation64 + $0x14] ss:$8 sps:$4 sm:$0xff]  }
0x2973   : > { %v7816_v42 = vrot.slane %v7815_v40, 2 }
0x2975   : > { %v7817_v43 = vadd.f32 %v7816_v42, %v7815_v40  ;;  %v15878_v42 = vld [vmem:[#allocation64 + $0x10] ss:$8 sps:$4 sm:$0xff]  }
0x2977   : > { %v7818_v45 = vrot.slane %v7817_v43, 1 }
0x2979   : > { %v7819_v46 = vadd.f32 %v7818_v45, %v7817_v43  ;;  %v15883_v43 = vld [vmem:[#allocation64 + $0x24] ss:$8 sps:$4 sm:$0xff]   ;;  %v15881_v45 = vld [vmem:[#allocation64 + $0x20] ss:$8 sps:$4 sm:$0xff]  }
0x297b   : > { %v7820_v49 = vmul.f32 0.001953125, %v7819_v46  ;;  %v15886_v46 = vld [vmem:[#allocation64 + $0x34] ss:$8 sps:$4 sm:$0xff]  }
0x297d   : > { %v7821_v50 = vadd.f32 1e-05, %v7820_v49  ;;  %v15884_v49 = vld [vmem:[#allocation64 + $0x30] ss:$8 sps:$4 sm:$0xff]  }
0x297f   : > { %16287 = vrsqrt.f32 %v7821_v50  ;;  %v15889_v50 = vld [vmem:[#allocation64 + $0x44] ss:$8 sps:$4 sm:$0xff]  }
0x2989   : > { %v16288_v60 = vpop.eup %16287 }
0x298a   : > { %v7824_v5 = vmul.f32 %v16288_v60, %v19761_v48  ;;  %v7823_v24 = vmul.f32 %v16288_v60, %v19759_v47  ;;  %v15916_v60 = vld [vmem:[#allocation64 + $0xd4] ss:$8 sps:$4 sm:$0xff]  }
0x298c   : > { %v7845_v20 = vmul.f32 %v7843_v21, %v7824_v5  ;;  %v7844_v26 = vmul.f32 %v7839_v8, %v7823_v24  ;;  %v15913_v21 = vld [vmem:[#allocation64 + $0xc4] ss:$8 sps:$4 sm:$0xff]   ;;  %v15911_v8 = vld [vmem:[#allocation64 + $0xc0] ss:$8 sps:$4 sm:$0xff]   ;;  %v15920_v5 = vld [vmem:[#allocation64 + $0xf0] ss:$8 sps:$4 sm:$0xff]  }
0x298e   : > { %v7865_v28 = vadd.f32 %v7863_v6, %v7845_v20  ;;  %v7864_v30 = vadd.f32 %v7859_v25, %v7844_v26  ;;  %v15925_v6 = vld [vmem:[#allocation64 + $0x204] ss:$8 sps:$4 sm:$0xff]   ;;  %v15923_v20 = vld [vmem:[#allocation64 + $0x200] ss:$8 sps:$4 sm:$0xff]   ;;  %v15928_v26 = vld [vmem:[#allocation64 + $0x214] ss:$8 sps:$4 sm:$0xff]  }
0x2990   : > { %v8157_v32 = vadd.f32 %v8155_v29, %v7865_v28  ;;  %v8156_v34 = vadd.f32 %v8154_v31, %v7864_v30  ;;  %v15926_v30 = vld [vmem:[#allocation64 + $0x210] ss:$8 sps:$4 sm:$0xff]   ;;  %v15931_v31 = vld [vmem:[#allocation64 + $0x224] ss:$8 sps:$4 sm:$0xff]  }
0x2992   : > { %v19791_v51 = vmax.f32 %v8157_v32, 0.0  ;;  %v19793_v36 = vmax.f32 %v8156_v34, 0.0  ;;  %v15929_v32 = vld [vmem:[#allocation64 + $0x220] ss:$8 sps:$4 sm:$0xff]   ;;  %v15934_v34 = vld [vmem:[#allocation64 + $0x234] ss:$8 sps:$4 sm:$0xff]  }
0x2994   : > { %v19797_v48 = vpack.c.bf16 %v19791_v51, %v19791_v51  ;;  %v19801_v47 = vpack.c.bf16 %v19793_v36, %v19793_v36 }
0x2996   : > { %8437 = vmatprep.mubr.bf16.mxu1 %v19797_v48  ;;  %v8166_v40 = vshll.u32 %v19797_v48, 16  ;;  %v8163_v24 = vshll.u32 %v19801_v47, 16  ;;  %v8174_v25 = vshrl.u32 %v19797_v48, 16  ;;  %v15932_v48 = vld [vmem:[#allocation64 + $0x230] ss:$8 sps:$4 sm:$0xff]  }
0x2997   : > { %8438 = vmatmul.mubr.bf16.vlgmr.msra.gmra.mrb[48].mxu1 %v19801_v47 }
0x2998   : > { %8607 = vmatpush1.bf16.msra.mxu1 %v15875_v37  ;;  %v8171_v41 = vsel %vm19171_vm7, 0, %v8166_v40  ;;  %v8170_v28 = vsel %vm19171_vm7, 0, %v8163_v24  ;;  %v8179_v29 = vsel %vm19171_vm7, %v8174_v25, 0  ;;  %v15937_v37 = vld [vmem:[#allocation64 + $0x244] ss:$8 sps:$4 sm:$0xff]  }
0x2999   : > { %8638 = vmatprep.mubr.bf16.mxu1 %v8171_v41  ;;  %8608 = vmatprep.subr.bf16.mxu1 %v15880_v39  ;;  %v15935_v39 = vld [vmem:[#allocation64 + $0x240] ss:$8 sps:$4 sm:$0xff]   ;;  %v15940_v40 = vld [vmem:[#allocation64 + $0x254] ss:$8 sps:$4 sm:$0xff]   ;;  %v15938_v41 = vld [vmem:[#allocation64 + $0x250] ss:$8 sps:$4 sm:$0xff]  }
0x299a   : > { %v15973_v24 = vld [vmem:[#allocation65 + $0x104] ss:$8 sps:$4 sm:$0xff]   ;;  %v15976_v25 = vld [vmem:[#allocation65 + $0x114] ss:$8 sps:$4 sm:$0xff]  }
0x299b   : > { %9206 = vmatprep.subr.bf16.mxu0 %v15973_v24  ;;  %v16016_v24 = vld [vmem:[#allocation65 + $0x1f0] ss:$8 sps:$4 sm:$0xff]  }
0x299c   : > { %8609 = vmatpush1.bf16.msra.mxu1 %v15878_v42  ;;  %v15943_v42 = vld [vmem:[#allocation64 + $0x264] ss:$8 sps:$4 sm:$0xff]  }
0x299d   : > { %8610 = vmatprep.subr.bf16.mxu1 %v15883_v43  ;;  %v15941_v43 = vld [vmem:[#allocation64 + $0x260] ss:$8 sps:$4 sm:$0xff]  }
0x29a0   : > { %8611 = vmatpush1.bf16.msra.mxu1 %v15881_v45  ;;  %v15946_v45 = vld [vmem:[#allocation64 + $0x274] ss:$8 sps:$4 sm:$0xff]  }
0x29a1   : > { %8612 = vmatprep.subr.bf16.mxu1 %v15886_v46  ;;  %v15944_v46 = vld [vmem:[#allocation64 + $0x270] ss:$8 sps:$4 sm:$0xff]  }
0x29a4   : > { %8613 = vmatpush1.bf16.msra.mxu1 %v15884_v49  ;;  %v15949_v49 = vld [vmem:[#allocation64 + $0x284] ss:$8 sps:$4 sm:$0xff]  }
0x29a5   : > { %8614 = vmatprep.subr.bf16.mxu1 %v15889_v50  ;;  %v15947_v50 = vld [vmem:[#allocation64 + $0x280] ss:$8 sps:$4 sm:$0xff]  }
0x29a8   : > { %8615 = vmatpush1.bf16.msra.mxu1 %v15887_v54  ;;  %v15952_v54 = vld [vmem:[#allocation64 + $0x294] ss:$8 sps:$4 sm:$0xff]  }
0x29a9   : > { %8616 = vmatprep.subr.bf16.mxu1 %v15892_v55  ;;  %v15950_v55 = vld [vmem:[#allocation64 + $0x290] ss:$8 sps:$4 sm:$0xff]  }
0x29ac   : > { %8617 = vmatpush1.bf16.msra.mxu1 %v15890_v56  ;;  %v15955_v56 = vld [vmem:[#allocation64 + $0x2a4] ss:$8 sps:$4 sm:$0xff]  }
0x29ad   : > { %8618 = vmatprep.subr.bf16.mxu1 %v15895_v2  ;;  %v15953_v2 = vld [vmem:[#allocation64 + $0x2a0] ss:$8 sps:$4 sm:$0xff]  }
0x29b0   : > { %8619 = vmatpush1.bf16.msra.mxu1 %v15893_v3  ;;  %v15958_v3 = vld [vmem:[#allocation64 + $0x2b4] ss:$8 sps:$4 sm:$0xff]  }
0x29b1   : > { %8620 = vmatprep.subr.bf16.mxu1 %v15898_v11  ;;  %v15956_v11 = vld [vmem:[#allocation64 + $0x2b0] ss:$8 sps:$4 sm:$0xff]  }
0x29b4   : > { %8621 = vmatpush1.bf16.msra.mxu1 %v15896_v12  ;;  %v15961_v12 = vld [vmem:[#allocation64 + $0x2c4] ss:$8 sps:$4 sm:$0xff]  }
0x29b5   : > { %8622 = vmatprep.subr.bf16.mxu1 %v15901_v4  ;;  %v15959_v4 = vld [vmem:[#allocation64 + $0x2c0] ss:$8 sps:$4 sm:$0xff]  }
0x29b8   : > { %8623 = vmatpush1.bf16.msra.mxu1 %v15899_v61  ;;  %v15964_v61 = vld [vmem:[#allocation64 + $0x2d4] ss:$8 sps:$4 sm:$0xff]  }
0x29b9   : > { %8624 = vmatprep.subr.bf16.mxu1 %v15904_v13  ;;  %v15962_v13 = vld [vmem:[#allocation64 + $0x2d0] ss:$8 sps:$4 sm:$0xff]  }
0x29bc   : > { %8625 = vmatpush1.bf16.msra.mxu1 %v15902_v14  ;;  %v15967_v14 = vld [vmem:[#allocation64 + $0x2e4] ss:$8 sps:$4 sm:$0xff]  }
0x29bd   : > { %8626 = vmatprep.subr.bf16.mxu1 %v15907_v35  ;;  %v15965_v35 = vld [vmem:[#allocation64 + $0x2e0] ss:$8 sps:$4 sm:$0xff]  }
0x29c0   : > { %8627 = vmatpush1.bf16.msra.mxu1 %v15905_v17  ;;  %v15970_v17 = vld [vmem:[#allocation64 + $0x2f4] ss:$8 sps:$4 sm:$0xff]  }
0x29c1   : > { %8628 = vmatprep.subr.bf16.mxu1 %v15910_v33  ;;  %v15968_v33 = vld [vmem:[#allocation64 + $0x2f0] ss:$8 sps:$4 sm:$0xff]  }
0x29c4   : > { %8629 = vmatpush1.bf16.msra.mxu1 %v15908_v44  ;;  %v8172_v44 = vshrl.u32 %v19801_v47, 16  ;;  %v15974_v47 = vld [vmem:[#allocation65 + $0x110] ss:$8 sps:$4 sm:$0xff]  }
0x29c5   : > { %8630 = vmatprep.subr.bf16.mxu1 %v15913_v21 }
0x29c6   : > { %v8178_v21 = vsel %vm19171_vm7, %v8172_v44, 0  ;;  %v16001_v44 = vld [vmem:[#allocation65 + $0x1a0] ss:$8 sps:$4 sm:$0xff]  }
0x29c8   : > { %8631 = vmatpush1.bf16.msra.mxu1 %v15911_v8 }
0x29c9   : > { %8632 = vmatprep.subr.bf16.mxu1 %v15916_v60 }
0x29cc   : > { %8633 = vmatpush1.bf16.msra.mxu1 %v15914_v58 }
0x29cd   : > { %8634 = vmatprep.subr.bf16.mxu1 %v15919_v59 }
0x29d0   : > { %8635 = vmatpush1.bf16.msra.mxu1 %v15917_v63 }
0x29d1   : > { %8636 = vmatprep.subr.bf16.mxu1 %v15922_v7 }
0x29d4   : > { %8637 = vmatpush1.bf16.msra.mxu1 %v15920_v5 }
0x29d5   : > { %8840 = vmatprep.subr.bf16.mxu1 %v15925_v6  ;;  %v15971_v6 = vld [vmem:[#allocation65 + $0x100] ss:$8 sps:$4 sm:$0xff]  }
0x29d6   : > { %9207 = vmatpush1.bf16.msra.mxu0 %v15971_v6  ;;  %v16018_v6 = vld [vmem:[#allocation65 + $0x1f4] ss:$8 sps:$4 sm:$0xff]  }
0x29d7   : > { %8639 = vmatmul.mubr.bf16.vlgmr.msra.gmra.mrb[48].mxu1 %v8170_v28  ;;  %9208 = vmatprep.subr.bf16.mxu0 %v15976_v25  ;;  %v15982_v28 = vld [vmem:[#allocation65 + $0x134] ss:$8 sps:$4 sm:$0xff]   ;;  %v16021_v25 = vld [vmem:[#allocation65 + $0x4] ss:$8 sps:$4 sm:$0xff]  }
0x29d8   : > { %8841 = vmatpush1.bf16.msra.mxu1 %v15923_v20  ;;  %8872 = vmatprep.mubr.bf16.mxu1 %v8179_v29  ;;  %v15979_v20 = vld [vmem:[#allocation65 + $0x124] ss:$8 sps:$4 sm:$0xff]   ;;  %v15980_v29 = vld [vmem:[#allocation65 + $0x130] ss:$8 sps:$4 sm:$0xff]  }
0x29d9   : > { %8842 = vmatprep.subr.bf16.mxu1 %v15928_v26  ;;  %v15977_v26 = vld [vmem:[#allocation65 + $0x120] ss:$8 sps:$4 sm:$0xff]  }
0x29da   : > { %9209 = vmatpush1.bf16.msra.mxu0 %v15974_v47 }
0x29db   : > { %9210 = vmatprep.subr.bf16.mxu0 %v15979_v20 }
0x29dc   : > { %8843 = vmatpush1.bf16.msra.mxu1 %v15926_v30  ;;  %v15985_v30 = vld [vmem:[#allocation65 + $0x144] ss:$8 sps:$4 sm:$0xff]  }
0x29dd   : > { %8844 = vmatprep.subr.bf16.mxu1 %v15931_v31  ;;  %v15983_v31 = vld [vmem:[#allocation65 + $0x140] ss:$8 sps:$4 sm:$0xff]  }
0x29de   : > { %9211 = vmatpush1.bf16.msra.mxu0 %v15977_v26 }
0x29df   : > { %9212 = vmatprep.subr.bf16.mxu0 %v15982_v28 }
0x29e0   : > { %8845 = vmatpush1.bf16.msra.mxu1 %v15929_v32  ;;  %v15988_v32 = vld [vmem:[#allocation65 + $0x154] ss:$8 sps:$4 sm:$0xff]  }
0x29e1   : > { %8846 = vmatprep.subr.bf16.mxu1 %v15934_v34  ;;  %v15986_v34 = vld [vmem:[#allocation65 + $0x150] ss:$8 sps:$4 sm:$0xff]  }
0x29e2   : > { %9213 = vmatpush1.bf16.msra.mxu0 %v15980_v29 }
0x29e3   : > { %9214 = vmatprep.subr.bf16.mxu0 %v15985_v30 }
0x29e4   : > { %8847 = vmatpush1.bf16.msra.mxu1 %v15932_v48  ;;  %v15991_v48 = vld [vmem:[#allocation65 + $0x164] ss:$8 sps:$4 sm:$0xff]  }
0x29e5   : > { %8848 = vmatprep.subr.bf16.mxu1 %v15937_v37  ;;  %v15989_v37 = vld [vmem:[#allocation65 + $0x160] ss:$8 sps:$4 sm:$0xff]  }
0x29e6   : > { %9215 = vmatpush1.bf16.msra.mxu0 %v15983_v31 }
0x29e7   : > { %9216 = vmatprep.subr.bf16.mxu0 %v15988_v32 }
0x29e8   : > { %8849 = vmatpush1.bf16.msra.mxu1 %v15935_v39 }
0x29e9   : > { %8850 = vmatprep.subr.bf16.mxu1 %v15940_v40 }
0x29ea   : > { %9217 = vmatpush1.bf16.msra.mxu0 %v15986_v34 }
0x29eb   : > { %9218 = vmatprep.subr.bf16.mxu0 %v15991_v48 }
0x29ec   : > { %8851 = vmatpush1.bf16.msra.mxu1 %v15938_v41 }
0x29ed   : > { %8852 = vmatprep.subr.bf16.mxu1 %v15943_v42 }
0x29ee   : > { %9219 = vmatpush1.bf16.msra.mxu0 %v15989_v37  ;;  %v8883_v37 = vld [vmem:[#allocation61] sm:$0xf] }
0x29f0   : > { %8853 = vmatpush1.bf16.msra.mxu1 %v15941_v43 }
0x29f1   : > { %8854 = vmatprep.subr.bf16.mxu1 %v15946_v45 }
0x29f4   : > { %8855 = vmatpush1.bf16.msra.mxu1 %v15944_v46 }
0x29f5   : > { %8856 = vmatprep.subr.bf16.mxu1 %v15949_v49 }
0x29f8   : > { %8857 = vmatpush1.bf16.msra.mxu1 %v15947_v50 }
0x29f9   : > { %8858 = vmatprep.subr.bf16.mxu1 %v15952_v54 }
0x29fc   : > { %8859 = vmatpush1.bf16.msra.mxu1 %v15950_v55 }
0x29fd   : > { %8860 = vmatprep.subr.bf16.mxu1 %v15955_v56 }
0x2a00   : > { %8861 = vmatpush1.bf16.msra.mxu1 %v15953_v2 }
0x2a01   : > { %8862 = vmatprep.subr.bf16.mxu1 %v15958_v3 }
0x2a04   : > { %8863 = vmatpush1.bf16.msra.mxu1 %v15956_v11 }
0x2a05   : > { %8864 = vmatprep.subr.bf16.mxu1 %v15961_v12 }
0x2a08   : > { %8865 = vmatpush1.bf16.msra.mxu1 %v15959_v4  ;;  %v15994_v4 = vld [vmem:[#allocation65 + $0x174] ss:$8 sps:$4 sm:$0xff]  }
0x2a09   : > { %8866 = vmatprep.subr.bf16.mxu1 %v15964_v61  ;;  %v15992_v61 = vld [vmem:[#allocation65 + $0x170] ss:$8 sps:$4 sm:$0xff]   ;;  %9220 = vmatprep.subr.bf16.mxu0 %v15994_v4 }
0x2a0a   : > { %9221 = vmatpush1.bf16.msra.mxu0 %v15992_v61 }
0x2a0c   : > { %8867 = vmatpush1.bf16.msra.mxu1 %v15962_v13  ;;  %v15997_v13 = vld [vmem:[#allocation65 + $0x184] ss:$8 sps:$4 sm:$0xff]  }
0x2a0d   : > { %8868 = vmatprep.subr.bf16.mxu1 %v15967_v14  ;;  %v15995_v14 = vld [vmem:[#allocation65 + $0x180] ss:$8 sps:$4 sm:$0xff]   ;;  %9222 = vmatprep.subr.bf16.mxu0 %v15997_v13 }
0x2a0e   : > { %9223 = vmatpush1.bf16.msra.mxu0 %v15995_v14 }
0x2a10   : > { %8869 = vmatpush1.bf16.msra.mxu1 %v15965_v35  ;;  %v16000_v35 = vld [vmem:[#allocation65 + $0x194] ss:$8 sps:$4 sm:$0xff]  }
0x2a11   : > { %8870 = vmatprep.subr.bf16.mxu1 %v15970_v17  ;;  %v15998_v17 = vld [vmem:[#allocation65 + $0x190] ss:$8 sps:$4 sm:$0xff]   ;;  %9224 = vmatprep.subr.bf16.mxu0 %v16000_v35  ;;  %v16019_v35 = vld [vmem:[#allocation65] ss:$8 sps:$4 sm:$0xff]  }
0x2a12   : > { %9225 = vmatpush1.bf16.msra.mxu0 %v15998_v17 }
0x2a14   : > { %8871 = vmatpush1.bf16.msra.mxu1 %v15968_v33  ;;  %v16003_v33 = vld [vmem:[#allocation65 + $0x1a4] ss:$8 sps:$4 sm:$0xff]  }
0x2a15   : > { %9226 = vmatprep.subr.bf16.mxu0 %v16003_v33  ;;  %v16024_v33 = vld [vmem:[#allocation65 + $0x14] ss:$8 sps:$4 sm:$0xff]  }
0x2a16   : > { %9227 = vmatpush1.bf16.msra.mxu0 %v16001_v44  ;;  %v16022_v44 = vld [vmem:[#allocation65 + $0x10] ss:$8 sps:$4 sm:$0xff]  }
0x2a17   : > { %8873 = vmatmul.mubr.bf16.vlgmr.msra.gmra.mrb[48].mxu1 %v8178_v21  ;;  %v16006_v21 = vld [vmem:[#allocation65 + $0x1b4] ss:$8 sps:$4 sm:$0xff]  }
0x2a18   : > { %9228 = vmatprep.subr.bf16.mxu0 %v16006_v21  ;;  %v16027_v21 = vld [vmem:[#allocation65 + $0x24] ss:$8 sps:$4 sm:$0xff]  }
0x2aea   : > { %v8874_v8 = vpop.f32.mrb[48].mxu1 }
0x2aeb   : > { %v8884_v60 = vsel %vm2481_vm1, %v8874_v8, 0.0  ;;  %v8876_v58 = vpop.f32.mrb[49].mxu1 }
0x2aec   : > { %v8885_v59 = vsel %vm2481_vm1, %v8876_v58, 0.0  ;;  %v8878_v63 = vpop.f32.mrb[50].mxu1 }
0x2aed   : > { %v8879_v7 = vpop.f32.mrb[51].mxu1  ;;  %v8886_v5 = vadd.f32 %v8885_v59, %v8884_v60  ;;  %v16009_v60 = vld [vmem:[#allocation65 + $0x1c4] ss:$8 sps:$4 sm:$0xff]   ;;  %v16012_v59 = vld [vmem:[#allocation65 + $0x1d4] ss:$8 sps:$4 sm:$0xff]  }
0x2aee   : > { %v16010_v63 = vld [vmem:[#allocation65 + $0x1d0] ss:$8 sps:$4 sm:$0xff]   ;;  %v16015_v7 = vld [vmem:[#allocation65 + $0x1e4] ss:$8 sps:$4 sm:$0xff]  }
0x2aef   : > { %8887 = vadd.xlane.f32.xlu0 %v8886_v5  ;;  %v16013_v5 = vld [vmem:[#allocation65 + $0x1e0] ss:$8 sps:$4 sm:$0xff]  }
0x2b7c   : > { %v8888_v39 = vpop.xlane.xlu0 %8887 }
0x2b7d   : > { %v8889_v40 = vsel %vm2481_vm1, %v8888_v39, 0.0  ;;  %v8926_v39 = vrot.slane %v8883_v37, %v19710_v52 }
0x2b7e   : > { %v8890_v41 = vrot.slane %v8889_v40, 4 }
0x2b80   : > { %v8891_v42 = vadd.f32 %v8890_v41, %v8889_v40  ;;  %v8922_v40 = vrot.slane %v8883_v37, %v19215_v62  ;;  %v8946_v41 = vrot.slane %v8883_v37, %v19713_v23 }
0x2b82   : > { %v8892_v43 = vrot.slane %v8891_v42, 2 }
0x2b84   : > { %v8893_v45 = vadd.f32 %v8892_v43, %v8891_v42  ;;  %v8942_v42 = vrot.slane %v8883_v37, %v19218_v1  ;;  %v8936_v43 = vrot.slane %v8926_v39, %v19215_v62  ;;  %v16055_v37 = vld [vmem:[#allocation65 + $0xc0] ss:$8 sps:$4 sm:$0xff]   ;;  %v16060_v39 = vld [vmem:[#allocation65 + $0xd4] ss:$8 sps:$4 sm:$0xff]  }
0x2b86   : > { %v8894_v46 = vrot.slane %v8893_v45, 1 }
0x2b88   : > { %v8895_v49 = vadd.f32 %v8894_v46, %v8893_v45  ;;  %v8932_v45 = vrot.slane %v8922_v40, %v19215_v62  ;;  %v16058_v40 = vld [vmem:[#allocation65 + $0xd0] ss:$8 sps:$4 sm:$0xff]  }
0x2b8a   : > { %v8896_v50 = vmul.f32 0.001953125, %v8895_v49 }
0x2b8c   : > { %v19820_v54 = vsub.f32 %v8874_v8, %v8896_v50  ;;  %v19822_v55 = vsub.f32 %v8876_v58, %v8896_v50  ;;  %v16004_v8 = vld [vmem:[#allocation65 + $0x1b0] ss:$8 sps:$4 sm:$0xff]   ;;  %v16007_v58 = vld [vmem:[#allocation65 + $0x1c0] ss:$8 sps:$4 sm:$0xff]   ;;  %v8956_v50 = vrot.slane %v8946_v41, %v19218_v1  ;;  %v16063_v41 = vld [vmem:[#allocation65 + $0xe4] ss:$8 sps:$4 sm:$0xff]  }
0x2b8d   : > { %9229 = vmatpush1.bf16.msra.mxu0 %v16004_v8  ;;  %v16025_v8 = vld [vmem:[#allocation65 + $0x20] ss:$8 sps:$4 sm:$0xff]  }
0x2b8e   : > { %v8899_v56 = vmul.f32 %v19820_v54, %v19820_v54  ;;  %v8900_v2 = vmul.f32 %v19822_v55, %v19822_v55  ;;  %9230 = vmatprep.subr.bf16.mxu0 %v16009_v60  ;;  %v16030_v60 = vld [vmem:[#allocation65 + $0x34] ss:$8 sps:$4 sm:$0xff]  }
0x2b90   : > { %v8901_v3 = vsel %vm2481_vm1, %v8899_v56, 0.0  ;;  %v8902_v11 = vsel %vm2481_vm1, %v8900_v2, 0.0  ;;  %v8952_v2 = vrot.slane %v8942_v42, %v19218_v1  ;;  %v16061_v42 = vld [vmem:[#allocation65 + $0xe0] ss:$8 sps:$4 sm:$0xff]  }
0x2b91   : > { %v8903_v12 = vadd.f32 %v8902_v11, %v8901_v3  ;;  %9231 = vmatpush1.bf16.msra.mxu0 %v16007_v58  ;;  %v16028_v58 = vld [vmem:[#allocation65 + $0x30] ss:$8 sps:$4 sm:$0xff]  }
0x2b92   : > { %9232 = vmatprep.subr.bf16.mxu0 %v16012_v59  ;;  %v16033_v59 = vld [vmem:[#allocation65 + $0x44] ss:$8 sps:$4 sm:$0xff]  }
0x2b93   : > { %8904 = vadd.xlane.f32.xlu1 %v8903_v12 }
0x2b95   : > { %9233 = vmatpush1.bf16.msra.mxu0 %v16010_v63  ;;  %v16031_v63 = vld [vmem:[#allocation65 + $0x40] ss:$8 sps:$4 sm:$0xff]  }
0x2b96   : > { %9234 = vmatprep.subr.bf16.mxu0 %v16015_v7  ;;  %v16036_v7 = vld [vmem:[#allocation65 + $0x54] ss:$8 sps:$4 sm:$0xff]  }
0x2b99   : > { %9235 = vmatpush1.bf16.msra.mxu0 %v16013_v5  ;;  %v16034_v5 = vld [vmem:[#allocation65 + $0x50] ss:$8 sps:$4 sm:$0xff]  }
0x2b9a   : > { %9236 = vmatprep.subr.bf16.mxu0 %v16018_v6  ;;  %v16039_v6 = vld [vmem:[#allocation65 + $0x64] ss:$8 sps:$4 sm:$0xff]  }
0x2b9d   : > { %9237 = vmatpush1.bf16.msra.mxu0 %v16016_v24  ;;  %v16037_v24 = vld [vmem:[#allocation65 + $0x60] ss:$8 sps:$4 sm:$0xff]  }
0x2b9e   : > { %9407 = vmatprep.subr.bf16.mxu0 %v16021_v25  ;;  %v16042_v25 = vld [vmem:[#allocation65 + $0x74] ss:$8 sps:$4 sm:$0xff]  }
0x2c20   : > { %v8905_v47 = vpop.xlane.xlu1 %8904 }
0x2c21   : > { %v8906_v20 = vsel %vm2481_vm1, %v8905_v47, 0.0  ;;  %v16040_v47 = vld [vmem:[#allocation65 + $0x70] ss:$8 sps:$4 sm:$0xff]  }
0x2c22   : > { %v8907_v26 = vrot.slane %v8906_v20, 4 }
0x2c24   : > { %v8908_v28 = vadd.f32 %v8907_v26, %v8906_v20  ;;  %v16045_v20 = vld [vmem:[#allocation65 + $0x84] ss:$8 sps:$4 sm:$0xff]   ;;  %v16043_v26 = vld [vmem:[#allocation65 + $0x80] ss:$8 sps:$4 sm:$0xff]  }
0x2c26   : > { %v8909_v29 = vrot.slane %v8908_v28, 2 }
0x2c28   : > { %v8910_v30 = vadd.f32 %v8909_v29, %v8908_v28  ;;  %v16048_v28 = vld [vmem:[#allocation65 + $0x94] ss:$8 sps:$4 sm:$0xff]   ;;  %v16046_v29 = vld [vmem:[#allocation65 + $0x90] ss:$8 sps:$4 sm:$0xff]  }
0x2c2a   : > { %v8911_v31 = vrot.slane %v8910_v30, 1 }
0x2c2c   : > { %v8912_v32 = vadd.f32 %v8911_v31, %v8910_v30  ;;  %v16051_v30 = vld [vmem:[#allocation65 + $0xa4] ss:$8 sps:$4 sm:$0xff]   ;;  %v16049_v31 = vld [vmem:[#allocation65 + $0xa0] ss:$8 sps:$4 sm:$0xff]  }
0x2c2e   : > { %v8913_v34 = vmul.f32 0.001953125, %v8912_v32  ;;  %v16054_v32 = vld [vmem:[#allocation65 + $0xb4] ss:$8 sps:$4 sm:$0xff]  }
0x2c30   : > { %v8914_v48 = vadd.f32 1e-05, %v8913_v34  ;;  %v16052_v34 = vld [vmem:[#allocation65 + $0xb0] ss:$8 sps:$4 sm:$0xff]  }
0x2c32   : > { %16289 = vrsqrt.f32 %v8914_v48  ;;  %v16057_v48 = vld [vmem:[#allocation65 + $0xc4] ss:$8 sps:$4 sm:$0xff]  }
0x2c3c   : > { %v16290_v46 = vpop.eup %16289 }
0x2c3d   : > { %v8917_v49 = vmul.f32 %v16290_v46, %v19822_v55  ;;  %v8916_v56 = vmul.f32 %v16290_v46, %v19820_v54  ;;  %v16069_v46 = vld [vmem:[#allocation65 + $0x204] ss:$8 sps:$4 sm:$0xff]  }
0x2c3f   : > { %v8938_v3 = vmul.f32 %v8936_v43, %v8917_v49  ;;  %v8937_v11 = vmul.f32 %v8932_v45, %v8916_v56  ;;  %v16066_v43 = vld [vmem:[#allocation65 + $0xf4] ss:$8 sps:$4 sm:$0xff]   ;;  %v16064_v45 = vld [vmem:[#allocation65 + $0xf0] ss:$8 sps:$4 sm:$0xff]   ;;  %v16067_v56 = vld [vmem:[#allocation65 + $0x200] ss:$8 sps:$4 sm:$0xff]  }
0x2c41   : > { %v8958_v12 = vadd.f32 %v8956_v50, %v8938_v3  ;;  %v8957_v4 = vadd.f32 %v8952_v2, %v8937_v11  ;;  %v16072_v2 = vld [vmem:[#allocation65 + $0x214] ss:$8 sps:$4 sm:$0xff]  }
0x2c43   : > { %v8960_v61 = vmax.f32 %v8958_v12, 0.0  ;;  %v8959_v13 = vmax.f32 %v8957_v4, 0.0  ;;  %v16070_v12 = vld [vmem:[#allocation65 + $0x210] ss:$8 sps:$4 sm:$0xff]   ;;  %v16075_v4 = vld [vmem:[#allocation65 + $0x224] ss:$8 sps:$4 sm:$0xff]  }
0x2c45   : > { %v19841_v14 = vpack.c.bf16 %v8960_v61, %v8960_v61  ;;  %v19843_v17 = vpack.c.bf16 %v8959_v13, %v8959_v13  ;;  %v16073_v61 = vld [vmem:[#allocation65 + $0x220] ss:$8 sps:$4 sm:$0xff]   ;;  %v16078_v13 = vld [vmem:[#allocation65 + $0x234] ss:$8 sps:$4 sm:$0xff]  }
0x2c47   : > { %9238 = vmatprep.mubr.bf16.mxu0 %v19841_v14  ;;  %v8967_v55 = vshll.u32 %v19841_v14, 16  ;;  %v8964_v49 = vshll.u32 %v19843_v17, 16  ;;  %v8975_v50 = vshrl.u32 %v19841_v14, 16  ;;  %v16076_v14 = vld [vmem:[#allocation65 + $0x230] ss:$8 sps:$4 sm:$0xff]  }
0x2c48   : > { %9239 = vmatmul.mubr.bf16.vlgmr.msra.gmra.mrb[40].mxu0 %v19843_v17 }
0x2c49   : > { %9408 = vmatpush1.bf16.msra.mxu0 %v16019_v35  ;;  %v8972_v54 = vsel %vm19171_vm7, 0, %v8967_v55  ;;  %v8971_v3 = vsel %vm19171_vm7, 0, %v8964_v49  ;;  %v8980_v11 = vsel %vm19171_vm7, %v8975_v50, 0  ;;  %v16081_v35 = vld [vmem:[#allocation65 + $0x244] ss:$8 sps:$4 sm:$0xff]  }
0x2c4a   : > { %9439 = vmatprep.mubr.bf16.mxu0 %v8972_v54  ;;  %9409 = vmatprep.subr.bf16.mxu0 %v16024_v33  ;;  %v16079_v33 = vld [vmem:[#allocation65 + $0x240] ss:$8 sps:$4 sm:$0xff]   ;;  %v16084_v55 = vld [vmem:[#allocation65 + $0x254] ss:$8 sps:$4 sm:$0xff]   ;;  %v16082_v54 = vld [vmem:[#allocation65 + $0x250] ss:$8 sps:$4 sm:$0xff]  }
0x2c4d   : > { %9410 = vmatpush1.bf16.msra.mxu0 %v16022_v44  ;;  %v16087_v44 = vld [vmem:[#allocation65 + $0x264] ss:$8 sps:$4 sm:$0xff]  }
0x2c4e   : > { %9411 = vmatprep.subr.bf16.mxu0 %v16027_v21  ;;  %v16085_v21 = vld [vmem:[#allocation65 + $0x260] ss:$8 sps:$4 sm:$0xff]  }
0x2c51   : > { %9412 = vmatpush1.bf16.msra.mxu0 %v16025_v8  ;;  %v16090_v8 = vld [vmem:[#allocation65 + $0x274] ss:$8 sps:$4 sm:$0xff]  }
0x2c52   : > { %9413 = vmatprep.subr.bf16.mxu0 %v16030_v60  ;;  %v16088_v60 = vld [vmem:[#allocation65 + $0x270] ss:$8 sps:$4 sm:$0xff]  }
0x2c55   : > { %9414 = vmatpush1.bf16.msra.mxu0 %v16028_v58  ;;  %v16093_v58 = vld [vmem:[#allocation65 + $0x284] ss:$8 sps:$4 sm:$0xff]  }
0x2c56   : > { %9415 = vmatprep.subr.bf16.mxu0 %v16033_v59  ;;  %v16091_v59 = vld [vmem:[#allocation65 + $0x280] ss:$8 sps:$4 sm:$0xff]  }
0x2c59   : > { %9416 = vmatpush1.bf16.msra.mxu0 %v16031_v63  ;;  %v16096_v63 = vld [vmem:[#allocation65 + $0x294] ss:$8 sps:$4 sm:$0xff]  }
0x2c5a   : > { %9417 = vmatprep.subr.bf16.mxu0 %v16036_v7  ;;  %v16094_v7 = vld [vmem:[#allocation65 + $0x290] ss:$8 sps:$4 sm:$0xff]  }
0x2c5d   : > { %9418 = vmatpush1.bf16.msra.mxu0 %v16034_v5  ;;  %v16099_v5 = vld [vmem:[#allocation65 + $0x2a4] ss:$8 sps:$4 sm:$0xff]  }
0x2c5e   : > { %9419 = vmatprep.subr.bf16.mxu0 %v16039_v6  ;;  %v16097_v6 = vld [vmem:[#allocation65 + $0x2a0] ss:$8 sps:$4 sm:$0xff]  }
0x2c61   : > { %9420 = vmatpush1.bf16.msra.mxu0 %v16037_v24  ;;  %v16102_v24 = vld [vmem:[#allocation65 + $0x2b4] ss:$8 sps:$4 sm:$0xff]  }
0x2c62   : > { %9421 = vmatprep.subr.bf16.mxu0 %v16042_v25  ;;  %v16100_v25 = vld [vmem:[#allocation65 + $0x2b0] ss:$8 sps:$4 sm:$0xff]  }
0x2c65   : > { %9422 = vmatpush1.bf16.msra.mxu0 %v16040_v47  ;;  %v16105_v47 = vld [vmem:[#allocation65 + $0x2c4] ss:$8 sps:$4 sm:$0xff]  }
0x2c66   : > { %9423 = vmatprep.subr.bf16.mxu0 %v16045_v20  ;;  %v16103_v20 = vld [vmem:[#allocation65 + $0x2c0] ss:$8 sps:$4 sm:$0xff]  }
0x2c69   : > { %9424 = vmatpush1.bf16.msra.mxu0 %v16043_v26  ;;  %v16108_v26 = vld [vmem:[#allocation65 + $0x2d4] ss:$8 sps:$4 sm:$0xff]  }
0x2c6a   : > { %9425 = vmatprep.subr.bf16.mxu0 %v16048_v28  ;;  %v16106_v28 = vld [vmem:[#allocation65 + $0x2d0] ss:$8 sps:$4 sm:$0xff]  }
0x2c6d   : > { %9426 = vmatpush1.bf16.msra.mxu0 %v16046_v29  ;;  %v16111_v29 = vld [vmem:[#allocation65 + $0x2e4] ss:$8 sps:$4 sm:$0xff]  }
0x2c6e   : > { %9427 = vmatprep.subr.bf16.mxu0 %v16051_v30  ;;  %v16109_v30 = vld [vmem:[#allocation65 + $0x2e0] ss:$8 sps:$4 sm:$0xff]  }
0x2c71   : > { %9428 = vmatpush1.bf16.msra.mxu0 %v16049_v31  ;;  %v16114_v31 = vld [vmem:[#allocation65 + $0x2f4] ss:$8 sps:$4 sm:$0xff]  }
0x2c72   : > { %9429 = vmatprep.subr.bf16.mxu0 %v16054_v32  ;;  %v16112_v32 = vld [vmem:[#allocation65 + $0x2f0] ss:$8 sps:$4 sm:$0xff]  }
0x2c75   : > { %9430 = vmatpush1.bf16.msra.mxu0 %v16052_v34  ;;  %v8973_v34 = vshrl.u32 %v19843_v17, 16 }
0x2c76   : > { %9431 = vmatprep.subr.bf16.mxu0 %v16057_v48 }
0x2c77   : > { %v8979_v48 = vsel %vm19171_vm7, %v8973_v34, 0 }
0x2c79   : > { %9432 = vmatpush1.bf16.msra.mxu0 %v16055_v37 }
0x2c7a   : > { %9433 = vmatprep.subr.bf16.mxu0 %v16060_v39 }
0x2c7d   : > { %9434 = vmatpush1.bf16.msra.mxu0 %v16058_v40 }
0x2c7e   : > { %9435 = vmatprep.subr.bf16.mxu0 %v16063_v41 }
0x2c81   : > { %9436 = vmatpush1.bf16.msra.mxu0 %v16061_v42 }
0x2c82   : > { %9437 = vmatprep.subr.bf16.mxu0 %v16066_v43 }
0x2c85   : > { %9438 = vmatpush1.bf16.msra.mxu0 %v16064_v45 }
0x2c86   : > { %9641 = vmatprep.subr.bf16.mxu0 %v16069_v46 }
0x2c88   : > { %9440 = vmatmul.mubr.bf16.vlgmr.msra.gmra.mrb[40].mxu0 %v8971_v3 }
0x2c89   : > { %9642 = vmatpush1.bf16.msra.mxu0 %v16067_v56  ;;  %9673 = vmatprep.mubr.bf16.mxu0 %v8980_v11 }
0x2c8a   : > { %9643 = vmatprep.subr.bf16.mxu0 %v16072_v2 }
0x2c8d   : > { %9644 = vmatpush1.bf16.msra.mxu0 %v16070_v12 }
0x2c8e   : > { %9645 = vmatprep.subr.bf16.mxu0 %v16075_v4 }
0x2c91   : > { %9646 = vmatpush1.bf16.msra.mxu0 %v16073_v61 }
0x2c92   : > { %9647 = vmatprep.subr.bf16.mxu0 %v16078_v13 }
0x2c95   : > { %9648 = vmatpush1.bf16.msra.mxu0 %v16076_v14 }
0x2c96   : > { %9649 = vmatprep.subr.bf16.mxu0 %v16081_v35 }
0x2c99   : > { %9650 = vmatpush1.bf16.msra.mxu0 %v16079_v33 }
0x2c9a   : > { %9651 = vmatprep.subr.bf16.mxu0 %v16084_v55 }
0x2c9d   : > { %9652 = vmatpush1.bf16.msra.mxu0 %v16082_v54  ;;  %v16115_v54 = vld [vmem:[%s20387_s23 + $0xc0] sm:$0xff]   ;;  %s17683_s23 = scalar_lea.vmem %s20133_s6, 16 }
0x2c9e   : > { %9653 = vmatprep.subr.bf16.mxu0 %v16087_v44  ;;  %v16116_v44 = vld [vmem:[%s20388_s10 + $0x80] sm:$0xff]   ;;  %13862 = vmatprep.subr.bf16.mxu1 %v16115_v54  ;;  %p17684_p10 = scmp.ne.s32.totalorder %s20133_s6, %s17683_s23  ;;  %p17691_p5 = scmp.lt.s32.totalorder %s17689_s7, %s17683_s23 }
0x2c9f   : > { %13863 = vmatpush3.bf16.msra.mxu1 %v16116_v44 }
0x2ca0   : > { %p17685_p13 = pnand %p17684_p10, %p20389_p12  ;;  %p17692_p6 = por %p17691_p5, %p17690_p1 }
0x2ca1   : > { %9654 = vmatpush1.bf16.msra.mxu0 %v16085_v21  ;;  %v16117_v21 = vld [vmem:[%s20388_s10 + $0xc8] sm:$0xff]  }
0x2ca2   : > { %9655 = vmatprep.subr.bf16.mxu0 %v16090_v8  ;;  %v16118_v8 = vld [vmem:[%s20388_s10 + $0x88] sm:$0xff]   ;;  %13864 = vmatprep.subr.bf16.mxu1 %v16117_v21  ;;  %p17686_p0 = pneg %p17685_p13 }
0x2ca3   : > { %13865 = vmatpush3.bf16.msra.mxu1 %v16118_v8  ;;  %v16133_v21 = vld [vmem:[%s20388_s10 + $0x48] sm:$0xff]  }
0x2ca4   : > { %p17693_p2 = pnand %p17692_p6, %p17686_p0 }
0x2ca5   : > { %9656 = vmatpush1.bf16.msra.mxu0 %v16088_v60  ;;  %v16119_v60 = vld [vmem:[%s20388_s10 + $0xd0] sm:$0xff]  }
0x2ca6   : > { %9657 = vmatprep.subr.bf16.mxu0 %v16093_v58  ;;  %v16120_v58 = vld [vmem:[%s20388_s10 + $0x90] sm:$0xff]   ;;  %13866 = vmatprep.subr.bf16.mxu1 %v16119_v60 }
0x2ca7   : > { %13867 = vmatpush3.bf16.msra.mxu1 %v16120_v58  ;;  %v16135_v60 = vld [vmem:[%s20388_s10 + $0x50] sm:$0xff]  }
0x2ca8   : > { %v16136_v58 = vld [vmem:[%s20388_s10 + $0x10] sm:$0xff]  }
0x2ca9   : > { %9658 = vmatpush1.bf16.msra.mxu0 %v16091_v59  ;;  %v16121_v59 = vld [vmem:[%s20388_s10 + $0xd8] sm:$0xff]  }
0x2caa   : > { %9659 = vmatprep.subr.bf16.mxu0 %v16096_v63  ;;  %v16122_v63 = vld [vmem:[%s20388_s10 + $0x98] sm:$0xff]   ;;  %13868 = vmatprep.subr.bf16.mxu1 %v16121_v59 }
0x2cab   : > { %13869 = vmatpush3.bf16.msra.mxu1 %v16122_v63  ;;  %v16137_v59 = vld [vmem:[%s20388_s10 + $0x58] sm:$0xff]  }
0x2cac   : > { %v16138_v63 = vld [vmem:[%s20388_s10 + $0x18] sm:$0xff]  }
0x2cad   : > { %9660 = vmatpush1.bf16.msra.mxu0 %v16094_v7  ;;  %v16123_v7 = vld [vmem:[%s20388_s10 + $0xe0] sm:$0xff]  }
0x2cae   : > { %9661 = vmatprep.subr.bf16.mxu0 %v16099_v5  ;;  %v16124_v5 = vld [vmem:[%s20388_s10 + $0xa0] sm:$0xff]   ;;  %13870 = vmatprep.subr.bf16.mxu1 %v16123_v7 }
0x2caf   : > { %13871 = vmatpush3.bf16.msra.mxu1 %v16124_v5  ;;  %v16139_v7 = vld [vmem:[%s20388_s10 + $0x60] sm:$0xff]  }
0x2cb0   : > { %v16140_v5 = vld [vmem:[%s20388_s10 + $0x20] sm:$0xff]  }
0x2cb1   : > { %9662 = vmatpush1.bf16.msra.mxu0 %v16097_v6  ;;  %v16125_v6 = vld [vmem:[%s20388_s10 + $0xe8] sm:$0xff]  }
0x2cb2   : > { %9663 = vmatprep.subr.bf16.mxu0 %v16102_v24  ;;  %v16126_v24 = vld [vmem:[%s20388_s10 + $0xa8] sm:$0xff]   ;;  %13872 = vmatprep.subr.bf16.mxu1 %v16125_v6 }
0x2cb3   : > { %13873 = vmatpush3.bf16.msra.mxu1 %v16126_v24  ;;  %v16141_v6 = vld [vmem:[%s20388_s10 + $0x68] sm:$0xff]  }
0x2cb4   : > { %v16142_v24 = vld [vmem:[%s20388_s10 + $0x28] sm:$0xff]  }
0x2cb5   : > { %9664 = vmatpush1.bf16.msra.mxu0 %v16100_v25  ;;  %v16127_v25 = vld [vmem:[%s20388_s10 + $0xf0] sm:$0xff]  }
0x2cb6   : > { %9665 = vmatprep.subr.bf16.mxu0 %v16105_v47  ;;  %v16128_v47 = vld [vmem:[%s20388_s10 + $0xb0] sm:$0xff]   ;;  %13874 = vmatprep.subr.bf16.mxu1 %v16127_v25 }
0x2cb7   : > { %13875 = vmatpush3.bf16.msra.mxu1 %v16128_v47  ;;  %v16143_v25 = vld [vmem:[%s20388_s10 + $0x70] sm:$0xff]  }
0x2cb8   : > { %v16144_v47 = vld [vmem:[%s20388_s10 + $0x30] sm:$0xff]  }
0x2cb9   : > { %9666 = vmatpush1.bf16.msra.mxu0 %v16103_v20  ;;  %v16129_v20 = vld [vmem:[%s20388_s10 + $0xf8] sm:$0xff]  }
0x2cba   : > { %9667 = vmatprep.subr.bf16.mxu0 %v16108_v26  ;;  %v16130_v26 = vld [vmem:[%s20388_s10 + $0xb8] sm:$0xff]   ;;  %13876 = vmatprep.subr.bf16.mxu1 %v16129_v20 }
0x2cbb   : > { %13877 = vmatpush3.bf16.msra.mxu1 %v16130_v26  ;;  %v16145_v20 = vld [vmem:[%s20388_s10 + $0x78] sm:$0xff]  }
0x2cbc   : > { %v16146_v26 = vld [vmem:[%s20388_s10 + $0x38] sm:$0xff]  }
0x2cbd   : > { %9668 = vmatpush1.bf16.msra.mxu0 %v16106_v28  ;;  %v16131_v28 = vld [vmem:[%s20388_s10 + $0x40] sm:$0xff]  }
0x2cbe   : > { %9669 = vmatprep.subr.bf16.mxu0 %v16111_v29  ;;  %13884 = vmatprep.subr.bf16.mxu1 %v16131_v28  ;;  %v16147_v28 = vld [vmem:[%s20388_s10 + $0x140] sm:$0xff]  }
0x2cc1   : > { %9670 = vmatpush1.bf16.msra.mxu0 %v16109_v30 }
0x2cc2   : > { %9671 = vmatprep.subr.bf16.mxu0 %v16114_v31 }
0x2cc5   : > { %9672 = vmatpush1.bf16.msra.mxu0 %v16112_v32 }
0x2cc6   : > { %14588 = vmatprep.subr.mxu0 %v17973_v0 }
0x2cc8   : > { %9674 = vmatmul.mubr.bf16.vlgmr.msra.gmra.mrb[40].mxu0 %v8979_v48 }
0x2cc9   : > { %14590 = vmatprep.mubr.msk.f32.mxu0 %vm17975_vm2, %v17973_v0 }
0x2d9b   : > { %v9675_v37 = vpop.f32.mrb[40].mxu0 }
0x2d9c   : > { %v9685_v39 = vsel %vm2481_vm1, %v9675_v37, 0.0  ;;  %v9677_v40 = vpop.f32.mrb[41].mxu0 }
0x2d9d   : > { %v9686_v41 = vsel %vm2481_vm1, %v9677_v40, 0.0  ;;  %v9679_v42 = vpop.f32.mrb[42].mxu0 }
0x2d9e   : > { %v9680_v43 = vpop.f32.mrb[43].mxu0  ;;  %v9687_v45 = vadd.f32 %v9686_v41, %v9685_v39  ;;  %v9684_v42 = vld [vmem:[#allocation62] sm:$0xf] }
0x2d9f   : > { %v9727_v43 = vrot.slane %v9684_v42, %v19710_v52 }
0x2da0   : > { %9688 = vadd.xlane.f32.xlu0 %v9687_v45  ;;  %v9723_v45 = vrot.slane %v9684_v42, %v19215_v62 }
0x2e2d   : > { %v9689_v17 = vpop.xlane.xlu0 %9688 }
0x2e2e   : > { %v9690_v46 = vsel %vm2481_vm1, %v9689_v17, 0.0  ;;  %v9747_v17 = vrot.slane %v9684_v42, %v19713_v23 }
0x2e2f   : > { %v9691_v49 = vrot.slane %v9690_v46, 4 }
0x2e31   : > { %v9692_v50 = vadd.f32 %v9691_v49, %v9690_v46  ;;  %v9743_v46 = vrot.slane %v9684_v42, %v19218_v1  ;;  %v9737_v49 = vrot.slane %v9727_v43, %v19215_v62  ;;  %v16154_v42 = vld [vmem:[%s20388_s10 + $0x118] sm:$0xff]   ;;  %v16155_v43 = vld [vmem:[%s20388_s10 + $0x160] sm:$0xff]  }
0x2e33   : > { %v9693_v56 = vrot.slane %v9692_v50, 2  ;;  %v9753_v52 = vrot.slane %v9743_v46, %v19218_v1  ;;  %v16158_v46 = vld [vmem:[%s20388_s10 + $0x128] sm:$0xff]  }
0x2e35   : > { %v9694_v2 = vadd.f32 %v9693_v56, %v9692_v50  ;;  %v9733_v50 = vrot.slane %v9723_v45, %v19215_v62  ;;  %v16156_v45 = vld [vmem:[%s20388_s10 + $0x120] sm:$0xff]  }
0x2e37   : > { %v9695_v3 = vrot.slane %v9694_v2, 1 }
0x2e39   : > { %v9696_v11 = vadd.f32 %v9695_v3, %v9694_v2  ;;  %v9757_v3 = vrot.slane %v9747_v17, %v19218_v1  ;;  %v16157_v17 = vld [vmem:[%s20388_s10 + $0x168] sm:$0xff]  }
0x2e3b   : > { %v9697_v12 = vmul.f32 0.001953125, %v9696_v11 }
0x2e3d   : > { %v19865_v4 = vsub.f32 %v9675_v37, %v9697_v12  ;;  %v9699_v61 = vsub.f32 %v9677_v40, %v9697_v12 }
0x2e3f   : > { %v9700_v13 = vmul.f32 %v19865_v4, %v19865_v4  ;;  %v9701_v14 = vmul.f32 %v9699_v61, %v9699_v61 }
0x2e41   : > { %v9702_v35 = vsel %vm2481_vm1, %v9700_v13, 0.0  ;;  %v9703_v33 = vsel %vm2481_vm1, %v9701_v14, 0.0 }
0x2e42   : > { %v9704_v55 = vadd.f32 %v9703_v33, %v9702_v35 }
0x2e44   : > { %9705 = vadd.xlane.f32.xlu1 %v9704_v55 }
0x2ed1   : > { %v9706_v29 = vpop.xlane.xlu1 %9705 }
0x2ed2   : > { %v9707_v30 = vsel %vm2481_vm1, %v9706_v29, 0.0 }
0x2ed3   : > { %v9708_v31 = vrot.slane %v9707_v30, 4 }
0x2ed5   : > { %v9709_v32 = vadd.f32 %v9708_v31, %v9707_v30  ;;  %v16148_v31 = vld [vmem:[%s20388_s10 + $0x100] sm:$0xff]  }
0x2ed7   : > { %v9710_v34 = vrot.slane %v9709_v32, 2 }
0x2ed9   : > { %v9711_v48 = vadd.f32 %v9710_v34, %v9709_v32  ;;  %v16149_v32 = vld [vmem:[%s20388_s10 + $0x148] sm:$0xff]  }
0x2edb   : > { %v9712_v37 = vrot.slane %v9711_v48, 1 }
0x2edd   : > { %v9713_v39 = vadd.f32 %v9712_v37, %v9711_v48  ;;  %v16150_v37 = vld [vmem:[%s20388_s10 + $0x108] sm:$0xff]  }
0x2edf   : > { %v9714_v40 = vmul.f32 0.001953125, %v9713_v39  ;;  %v16151_v39 = vld [vmem:[%s20388_s10 + $0x150] sm:$0xff]  }
0x2ee1   : > { %v9715_v41 = vadd.f32 1e-05, %v9714_v40  ;;  %v16152_v40 = vld [vmem:[%s20388_s10 + $0x110] sm:$0xff]  }
0x2ee3   : > { %16291 = vrsqrt.f32 %v9715_v41  ;;  %v16153_v41 = vld [vmem:[%s20388_s10 + $0x158] sm:$0xff]  }
0x2eed   : > { %v16292_v56 = vpop.eup %16291 }
0x2eee   : > { %v9718_v2 = vmul.f32 %v16292_v56, %v9699_v61  ;;  %v9717_v11 = vmul.f32 %v16292_v56, %v19865_v4  ;;  %v16132_v4 = vld [vmem:[%s20388_s10] sm:$0xff]   ;;  %v16161_v56 = vld [vmem:[%s20388_s10 + $0x178] sm:$0xff]  }
0x2ef0   : > { %v9739_v12 = vmul.f32 %v9737_v49, %v9718_v2  ;;  %v9738_v13 = vmul.f32 %v9733_v50, %v9717_v11  ;;  %v16159_v49 = vld [vmem:[%s20388_s10 + $0x170] sm:$0xff]   ;;  %v16162_v2 = vld [vmem:[%s20388_s10 + $0x138] sm:$0xff]  }
0x2ef1   : > { %v16160_v50 = vld [vmem:[%s20388_s10 + $0x130] sm:$0xff]  }
0x2ef2   : > { %v9759_v23 = vadd.f32 %v9757_v3, %v9739_v12  ;;  %v9758_v14 = vadd.f32 %v9753_v52, %v9738_v13  ;;  %v16163_v11 = vld [vmem:[#allocation74 + $0x40] sm:$0xff]   ;;  %v16164_v12 = vld [vmem:[#allocation74 + $0x48] sm:$0xff]   ;;  %v16165_v13 = vld [vmem:[#allocation74 + $0x50] sm:$0xff]  }
0x2ef4   : > { %v9761_v35 = vadd.f32 %v9759_v23, %v19791_v51  ;;  %v9760_v33 = vadd.f32 %v9758_v14, %v19793_v36  ;;  %v16134_v36 = vld [vmem:[%s20388_s10 + $0x8] sm:$0xff]  }
0x2ef5   : > { %v16166_v23 = vld [vmem:[#allocation74 + $0x58] sm:$0xff]   ;;  %v16167_v14 = vld [vmem:[#allocation74 + $0x60] sm:$0xff]  }
0x2ef6   : > { %v9763_v55 = vmax.f32 %v9761_v35, 0.0  ;;  %v9762_v54 = vmax.f32 %v9760_v33, 0.0  ;;  %v16168_v35 = vld [vmem:[#allocation74 + $0x68] sm:$0xff]   ;;  %v16169_v33 = vld [vmem:[#allocation74 + $0x70] sm:$0xff]  }
0x2ef8   : > { %v9765_v61 = vpack.c.bf16 %v9763_v55, %v9763_v55  ;;  %v19900_v44 = vpack.c.bf16 %v9762_v54, %v9762_v54  ;;  %v16170_v55 = vld [vmem:[#allocation74 + $0x78] sm:$0xff]   ;;  %v16171_v54 = vld [vmem:[#allocation74] sm:$0xff]  }
0x2efa   : > { %9977 = vmatprep.mubr.bf16.mxu1 %v9765_v61  ;;  %v9770_v8 = vshll.u32 %v9765_v61, 16  ;;  %v9767_v29 = vshll.u32 %v19900_v44, 16  ;;  %v9778_v30 = vshrl.u32 %v9765_v61, 16  ;;  %v9776_v3 = vshrl.u32 %v19900_v44, 16  ;;  %v16172_v61 = vld [vmem:[#allocation74 + $0x8] sm:$0xff]  }
0x2efb   : > { %9978 = vmatmul.mubr.bf16.vlgmr.msra.gmra.mrb[52].mxu1 %v19900_v44  ;;  %v16173_v44 = vld [vmem:[#allocation74 + $0x10] sm:$0xff]  }
0x2efc   : > { %13885 = vmatpush3.bf16.msra.mxu1 %v16132_v4  ;;  %v9775_v51 = vsel %vm19171_vm7, 0, %v9770_v8  ;;  %v9774_v34 = vsel %vm19171_vm7, 0, %v9767_v29  ;;  %v9783_v48 = vsel %vm19171_vm7, %v9778_v30, 0  ;;  %v9782_v52 = vsel %vm19171_vm7, %v9776_v3, 0  ;;  %v16174_v4 = vld [vmem:[#allocation74 + $0x18] sm:$0xff]   ;;  %v16177_v8 = vld [vmem:[#allocation74 + $0x30] sm:$0xff]  }
0x2efd   : > { %10113 = vmatprep.mubr.bf16.mxu1 %v9775_v51  ;;  %13886 = vmatprep.subr.bf16.mxu1 %v16133_v21  ;;  %v16175_v21 = vld [vmem:[#allocation74 + $0x20] sm:$0xff]   ;;  %v16178_v51 = vld [vmem:[#allocation74 + $0x38] sm:$0xff]  }
0x2f00   : > { %13887 = vmatpush3.bf16.msra.mxu1 %v16134_v36  ;;  %v16179_v36 = vld [vmem:[#allocation74 + $0x80] sm:$0xff]  }
0x2f01   : > { %13888 = vmatprep.subr.bf16.mxu1 %v16135_v60  ;;  %v16180_v60 = vld [vmem:[#allocation74 + $0x88] sm:$0xff]  }
0x2f04   : > { %13889 = vmatpush3.bf16.msra.mxu1 %v16136_v58  ;;  %v16181_v58 = vld [vmem:[#allocation74 + $0x90] sm:$0xff]  }
0x2f05   : > { %13890 = vmatprep.subr.bf16.mxu1 %v16137_v59  ;;  %v16182_v59 = vld [vmem:[#allocation74 + $0x98] sm:$0xff]  }
0x2f08   : > { %13891 = vmatpush3.bf16.msra.mxu1 %v16138_v63  ;;  %v16183_v63 = vld [vmem:[#allocation74 + $0xa0] sm:$0xff]  }
0x2f09   : > { %13892 = vmatprep.subr.bf16.mxu1 %v16139_v7  ;;  %v16185_v7 = vld [vmem:[#allocation74 + $0xb0] sm:$0xff]  }
0x2f0c   : > { %13893 = vmatpush3.bf16.msra.mxu1 %v16140_v5  ;;  %v16186_v5 = vld [vmem:[#allocation74 + $0xb8] sm:$0xff]  }
0x2f0d   : > { %13894 = vmatprep.subr.bf16.mxu1 %v16141_v6 }
0x2f10   : > { %13895 = vmatpush3.bf16.msra.mxu1 %v16142_v24 }
0x2f11   : > { %13896 = vmatprep.subr.bf16.mxu1 %v16143_v25 }
0x2f14   : > { %13897 = vmatpush3.bf16.msra.mxu1 %v16144_v47 }
0x2f15   : > { %13898 = vmatprep.subr.bf16.mxu1 %v16145_v20 }
0x2f18   : > { %13899 = vmatpush3.bf16.msra.mxu1 %v16146_v26 }
0x2f19   : > { %13906 = vmatprep.subr.bf16.mxu1 %v16147_v28 }
0x2f1b   : > { %10114 = vmatmul.mubr.bf16.vlgmr.msra.gmra.mrb[56].mxu1 %v9774_v34 }
0x2f1c   : > { %13907 = vmatpush3.bf16.msra.mxu1 %v16148_v31  ;;  %10282 = vmatprep.mubr.bf16.mxu1 %v9783_v48 }
0x2f1d   : > { %13908 = vmatprep.subr.bf16.mxu1 %v16149_v32 }
0x2f20   : > { %13909 = vmatpush3.bf16.msra.mxu1 %v16150_v37 }
0x2f21   : > { %13910 = vmatprep.subr.bf16.mxu1 %v16151_v39 }
0x2f24   : > { %13911 = vmatpush3.bf16.msra.mxu1 %v16152_v40 }
0x2f25   : > { %13912 = vmatprep.subr.bf16.mxu1 %v16153_v41 }
0x2f28   : > { %13913 = vmatpush3.bf16.msra.mxu1 %v16154_v42 }
0x2f29   : > { %13914 = vmatprep.subr.bf16.mxu1 %v16155_v43 }
0x2f2c   : > { %13915 = vmatpush3.bf16.msra.mxu1 %v16156_v45 }
0x2f2d   : > { %13916 = vmatprep.subr.bf16.mxu1 %v16157_v17 }
0x2f30   : > { %13917 = vmatpush3.bf16.msra.mxu1 %v16158_v46 }
0x2f31   : > { %13918 = vmatprep.subr.bf16.mxu1 %v16159_v49 }
0x2f34   : > { %13919 = vmatpush3.bf16.msra.mxu1 %v16160_v50 }
0x2f35   : > { %13920 = vmatprep.subr.bf16.mxu1 %v16161_v56 }
0x2f38   : > { %13921 = vmatpush3.bf16.msra.mxu1 %v16162_v2 }
0x2f39   : > { %14528 = vmatprep.subr.bf16.mxu1 %v17973_v0 }
0x2f3b   : > { %10283 = vmatmul.mubr.bf16.vlgmr.msra.gmra.mrb[60].mxu1 %v9782_v52 }
0x2f3c   : > { %14529 = vmatpush3.bf16.msra.mxu1 %v16163_v11  ;;  %14544 = vmatprep.mubr.msk.bf16.mxu1 %vm17975_vm2, %v17973_v0 }
0x2f3d   : > { %14530 = vmatprep.subr.bf16.mxu1 %v17973_v0 }
0x2f40   : > { %14531 = vmatpush3.bf16.msra.mxu1 %v16164_v12 }
0x2f41   : > { %14532 = vmatprep.subr.bf16.mxu1 %v17973_v0 }
0x2f44   : > { %14533 = vmatpush3.bf16.msra.mxu1 %v16165_v13 }
0x2f45   : > { %14534 = vmatprep.subr.bf16.mxu1 %v17973_v0 }
0x2f48   : > { %14535 = vmatpush3.bf16.msra.mxu1 %v16166_v23 }
0x2f49   : > { %14536 = vmatprep.subr.bf16.mxu1 %v17973_v0 }
0x2f4c   : > { %14537 = vmatpush3.bf16.msra.mxu1 %v16167_v14 }
0x2f4d   : > { %14538 = vmatprep.subr.bf16.mxu1 %v17973_v0 }
0x2f50   : > { %14539 = vmatpush3.bf16.msra.mxu1 %v16168_v35 }
0x2f51   : > { %14540 = vmatprep.subr.bf16.mxu1 %v17973_v0 }
0x2f54   : > { %14541 = vmatpush3.bf16.msra.mxu1 %v16169_v33 }
0x2f55   : > { %14542 = vmatprep.subr.bf16.mxu1 %v17973_v0 }
0x2f58   : > { %14543 = vmatpush3.bf16.msra.mxu1 %v16170_v55 }
0x2f59   : > { %14548 = vmatprep.subr.bf16.mxu1 %v17973_v0 }
0x2f5b   : > { %14545 = vmatmul.mubr.bf16.vlgmr.msra.gmra.mrb[64].mxu1 %v19660_v15  ;;  %v16176_v15 = vld [vmem:[#allocation74 + $0x28] sm:$0xff]  }
0x2f5c   : > { %14549 = vmatpush3.bf16.msra.mxu1 %v16171_v54  ;;  %14564 = vmatprep.mubr.msk.bf16.mxu1 %vm17975_vm2, %v17973_v0 }
0x2f5d   : > { %14550 = vmatprep.subr.bf16.mxu1 %v17973_v0 }
0x2f60   : > { %14551 = vmatpush3.bf16.msra.mxu1 %v16172_v61 }
0x2f61   : > { %14552 = vmatprep.subr.bf16.mxu1 %v17973_v0 }
0x2f64   : > { %14553 = vmatpush3.bf16.msra.mxu1 %v16173_v44 }
0x2f65   : > { %14554 = vmatprep.subr.bf16.mxu1 %v17973_v0 }
0x2f68   : > { %14555 = vmatpush3.bf16.msra.mxu1 %v16174_v4 }
0x2f69   : > { %14556 = vmatprep.subr.bf16.mxu1 %v17973_v0 }
0x2f6c   : > { %14557 = vmatpush3.bf16.msra.mxu1 %v16175_v21 }
0x2f6d   : > { %14558 = vmatprep.subr.bf16.mxu1 %v17973_v0 }
0x2f70   : > { %14559 = vmatpush3.bf16.msra.mxu1 %v16176_v15 }
0x2f71   : > { %14560 = vmatprep.subr.bf16.mxu1 %v17973_v0 }
0x2f74   : > { %14561 = vmatpush3.bf16.msra.mxu1 %v16177_v8 }
0x2f75   : > { %14562 = vmatprep.subr.bf16.mxu1 %v17973_v0 }
0x2f78   : > { %14563 = vmatpush3.bf16.msra.mxu1 %v16178_v51 }
0x2f79   : > { %14568 = vmatprep.subr.bf16.mxu1 %v17973_v0 }
0x2f7b   : > { %14565 = vmatmul.mubr.bf16.vlgmr.msra.gmra.mrb[64].mxu1 %v19668_v38  ;;  %v16184_v38 = vld [vmem:[#allocation74 + $0xa8] sm:$0xff]  }
0x2f7c   : > { %14569 = vmatpush3.bf16.msra.mxu1 %v16179_v36  ;;  %14584 = vmatprep.mubr.msk.bf16.mxu1 %vm17975_vm2, %v17973_v0 }
0x2f7d   : > { %14570 = vmatprep.subr.bf16.mxu1 %v17973_v0 }
0x2f80   : > { %14571 = vmatpush3.bf16.msra.mxu1 %v16180_v60 }
0x2f81   : > { %14572 = vmatprep.subr.bf16.mxu1 %v17973_v0 }
0x2f84   : > { %14573 = vmatpush3.bf16.msra.mxu1 %v16181_v58 }
0x2f85   : > { %14574 = vmatprep.subr.bf16.mxu1 %v17973_v0 }
0x2f88   : > { %14575 = vmatpush3.bf16.msra.mxu1 %v16182_v59 }
0x2f89   : > { %14576 = vmatprep.subr.bf16.mxu1 %v17973_v0 }
0x2f8c   : > { %14577 = vmatpush3.bf16.msra.mxu1 %v16183_v63 }
0x2f8d   : > { %14578 = vmatprep.subr.bf16.mxu1 %v17973_v0 }
0x2f90   : > { %14579 = vmatpush3.bf16.msra.mxu1 %v16184_v38 }
0x2f91   : > { %14580 = vmatprep.subr.bf16.mxu1 %v17973_v0 }
0x2f94   : > { %14581 = vmatpush3.bf16.msra.mxu1 %v16185_v7 }
0x2f95   : > { %14582 = vmatprep.subr.bf16.mxu1 %v17973_v0 }
0x2f98   : > { %14583 = vmatpush3.bf16.msra.mxu1 %v16186_v5 }
0x2f9b   : > { %14585 = vmatmul.mubr.bf16.vlgmr.msra.gmra.mrb[64].mxu1 %v19674_v53 }
0x2fce   : > { %v13878_v6 = vpop.f32.mrb[52].mxu1 }
0x2fcf   : > { %v13879_v24 = vpop.f32.mrb[53].mxu1 }
0x2fd0   : > { %v13880_v25 = vadd.f32 %v13879_v24, %v13878_v6  ;;  %v13881_v47 = vpop.f32.mrb[54].mxu1 }
0x2fd1   : > { %v13882_v20 = vpop.f32.mrb[55].mxu1 }
0x2fd2   : > { %v10291_v20 = vld [vmem:[#allocation76] sm:$0x3] }
0x2fee   : > { %v13900_v26 = vpop.f32.mrb[56].mxu1 }
0x2fef   : > { %v13901_v28 = vpop.f32.mrb[57].mxu1 }
0x2ff0   : > { %v13902_v29 = vadd.f32 %v13901_v28, %v13900_v26  ;;  %v13903_v30 = vpop.f32.mrb[58].mxu1  ;;  %v10323_v26 = vrot.slane %v10291_v20, %v19215_v62 }
0x2ff1   : > { %v13904_v31 = vpop.f32.mrb[59].mxu1  ;;  %v10328_v30 = vrot.slane %v10291_v20, %v19218_v1 }
0x2ff2   : > { %v10116_v32 = vadd.f32 %v13902_v29, %v13880_v25 }
0x300e   : > { %v13922_v34 = vpop.f32.mrb[60].mxu1 }
0x300f   : > { %v13923_v48 = vpop.f32.mrb[61].mxu1 }
0x3010   : > { %v13924_v37 = vadd.f32 %v13923_v48, %v13922_v34  ;;  %v13925_v39 = vpop.f32.mrb[62].mxu1  ;;  %v10330_v34 = vld [vmem:[%s18267_s27] sm:$0xf]  ;;  %v16187_v48 = vld [vmem:[#allocation71 + $0x20] sm:$0xff]  }
0x3011   : > { %v13926_v40 = vpop.f32.mrb[63].mxu1  ;;  %v16189_v39 = vld [vmem:[#allocation71 + $0x30] sm:$0xff]  }
0x3012   : > { %v10290_v41 = vadd.f32 %v13924_v37, %v10116_v32  ;;  %v16188_v37 = vld [vmem:[#allocation71 + $0x28] sm:$0xff]   ;;  %v16190_v40 = vld [vmem:[#allocation71 + $0x38] sm:$0xff]  }
0x3014   : > { %v10292_v42 = vsel %vm2481_vm1, %v10290_v41, 0.0 }
0x3015   : > { %10293 = vadd.xlane.f32.xlu0 %v10292_v42  ;;  %v16192_v42 = vld [vmem:[#allocation71 + $0x8] sm:$0xff]  }
0x306e   : > { %v10639_v53 = vpop.f32.mrb[64].mxu1 }
0x306f   : > { %v14586_v43 = vpop.f32.mrb[65].mxu1  ;;  %v10647_v45 = vsel %vm3844_vm12, %v10639_v53, 0.0 }
0x3070   : > { %v10642_v17 = vpop.f32.mrb[66].mxu1  ;;  %10648 = vadd.xlane.f32.xlu0 %v10647_v45  ;;  %v16194_v43 = vld [vmem:[#allocation71 + $0x18] sm:$0xff]   ;;  %v16195_v45 = vld [vmem:[#allocation71 + $0x40] sm:$0xff]  }
0x3071   : > { %v14587_v46 = vpop.f32.mrb[67].mxu1  ;;  %v16197_v17 = vld [vmem:[#allocation71 + $0x50] sm:$0xff]  }
0x3072   : > { %v16198_v46 = vld [vmem:[#allocation71 + $0x58] sm:$0xff]  }
0x30a2   : > { %v10294_v49 = vpop.xlane.xlu0 %10293 }
0x30a3   : > { %v10295_v50 = vsel %vm2481_vm1, %v10294_v49, 0.0 }
0x30a4   : > { %v10296_v56 = vrot.slane %v10295_v50, 4 }
0x30a6   : > { %v10297_v2 = vadd.f32 %v10296_v56, %v10295_v50 }
0x30a8   : > { %v10298_v3 = vrot.slane %v10297_v2, 2 }
0x30aa   : > { %v10299_v11 = vadd.f32 %v10298_v3, %v10297_v2 }
0x30ac   : > { %v10300_v52 = vrot.slane %v10299_v11, 1 }
0x30ae   : > { %v10301_v12 = vadd.f32 %v10300_v52, %v10299_v11 }
0x30b0   : > { %v10303_v13 = vmul.f32 0.00390625, %v10301_v12 }
0x30b2   : > { %v10304_v23 = vsub.f32 %v10290_v41, %v10303_v13  ;;  %v16191_v41 = vld [vmem:[#allocation71] sm:$0xff]  }
0x30b4   : > { %v10305_v14 = vmul.f32 %v10304_v23, %v10304_v23 }
0x30b6   : > { %v10306_v35 = vsel %vm2481_vm1, %v10305_v14, 0.0  ;;  %v10646_v14 = vld [vmem:[#allocation73] sm:$0x3] }
0x30b7   : > { %10307 = vadd.xlane.f32.xlu1 %v10306_v35  ;;  %v10677_v35 = vrot.slane %v10646_v14, %v19215_v62 }
0x30fd   : > { %v10649_v33 = vpop.xlane.xlu0 %10648 }
0x30fe   : > { %v10650_v55 = vsel %vm3844_vm12, %v10649_v33, 0.0 }
0x30ff   : > { %v10651_v54 = vrot.slane %v10650_v55, 4 }
0x3101   : > { %v10652_v61 = vadd.f32 %v10651_v54, %v10650_v55  ;;  %v10682_v55 = vrot.slane %v10646_v14, %v19218_v1 }
0x3103   : > { %v10653_v44 = vrot.slane %v10652_v61, 2 }
0x3105   : > { %v10654_v4 = vadd.f32 %v10653_v44, %v10652_v61 }
0x3107   : > { %v10655_v21 = vrot.slane %v10654_v4, 1 }
0x3109   : > { %v10656_v15 = vadd.f32 %v10655_v21, %v10654_v4  ;;  %v10761_v21 = vld [vmem:[%s18272_s9] sm:$0xff] }
0x310b   : > { %v10657_v8 = vmul.f32 0.001953125, %v10656_v15  ;;  %v16199_v15 = vld [vmem:[#allocation68 + $0x10] sm:$0xff]  }
0x310d   : > { %v19982_v51 = vsub.f32 %v10639_v53, %v10657_v8  ;;  %v16193_v53 = vld [vmem:[#allocation71 + $0x10] sm:$0xff]   ;;  %v16200_v8 = vld [vmem:[#allocation68 + $0x18] sm:$0xff]  }
0x310f   : > { %v10659_v36 = vmul.f32 %v19982_v51, %v19982_v51 }
0x3111   : > { %v10660_v60 = vsel %vm3844_vm12, %v10659_v36, 0.0  ;;  %v16202_v36 = vld [vmem:[#allocation68 + $0x8] sm:$0xff]  }
0x3112   : > { %10661 = vadd.xlane.f32.xlu1 %v10660_v60  ;;  %v16203_v60 = vld [vmem:[#allocation68 + $0x20] sm:$0xff]  }
0x3144   : > { %v10308_v58 = vpop.xlane.xlu1 %10307 }
0x3145   : > { %v10309_v59 = vsel %vm2481_vm1, %v10308_v58, 0.0  ;;  %v16204_v58 = vld [vmem:[#allocation68 + $0x28] sm:$0xff]  }
0x3146   : > { %v10310_v63 = vrot.slane %v10309_v59, 4 }
0x3148   : > { %v10311_v38 = vadd.f32 %v10310_v63, %v10309_v59 }
0x314a   : > { %v10312_v7 = vrot.slane %v10311_v38, 2 }
0x314c   : > { %v10313_v5 = vadd.f32 %v10312_v7, %v10311_v38 }
0x314e   : > { %v10314_v6 = vrot.slane %v10313_v5, 1 }
0x3150   : > { %v10315_v24 = vadd.f32 %v10314_v6, %v10313_v5 }
0x3152   : > { %v10316_v25 = vmul.f32 0.00390625, %v10315_v24 }
0x3154   : > { %v10317_v47 = vadd.f32 1e-05, %v10316_v25 }
0x3156   : > { %16293 = vrsqrt.f32 %v10317_v47 }
0x3160   : > { %v16294_v28 = vpop.eup %16293 }
0x3161   : > { %v10319_v29 = vmul.f32 %v16294_v28, %v10304_v23 }
0x3163   : > { %v10324_v31 = vmul.f32 %v10323_v26, %v10319_v29 }
0x3165   : > { %v10329_v32 = vadd.f32 %v10328_v30, %v10324_v31 }
0x3167   : > { %14589 = vmatpush3.msk.msra.mxu0 %vm2481_vm1, %v10329_v32 }
0x3168   : > { %14591 = vmatmul.mubr.msk.f32.vlgmr.msra.gmra.mrb[34].mxu0 %vm10684_vm5, %v10330_v34  ;;  %14593 = vmatprep.subr.bf16.mxu0 %v17973_v0 }
0x3169   : > { %14594 = vmatpush3.bf16.msra.mxu0 %v16187_v48  ;;  %14601 = vmatprep.mubr.msk.bf16.mxu0 %vm17975_vm2, %v17973_v0  ;;  %v11092_v48 = vld [vmem:[%s18277_s17] sm:$0xff] }
0x316a   : > { %14595 = vmatprep.subr.bf16.mxu0 %v17973_v0  ;;  %14660 = vmatprep.mubr.msk.f32.mxu1 %vm5075_vm15, %v11092_v48 }
0x316d   : > { %14596 = vmatpush3.bf16.msra.mxu0 %v16188_v37 }
0x316e   : > { %14597 = vmatprep.subr.bf16.mxu0 %v17973_v0 }
0x3171   : > { %14598 = vmatpush3.bf16.msra.mxu0 %v16189_v39 }
0x3172   : > { %14599 = vmatprep.subr.bf16.mxu0 %v17973_v0 }
0x3175   : > { %14600 = vmatpush3.bf16.msra.mxu0 %v16190_v40 }
0x3176   : > { %14605 = vmatprep.subr.bf16.mxu0 %v17973_v0 }
0x3178   : > { %14602 = vmatmul.mubr.msk.bf16.vlgmr.msra.gmra.mrb[44].mxu0 %vm3794_vm11, %v19469_v57  ;;  %v16196_v57 = vld [vmem:[#allocation71 + $0x48] sm:$0xff]  }
0x3179   : > { %14606 = vmatpush3.bf16.msra.mxu0 %v16191_v41  ;;  %14613 = vmatprep.mubr.msk.bf16.mxu0 %vm17975_vm2, %v17973_v0 }
0x317a   : > { %14607 = vmatprep.subr.bf16.mxu0 %v17973_v0 }
0x317d   : > { %14608 = vmatpush3.bf16.msra.mxu0 %v16192_v42 }
0x317e   : > { %14609 = vmatprep.subr.bf16.mxu0 %v17973_v0 }
0x3181   : > { %14610 = vmatpush3.bf16.msra.mxu0 %v16193_v53 }
0x3182   : > { %14611 = vmatprep.subr.bf16.mxu0 %v17973_v0 }
0x3185   : > { %14612 = vmatpush3.bf16.msra.mxu0 %v16194_v43 }
0x3186   : > { %14617 = vmatprep.subr.bf16.mxu0 %v17973_v0 }
0x3188   : > { %14614 = vmatmul.mubr.msk.bf16.vlgmr.msra.gmra.mrb[44].mxu0 %vm3794_vm11, %v19483_v9 }
0x3189   : > { %14618 = vmatpush3.bf16.msra.mxu0 %v16195_v45  ;;  %14625 = vmatprep.mubr.msk.bf16.mxu0 %vm17975_vm2, %v17973_v0 }
0x318a   : > { %14619 = vmatprep.subr.bf16.mxu0 %v17973_v0 }
0x318d   : > { %14620 = vmatpush3.bf16.msra.mxu0 %v16196_v57 }
0x318e   : > { %14621 = vmatprep.subr.bf16.mxu0 %v17973_v0 }
0x3191   : > { %14622 = vmatpush3.bf16.msra.mxu0 %v16197_v17  ;;  %v10981_v17 = vld [vmem:[#allocation70] sm:$0x3] }
0x3192   : > { %14623 = vmatprep.subr.bf16.mxu0 %v17973_v0 }
0x3195   : > { %14624 = vmatpush3.bf16.msra.mxu0 %v16198_v46  ;;  %v11009_v46 = vrot.slane %v10981_v17, %v19215_v62 }
0x3196   : > { %14629 = vmatprep.subr.mxu0 %v17973_v0 }
0x3198   : > { %14626 = vmatmul.mubr.msk.bf16.vlgmr.msra.gmra.mrb[44].mxu0 %vm3794_vm11, %v19495_v18 }
0x3199   : > { %14631 = vmatprep.mubr.msk.f32.mxu0 %vm17975_vm2, %v17973_v0 }
0x319f   : > { %v10662_v9 = vpop.xlane.xlu1 %10661 }
0x31a0   : > { %v10663_v49 = vsel %vm3844_vm12, %v10662_v9, 0.0 }
0x31a1   : > { %v10664_v50 = vrot.slane %v10663_v49, 4 }
0x31a3   : > { %v10665_v56 = vadd.f32 %v10664_v50, %v10663_v49  ;;  %v11014_v50 = vrot.slane %v10981_v17, %v19218_v1  ;;  %v16215_v17 = vld [vmem:[#allocation80 + $0x10] sm:$0xff]  }
0x31a5   : > { %v10666_v2 = vrot.slane %v10665_v56, 2 }
0x31a7   : > { %v10667_v3 = vadd.f32 %v10666_v2, %v10665_v56 }
0x31a9   : > { %v10668_v11 = vrot.slane %v10667_v3, 1 }
0x31ab   : > { %v10669_v52 = vadd.f32 %v10668_v11, %v10667_v3  ;;  %v11093_v11 = vld [vmem:[%s18277_s17 + $0x8] sm:$0xff] }
0x31ad   : > { %v10670_v12 = vmul.f32 0.001953125, %v10669_v52 }
0x31af   : > { %v10671_v13 = vadd.f32 1e-05, %v10670_v12 }
0x31b1   : > { %16295 = vrsqrt.f32 %v10671_v13 }
0x31bb   : > { %v16296_v23 = vpop.eup %16295 }
0x31bc   : > { %v10673_v18 = vmul.f32 %v16296_v23, %v19982_v51  ;;  %v16201_v51 = vld [vmem:[#allocation68] sm:$0xff]  }
0x31be   : > { %v10678_v33 = vmul.f32 %v10677_v35, %v10673_v18 }
0x31c0   : > { %v10683_v54 = vadd.f32 %v10682_v55, %v10678_v33 }
0x323b   : > { %v10757_v61 = vpop.f32.mrb[34].mxu0 }
0x323c   : > { %v10758_v44 = vadd.f32 %v10757_v61, %v10683_v54  ;;  %v14592_v4 = vpop.f32.mrb[35].mxu0 }
0x323e   : > { %14630 = vmatpush3.msk.msra.mxu0 %vm3844_vm12, %v10758_v44 }
0x323f   : > { %14634 = vmatprep.subr.bf16.mxu0 %v17973_v0  ;;  %14632 = vmatmul.mubr.msk.f32.vlgmr.msra.gmra.mrb[48].mxu0 %vm6908_vm4, %v10761_v21 }
0x3240   : > { %14635 = vmatpush3.bf16.msra.mxu0 %v16199_v15  ;;  %14638 = vmatprep.mubr.msk.bf16.mxu0 %vm17975_vm2, %v17973_v0  ;;  %v16205_v15 = vld [vmem:[#allocation80 + $0x40] sm:$0xff]  }
0x3241   : > { %14636 = vmatprep.subr.bf16.mxu0 %v17973_v0 }
0x3244   : > { %14637 = vmatpush3.bf16.msra.mxu0 %v16200_v8  ;;  %v16206_v8 = vld [vmem:[#allocation80 + $0x48] sm:$0xff]  }
0x3245   : > { %14642 = vmatprep.subr.bf16.mxu0 %v17973_v0 }
0x3247   : > { %14639 = vmatmul.mubr.msk.bf16.vlgmr.msra.gmra.mrb[52].mxu0 %vm2627_vm9, %v19316_v19 }
0x3248   : > { %14643 = vmatpush3.bf16.msra.mxu0 %v16201_v51  ;;  %14646 = vmatprep.mubr.msk.bf16.mxu0 %vm17975_vm2, %v17973_v0  ;;  %v16207_v51 = vld [vmem:[#allocation80 + $0x50] sm:$0xff]  }
0x3249   : > { %14644 = vmatprep.subr.bf16.mxu0 %v17973_v0 }
0x324c   : > { %14645 = vmatpush3.bf16.msra.mxu0 %v16202_v36  ;;  %v16208_v36 = vld [vmem:[#allocation80 + $0x58] sm:$0xff]  }
0x324d   : > { %14650 = vmatprep.subr.bf16.mxu0 %v17973_v0 }
0x3253   : > { %14647 = vmatmul.mubr.msk.bf16.vlgmr.msra.gmra.mrb[52].mxu0 %vm2627_vm9, %v19328_v22 }
0x3254   : > { %14651 = vmatpush3.bf16.msra.mxu0 %v16203_v60  ;;  %14654 = vmatprep.mubr.msk.bf16.mxu0 %vm17975_vm2, %v17973_v0  ;;  %v16209_v60 = vld [vmem:[#allocation80 + $0x60] sm:$0xff]  }
0x3255   : > { %14652 = vmatprep.subr.bf16.mxu0 %v17973_v0 }
0x3258   : > { %14653 = vmatpush3.bf16.msra.mxu0 %v16204_v58  ;;  %v16210_v58 = vld [vmem:[#allocation80 + $0x68] sm:$0xff]  }
0x3259   : > { %14723 = vmatprep.subr.bf16.mxu0 %v17973_v0 }
0x325f   : > { %14655 = vmatmul.mubr.msk.bf16.vlgmr.msra.gmra.mrb[52].mxu0 %vm2627_vm9, %v19338_v27 }
0x3260   : > { %14739 = vmatprep.mubr.msk.bf16.mxu0 %vm17975_vm2, %v17973_v0 }
0x326b   : > { %v10974_v19 = vpop.f32.mrb[44].mxu0 }
0x326c   : > { %10982 = vadd.xlane.f32.xlu0 %v10974_v19  ;;  %v14627_v59 = vpop.f32.mrb[45].mxu0 }
0x326d   : > { %v10977_v22 = vpop.f32.mrb[46].mxu0  ;;  %v16212_v59 = vld [vmem:[#allocation80 + $0x78] sm:$0xff]  }
0x326e   : > { %v14628_v63 = vpop.f32.mrb[47].mxu0 }
0x32f9   : > { %v10983_v38 = vpop.xlane.xlu0 %10982 }
0x32fa   : > { %v10984_v7 = vrot.slane %v10983_v38, 4 }
0x32fc   : > { %v10985_v5 = vadd.f32 %v10984_v7, %v10983_v38 }
0x32fe   : > { %v10986_v6 = vrot.slane %v10985_v5, 2 }
0x3300   : > { %v10987_v24 = vadd.f32 %v10986_v6, %v10985_v5 }
0x3302   : > { %v10988_v25 = vrot.slane %v10987_v24, 1 }
0x3304   : > { %v10989_v47 = vadd.f32 %v10988_v25, %v10987_v24 }
0x3306   : > { %v10991_v20 = vmul.f32 0.0009765625, %v10989_v47 }
0x3308   : > { %v10992_v26 = vsub.f32 %v10974_v19, %v10991_v20  ;;  %v16211_v19 = vld [vmem:[#allocation80 + $0x70] sm:$0xff]  }
0x330a   : > { %v10993_v28 = vmul.f32 %v10992_v26, %v10992_v26 }
0x330c   : > { %10994 = vadd.xlane.f32.xlu1 %v10993_v28 }
0x3312   : > { %v11088_v27 = vpop.f32.mrb[48].mxu0 }
0x3313   : > { %v14633_v29 = vpop.f32.mrb[49].mxu0 }
0x3332   : > { %v11260_v30 = vpop.f32.mrb[52].mxu0 }
0x3333   : > { %11270 = vadd.xlane.f32.xlu0 %v11260_v30  ;;  %v14656_v31 = vpop.f32.mrb[53].mxu0 }
0x3334   : > { %v11263_v32 = vpop.f32.mrb[54].mxu0 }
0x3335   : > { %v14657_v34 = vpop.f32.mrb[55].mxu0  ;;  %11272 = vadd.xlane.f32.xlu1 %v11263_v32 }
0x3399   : > { %v10995_v37 = vpop.xlane.xlu1 %10994 }
0x339a   : > { %v10996_v39 = vrot.slane %v10995_v37, 4 }
0x339c   : > { %v10997_v40 = vadd.f32 %v10996_v39, %v10995_v37 }
0x339e   : > { %v10998_v41 = vrot.slane %v10997_v40, 2 }
0x33a0   : > { %v10999_v42 = vadd.f32 %v10998_v41, %v10997_v40 }
0x33a2   : > { %v11000_v53 = vrot.slane %v10999_v42, 1 }
0x33a4   : > { %v11001_v43 = vadd.f32 %v11000_v53, %v10999_v42 }
0x33a6   : > { %v11002_v45 = vmul.f32 0.0009765625, %v11001_v43  ;;  %v16213_v43 = vld [vmem:[#allocation80] sm:$0xff]  }
0x33a8   : > { %v11003_v57 = vadd.f32 1e-05, %v11002_v45 }
0x33aa   : > { %16297 = vrsqrt.f32 %v11003_v57  ;;  %v16214_v57 = vld [vmem:[#allocation80 + $0x8] sm:$0xff]  }
0x33b4   : > { %v16298_v9 = vpop.eup %16297 }
0x33b5   : > { %v11005_v49 = vmul.f32 %v16298_v9, %v10992_v26  ;;  %v16217_v9 = vld [vmem:[#allocation80 + $0x20] sm:$0xff]  }
0x33b7   : > { %v11010_v56 = vmul.f32 %v11009_v46, %v11005_v49  ;;  %v16216_v46 = vld [vmem:[#allocation80 + $0x18] sm:$0xff]   ;;  %v16218_v49 = vld [vmem:[#allocation80 + $0x28] sm:$0xff]  }
0x33b9   : > { %v11015_v2 = vadd.f32 %v11014_v50, %v11010_v56  ;;  %v16219_v56 = vld [vmem:[#allocation80 + $0x30] sm:$0xff]  }
0x33bb   : > { %v11089_v3 = vadd.f32 %v11088_v27, %v11015_v2  ;;  %v11269_v27 = vld [vmem:[#allocation67] sm:$0x3] }
0x33bc   : > { %v11312_v34 = vrot.slane %v11269_v27, %v19218_v1 }
0x33bd   : > { %14658 = vmatprep.subr.mxu1 %v11089_v3 }
0x33be   : > { %14659 = vmatpush3.msra.mxu1 %v11089_v3 }
0x33bf   : > { %14661 = vmatmul.mubr.msk.f32.vlgmr.msra.gmra.mrb[46].mxu1 %vm5075_vm15, %v11093_v11  ;;  %14663 = vmatprep.subr.bf16.mxu1 %v17973_v0  ;;  %v16220_v11 = vld [vmem:[#allocation80 + $0x38] sm:$0xff]  }
0x33c0   : > { %14679 = vmatprep.mubr.msk.bf16.mxu1 %vm17975_vm2, %v17973_v0  ;;  %v11271_v52 = vpop.xlane.xlu0 %11270  ;;  %14664 = vmatpush3.bf16.msra.mxu1 %v16205_v15 }
0x33c1   : > { %14665 = vmatprep.subr.bf16.mxu1 %v17973_v0 }
0x33c2   : > { %v11273_v12 = vpop.xlane.xlu1 %11272 }
0x33c3   : > { %v11274_v13 = vadd.f32 %v11273_v12, %v11271_v52  ;;  %v16221_v12 = vld [vmem:[#allocation80 + $0x80] sm:$0xff]  }
0x33c4   : > { %14666 = vmatpush3.bf16.msra.mxu1 %v16206_v8 }
0x33c5   : > { %v11275_v23 = vrot.slane %v11274_v13, 4  ;;  %14667 = vmatprep.subr.bf16.mxu1 %v17973_v0 }
0x33c7   : > { %v11276_v14 = vadd.f32 %v11275_v23, %v11274_v13  ;;  %v16222_v23 = vld [vmem:[#allocation80 + $0x88] sm:$0xff]  }
0x33c8   : > { %14668 = vmatpush3.bf16.msra.mxu1 %v16207_v51 }
0x33c9   : > { %v11277_v18 = vrot.slane %v11276_v14, 2  ;;  %14669 = vmatprep.subr.bf16.mxu1 %v17973_v0 }
0x33cb   : > { %v11278_v35 = vadd.f32 %v11277_v18, %v11276_v14  ;;  %v16223_v14 = vld [vmem:[#allocation80 + $0x90] sm:$0xff]   ;;  %v16224_v18 = vld [vmem:[#allocation80 + $0x98] sm:$0xff]  }
0x33cc   : > { %14670 = vmatpush3.bf16.msra.mxu1 %v16208_v36 }
0x33cd   : > { %v11279_v33 = vrot.slane %v11278_v35, 1  ;;  %14671 = vmatprep.subr.bf16.mxu1 %v17973_v0 }
0x33cf   : > { %v11280_v55 = vadd.f32 %v11279_v33, %v11278_v35  ;;  %v16225_v35 = vld [vmem:[#allocation80 + $0xa0] sm:$0xff]   ;;  %v16226_v33 = vld [vmem:[#allocation80 + $0xa8] sm:$0xff]  }
0x33d0   : > { %14672 = vmatpush3.bf16.msra.mxu1 %v16209_v60 }
0x33d1   : > { %v11282_v54 = vmul.f32 0.00048828125, %v11280_v55  ;;  %14673 = vmatprep.subr.bf16.mxu1 %v17973_v0  ;;  %v16227_v55 = vld [vmem:[#allocation80 + $0xb0] sm:$0xff]  }
0x33d3   : > { %v11284_v61 = vsub.f32 %v11263_v32, %v11282_v54  ;;  %v11283_v44 = vsub.f32 %v11260_v30, %v11282_v54  ;;  %v11306_v30 = vrot.slane %v11269_v27, %v19215_v62  ;;  %v16232_v27 = vld [vmem:[#allocation82 + $0x58] sm:$0xff]  }
0x33d4   : > { %14674 = vmatpush3.bf16.msra.mxu1 %v16210_v58 }
0x33d5   : > { %v11286_v4 = vmul.f32 %v11284_v61, %v11284_v61  ;;  %v11285_v21 = vmul.f32 %v11283_v44, %v11283_v44  ;;  %14675 = vmatprep.subr.bf16.mxu1 %v17973_v0 }
0x33d7   : > { %11289 = vadd.xlane.f32.xlu1 %v11286_v4  ;;  %11287 = vadd.xlane.f32.xlu0 %v11285_v21 }
0x33d8   : > { %14676 = vmatpush3.bf16.msra.mxu1 %v16211_v19 }
0x33d9   : > { %14677 = vmatprep.subr.bf16.mxu1 %v17973_v0 }
0x33dc   : > { %14678 = vmatpush3.bf16.msra.mxu1 %v16212_v59 }
0x33dd   : > { %14683 = vmatprep.subr.bf16.mxu1 %v17973_v0 }
0x3464   : > { %v11290_v22 = vpop.xlane.xlu1 %11289  ;;  %v11288_v63 = vpop.xlane.xlu0 %11287 }
0x3465   : > { %v11291_v38 = vadd.f32 %v11290_v22, %v11288_v63 }
0x3467   : > { %v11292_v7 = vrot.slane %v11291_v38, 4 }
0x3469   : > { %v11293_v5 = vadd.f32 %v11292_v7, %v11291_v38 }
0x346b   : > { %v11294_v6 = vrot.slane %v11293_v5, 2 }
0x346d   : > { %v11295_v24 = vadd.f32 %v11294_v6, %v11293_v5 }
0x346f   : > { %v11296_v25 = vrot.slane %v11295_v24, 1 }
0x3471   : > { %v11297_v47 = vadd.f32 %v11296_v25, %v11295_v24 }
0x3473   : > { %v11298_v20 = vmul.f32 0.00048828125, %v11297_v47 }
0x3475   : > { %v11299_v26 = vadd.f32 1e-05, %v11298_v20  ;;  %v16229_v20 = vld [vmem:[#allocation82 + $0x40] sm:$0xff]  }
0x3476   : > { %14724 = vmatpush3.bf16.msra.mxu0 %v16229_v20 }
0x3477   : > { %16299 = vrsqrt.f32 %v11299_v26  ;;  %14725 = vmatprep.subr.bf16.mxu0 %v17973_v0  ;;  %v16230_v26 = vld [vmem:[#allocation82 + $0x48] sm:$0xff]  }
0x347a   : > { %14726 = vmatpush3.bf16.msra.mxu0 %v16230_v26 }
0x347b   : > { %14727 = vmatprep.subr.bf16.mxu0 %v17973_v0 }
0x3481   : > { %v16300_v28 = vpop.eup %16299 }
0x3482   : > { %v11302_v29 = vmul.f32 %v16300_v28, %v11284_v61  ;;  %v11301_v31 = vmul.f32 %v16300_v28, %v11283_v44  ;;  %v16228_v61 = vld [vmem:[#allocation80 + $0xb8] sm:$0xff]   ;;  %v16231_v28 = vld [vmem:[#allocation82 + $0x50] sm:$0xff]  }
0x3483   : > { %14728 = vmatpush3.bf16.msra.mxu0 %v16231_v28 }
0x3484   : > { %v11308_v32 = vmul.f32 %v11306_v30, %v11302_v29  ;;  %v11307_v48 = vmul.f32 %v11306_v30, %v11301_v31  ;;  %14729 = vmatprep.subr.bf16.mxu0 %v17973_v0  ;;  %v16233_v29 = vld [vmem:[#allocation82 + $0x60] sm:$0xff]   ;;  %v16234_v30 = vld [vmem:[#allocation82 + $0x68] sm:$0xff]   ;;  %v16235_v31 = vld [vmem:[#allocation82 + $0x70] sm:$0xff]  }
0x3486   : > { %v11314_v37 = vadd.f32 %v11312_v34, %v11308_v32  ;;  %v11313_v40 = vadd.f32 %v11312_v34, %v11307_v48  ;;  %v16236_v32 = vld [vmem:[#allocation82 + $0x78] sm:$0xff]  }
0x3487   : > { %14730 = vmatpush3.bf16.msra.mxu0 %v16232_v27 }
0x3488   : > { %14731 = vmatprep.subr.bf16.mxu0 %v17973_v0 }
0x348b   : > { %14732 = vmatpush3.bf16.msra.mxu0 %v16233_v29 }
0x348c   : > { %14733 = vmatprep.subr.bf16.mxu0 %v17973_v0 }
0x348f   : > { %14734 = vmatpush3.bf16.msra.mxu0 %v16234_v30 }
0x3490   : > { %14735 = vmatprep.subr.bf16.mxu0 %v17973_v0 }
0x3492   : > { %v14662_v39 = vpop.f32.mrb[46].mxu1 }
0x3493   : > { %v20066_v41 = vadd.f32 %v14662_v39, %v11314_v37  ;;  %v11387_v42 = vpop.f32.mrb[47].mxu1  ;;  %14736 = vmatpush3.bf16.msra.mxu0 %v16235_v31 }
0x3494   : > { %v11388_v53 = vadd.f32 %v11387_v42, %v11313_v40  ;;  %14737 = vmatprep.subr.bf16.mxu0 %v17973_v0 }
0x3496   : > { %v11396_v45 = vpack.c.bf16 %v20066_v41, %v11388_v53 }
0x3497   : > { %14738 = vmatpush3.bf16.msra.mxu0 %v16236_v32 }
0x3498   : > { %14680 = vmatmul.mubr.bf16.vlgmr.msra.gmra.mrb[68].mxu1 %v11396_v45  ;;  %v11398_v50 = vshrl.u32 %v11396_v45, 16  ;;  %v11401_v3 = vshll.u32 %v11396_v45, 16  ;;  %14743 = vmatprep.subr.bf16.mxu0 %v17973_v0 }
0x3499   : > { %14684 = vmatpush3.bf16.msra.mxu1 %v16213_v43  ;;  %14699 = vmatprep.mubr.msk.bf16.mxu1 %vm17975_vm2, %v17973_v0 }
0x349a   : > { %14685 = vmatprep.subr.bf16.mxu1 %v17973_v0  ;;  %v11400_v2 = vrot.slane %v11398_v50, 7  ;;  %v11406_v54 = vrot.slane %v11401_v3, 1 }
0x349c   : > { %v11403_v52 = vor.u32 %v11401_v3, %v11400_v2  ;;  %v11407_v44 = vor.u32 %v11406_v54, %v11398_v50  ;;  %v16241_v54 = vld [vmem:[#allocation82 + $0x20] sm:$0xff]  }
0x349d   : > { %14686 = vmatpush3.bf16.msra.mxu1 %v16214_v57 }
0x349e   : > { %14687 = vmatprep.subr.bf16.mxu1 %v17973_v0  ;;  %v11405_v13 = vsel %vm19171_vm7, 0, %v11403_v52  ;;  %v11409_v4 = vsel %vm19179_vm8, %v11407_v44, 0 }
0x34a1   : > { %14688 = vmatpush3.bf16.msra.mxu1 %v16215_v17 }
0x34a2   : > { %14689 = vmatprep.subr.bf16.mxu1 %v17973_v0 }
0x34a5   : > { %14690 = vmatpush3.bf16.msra.mxu1 %v16216_v46  ;;  %v11729_v46 = vld [vmem:[#allocation77] sm:$0x3] }
0x34a6   : > { %14691 = vmatprep.subr.bf16.mxu1 %v17973_v0  ;;  %v11771_v2 = vrot.slane %v11729_v46, %v19218_v1 }
0x34a9   : > { %14692 = vmatpush3.bf16.msra.mxu1 %v16217_v9  ;;  %v11765_v9 = vrot.slane %v11729_v46, %v19215_v62 }
0x34aa   : > { %14693 = vmatprep.subr.bf16.mxu1 %v17973_v0 }
0x34ad   : > { %14694 = vmatpush3.bf16.msra.mxu1 %v16218_v49 }
0x34ae   : > { %14695 = vmatprep.subr.bf16.mxu1 %v17973_v0 }
0x34b1   : > { %14696 = vmatpush3.bf16.msra.mxu1 %v16219_v56 }
0x34b2   : > { %14697 = vmatprep.subr.bf16.mxu1 %v17973_v0 }
0x34b5   : > { %14698 = vmatpush3.bf16.msra.mxu1 %v16220_v11 }
0x34b6   : > { %14703 = vmatprep.subr.bf16.mxu1 %v17973_v0 }
0x34b8   : > { %14700 = vmatmul.mubr.bf16.vlgmr.msra.gmra.mrb[68].mxu1 %v11405_v13 }
0x34b9   : > { %14704 = vmatpush3.bf16.msra.mxu1 %v16221_v12  ;;  %14719 = vmatprep.mubr.msk.bf16.mxu1 %vm17975_vm2, %v17973_v0 }
0x34ba   : > { %14705 = vmatprep.subr.bf16.mxu1 %v17973_v0 }
0x34bd   : > { %14706 = vmatpush3.bf16.msra.mxu1 %v16222_v23 }
0x34be   : > { %14707 = vmatprep.subr.bf16.mxu1 %v17973_v0 }
0x34c1   : > { %14708 = vmatpush3.bf16.msra.mxu1 %v16223_v14  ;;  %v16237_v14 = vld [vmem:[#allocation82] sm:$0xff]  }
0x34c2   : > { %14709 = vmatprep.subr.bf16.mxu1 %v17973_v0 }
0x34c5   : > { %14710 = vmatpush3.bf16.msra.mxu1 %v16224_v18 }
0x34c6   : > { %14711 = vmatprep.subr.bf16.mxu1 %v17973_v0 }
0x34c9   : > { %14712 = vmatpush3.bf16.msra.mxu1 %v16225_v35  ;;  %v16238_v35 = vld [vmem:[#allocation82 + $0x8] sm:$0xff]  }
0x34ca   : > { %14713 = vmatprep.subr.bf16.mxu1 %v17973_v0 }
0x34cd   : > { %14714 = vmatpush3.bf16.msra.mxu1 %v16226_v33  ;;  %v16239_v33 = vld [vmem:[#allocation82 + $0x10] sm:$0xff]  }
0x34ce   : > { %14715 = vmatprep.subr.bf16.mxu1 %v17973_v0 }
0x34d1   : > { %14716 = vmatpush3.bf16.msra.mxu1 %v16227_v55  ;;  %v16240_v55 = vld [vmem:[#allocation82 + $0x18] sm:$0xff]  }
0x34d2   : > { %14717 = vmatprep.subr.bf16.mxu1 %v17973_v0 }
0x34d5   : > { %14718 = vmatpush3.bf16.msra.mxu1 %v16228_v61  ;;  %v16242_v61 = vld [vmem:[#allocation82 + $0x28] sm:$0xff]  }
0x34d8   : > { %14720 = vmatmul.mubr.bf16.vlgmr.msra.gmra.mrb[68].mxu1 %v11409_v4  ;;  %v16243_v4 = vld [vmem:[#allocation82 + $0x30] sm:$0xff]  }
0x35ab   : > { %v11720_v21 = vpop.f32.mrb[68].mxu1 }
0x35ac   : > { %11730 = vadd.xlane.f32.xlu0 %v11720_v21  ;;  %v14721_v15 = vpop.f32.mrb[69].mxu1 }
0x35ad   : > { %v11723_v8 = vpop.f32.mrb[70].mxu1  ;;  %v16244_v15 = vld [vmem:[#allocation82 + $0x38] sm:$0xff]  }
0x35ae   : > { %11732 = vadd.xlane.f32.xlu1 %v11723_v8  ;;  %v14722_v51 = vpop.f32.mrb[71].mxu1 }
0x3639   : > { %v11731_v36 = vpop.xlane.xlu0 %11730 }
0x363b   : > { %v11733_v60 = vpop.xlane.xlu1 %11732 }
0x363c   : > { %v11734_v58 = vadd.f32 %v11733_v60, %v11731_v36  ;;  %v16245_v36 = vld [vmem:[#allocation82 + $0x80] sm:$0xff]  }
0x363e   : > { %v11735_v19 = vrot.slane %v11734_v58, 4 }
0x3640   : > { %v11736_v59 = vadd.f32 %v11735_v19, %v11734_v58  ;;  %v16246_v58 = vld [vmem:[#allocation82 + $0x88] sm:$0xff]   ;;  %v16247_v19 = vld [vmem:[#allocation82 + $0x90] sm:$0xff]  }
0x3642   : > { %v11737_v22 = vrot.slane %v11736_v59, 2 }
0x3644   : > { %v11738_v63 = vadd.f32 %v11737_v22, %v11736_v59  ;;  %v16248_v59 = vld [vmem:[#allocation82 + $0x98] sm:$0xff]   ;;  %v16249_v22 = vld [vmem:[#allocation82 + $0xa0] sm:$0xff]  }
0x3646   : > { %v11739_v38 = vrot.slane %v11738_v63, 1 }
0x3648   : > { %v11740_v7 = vadd.f32 %v11739_v38, %v11738_v63  ;;  %v16251_v63 = vld [vmem:[#allocation82 + $0xb0] sm:$0xff]  }
0x364a   : > { %v11741_v5 = vmul.f32 0.00048828125, %v11740_v7  ;;  %v16252_v7 = vld [vmem:[#allocation82 + $0xb8] sm:$0xff]  }
0x364c   : > { %v11743_v6 = vsub.f32 %v11723_v8, %v11741_v5  ;;  %v11742_v24 = vsub.f32 %v11720_v21, %v11741_v5 }
0x364e   : > { %v11745_v25 = vmul.f32 %v11743_v6, %v11743_v6  ;;  %v11744_v47 = vmul.f32 %v11742_v24, %v11742_v24 }
0x3650   : > { %11748 = vadd.xlane.f32.xlu1 %v11745_v25  ;;  %11746 = vadd.xlane.f32.xlu0 %v11744_v47 }
0x36dd   : > { %v11749_v34 = vpop.xlane.xlu1 %11748  ;;  %v11747_v48 = vpop.xlane.xlu0 %11746 }
0x36de   : > { %v11750_v37 = vadd.f32 %v11749_v34, %v11747_v48 }
0x36e0   : > { %v11751_v39 = vrot.slane %v11750_v37, 4 }
0x36e2   : > { %v11752_v40 = vadd.f32 %v11751_v39, %v11750_v37 }
0x36e4   : > { %v11753_v42 = vrot.slane %v11752_v40, 2 }
0x36e6   : > { %v11754_v53 = vadd.f32 %v11753_v42, %v11752_v40 }
0x36e8   : > { %v11755_v43 = vrot.slane %v11754_v53, 1 }
0x36ea   : > { %v11756_v45 = vadd.f32 %v11755_v43, %v11754_v53 }
0x36ec   : > { %v11757_v57 = vmul.f32 0.00048828125, %v11756_v45 }
0x36ee   : > { %v11758_v17 = vadd.f32 1e-05, %v11757_v57 }
0x36f0   : > { %16301 = vrsqrt.f32 %v11758_v17 }
0x36fa   : > { %v16302_v49 = vpop.eup %16301 }
0x36fb   : > { %v11760_v50 = vmul.f32 %v16302_v49, %v11742_v24  ;;  %v11761_v56 = vmul.f32 %v16302_v49, %v11743_v6 }
0x36fd   : > { %v11766_v3 = vmul.f32 %v11765_v9, %v11760_v50  ;;  %v11767_v11 = vmul.f32 %v11765_v9, %v11761_v56 }
0x36ff   : > { %v11772_v52 = vadd.f32 %v11771_v2, %v11766_v3  ;;  %v11773_v12 = vadd.f32 %v11771_v2, %v11767_v11  ;;  %v12109_v2 = vld [vmem:[#allocation79] sm:$0x3] }
0x3700   : > { %v12144_v3 = vrot.slane %v12109_v2, %v19215_v62 }
0x3701   : > { %v11774_v13 = vmax.f32 %v11772_v52, 0.0  ;;  %v11775_v23 = vmax.f32 %v11773_v12, 0.0  ;;  %v12149_v12 = vrot.slane %v12109_v2, %v19218_v1 }
0x3703   : > { %v11776_v18 = vpack.c.bf16 %v11775_v23, %v11774_v13 }
0x3705   : > { %14740 = vmatmul.mubr.bf16.vlgmr.msra.gmra.mrb[56].mxu0 %v11776_v18  ;;  %v11778_v44 = vshrl.u32 %v11776_v18, 16  ;;  %v11781_v8 = vshll.u32 %v11776_v18, 16 }
0x3706   : > { %14744 = vmatpush3.bf16.msra.mxu0 %v16237_v14  ;;  %14759 = vmatprep.mubr.msk.bf16.mxu0 %vm17975_vm2, %v17973_v0 }
0x3707   : > { %14745 = vmatprep.subr.bf16.mxu0 %v17973_v0  ;;  %v11780_v21 = vrot.slane %v11778_v44, 7  ;;  %v11786_v38 = vrot.slane %v11781_v8, 1 }
0x3709   : > { %v11783_v51 = vor.u32 %v11781_v8, %v11780_v21  ;;  %v11787_v5 = vor.u32 %v11786_v38, %v11778_v44 }
0x370a   : > { %14746 = vmatpush3.bf16.msra.mxu0 %v16238_v35 }
0x370b   : > { %14747 = vmatprep.subr.bf16.mxu0 %v17973_v0  ;;  %v11785_v60 = vsel %vm19171_vm7, 0, %v11783_v51  ;;  %v11789_v6 = vsel %vm19179_vm8, %v11787_v5, 0 }
0x370e   : > { %14748 = vmatpush3.bf16.msra.mxu0 %v16239_v33 }
0x370f   : > { %14749 = vmatprep.subr.bf16.mxu0 %v17973_v0 }
0x3712   : > { %14750 = vmatpush3.bf16.msra.mxu0 %v16240_v55 }
0x3713   : > { %14751 = vmatprep.subr.bf16.mxu0 %v17973_v0 }
0x3716   : > { %14752 = vmatpush3.bf16.msra.mxu0 %v16241_v54 }
0x3717   : > { %14753 = vmatprep.subr.bf16.mxu0 %v17973_v0 }
0x371a   : > { %14754 = vmatpush3.bf16.msra.mxu0 %v16242_v61 }
0x371b   : > { %14755 = vmatprep.subr.bf16.mxu0 %v17973_v0 }
0x371e   : > { %14756 = vmatpush3.bf16.msra.mxu0 %v16243_v4 }
0x371f   : > { %14757 = vmatprep.subr.bf16.mxu0 %v17973_v0 }
0x3722   : > { %14758 = vmatpush3.bf16.msra.mxu0 %v16244_v15 }
0x3723   : > { %14763 = vmatprep.subr.bf16.mxu0 %v17973_v0 }
0x3725   : > { %14760 = vmatmul.mubr.bf16.vlgmr.msra.gmra.mrb[56].mxu0 %v11785_v60 }
0x3726   : > { %14764 = vmatpush3.bf16.msra.mxu0 %v16245_v36  ;;  %14779 = vmatprep.mubr.msk.bf16.mxu0 %vm17975_vm2, %v17973_v0 }
0x3727   : > { %14765 = vmatprep.subr.bf16.mxu0 %v17973_v0 }
0x372a   : > { %14766 = vmatpush3.bf16.msra.mxu0 %v16246_v58 }
0x372b   : > { %14767 = vmatprep.subr.bf16.mxu0 %v17973_v0 }
0x372e   : > { %14768 = vmatpush3.bf16.msra.mxu0 %v16247_v19 }
0x372f   : > { %14769 = vmatprep.subr.bf16.mxu0 %v17973_v0 }
0x3732   : > { %14770 = vmatpush3.bf16.msra.mxu0 %v16248_v59 }
0x3733   : > { %14771 = vmatprep.subr.bf16.mxu0 %v17973_v0 }
0x3736   : > { %14772 = vmatpush3.bf16.msra.mxu0 %v16249_v22 }
0x3737   : > { %14773 = vmatprep.subr.bf16.mxu0 %v17973_v0 }
0x373a   : > { %14774 = vmatpush3.bf16.msra.mxu0 %v16250_v10 }
0x373b   : > { %14775 = vmatprep.subr.bf16.mxu0 %v17973_v0 }
0x373e   : > { %14776 = vmatpush3.bf16.msra.mxu0 %v16251_v63 }
0x373f   : > { %14777 = vmatprep.subr.bf16.mxu0 %v17973_v0 }
0x3742   : > { %14778 = vmatpush3.bf16.msra.mxu0 %v16252_v7 }
0x3745   : > { %14780 = vmatmul.mubr.bf16.vlgmr.msra.gmra.mrb[56].mxu0 %v11789_v6 }
0x3818   : > { %v12100_v24 = vpop.f32.mrb[56].mxu0 }
0x3819   : > { %12110 = vadd.xlane.f32.xlu0 %v12100_v24  ;;  %v14781_v25 = vpop.f32.mrb[57].mxu0 }
0x381a   : > { %v12103_v47 = vpop.f32.mrb[58].mxu0 }
0x381b   : > { %12112 = vadd.xlane.f32.xlu1 %v12103_v47  ;;  %v14782_v20 = vpop.f32.mrb[59].mxu0 }
0x38a6   : > { %v12111_v26 = vpop.xlane.xlu0 %12110 }
0x38a8   : > { %v12113_v28 = vpop.xlane.xlu1 %12112 }
0x38a9   : > { %v12114_v27 = vadd.f32 %v12113_v28, %v12111_v26 }
0x38ab   : > { %v12115_v29 = vrot.slane %v12114_v27, 4 }
0x38ad   : > { %v12116_v30 = vadd.f32 %v12115_v29, %v12114_v27 }
0x38af   : > { %v12117_v31 = vrot.slane %v12116_v30, 2 }
0x38b1   : > { %v12118_v32 = vadd.f32 %v12117_v31, %v12116_v30 }
0x38b3   : > { %v12119_v0 = vrot.slane %v12118_v32, 1 }
0x38b5   : > { %v12120_v34 = vadd.f32 %v12119_v0, %v12118_v32 }
0x38b7   : > { %v12121_v48 = vmul.f32 0.00048828125, %v12120_v34 }
0x38b9   : > { %v12123_v37 = vsub.f32 %v12103_v47, %v12121_v48  ;;  %v12122_v16 = vsub.f32 %v12100_v24, %v12121_v48 }
0x38bb   : > { %v12125_v39 = vmul.f32 %v12123_v37, %v12123_v37  ;;  %v12124_v40 = vmul.f32 %v12122_v16, %v12122_v16 }
0x38bd   : > { %12128 = vadd.xlane.f32.xlu1 %v12125_v39  ;;  %12126 = vadd.xlane.f32.xlu0 %v12124_v40 }
0x394a   : > { %v12129_v42 = vpop.xlane.xlu1 %12128  ;;  %v12127_v53 = vpop.xlane.xlu0 %12126 }
0x394b   : > { %v12130_v43 = vadd.f32 %v12129_v42, %v12127_v53 }
0x394d   : > { %v12131_v45 = vrot.slane %v12130_v43, 4 }
0x394f   : > { %v12132_v57 = vadd.f32 %v12131_v45, %v12130_v43 }
0x3951   : > { %v12133_v17 = vrot.slane %v12132_v57, 2 }
0x3953   : > { %v12134_v46 = vadd.f32 %v12133_v17, %v12132_v57 }
0x3955   : > { %v12135_v9 = vrot.slane %v12134_v46, 1 }
0x3957   : > { %v12136_v49 = vadd.f32 %v12135_v9, %v12134_v46 }
0x3959   : > { %v12137_v50 = vmul.f32 0.00048828125, %v12136_v49 }
0x395b   : > { %v12138_v56 = vadd.f32 1e-05, %v12137_v50 }
0x395d   : > { %16303 = vrsqrt.f32 %v12138_v56 }
0x3967   : > { %v16304_v11 = vpop.eup %16303 }
0x3968   : > { %v12140_v52 = vmul.f32 %v16304_v11, %v12123_v37 }
0x396a   : > { %v12145_v13 = vmul.f32 %v12144_v3, %v12140_v52 }
0x396c   : > { %v12150_v23 = vadd.f32 %v12149_v12, %v12145_v13 }
0x396e   : > { %v12151_v14 = vadd.f32 %v12150_v23, %v20066_v41 }
0x3970   : > { %v12152_v18 = vmax.f32 %v12151_v14, 0.0 }
0x3972   : > { %12153 = vst [vmem:[%s2445_s2 - $0x7] sm:$0x80] %v12152_v18 }
0x3973   : > { %17696 = shalt.err (!%p17693_p2)
}
0x3974   : > { %s17697_s3 = scalar_lea.hbm %s20131_s1, 16  ;;  %s17701_s18 = scalar_lea.hbm %s18282_s21, 128 }
0x3975   : > { %p17698_p3 = scmp.ne.s32.totalorder %s20131_s1, %s17697_s3  ;;  %p17702_p8 = scmp.lt.u32.totalorder %s20131_s1, %s18282_s21 }
0x3976   : > { %p17703_p11 = scmp.lt.u32.totalorder %s17701_s18, %s17697_s3  ;;  %p17705_p10 = scmp.lt.u32.totalorder %s17697_s3, %s20131_s1 }
0x3977   : > { %p17699_p4 = pnand %p17698_p3, %p20389_p12 }
0x3978   : > { %p17704_p9 = por %p17703_p11, %p17702_p8 }
0x3979   : > { %p17700_p7 = pneg %p17699_p4 }
0x397a   : > { %p17706_p13 = por %p17705_p10, %p17704_p9 }
0x397c   : > { %p17707_p0 = pnand %p17706_p13, %p17700_p7 }
0x397e   : > { %17710 = shalt.err (!%p17707_p0)
}
0x397f   : > { %15169 = dma.vmem_to_hbm [thread:$0]  (%p20389_p12), %s20133_s6, 16, %s20131_s1, %s12155_s5  }
0x3980 PF: > { %p15281_p1 = scmp.ge.s32.totalorder %s17853_s26, 2  ;;  %s12179_s4 = sand.u32 1, %s17841_s0  }
0x3981   : > { %p20390_p5 = scmp.ne.s32.totalorder %s20328_s16, 0  ;;  %s12180_s7 = scalar_lea.sflag [#allocation4], %s12179_s4 }
0x3983   : > { %p15172_p6 = pnand %p15281_p1, %p20390_p5 }
0x3985   : > { %17836 = dma.done.wait (!%p15172_p6), %s12180_s7, 16  }
0x3986   : > { %17838 = vsyncadd (!%p15172_p6), %s12180_s7, 4294967280  ;;  %s20391_s26 = sld [smem:[#allocation164_spill]]  ;;  %s20392_s2 = sld [smem:[#allocation163_spill]] }
0x3987   : > { %s20393_s23 = sld [smem:[#allocation165_spill]]  ;;  %s20394_s0 = smov %s17845_s22 }
0x398c   : > { %p156_p2 = scmp.ge.s32.totalorder %s20391_s26, 10   ;;  %s20395_s22 = smov %s20392_s2 }
0x398e   :  { %158 = sbr.rel (!%p156_p2) target bundleno = 142 (0x8e), region = 607 }
0x3995   :  { %12184 = vsyncpa [#allocation3], 1 }
0x3996   :  { %12186 = vsyncpa [#allocation3 + $0x1], 1 }
0x3997   :  { %12187 = vsyncpa [#allocation6], 1 }
0x3998   :  { %12188 = vsyncpa [#allocation9], 1 }
0x3999   :  { %12189 = vsyncpa [#allocation12], 1 }
0x399a   :  { %12190 = vsyncpa [#allocation15], 1 }
0x399b   :  { %12191 = vsyncpa [#allocation18], 1 }
0x399c   :  { %12192 = vsyncpa [#allocation21], 1 }
0x399d   :  { %12193 = vsyncpa [#allocation24], 1 }
0x399e   :  { %12194 = vsyncpa [#allocation27], 1 }
0x399f   :  { %12195 = vsyncpa [#allocation30], 1 }
0x39a0   :  { %12196 = vsyncpa [#allocation33], 1 }
0x39a1   :  { %12197 = vsyncpa [#allocation36], 1 }
0x39a2   :  { %12198 = vsyncpa [#allocation39], 1 }
0x39a3   :  { %12199 = vsyncpa [#allocation42], 1 }
0x39a4   :  { %12200 = vsyncpa [#allocation45], 1 }
0x39a5   :  { %12201 = vsyncpa [#allocation48], 1 }
0x39a6   :  { %12202 = vsyncpa [#allocation51], 1 }
0x39a7   :  { %12203 = vsyncpa [#allocation54], 1 }
0x39a8   :  { %12204 = vsyncpa [#allocation57], 1 }
0x39a9   :  { %12205 = vsyncpa [#allocation60], 1 }
0x39aa   :  { %12206 = vsyncpa [#allocation63], 1 }
0x39ab   :  { %12207 = vsyncpa [#allocation66], 1 }
0x39ac   :  { %12208 = vsyncpa [#allocation69], 1 }
0x39ad   :  { %12209 = vsyncpa [#allocation72], 1 }
0x39ae   :  { %12210 = vsyncpa [#allocation75], 1 }
0x39af   :  { %12211 = vsyncpa [#allocation78], 1 }
0x39b0   :  { %12212 = vsyncpa [#allocation81], 1 }
0x39b1   :  { %12213 = vsyncpa [#allocation4], 1 }
0x39b2   :  { %12215 = vsyncpa [#allocation4 + $0x1], 1 }

</bundles_post_ra>
